<compile_context>
chip_gen: v7x
topology: tpu7x:2x2x1
jax: 0.10.0
libtpu: 0.0.40
codegen_flags: <defaults>
</compile_context>

<pallas_src>
import functools

import jax
import jax.numpy as jnp
from jax import lax
from jax.experimental import pallas as pl
from jax.experimental.pallas import tpu as pltpu

LRELU_SLOPE = 0.2
BN_EPS = 1e-5
TR_MAX = 32            # output-row band per grid step (chosen to divide OH)


@functools.lru_cache(maxsize=None)
def _vmem_limit():
    cap = 128 * 1024 * 1024
    try:
        cap = int(pltpu.get_tpu_info().vmem_capacity_bytes)
    except Exception:
        pass
    return int(min(cap // 2, 64 * 1024 * 1024))


def _compiler_params(sems):
    return pltpu.CompilerParams(dimension_semantics=sems,
                                vmem_limit_bytes=_vmem_limit())


# --------------------------------------------------------------------- kernels
def _conv_s2d_kernel(main_ref, extra_ref, w_ref, y_ref, *stat_refs, tr, ow, act):
    """One row-band of a 4x4/stride-2/pad-1 conv on the padded space-to-depth input.

    main_ref : (1, TR, W2, 4C)  s2d rows [TR*r, TR*r + TR)
    extra_ref: (1, 1,  W2, 4C)  s2d row  TR*(r+1)
    w_ref    : (4, 4C, OC)      per-tap weights, tap = 2*di + dj
    y_ref    : (TR*OW, OC)      raw conv output (bf16)
    stat_refs: optional (1,1,OC) channel sum / sum-of-squares (f32)
    """
    band = jnp.concatenate([main_ref[0], extra_ref[0]], axis=0)   # (TR+1, W2, 4C)
    kc = w_ref.shape[1]
    oc = w_ref.shape[2]
    acc = jnp.zeros((tr * ow, oc), jnp.float32)
    for t, (di, dj) in enumerate(((0, 0), (0, 1), (1, 0), (1, 1))):
        tap = band[di:di + tr, dj:dj + ow, :].reshape(tr * ow, kc)
        acc = acc + jnp.dot(tap, w_ref[t], preferred_element_type=jnp.float32)
    if act == "lrelu":
        acc = jnp.where(acc > 0, acc, LRELU_SLOPE * acc)
    y_ref[...] = acc.astype(y_ref.dtype)
    if stat_refs:
        s_ref, ss_ref = stat_refs
        s_ref[...] = jnp.sum(acc, axis=0, keepdims=True).reshape(1, 1, -1)
        ss_ref[...] = jnp.sum(acc * acc, axis=0, keepdims=True).reshape(1, 1, -1)


def _head_kernel(p_ref, scale_ref, shift_ref, w_ref, o_ref):
    """Final 4x4 valid conv as a plain matmul; the previous layer's BN scale/shift
    + LeakyReLU and the final sigmoid are fused in."""
    p = p_ref[...].astype(jnp.float32) * scale_ref[...] + shift_ref[...]
    p = jnp.where(p > 0, p, LRELU_SLOPE * p).astype(jnp.bfloat16)
    acc = jnp.dot(p, w_ref[...], preferred_element_type=jnp.float32)
    o_ref[...] = jax.nn.sigmoid(acc)


# -------------------------------------------------------------------- wrappers
def _pick_tr(oh):
    tr = min(oh, TR_MAX)
    while oh % tr:
        tr -= 1
    return tr


def conv_s2d(s, w_taps, *, act=None, with_stats=False):
    """s: (N, H2, W2, 4C) padded space-to-depth input, w_taps: (4, 4C, OC).

    Returns y (N*OH*OW, OC) bf16 and, if with_stats, per-band channel sum /
    sum-of-squares of shape (N*G, 1, OC) f32 (reduced outside the kernel)."""
    n, h2, w2, c4 = s.shape
    oh, ow = h2 - 1, w2 - 1
    oc = w_taps.shape[2]
    tr = _pick_tr(oh)
    g = oh // tr
    m = n * oh * ow

    kernel = functools.partial(_conv_s2d_kernel, tr=tr, ow=ow, act=act)

    y_shape = jax.ShapeDtypeStruct((m, oc), jnp.bfloat16)
    y_spec = pl.BlockSpec((tr * ow, oc), lambda b, r: (b * g + r, 0))
    if with_stats:
        stat_shape = jax.ShapeDtypeStruct((n * g, 1, oc), jnp.float32)
        stat_spec = pl.BlockSpec((1, 1, oc), lambda b, r: (b * g + r, 0, 0))
        out_shape = (y_shape, stat_shape, stat_shape)
        out_specs = (y_spec, stat_spec, stat_spec)
    else:
        out_shape = y_shape
        out_specs = y_spec

    # TODO(synk): for very large featureSize on v7x (64 MiB VMEM) add a K grid
    #             axis (f32 accumulator scratch + pl.when init/finalize) and
    #             single-buffer the constant weight block (pl.Buffered(1));
    #             optionally pad small OC to 128 for lane-dense stores on v5e.
    return pl.pallas_call(
        kernel,
        out_shape=out_shape,
        grid=(n, g),
        in_specs=[
            pl.BlockSpec((1, tr, w2, c4), lambda b, r: (b, r, 0, 0)),
            pl.BlockSpec((1, 1, w2, c4), lambda b, r: (b, (r + 1) * tr, 0, 0)),
            pl.BlockSpec(w_taps.shape, lambda b, r: (0, 0, 0)),
        ],
        out_specs=out_specs,
        compiler_params=_compiler_params(("parallel", "parallel")),
    )(s, s, w_taps)


def head_matmul(p, scale_t, shift_t, w_mat):
    """p: (N, K) bf16 flattened 4x4 feature map, w_mat: (K, OUT) bf16."""
    n, k = p.shape
    oc = w_mat.shape[1]
    # TODO(synk): tile over rows (and OC) for very large batch; one block is fine here.
    return pl.pallas_call(
        _head_kernel,
        out_shape=jax.ShapeDtypeStruct((n, oc), jnp.float32),
        grid=(1,),
        in_specs=[
            pl.BlockSpec((n, k), lambda i: (0, 0)),
            pl.BlockSpec((1, k), lambda i: (0, 0)),
            pl.BlockSpec((1, k), lambda i: (0, 0)),
            pl.BlockSpec((k, oc), lambda i: (0, 0)),
        ],
        out_specs=pl.BlockSpec((n, oc), lambda i: (0, 0)),
        compiler_params=_compiler_params(("arbitrary",)),
    )(p, scale_t, shift_t, w_mat)


# ------------------------------------------------------------------------ glue
def pad_s2d(x):
    """(N, H, W, C) -> pad 1 -> 2x2 space-to-depth -> (N, H/2+1, W/2+1, 4C)."""
    n, h, w, c = x.shape
    xp = jnp.pad(x, ((0, 0), (1, 1), (1, 1), (0, 0)))
    h2, w2 = (h + 2) // 2, (w + 2) // 2
    s = xp.reshape(n, h2, 2, w2, 2, c).transpose(0, 1, 3, 2, 4, 5)
    # TODO(synk): fold this relayout (and the BN affine applied before it) into
    #             the producing conv kernel's output path to drop one more
    #             activation read+write per layer.
    return s.reshape(n, h2, w2, 4 * c)


def bn_scale_shift(psum, psumsq, m, gamma, beta):
    # E[x^2]-E[x]^2 in f32: slightly weaker than two-pass, but post-conv
    # activations are ~zero-mean; the clamp guards the rsqrt.
    mean = jnp.sum(psum, axis=(0, 1)) / m
    var = jnp.maximum(jnp.sum(psumsq, axis=(0, 1)) / m - mean * mean, 0.0)
    scale = gamma * lax.rsqrt(var + BN_EPS)
    shift = beta - mean * scale
    return scale, shift


def w_to_s2d_taps(w):
    """PyTorch Conv2d weight (OC, IC, 4, 4) -> (4, 4*IC, OC) tap weights matching
    the (ph, pw, c) space-to-depth channel order; tap index = 2*di + dj."""
    oc, ic, kh, kw = w.shape
    w6 = w.reshape(oc, ic, 2, 2, 2, 2)             # (oc, c, di, ph, dj, pw)
    wt = jnp.transpose(w6, (2, 4, 3, 5, 1, 0))     # (di, dj, ph, pw, c, oc)
    return wt.reshape(4, 4 * ic, oc)


def w_to_head_mat(w):
    """(OC, IC, KH, KW) -> (KH*KW*IC, OC), matching the (h, w, c) patch order."""
    oc, ic, kh, kw = w.shape
    return jnp.transpose(w, (2, 3, 1, 0)).reshape(kh * kw * ic, oc)


def prepare_params(raw):
    """One-time weight prep (hoisted out of the forward): tap layout + bf16."""
    p = {}
    for l in (1, 2, 3, 4):
        p[f"w{l}t"] = w_to_s2d_taps(raw[f"w{l}"]).astype(jnp.bfloat16)
    p["w5m"] = w_to_head_mat(raw["w5"]).astype(jnp.bfloat16)
    for l in (2, 3, 4):
        p[f"g{l}"] = raw[f"g{l}"]
        p[f"b{l}"] = raw[f"b{l}"]
    return p


# --------------------------------------------------------------------- forward
def discriminator2d_forward(x_nchw, params):
    n = x_nchw.shape[0]
    # single layout change at the boundary: NCHW -> NHWC, bf16 activations.
    x = jnp.transpose(x_nchw, (0, 2, 3, 1)).astype(jnp.bfloat16)
    s = pad_s2d(x)

    # conv1 + LeakyReLU (no BN), activation fused in-kernel.
    oh, ow = s.shape[1] - 1, s.shape[2] - 1
    y = conv_s2d(s, params["w1t"], act="lrelu")
    s = pad_s2d(y.reshape(n, oh, ow, -1))

    # conv2..conv4: conv + fused BN statistics; BN affine + LeakyReLU folded into
    # the next layer's pad+space-to-depth relayout (or into the head for conv4).
    scale = shift = None
    for l in (2, 3, 4):
        oh, ow = s.shape[1] - 1, s.shape[2] - 1
        y, psum, psumsq = conv_s2d(s, params[f"w{l}t"], act=None, with_stats=True)
        scale, shift = bn_scale_shift(psum, psumsq, n * oh * ow,
                                      params[f"g{l}"], params[f"b{l}"])
        if l < 4:
            a = y.reshape(n, oh, ow, -1).astype(jnp.float32) * scale + shift
            a = jnp.where(a > 0, a, LRELU_SLOPE * a).astype(jnp.bfloat16)
            s = pad_s2d(a)

    # conv5 (4x4, stride 1, valid) + Sigmoid: the whole 4x4 map is the patch, so
    # it is a plain matmul; BN4 scale/shift + LeakyReLU are folded into the kernel.
    oc4 = y.shape[1]
    p5 = y.reshape(n, oh * ow * oc4)                       # (h, w, c) patch order
    scale_t = jnp.tile(scale, oh * ow).reshape(1, -1).astype(jnp.float32)
    shift_t = jnp.tile(shift, oh * ow).reshape(1, -1).astype(jnp.float32)
    out = head_matmul(p5, scale_t, shift_t, params["w5m"])  # (N, outSize) f32
    return out.reshape(n, -1, 1, 1)


# ------------------------------------------------------ reference (f32, NCHW)
def _ref_conv(x, w, stride, pad):
    return lax.conv_general_dilated(
        x, w, (stride, stride), [(pad, pad), (pad, pad)],
        dimension_numbers=("NCHW", "OIHW", "NCHW"))


def reference_forward(x, raw):
    def lrelu(v):
        return jnp.where(v > 0, v, LRELU_SLOPE * v)

    def bn(v, g, b):
        mean = v.mean(axis=(0, 2, 3), keepdims=True)
        var = ((v - mean) ** 2).mean(axis=(0, 2, 3), keepdims=True)
        return ((v - mean) * lax.rsqrt(var + BN_EPS) * g.reshape(1, -1, 1, 1)
                + b.reshape(1, -1, 1, 1))

    v = lrelu(_ref_conv(x, raw["w1"], 2, 1))
    v = lrelu(bn(_ref_conv(v, raw["w2"], 2, 1), raw["g2"], raw["b2"]))
    v = lrelu(bn(_ref_conv(v, raw["w3"], 2, 1), raw["g3"], raw["b3"]))
    v = lrelu(bn(_ref_conv(v, raw["w4"], 2, 1), raw["g4"], raw["b4"]))
    return jax.nn.sigmoid(_ref_conv(v, raw["w5"], 1, 0))


# ---------------------------------------------------------------------- params
def init_params(key, channel_size, feature_size, out_size):
    f = feature_size
    keys = jax.random.split(key, 5)

    def conv_w(k, oc, ic):
        return 0.02 * jax.random.normal(k, (oc, ic, 4, 4), jnp.float32)

    return {
        "w1": conv_w(keys[0], f, channel_size),
        "w2": conv_w(keys[1], 2 * f, f),
        "g2": jnp.ones((2 * f,), jnp.float32), "b2": jnp.zeros((2 * f,), jnp.float32),
        "w3": conv_w(keys[2], 4 * f, 2 * f),
        "g3": jnp.ones((4 * f,), jnp.float32), "b3": jnp.zeros((4 * f,), jnp.float32),
        "w4": conv_w(keys[3], 8 * f, 4 * f),
        "g4": jnp.ones((8 * f,), jnp.float32), "b4": jnp.zeros((8 * f,), jnp.float32),
        "w5": conv_w(keys[4], out_size, 8 * f),
    }


# ------------------------------------------------------------------------ main
if __name__ == "__main__":
    # Architecturally valid minimum: 4 stride-2 convs + final 4x4 valid conv -> H=W=64.
    N, CH, F, OUT, H = 2, 3, 8, 1, 64
    key = jax.random.PRNGKey(0)
    kx, kp = jax.random.split(key)
    x = jax.random.normal(kx, (N, CH, H, H), jnp.float32)
    raw = init_params(kp, CH, F, OUT)
    params = prepare_params(raw)

    fwd = jax.jit(discriminator2d_forward)
    out = jax.block_until_ready(fwd(x, params))
    assert out.shape == (N, OUT, 1, 1), out.shape
    assert bool(jnp.all(jnp.isfinite(out)))

    ref = jax.block_until_ready(reference_forward(x, raw))
    # bf16 activations/weights (f32 accumulation + f32 BN math) -> loose tolerance
    # on the sigmoid output; a wrong implementation would be off by >> 0.1.
    err = float(jnp.max(jnp.abs(out - ref)))
    assert jnp.allclose(out, ref, rtol=3e-2, atol=3e-2), err

    print("KERNEL_OK")
</pallas_src>

<mosaic_0001>
module attributes {stable_mosaic.version = 11 : i64} {
  func.func @_conv_s2d_kernel(%arg0: i32, %arg1: i32, %arg2: memref<1x32x33x12xbf16, #tpu.memory_space<vmem>>, %arg3: memref<1x1x33x12xbf16, #tpu.memory_space<vmem>>, %arg4: memref<4x12x8xbf16, #tpu.memory_space<vmem>>, %arg5: memref<1024x8xbf16, #tpu.memory_space<vmem>>) attributes {dimension_semantics = [#tpu.dimension_semantics<parallel>, #tpu.dimension_semantics<parallel>], iteration_bounds = array<i64: 2, 1>, scalar_prefetch = 0 : i64, scratch_operands = 0 : i64, tpu.core_type = #tpu.core_type<tc>, window_params = [{transform_indices = @transform_0, window_bounds = array<i64: 1, 32, 33, 12>}, {transform_indices = @transform_1, window_bounds = array<i64: 1, 1, 33, 12>}, {pipeline_mode = #tpu.pipeline_mode<synchronous>, transform_indices = @transform_2, window_bounds = array<i64: 4, 12, 8>}, {transform_indices = @transform_3, window_bounds = array<i64: 1024, 8>}]} {
    %c0 = arith.constant 0 : index
    %c0_0 = arith.constant 0 : index
    %c0_1 = arith.constant 0 : index
    %c0_2 = arith.constant 0 : index
    %0 = vector.load %arg2[%c0, %c0_0, %c0_1, %c0_2] : memref<1x32x33x12xbf16, #tpu.memory_space<vmem>>, vector<1x32x33x12xbf16>
    %1 = vector.shape_cast %0 : vector<1x32x33x12xbf16> to vector<32x33x12xbf16>
    %c0_3 = arith.constant 0 : index
    %c0_4 = arith.constant 0 : index
    %c0_5 = arith.constant 0 : index
    %c0_6 = arith.constant 0 : index
    %2 = vector.load %arg3[%c0_3, %c0_4, %c0_5, %c0_6] : memref<1x1x33x12xbf16, #tpu.memory_space<vmem>>, vector<1x1x33x12xbf16>
    %3 = vector.shape_cast %2 : vector<1x1x33x12xbf16> to vector<1x33x12xbf16>
    %4 = tpu.concatenate %1, %3 in 0 : vector<32x33x12xbf16>, vector<1x33x12xbf16> -> vector<33x33x12xbf16>
    %cst = arith.constant 0.000000e+00 : f32
    %5 = vector.broadcast %cst : f32 to vector<1024x8xf32>
    %6 = vector.extract_strided_slice %4 {offsets = [0, 0, 0], sizes = [32, 32, 12], strides = [1, 1, 1]} : vector<33x33x12xbf16> to vector<32x32x12xbf16>
    %7 = vector.shape_cast %6 : vector<32x32x12xbf16> to vector<1024x12xbf16>
    %c0_7 = arith.constant 0 : index
    %c0_8 = arith.constant 0 : index
    %c0_9 = arith.constant 0 : index
    %8 = vector.load %arg4[%c0_7, %c0_8, %c0_9] : memref<4x12x8xbf16, #tpu.memory_space<vmem>>, vector<1x12x8xbf16>
    %9 = vector.shape_cast %8 : vector<1x12x8xbf16> to vector<12x8xbf16>
    %cst_10 = arith.constant dense<0.000000e+00> : vector<1024x8xf32>
    %10 = tpu.matmul %7, %9, %cst_10 {dimension_numbers = #tpu.dot_dimension_numbers<[1], [0], [0], [1], [0, 0, 1, 1], [], []>} : vector<1024x12xbf16>, vector<12x8xbf16>, vector<1024x8xf32> -> vector<1024x8xf32>
    %11 = arith.addf %5, %10 : vector<1024x8xf32>
    %12 = vector.extract_strided_slice %4 {offsets = [0, 1, 0], sizes = [32, 32, 12], strides = [1, 1, 1]} : vector<33x33x12xbf16> to vector<32x32x12xbf16>
    %13 = vector.shape_cast %12 : vector<32x32x12xbf16> to vector<1024x12xbf16>
    %c1 = arith.constant 1 : index
    %c0_11 = arith.constant 0 : index
    %c0_12 = arith.constant 0 : index
    %14 = vector.load %arg4[%c1, %c0_11, %c0_12] : memref<4x12x8xbf16, #tpu.memory_space<vmem>>, vector<1x12x8xbf16>
    %15 = vector.shape_cast %14 : vector<1x12x8xbf16> to vector<12x8xbf16>
    %cst_13 = arith.constant dense<0.000000e+00> : vector<1024x8xf32>
    %16 = tpu.matmul %13, %15, %cst_13 {dimension_numbers = #tpu.dot_dimension_numbers<[1], [0], [0], [1], [0, 0, 1, 1], [], []>} : vector<1024x12xbf16>, vector<12x8xbf16>, vector<1024x8xf32> -> vector<1024x8xf32>
    %17 = arith.addf %11, %16 : vector<1024x8xf32>
    %18 = vector.extract_strided_slice %4 {offsets = [1, 0, 0], sizes = [32, 32, 12], strides = [1, 1, 1]} : vector<33x33x12xbf16> to vector<32x32x12xbf16>
    %19 = vector.shape_cast %18 : vector<32x32x12xbf16> to vector<1024x12xbf16>
    %c2 = arith.constant 2 : index
    %c0_14 = arith.constant 0 : index
    %c0_15 = arith.constant 0 : index
    %20 = vector.load %arg4[%c2, %c0_14, %c0_15] : memref<4x12x8xbf16, #tpu.memory_space<vmem>>, vector<1x12x8xbf16>
    %21 = vector.shape_cast %20 : vector<1x12x8xbf16> to vector<12x8xbf16>
    %cst_16 = arith.constant dense<0.000000e+00> : vector<1024x8xf32>
    %22 = tpu.matmul %19, %21, %cst_16 {dimension_numbers = #tpu.dot_dimension_numbers<[1], [0], [0], [1], [0, 0, 1, 1], [], []>} : vector<1024x12xbf16>, vector<12x8xbf16>, vector<1024x8xf32> -> vector<1024x8xf32>
    %23 = arith.addf %17, %22 : vector<1024x8xf32>
    %24 = vector.extract_strided_slice %4 {offsets = [1, 1, 0], sizes = [32, 32, 12], strides = [1, 1, 1]} : vector<33x33x12xbf16> to vector<32x32x12xbf16>
    %25 = vector.shape_cast %24 : vector<32x32x12xbf16> to vector<1024x12xbf16>
    %c3 = arith.constant 3 : index
    %c0_17 = arith.constant 0 : index
    %c0_18 = arith.constant 0 : index
    %26 = vector.load %arg4[%c3, %c0_17, %c0_18] : memref<4x12x8xbf16, #tpu.memory_space<vmem>>, vector<1x12x8xbf16>
    %27 = vector.shape_cast %26 : vector<1x12x8xbf16> to vector<12x8xbf16>
    %cst_19 = arith.constant dense<0.000000e+00> : vector<1024x8xf32>
    %28 = tpu.matmul %25, %27, %cst_19 {dimension_numbers = #tpu.dot_dimension_numbers<[1], [0], [0], [1], [0, 0, 1, 1], [], []>} : vector<1024x12xbf16>, vector<12x8xbf16>, vector<1024x8xf32> -> vector<1024x8xf32>
    %29 = arith.addf %23, %28 : vector<1024x8xf32>
    %cst_20 = arith.constant 0.000000e+00 : f32
    %30 = vector.broadcast %cst_20 : f32 to vector<1024x8xf32>
    %31 = arith.cmpf ogt, %29, %30 : vector<1024x8xf32>
    %cst_21 = arith.constant 2.000000e-01 : f32
    %32 = vector.broadcast %cst_21 : f32 to vector<1024x8xf32>
    %33 = arith.mulf %32, %29 : vector<1024x8xf32>
    %34 = arith.select %31, %29, %33 : vector<1024x8xi1>, vector<1024x8xf32>
    %35 = arith.truncf %34 : vector<1024x8xf32> to vector<1024x8xbf16>
    %c0_22 = arith.constant 0 : index
    %c0_23 = arith.constant 0 : index
    %36 = vector.load %arg5[%c0_22, %c0_23] : memref<1024x8xbf16, #tpu.memory_space<vmem>>, vector<1024x8xbf16>
    tpu.vector_store %arg5[%c0_22, %c0_23], %35 {strides = array<i32>} : memref<1024x8xbf16, #tpu.memory_space<vmem>>, vector<1024x8xbf16>,
    return
  }
  func.func @transform_0(%arg0: i32, %arg1: i32) -> (i32, i32, i32, i32) {
    %c0_i32 = arith.constant 0 : i32
    %c0_i32_0 = arith.constant 0 : i32
    %c0_i32_1 = arith.constant 0 : i32
    return %arg0, %arg1, %c0_i32, %c0_i32_0 : i32, i32, i32, i32
  }
  func.func @transform_1(%arg0: i32, %arg1: i32) -> (i32, i32, i32, i32) {
    %c1_i32 = arith.constant 1 : i32
    %0 = arith.addi %arg1, %c1_i32 : i32
    %c32_i32 = arith.constant 32 : i32
    %1 = arith.muli %0, %c32_i32 : i32
    %c0_i32 = arith.constant 0 : i32
    %c0_i32_0 = arith.constant 0 : i32
    %c0_i32_1 = arith.constant 0 : i32
    return %arg0, %1, %c0_i32, %c0_i32_0 : i32, i32, i32, i32
  }
  func.func @transform_2(%arg0: i32, %arg1: i32) -> (i32, i32, i32) {
    %c0_i32 = arith.constant 0 : i32
    %c0_i32_0 = arith.constant 0 : i32
    %c0_i32_1 = arith.constant 0 : i32
    %c0_i32_2 = arith.constant 0 : i32
    return %c0_i32, %c0_i32_0, %c0_i32_1 : i32, i32, i32
  }
  func.func @transform_3(%arg0: i32, %arg1: i32) -> (i32, i32) {
    %c1_i32 = arith.constant 1 : i32
    %0 = arith.muli %arg0, %c1_i32 : i32
    %1 = arith.addi %0, %arg1 : i32
    %c0_i32 = arith.constant 0 : i32
    %c0_i32_0 = arith.constant 0 : i32
    return %1, %c0_i32 : i32, i32
  }
}

module attributes {stable_mosaic.version = 11 : i64} {
  func.func @_conv_s2d_kernel(%arg0: i32, %arg1: i32, %arg2: memref<1x16x17x32xbf16, #tpu.memory_space<vmem>>, %arg3: memref<1x1x17x32xbf16, #tpu.memory_space<vmem>>, %arg4: memref<4x32x16xbf16, #tpu.memory_space<vmem>>, %arg5: memref<256x16xbf16, #tpu.memory_space<vmem>>, %arg6: memref<1x1x16xf32, #tpu.memory_space<vmem>>, %arg7: memref<1x1x16xf32, #tpu.memory_space<vmem>>) attributes {dimension_semantics = [#tpu.dimension_semantics<parallel>, #tpu.dimension_semantics<parallel>], iteration_bounds = array<i64: 2, 1>, scalar_prefetch = 0 : i64, scratch_operands = 0 : i64, tpu.core_type = #tpu.core_type<tc>, window_params = [{transform_indices = @transform_0, window_bounds = array<i64: 1, 16, 17, 32>}, {transform_indices = @transform_1, window_bounds = array<i64: 1, 1, 17, 32>}, {pipeline_mode = #tpu.pipeline_mode<synchronous>, transform_indices = @transform_2, window_bounds = array<i64: 4, 32, 16>}, {transform_indices = @transform_3, window_bounds = array<i64: 256, 16>}, {transform_indices = @transform_4, window_bounds = array<i64: 1, 1, 16>}, {transform_indices = @transform_5, window_bounds = array<i64: 1, 1, 16>}]} {
    %c0 = arith.constant 0 : index
    %c0_0 = arith.constant 0 : index
    %c0_1 = arith.constant 0 : index
    %c0_2 = arith.constant 0 : index
    %0 = vector.load %arg2[%c0, %c0_0, %c0_1, %c0_2] : memref<1x16x17x32xbf16, #tpu.memory_space<vmem>>, vector<1x16x17x32xbf16>
    %1 = vector.shape_cast %0 : vector<1x16x17x32xbf16> to vector<16x17x32xbf16>
    %c0_3 = arith.constant 0 : index
    %c0_4 = arith.constant 0 : index
    %c0_5 = arith.constant 0 : index
    %c0_6 = arith.constant 0 : index
    %2 = vector.load %arg3[%c0_3, %c0_4, %c0_5, %c0_6] : memref<1x1x17x32xbf16, #tpu.memory_space<vmem>>, vector<1x1x17x32xbf16>
    %3 = vector.shape_cast %2 : vector<1x1x17x32xbf16> to vector<1x17x32xbf16>
    %4 = tpu.concatenate %1, %3 in 0 : vector<16x17x32xbf16>, vector<1x17x32xbf16> -> vector<17x17x32xbf16>
    %cst = arith.constant 0.000000e+00 : f32
    %5 = vector.broadcast %cst : f32 to vector<256x16xf32>
    %6 = vector.extract_strided_slice %4 {offsets = [0, 0, 0], sizes = [16, 16, 32], strides = [1, 1, 1]} : vector<17x17x32xbf16> to vector<16x16x32xbf16>
    %7 = vector.shape_cast %6 : vector<16x16x32xbf16> to vector<256x32xbf16>
    %c0_7 = arith.constant 0 : index
    %c0_8 = arith.constant 0 : index
    %c0_9 = arith.constant 0 : index
    %8 = vector.load %arg4[%c0_7, %c0_8, %c0_9] : memref<4x32x16xbf16, #tpu.memory_space<vmem>>, vector<1x32x16xbf16>
    %9 = vector.shape_cast %8 : vector<1x32x16xbf16> to vector<32x16xbf16>
    %cst_10 = arith.constant dense<0.000000e+00> : vector<256x16xf32>
    %10 = tpu.matmul %7, %9, %cst_10 {dimension_numbers = #tpu.dot_dimension_numbers<[1], [0], [0], [1], [0, 0, 1, 1], [], []>} : vector<256x32xbf16>, vector<32x16xbf16>, vector<256x16xf32> -> vector<256x16xf32>
    %11 = arith.addf %5, %10 : vector<256x16xf32>
    %12 = vector.extract_strided_slice %4 {offsets = [0, 1, 0], sizes = [16, 16, 32], strides = [1, 1, 1]} : vector<17x17x32xbf16> to vector<16x16x32xbf16>
    %13 = vector.shape_cast %12 : vector<16x16x32xbf16> to vector<256x32xbf16>
    %c1 = arith.constant 1 : index
    %c0_11 = arith.constant 0 : index
    %c0_12 = arith.constant 0 : index
    %14 = vector.load %arg4[%c1, %c0_11, %c0_12] : memref<4x32x16xbf16, #tpu.memory_space<vmem>>, vector<1x32x16xbf16>
    %15 = vector.shape_cast %14 : vector<1x32x16xbf16> to vector<32x16xbf16>
    %cst_13 = arith.constant dense<0.000000e+00> : vector<256x16xf32>
    %16 = tpu.matmul %13, %15, %cst_13 {dimension_numbers = #tpu.dot_dimension_numbers<[1], [0], [0], [1], [0, 0, 1, 1], [], []>} : vector<256x32xbf16>, vector<32x16xbf16>, vector<256x16xf32> -> vector<256x16xf32>
    %17 = arith.addf %11, %16 : vector<256x16xf32>
    %18 = vector.extract_strided_slice %4 {offsets = [1, 0, 0], sizes = [16, 16, 32], strides = [1, 1, 1]} : vector<17x17x32xbf16> to vector<16x16x32xbf16>
    %19 = vector.shape_cast %18 : vector<16x16x32xbf16> to vector<256x32xbf16>
    %c2 = arith.constant 2 : index
    %c0_14 = arith.constant 0 : index
    %c0_15 = arith.constant 0 : index
    %20 = vector.load %arg4[%c2, %c0_14, %c0_15] : memref<4x32x16xbf16, #tpu.memory_space<vmem>>, vector<1x32x16xbf16>
    %21 = vector.shape_cast %20 : vector<1x32x16xbf16> to vector<32x16xbf16>
    %cst_16 = arith.constant dense<0.000000e+00> : vector<256x16xf32>
    %22 = tpu.matmul %19, %21, %cst_16 {dimension_numbers = #tpu.dot_dimension_numbers<[1], [0], [0], [1], [0, 0, 1, 1], [], []>} : vector<256x32xbf16>, vector<32x16xbf16>, vector<256x16xf32> -> vector<256x16xf32>
    %23 = arith.addf %17, %22 : vector<256x16xf32>
    %24 = vector.extract_strided_slice %4 {offsets = [1, 1, 0], sizes = [16, 16, 32], strides = [1, 1, 1]} : vector<17x17x32xbf16> to vector<16x16x32xbf16>
    %25 = vector.shape_cast %24 : vector<16x16x32xbf16> to vector<256x32xbf16>
    %c3 = arith.constant 3 : index
    %c0_17 = arith.constant 0 : index
    %c0_18 = arith.constant 0 : index
    %26 = vector.load %arg4[%c3, %c0_17, %c0_18] : memref<4x32x16xbf16, #tpu.memory_space<vmem>>, vector<1x32x16xbf16>
    %27 = vector.shape_cast %26 : vector<1x32x16xbf16> to vector<32x16xbf16>
    %cst_19 = arith.constant dense<0.000000e+00> : vector<256x16xf32>
    %28 = tpu.matmul %25, %27, %cst_19 {dimension_numbers = #tpu.dot_dimension_numbers<[1], [0], [0], [1], [0, 0, 1, 1], [], []>} : vector<256x32xbf16>, vector<32x16xbf16>, vector<256x16xf32> -> vector<256x16xf32>
    %29 = arith.addf %23, %28 : vector<256x16xf32>
    %30 = arith.truncf %29 : vector<256x16xf32> to vector<256x16xbf16>
    %c0_20 = arith.constant 0 : index
    %c0_21 = arith.constant 0 : index
    %31 = vector.load %arg5[%c0_20, %c0_21] : memref<256x16xbf16, #tpu.memory_space<vmem>>, vector<256x16xbf16>
    tpu.vector_store %arg5[%c0_20, %c0_21], %30 {strides = array<i32>} : memref<256x16xbf16, #tpu.memory_space<vmem>>, vector<256x16xbf16>,
    %cst_22 = arith.constant dense<0.000000e+00> : vector<16xf32>
    %32 = vector.multi_reduction <add>, %29, %cst_22 [0] : vector<256x16xf32> to vector<16xf32>
    %33 = vector.shape_cast %32 : vector<16xf32> to vector<1x16xf32>
    %34 = vector.shape_cast %33 : vector<1x16xf32> to vector<1x1x16xf32>
    %c0_23 = arith.constant 0 : index
    %c0_24 = arith.constant 0 : index
    %c0_25 = arith.constant 0 : index
    %35 = vector.load %arg6[%c0_23, %c0_24, %c0_25] : memref<1x1x16xf32, #tpu.memory_space<vmem>>, vector<1x1x16xf32>
    tpu.vector_store %arg6[%c0_23, %c0_24, %c0_25], %34 {strides = array<i32>} : memref<1x1x16xf32, #tpu.memory_space<vmem>>, vector<1x1x16xf32>,
    %36 = arith.mulf %29, %29 : vector<256x16xf32>
    %cst_26 = arith.constant dense<0.000000e+00> : vector<16xf32>
    %37 = vector.multi_reduction <add>, %36, %cst_26 [0] : vector<256x16xf32> to vector<16xf32>
    %38 = vector.shape_cast %37 : vector<16xf32> to vector<1x16xf32>
    %39 = vector.shape_cast %38 : vector<1x16xf32> to vector<1x1x16xf32>
    %c0_27 = arith.constant 0 : index
    %c0_28 = arith.constant 0 : index
    %c0_29 = arith.constant 0 : index
    %40 = vector.load %arg7[%c0_27, %c0_28, %c0_29] : memref<1x1x16xf32, #tpu.memory_space<vmem>>, vector<1x1x16xf32>
    tpu.vector_store %arg7[%c0_27, %c0_28, %c0_29], %39 {strides = array<i32>} : memref<1x1x16xf32, #tpu.memory_space<vmem>>, vector<1x1x16xf32>,
    return
  }
  func.func @transform_0(%arg0: i32, %arg1: i32) -> (i32, i32, i32, i32) {
    %c0_i32 = arith.constant 0 : i32
    %c0_i32_0 = arith.constant 0 : i32
    %c0_i32_1 = arith.constant 0 : i32
    return %arg0, %arg1, %c0_i32, %c0_i32_0 : i32, i32, i32, i32
  }
  func.func @transform_1(%arg0: i32, %arg1: i32) -> (i32, i32, i32, i32) {
    %c1_i32 = arith.constant 1 : i32
    %0 = arith.addi %arg1, %c1_i32 : i32
    %c16_i32 = arith.constant 16 : i32
    %1 = arith.muli %0, %c16_i32 : i32
    %c0_i32 = arith.constant 0 : i32
    %c0_i32_0 = arith.constant 0 : i32
    %c0_i32_1 = arith.constant 0 : i32
    return %arg0, %1, %c0_i32, %c0_i32_0 : i32, i32, i32, i32
  }
  func.func @transform_2(%arg0: i32, %arg1: i32) -> (i32, i32, i32) {
    %c0_i32 = arith.constant 0 : i32
    %c0_i32_0 = arith.constant 0 : i32
    %c0_i32_1 = arith.constant 0 : i32
    %c0_i32_2 = arith.constant 0 : i32
    return %c0_i32, %c0_i32_0, %c0_i32_1 : i32, i32, i32
  }
  func.func @transform_3(%arg0: i32, %arg1: i32) -> (i32, i32) {
    %c1_i32 = arith.constant 1 : i32
    %0 = arith.muli %arg0, %c1_i32 : i32
    %1 = arith.addi %0, %arg1 : i32
    %c0_i32 = arith.constant 0 : i32
    %c0_i32_0 = arith.constant 0 : i32
    return %1, %c0_i32 : i32, i32
  }
  func.func @transform_4(%arg0: i32, %arg1: i32) -> (i32, i32, i32) {
    %c1_i32 = arith.constant 1 : i32
    %0 = arith.muli %arg0, %c1_i32 : i32
    %1 = arith.addi %0, %arg1 : i32
    %c0_i32 = arith.constant 0 : i32
    %c0_i32_0 = arith.constant 0 : i32
    %c0_i32_1 = arith.constant 0 : i32
    return %1, %c0_i32, %c0_i32_0 : i32, i32, i32
  }
  func.func @transform_5(%arg0: i32, %arg1: i32) -> (i32, i32, i32) {
    %c1_i32 = arith.constant 1 : i32
    %0 = arith.muli %arg0, %c1_i32 : i32
    %1 = arith.addi %0, %arg1 : i32
    %c0_i32 = arith.constant 0 : i32
    %c0_i32_0 = arith.constant 0 : i32
    %c0_i32_1 = arith.constant 0 : i32
    return %1, %c0_i32, %c0_i32_0 : i32, i32, i32
  }
}

module attributes {stable_mosaic.version = 11 : i64} {
  func.func @_conv_s2d_kernel(%arg0: i32, %arg1: i32, %arg2: memref<1x8x9x64xbf16, #tpu.memory_space<vmem>>, %arg3: memref<1x1x9x64xbf16, #tpu.memory_space<vmem>>, %arg4: memref<4x64x32xbf16, #tpu.memory_space<vmem>>, %arg5: memref<64x32xbf16, #tpu.memory_space<vmem>>, %arg6: memref<1x1x32xf32, #tpu.memory_space<vmem>>, %arg7: memref<1x1x32xf32, #tpu.memory_space<vmem>>) attributes {dimension_semantics = [#tpu.dimension_semantics<parallel>, #tpu.dimension_semantics<parallel>], iteration_bounds = array<i64: 2, 1>, scalar_prefetch = 0 : i64, scratch_operands = 0 : i64, tpu.core_type = #tpu.core_type<tc>, window_params = [{transform_indices = @transform_0, window_bounds = array<i64: 1, 8, 9, 64>}, {transform_indices = @transform_1, window_bounds = array<i64: 1, 1, 9, 64>}, {pipeline_mode = #tpu.pipeline_mode<synchronous>, transform_indices = @transform_2, window_bounds = array<i64: 4, 64, 32>}, {transform_indices = @transform_3, window_bounds = array<i64: 64, 32>}, {transform_indices = @transform_4, window_bounds = array<i64: 1, 1, 32>}, {transform_indices = @transform_5, window_bounds = array<i64: 1, 1, 32>}]} {
    %c0 = arith.constant 0 : index
    %c0_0 = arith.constant 0 : index
    %c0_1 = arith.constant 0 : index
    %c0_2 = arith.constant 0 : index
    %0 = vector.load %arg2[%c0, %c0_0, %c0_1, %c0_2] : memref<1x8x9x64xbf16, #tpu.memory_space<vmem>>, vector<1x8x9x64xbf16>
    %1 = vector.shape_cast %0 : vector<1x8x9x64xbf16> to vector<8x9x64xbf16>
    %c0_3 = arith.constant 0 : index
    %c0_4 = arith.constant 0 : index
    %c0_5 = arith.constant 0 : index
    %c0_6 = arith.constant 0 : index
    %2 = vector.load %arg3[%c0_3, %c0_4, %c0_5, %c0_6] : memref<1x1x9x64xbf16, #tpu.memory_space<vmem>>, vector<1x1x9x64xbf16>
    %3 = vector.shape_cast %2 : vector<1x1x9x64xbf16> to vector<1x9x64xbf16>
    %4 = tpu.concatenate %1, %3 in 0 : vector<8x9x64xbf16>, vector<1x9x64xbf16> -> vector<9x9x64xbf16>
    %cst = arith.constant 0.000000e+00 : f32
    %5 = vector.broadcast %cst : f32 to vector<64x32xf32>
    %6 = vector.extract_strided_slice %4 {offsets = [0, 0, 0], sizes = [8, 8, 64], strides = [1, 1, 1]} : vector<9x9x64xbf16> to vector<8x8x64xbf16>
    %7 = vector.shape_cast %6 : vector<8x8x64xbf16> to vector<64x64xbf16>
    %c0_7 = arith.constant 0 : index
    %c0_8 = arith.constant 0 : index
    %c0_9 = arith.constant 0 : index
    %8 = vector.load %arg4[%c0_7, %c0_8, %c0_9] : memref<4x64x32xbf16, #tpu.memory_space<vmem>>, vector<1x64x32xbf16>
    %9 = vector.shape_cast %8 : vector<1x64x32xbf16> to vector<64x32xbf16>
    %cst_10 = arith.constant dense<0.000000e+00> : vector<64x32xf32>
    %10 = tpu.matmul %7, %9, %cst_10 {dimension_numbers = #tpu.dot_dimension_numbers<[1], [0], [0], [1], [0, 0, 1, 1], [], []>} : vector<64x64xbf16>, vector<64x32xbf16>, vector<64x32xf32> -> vector<64x32xf32>
    %11 = arith.addf %5, %10 : vector<64x32xf32>
    %12 = vector.extract_strided_slice %4 {offsets = [0, 1, 0], sizes = [8, 8, 64], strides = [1, 1, 1]} : vector<9x9x64xbf16> to vector<8x8x64xbf16>
    %13 = vector.shape_cast %12 : vector<8x8x64xbf16> to vector<64x64xbf16>
    %c1 = arith.constant 1 : index
    %c0_11 = arith.constant 0 : index
    %c0_12 = arith.constant 0 : index
    %14 = vector.load %arg4[%c1, %c0_11, %c0_12] : memref<4x64x32xbf16, #tpu.memory_space<vmem>>, vector<1x64x32xbf16>
    %15 = vector.shape_cast %14 : vector<1x64x32xbf16> to vector<64x32xbf16>
    %cst_13 = arith.constant dense<0.000000e+00> : vector<64x32xf32>
    %16 = tpu.matmul %13, %15, %cst_13 {dimension_numbers = #tpu.dot_dimension_numbers<[1], [0], [0], [1], [0, 0, 1, 1], [], []>} : vector<64x64xbf16>, vector<64x32xbf16>, vector<64x32xf32> -> vector<64x32xf32>
    %17 = arith.addf %11, %16 : vector<64x32xf32>
    %18 = vector.extract_strided_slice %4 {offsets = [1, 0, 0], sizes = [8, 8, 64], strides = [1, 1, 1]} : vector<9x9x64xbf16> to vector<8x8x64xbf16>
    %19 = vector.shape_cast %18 : vector<8x8x64xbf16> to vector<64x64xbf16>
    %c2 = arith.constant 2 : index
    %c0_14 = arith.constant 0 : index
    %c0_15 = arith.constant 0 : index
    %20 = vector.load %arg4[%c2, %c0_14, %c0_15] : memref<4x64x32xbf16, #tpu.memory_space<vmem>>, vector<1x64x32xbf16>
    %21 = vector.shape_cast %20 : vector<1x64x32xbf16> to vector<64x32xbf16>
    %cst_16 = arith.constant dense<0.000000e+00> : vector<64x32xf32>
    %22 = tpu.matmul %19, %21, %cst_16 {dimension_numbers = #tpu.dot_dimension_numbers<[1], [0], [0], [1], [0, 0, 1, 1], [], []>} : vector<64x64xbf16>, vector<64x32xbf16>, vector<64x32xf32> -> vector<64x32xf32>
    %23 = arith.addf %17, %22 : vector<64x32xf32>
    %24 = vector.extract_strided_slice %4 {offsets = [1, 1, 0], sizes = [8, 8, 64], strides = [1, 1, 1]} : vector<9x9x64xbf16> to vector<8x8x64xbf16>
    %25 = vector.shape_cast %24 : vector<8x8x64xbf16> to vector<64x64xbf16>
    %c3 = arith.constant 3 : index
    %c0_17 = arith.constant 0 : index
    %c0_18 = arith.constant 0 : index
    %26 = vector.load %arg4[%c3, %c0_17, %c0_18] : memref<4x64x32xbf16, #tpu.memory_space<vmem>>, vector<1x64x32xbf16>
    %27 = vector.shape_cast %26 : vector<1x64x32xbf16> to vector<64x32xbf16>
    %cst_19 = arith.constant dense<0.000000e+00> : vector<64x32xf32>
    %28 = tpu.matmul %25, %27, %cst_19 {dimension_numbers = #tpu.dot_dimension_numbers<[1], [0], [0], [1], [0, 0, 1, 1], [], []>} : vector<64x64xbf16>, vector<64x32xbf16>, vector<64x32xf32> -> vector<64x32xf32>
    %29 = arith.addf %23, %28 : vector<64x32xf32>
    %30 = arith.truncf %29 : vector<64x32xf32> to vector<64x32xbf16>
    %c0_20 = arith.constant 0 : index
    %c0_21 = arith.constant 0 : index
    %31 = vector.load %arg5[%c0_20, %c0_21] : memref<64x32xbf16, #tpu.memory_space<vmem>>, vector<64x32xbf16>
    tpu.vector_store %arg5[%c0_20, %c0_21], %30 {strides = array<i32>} : memref<64x32xbf16, #tpu.memory_space<vmem>>, vector<64x32xbf16>,
    %cst_22 = arith.constant dense<0.000000e+00> : vector<32xf32>
    %32 = vector.multi_reduction <add>, %29, %cst_22 [0] : vector<64x32xf32> to vector<32xf32>
    %33 = vector.shape_cast %32 : vector<32xf32> to vector<1x32xf32>
    %34 = vector.shape_cast %33 : vector<1x32xf32> to vector<1x1x32xf32>
    %c0_23 = arith.constant 0 : index
    %c0_24 = arith.constant 0 : index
    %c0_25 = arith.constant 0 : index
    %35 = vector.load %arg6[%c0_23, %c0_24, %c0_25] : memref<1x1x32xf32, #tpu.memory_space<vmem>>, vector<1x1x32xf32>
    tpu.vector_store %arg6[%c0_23, %c0_24, %c0_25], %34 {strides = array<i32>} : memref<1x1x32xf32, #tpu.memory_space<vmem>>, vector<1x1x32xf32>,
    %36 = arith.mulf %29, %29 : vector<64x32xf32>
    %cst_26 = arith.constant dense<0.000000e+00> : vector<32xf32>
    %37 = vector.multi_reduction <add>, %36, %cst_26 [0] : vector<64x32xf32> to vector<32xf32>
    %38 = vector.shape_cast %37 : vector<32xf32> to vector<1x32xf32>
    %39 = vector.shape_cast %38 : vector<1x32xf32> to vector<1x1x32xf32>
    %c0_27 = arith.constant 0 : index
    %c0_28 = arith.constant 0 : index
    %c0_29 = arith.constant 0 : index
    %40 = vector.load %arg7[%c0_27, %c0_28, %c0_29] : memref<1x1x32xf32, #tpu.memory_space<vmem>>, vector<1x1x32xf32>
    tpu.vector_store %arg7[%c0_27, %c0_28, %c0_29], %39 {strides = array<i32>} : memref<1x1x32xf32, #tpu.memory_space<vmem>>, vector<1x1x32xf32>,
    return
  }
  func.func @transform_0(%arg0: i32, %arg1: i32) -> (i32, i32, i32, i32) {
    %c0_i32 = arith.constant 0 : i32
    %c0_i32_0 = arith.constant 0 : i32
    %c0_i32_1 = arith.constant 0 : i32
    return %arg0, %arg1, %c0_i32, %c0_i32_0 : i32, i32, i32, i32
  }
  func.func @transform_1(%arg0: i32, %arg1: i32) -> (i32, i32, i32, i32) {
    %c1_i32 = arith.constant 1 : i32
    %0 = arith.addi %arg1, %c1_i32 : i32
    %c8_i32 = arith.constant 8 : i32
    %1 = arith.muli %0, %c8_i32 : i32
    %c0_i32 = arith.constant 0 : i32
    %c0_i32_0 = arith.constant 0 : i32
    %c0_i32_1 = arith.constant 0 : i32
    return %arg0, %1, %c0_i32, %c0_i32_0 : i32, i32, i32, i32
  }
  func.func @transform_2(%arg0: i32, %arg1: i32) -> (i32, i32, i32) {
    %c0_i32 = arith.constant 0 : i32
    %c0_i32_0 = arith.constant 0 : i32
    %c0_i32_1 = arith.constant 0 : i32
    %c0_i32_2 = arith.constant 0 : i32
    return %c0_i32, %c0_i32_0, %c0_i32_1 : i32, i32, i32
  }
  func.func @transform_3(%arg0: i32, %arg1: i32) -> (i32, i32) {
    %c1_i32 = arith.constant 1 : i32
    %0 = arith.muli %arg0, %c1_i32 : i32
    %1 = arith.addi %0, %arg1 : i32
    %c0_i32 = arith.constant 0 : i32
    %c0_i32_0 = arith.constant 0 : i32
    return %1, %c0_i32 : i32, i32
  }
  func.func @transform_4(%arg0: i32, %arg1: i32) -> (i32, i32, i32) {
    %c1_i32 = arith.constant 1 : i32
    %0 = arith.muli %arg0, %c1_i32 : i32
    %1 = arith.addi %0, %arg1 : i32
    %c0_i32 = arith.constant 0 : i32
    %c0_i32_0 = arith.constant 0 : i32
    %c0_i32_1 = arith.constant 0 : i32
    return %1, %c0_i32, %c0_i32_0 : i32, i32, i32
  }
  func.func @transform_5(%arg0: i32, %arg1: i32) -> (i32, i32, i32) {
    %c1_i32 = arith.constant 1 : i32
    %0 = arith.muli %arg0, %c1_i32 : i32
    %1 = arith.addi %0, %arg1 : i32
    %c0_i32 = arith.constant 0 : i32
    %c0_i32_0 = arith.constant 0 : i32
    %c0_i32_1 = arith.constant 0 : i32
    return %1, %c0_i32, %c0_i32_0 : i32, i32, i32
  }
}

module attributes {stable_mosaic.version = 11 : i64} {
  func.func @_conv_s2d_kernel(%arg0: i32, %arg1: i32, %arg2: memref<1x4x5x128xbf16, #tpu.memory_space<vmem>>, %arg3: memref<1x1x5x128xbf16, #tpu.memory_space<vmem>>, %arg4: memref<4x128x64xbf16, #tpu.memory_space<vmem>>, %arg5: memref<16x64xbf16, #tpu.memory_space<vmem>>, %arg6: memref<1x1x64xf32, #tpu.memory_space<vmem>>, %arg7: memref<1x1x64xf32, #tpu.memory_space<vmem>>) attributes {dimension_semantics = [#tpu.dimension_semantics<parallel>, #tpu.dimension_semantics<parallel>], iteration_bounds = array<i64: 2, 1>, scalar_prefetch = 0 : i64, scratch_operands = 0 : i64, tpu.core_type = #tpu.core_type<tc>, window_params = [{transform_indices = @transform_0, window_bounds = array<i64: 1, 4, 5, 128>}, {transform_indices = @transform_1, window_bounds = array<i64: 1, 1, 5, 128>}, {pipeline_mode = #tpu.pipeline_mode<synchronous>, transform_indices = @transform_2, window_bounds = array<i64: 4, 128, 64>}, {transform_indices = @transform_3, window_bounds = array<i64: 16, 64>}, {transform_indices = @transform_4, window_bounds = array<i64: 1, 1, 64>}, {transform_indices = @transform_5, window_bounds = array<i64: 1, 1, 64>}]} {
    %c0 = arith.constant 0 : index
    %c0_0 = arith.constant 0 : index
    %c0_1 = arith.constant 0 : index
    %c0_2 = arith.constant 0 : index
    %0 = vector.load %arg2[%c0, %c0_0, %c0_1, %c0_2] : memref<1x4x5x128xbf16, #tpu.memory_space<vmem>>, vector<1x4x5x128xbf16>
    %1 = vector.shape_cast %0 : vector<1x4x5x128xbf16> to vector<4x5x128xbf16>
    %c0_3 = arith.constant 0 : index
    %c0_4 = arith.constant 0 : index
    %c0_5 = arith.constant 0 : index
    %c0_6 = arith.constant 0 : index
    %2 = vector.load %arg3[%c0_3, %c0_4, %c0_5, %c0_6] : memref<1x1x5x128xbf16, #tpu.memory_space<vmem>>, vector<1x1x5x128xbf16>
    %3 = vector.shape_cast %2 : vector<1x1x5x128xbf16> to vector<1x5x128xbf16>
    %4 = tpu.concatenate %1, %3 in 0 : vector<4x5x128xbf16>, vector<1x5x128xbf16> -> vector<5x5x128xbf16>
    %cst = arith.constant 0.000000e+00 : f32
    %5 = vector.broadcast %cst : f32 to vector<16x64xf32>
    %6 = vector.extract_strided_slice %4 {offsets = [0, 0, 0], sizes = [4, 4, 128], strides = [1, 1, 1]} : vector<5x5x128xbf16> to vector<4x4x128xbf16>
    %7 = vector.shape_cast %6 : vector<4x4x128xbf16> to vector<16x128xbf16>
    %c0_7 = arith.constant 0 : index
    %c0_8 = arith.constant 0 : index
    %c0_9 = arith.constant 0 : index
    %8 = vector.load %arg4[%c0_7, %c0_8, %c0_9] : memref<4x128x64xbf16, #tpu.memory_space<vmem>>, vector<1x128x64xbf16>
    %9 = vector.shape_cast %8 : vector<1x128x64xbf16> to vector<128x64xbf16>
    %cst_10 = arith.constant dense<0.000000e+00> : vector<16x64xf32>
    %10 = tpu.matmul %7, %9, %cst_10 {dimension_numbers = #tpu.dot_dimension_numbers<[1], [0], [0], [1], [0, 0, 1, 1], [], []>} : vector<16x128xbf16>, vector<128x64xbf16>, vector<16x64xf32> -> vector<16x64xf32>
    %11 = arith.addf %5, %10 : vector<16x64xf32>
    %12 = vector.extract_strided_slice %4 {offsets = [0, 1, 0], sizes = [4, 4, 128], strides = [1, 1, 1]} : vector<5x5x128xbf16> to vector<4x4x128xbf16>
    %13 = vector.shape_cast %12 : vector<4x4x128xbf16> to vector<16x128xbf16>
    %c1 = arith.constant 1 : index
    %c0_11 = arith.constant 0 : index
    %c0_12 = arith.constant 0 : index
    %14 = vector.load %arg4[%c1, %c0_11, %c0_12] : memref<4x128x64xbf16, #tpu.memory_space<vmem>>, vector<1x128x64xbf16>
    %15 = vector.shape_cast %14 : vector<1x128x64xbf16> to vector<128x64xbf16>
    %cst_13 = arith.constant dense<0.000000e+00> : vector<16x64xf32>
    %16 = tpu.matmul %13, %15, %cst_13 {dimension_numbers = #tpu.dot_dimension_numbers<[1], [0], [0], [1], [0, 0, 1, 1], [], []>} : vector<16x128xbf16>, vector<128x64xbf16>, vector<16x64xf32> -> vector<16x64xf32>
    %17 = arith.addf %11, %16 : vector<16x64xf32>
    %18 = vector.extract_strided_slice %4 {offsets = [1, 0, 0], sizes = [4, 4, 128], strides = [1, 1, 1]} : vector<5x5x128xbf16> to vector<4x4x128xbf16>
    %19 = vector.shape_cast %18 : vector<4x4x128xbf16> to vector<16x128xbf16>
    %c2 = arith.constant 2 : index
    %c0_14 = arith.constant 0 : index
    %c0_15 = arith.constant 0 : index
    %20 = vector.load %arg4[%c2, %c0_14, %c0_15] : memref<4x128x64xbf16, #tpu.memory_space<vmem>>, vector<1x128x64xbf16>
    %21 = vector.shape_cast %20 : vector<1x128x64xbf16> to vector<128x64xbf16>
    %cst_16 = arith.constant dense<0.000000e+00> : vector<16x64xf32>
    %22 = tpu.matmul %19, %21, %cst_16 {dimension_numbers = #tpu.dot_dimension_numbers<[1], [0], [0], [1], [0, 0, 1, 1], [], []>} : vector<16x128xbf16>, vector<128x64xbf16>, vector<16x64xf32> -> vector<16x64xf32>
    %23 = arith.addf %17, %22 : vector<16x64xf32>
    %24 = vector.extract_strided_slice %4 {offsets = [1, 1, 0], sizes = [4, 4, 128], strides = [1, 1, 1]} : vector<5x5x128xbf16> to vector<4x4x128xbf16>
    %25 = vector.shape_cast %24 : vector<4x4x128xbf16> to vector<16x128xbf16>
    %c3 = arith.constant 3 : index
    %c0_17 = arith.constant 0 : index
    %c0_18 = arith.constant 0 : index
    %26 = vector.load %arg4[%c3, %c0_17, %c0_18] : memref<4x128x64xbf16, #tpu.memory_space<vmem>>, vector<1x128x64xbf16>
    %27 = vector.shape_cast %26 : vector<1x128x64xbf16> to vector<128x64xbf16>
    %cst_19 = arith.constant dense<0.000000e+00> : vector<16x64xf32>
    %28 = tpu.matmul %25, %27, %cst_19 {dimension_numbers = #tpu.dot_dimension_numbers<[1], [0], [0], [1], [0, 0, 1, 1], [], []>} : vector<16x128xbf16>, vector<128x64xbf16>, vector<16x64xf32> -> vector<16x64xf32>
    %29 = arith.addf %23, %28 : vector<16x64xf32>
    %30 = arith.truncf %29 : vector<16x64xf32> to vector<16x64xbf16>
    %c0_20 = arith.constant 0 : index
    %c0_21 = arith.constant 0 : index
    %31 = vector.load %arg5[%c0_20, %c0_21] : memref<16x64xbf16, #tpu.memory_space<vmem>>, vector<16x64xbf16>
    tpu.vector_store %arg5[%c0_20, %c0_21], %30 {strides = array<i32>} : memref<16x64xbf16, #tpu.memory_space<vmem>>, vector<16x64xbf16>,
    %cst_22 = arith.constant dense<0.000000e+00> : vector<64xf32>
    %32 = vector.multi_reduction <add>, %29, %cst_22 [0] : vector<16x64xf32> to vector<64xf32>
    %33 = vector.shape_cast %32 : vector<64xf32> to vector<1x64xf32>
    %34 = vector.shape_cast %33 : vector<1x64xf32> to vector<1x1x64xf32>
    %c0_23 = arith.constant 0 : index
    %c0_24 = arith.constant 0 : index
    %c0_25 = arith.constant 0 : index
    %35 = vector.load %arg6[%c0_23, %c0_24, %c0_25] : memref<1x1x64xf32, #tpu.memory_space<vmem>>, vector<1x1x64xf32>
    tpu.vector_store %arg6[%c0_23, %c0_24, %c0_25], %34 {strides = array<i32>} : memref<1x1x64xf32, #tpu.memory_space<vmem>>, vector<1x1x64xf32>,
    %36 = arith.mulf %29, %29 : vector<16x64xf32>
    %cst_26 = arith.constant dense<0.000000e+00> : vector<64xf32>
    %37 = vector.multi_reduction <add>, %36, %cst_26 [0] : vector<16x64xf32> to vector<64xf32>
    %38 = vector.shape_cast %37 : vector<64xf32> to vector<1x64xf32>
    %39 = vector.shape_cast %38 : vector<1x64xf32> to vector<1x1x64xf32>
    %c0_27 = arith.constant 0 : index
    %c0_28 = arith.constant 0 : index
    %c0_29 = arith.constant 0 : index
    %40 = vector.load %arg7[%c0_27, %c0_28, %c0_29] : memref<1x1x64xf32, #tpu.memory_space<vmem>>, vector<1x1x64xf32>
    tpu.vector_store %arg7[%c0_27, %c0_28, %c0_29], %39 {strides = array<i32>} : memref<1x1x64xf32, #tpu.memory_space<vmem>>, vector<1x1x64xf32>,
    return
  }
  func.func @transform_0(%arg0: i32, %arg1: i32) -> (i32, i32, i32, i32) {
    %c0_i32 = arith.constant 0 : i32
    %c0_i32_0 = arith.constant 0 : i32
    %c0_i32_1 = arith.constant 0 : i32
    return %arg0, %arg1, %c0_i32, %c0_i32_0 : i32, i32, i32, i32
  }
  func.func @transform_1(%arg0: i32, %arg1: i32) -> (i32, i32, i32, i32) {
    %c1_i32 = arith.constant 1 : i32
    %0 = arith.addi %arg1, %c1_i32 : i32
    %c4_i32 = arith.constant 4 : i32
    %1 = arith.muli %0, %c4_i32 : i32
    %c0_i32 = arith.constant 0 : i32
    %c0_i32_0 = arith.constant 0 : i32
    %c0_i32_1 = arith.constant 0 : i32
    return %arg0, %1, %c0_i32, %c0_i32_0 : i32, i32, i32, i32
  }
  func.func @transform_2(%arg0: i32, %arg1: i32) -> (i32, i32, i32) {
    %c0_i32 = arith.constant 0 : i32
    %c0_i32_0 = arith.constant 0 : i32
    %c0_i32_1 = arith.constant 0 : i32
    %c0_i32_2 = arith.constant 0 : i32
    return %c0_i32, %c0_i32_0, %c0_i32_1 : i32, i32, i32
  }
  func.func @transform_3(%arg0: i32, %arg1: i32) -> (i32, i32) {
    %c1_i32 = arith.constant 1 : i32
    %0 = arith.muli %arg0, %c1_i32 : i32
    %1 = arith.addi %0, %arg1 : i32
    %c0_i32 = arith.constant 0 : i32
    %c0_i32_0 = arith.constant 0 : i32
    return %1, %c0_i32 : i32, i32
  }
  func.func @transform_4(%arg0: i32, %arg1: i32) -> (i32, i32, i32) {
    %c1_i32 = arith.constant 1 : i32
    %0 = arith.muli %arg0, %c1_i32 : i32
    %1 = arith.addi %0, %arg1 : i32
    %c0_i32 = arith.constant 0 : i32
    %c0_i32_0 = arith.constant 0 : i32
    %c0_i32_1 = arith.constant 0 : i32
    return %1, %c0_i32, %c0_i32_0 : i32, i32, i32
  }
  func.func @transform_5(%arg0: i32, %arg1: i32) -> (i32, i32, i32) {
    %c1_i32 = arith.constant 1 : i32
    %0 = arith.muli %arg0, %c1_i32 : i32
    %1 = arith.addi %0, %arg1 : i32
    %c0_i32 = arith.constant 0 : i32
    %c0_i32_0 = arith.constant 0 : i32
    %c0_i32_1 = arith.constant 0 : i32
    return %1, %c0_i32, %c0_i32_0 : i32, i32, i32
  }
}

module attributes {stable_mosaic.version = 11 : i64} {
  func.func @_head_kernel(%arg0: i32, %arg1: memref<2x1024xbf16, #tpu.memory_space<vmem>>, %arg2: memref<1x1024xf32, #tpu.memory_space<vmem>>, %arg3: memref<1x1024xf32, #tpu.memory_space<vmem>>, %arg4: memref<1024x1xbf16, #tpu.memory_space<vmem>>, %arg5: memref<2x1xf32, #tpu.memory_space<vmem>>) attributes {dimension_semantics = [#tpu.dimension_semantics<arbitrary>], iteration_bounds = array<i64: 1>, scalar_prefetch = 0 : i64, scratch_operands = 0 : i64, tpu.core_type = #tpu.core_type<tc>, window_params = [{pipeline_mode = #tpu.pipeline_mode<synchronous>, transform_indices = @transform_0, window_bounds = array<i64: 2, 1024>}, {pipeline_mode = #tpu.pipeline_mode<synchronous>, transform_indices = @transform_1, window_bounds = array<i64: 1, 1024>}, {pipeline_mode = #tpu.pipeline_mode<synchronous>, transform_indices = @transform_2, window_bounds = array<i64: 1, 1024>}, {pipeline_mode = #tpu.pipeline_mode<synchronous>, transform_indices = @transform_3, window_bounds = array<i64: 1024, 1>}, {pipeline_mode = #tpu.pipeline_mode<synchronous>, transform_indices = @transform_4, window_bounds = array<i64: 2, 1>}]} {
    %c0 = arith.constant 0 : index
    %c0_0 = arith.constant 0 : index
    %0 = vector.load %arg1[%c0, %c0_0] : memref<2x1024xbf16, #tpu.memory_space<vmem>>, vector<2x1024xbf16>
    %1 = arith.extf %0 : vector<2x1024xbf16> to vector<2x1024xf32>
    %c0_1 = arith.constant 0 : index
    %c0_2 = arith.constant 0 : index
    %2 = vector.load %arg2[%c0_1, %c0_2] : memref<1x1024xf32, #tpu.memory_space<vmem>>, vector<1x1024xf32>
    %3 = vector.broadcast %2 : vector<1x1024xf32> to vector<2x1024xf32>
    %4 = arith.mulf %1, %3 : vector<2x1024xf32>
    %c0_3 = arith.constant 0 : index
    %c0_4 = arith.constant 0 : index
    %5 = vector.load %arg3[%c0_3, %c0_4] : memref<1x1024xf32, #tpu.memory_space<vmem>>, vector<1x1024xf32>
    %6 = vector.broadcast %5 : vector<1x1024xf32> to vector<2x1024xf32>
    %7 = arith.addf %4, %6 : vector<2x1024xf32>
    %cst = arith.constant 0.000000e+00 : f32
    %8 = vector.broadcast %cst : f32 to vector<2x1024xf32>
    %9 = arith.cmpf ogt, %7, %8 : vector<2x1024xf32>
    %cst_5 = arith.constant 2.000000e-01 : f32
    %10 = vector.broadcast %cst_5 : f32 to vector<2x1024xf32>
    %11 = arith.mulf %10, %7 : vector<2x1024xf32>
    %12 = arith.select %9, %7, %11 : vector<2x1024xi1>, vector<2x1024xf32>
    %13 = arith.truncf %12 : vector<2x1024xf32> to vector<2x1024xbf16>
    %c0_6 = arith.constant 0 : index
    %c0_7 = arith.constant 0 : index
    %14 = vector.load %arg4[%c0_6, %c0_7] : memref<1024x1xbf16, #tpu.memory_space<vmem>>, vector<1024x1xbf16>
    %cst_8 = arith.constant dense<0.000000e+00> : vector<2x1xf32>
    %15 = tpu.matmul %13, %14, %cst_8 {dimension_numbers = #tpu.dot_dimension_numbers<[1], [0], [0], [1], [0, 0, 1, 1], [], []>} : vector<2x1024xbf16>, vector<1024x1xbf16>, vector<2x1xf32> -> vector<2x1xf32>
    %16 = arith.negf %15 : vector<2x1xf32>
    %17 = math.exp %16 : vector<2x1xf32>
    %cst_9 = arith.constant 1.000000e+00 : f32
    %18 = vector.broadcast %cst_9 : f32 to vector<2x1xf32>
    %19 = arith.addf %18, %17 : vector<2x1xf32>
    %20 = arith.divf %18, %19 : vector<2x1xf32>
    %c0_10 = arith.constant 0 : index
    %c0_11 = arith.constant 0 : index
    %21 = vector.load %arg5[%c0_10, %c0_11] : memref<2x1xf32, #tpu.memory_space<vmem>>, vector<2x1xf32>
    tpu.vector_store %arg5[%c0_10, %c0_11], %20 {strides = array<i32>} : memref<2x1xf32, #tpu.memory_space<vmem>>, vector<2x1xf32>,
    return
  }
  func.func @transform_0(%arg0: i32) -> (i32, i32) {
    %c0_i32 = arith.constant 0 : i32
    %c0_i32_0 = arith.constant 0 : i32
    %c0_i32_1 = arith.constant 0 : i32
    return %c0_i32, %c0_i32_0 : i32, i32
  }
  func.func @transform_1(%arg0: i32) -> (i32, i32) {
    %c0_i32 = arith.constant 0 : i32
    %c0_i32_0 = arith.constant 0 : i32
    %c0_i32_1 = arith.constant 0 : i32
    return %c0_i32, %c0_i32_0 : i32, i32
  }
  func.func @transform_2(%arg0: i32) -> (i32, i32) {
    %c0_i32 = arith.constant 0 : i32
    %c0_i32_0 = arith.constant 0 : i32
    %c0_i32_1 = arith.constant 0 : i32
    return %c0_i32, %c0_i32_0 : i32, i32
  }
  func.func @transform_3(%arg0: i32) -> (i32, i32) {
    %c0_i32 = arith.constant 0 : i32
    %c0_i32_0 = arith.constant 0 : i32
    %c0_i32_1 = arith.constant 0 : i32
    return %c0_i32, %c0_i32_0 : i32, i32
  }
  func.func @transform_4(%arg0: i32) -> (i32, i32) {
    %c0_i32 = arith.constant 0 : i32
    %c0_i32_0 = arith.constant 0 : i32
    %c0_i32_1 = arith.constant 0 : i32
    return %c0_i32, %c0_i32_0 : i32, i32
  }
}

</mosaic_0001>

<bundles_post_ra>
// kernel: discriminator2d_forward.5
= control target key start
LH: loop header
LB: loop body
LE: loop exit
PB: predicated region body
PF: predicated region fallthrough
CT: control target
= control target key end

     0   :  { %s10680_s0 = inlined_call_operand.hbm [shape: bf16[2,33,33,12], index: 0, kind: input, shape index: {}, may-alias: {0,1}]   ;;  %s10681_s1 = inlined_call_operand.hbm [shape: bf16[2,33,33,12], index: 1, kind: input, shape index: {}, may-alias: {0,1}]   ;;  %s10682_s2 = inlined_call_operand.hbm [shape: bf16[4,12,8], index: 2, kind: input, shape index: {}]   ;;  %s10683_s3 = inlined_call_operand.hbm [shape: bf16[2048,8], index: 3, kind: output, shape index: {}]  }
   0x1   :  { %10780 = sst [smem:[#allocation106_spill]] %s10680_s0 }
   0x2   :  { %10781 = sst [smem:[#allocation107_spill]] %s10682_s2 }
   0x3   :  { %8 = vsyncpa [#allocation3], 0 }
   0x4   :  { %10 = vsyncpa [#allocation3 + $0x1], 0 }
   0x5   :  { %11 = vsyncpa [#allocation6], 0 }
   0x6   :  { %13 = vsyncpa [#allocation6 + $0x1], 0 }
   0x7   :  { %14 = vsyncpa [#allocation4], 0 }
   0x8   :  { %16 = vsyncpa [#allocation4 + $0x1], 0  ;;  %s8677_s12 = smov 0   ;;  %s8679_s13 = smov 0  }
   0x9   :  { %s8681_s14 = smov 0   ;;  %s8683_s15 = smov 0  }
   0xa   :  { %s8685_s16 = smov 0   ;;  %s8687_s17 = smov 0  }
   0xb LB: > { %s8708_s18 = sadd.s32 4294967295, %s8647_s17   ;;  %s6478_s19 = sadd.s32 4294967294, %s8647_s17   ;;  %s8647_s17 = sphi %s8687_s17, %s22_s17   ;;  %s8643_s16 = sphi %s8685_s16, %s10992_s16   ;;  %s8639_s15 = sphi %s8683_s15, %s10991_s15   ;;  %s8635_s14 = sphi %s8681_s14, %s10990_s14   ;;  %s8631_s13 = sphi %s8679_s13, %s10989_s13   ;;  %s8627_s12 = sphi %s8677_s12, %s10988_s12  }
   0xc   : > { %p56_p0 = scmp.ne.s32.totalorder %s8631_s13, %s8627_s12  ;;  %p10684_p1 = scmp.eq.s32.totalorder %s8708_s18, 0 }
   0xd   : > { %p141_p3 = scmp.eq.s32.totalorder %s6478_s19, 1  ;;  %p6479_p5 = scmp.ge.s32.totalorder %s8647_s17, 1 }
   0xe   : > { %p8717_p4 = por %p10684_p1, %p56_p0  ;;  %p148_p7 = scmp.lt.s32.totalorder %s8647_s17, 3 }
   0xf   : > { %p8722_p6 = por %p141_p3, %p56_p0  ;;  %s8649_s23 = smov [#allocation7]  }
  0x10   : > { %s10782_s20 = scalar_select %p8717_p4, 1, 0 }
  0x11   : > { %s10783_s21 = scalar_select %p8722_p6, 1, 0 }
  0x12   : > { %p8727_p8 = pnand %p6479_p5, %p148_p7  ;;  %s160_s24 = sshll.u32 %s8649_s23, 4  ;;  %s161_s24 = int_to_ptr.vmem [resolvable:$true] %s160_s24 }
  0x13   : > { %s34_s26 = sadd.s32 1, %s8643_s16  ;;  %s10786_s2 = sld [smem:[#allocation107_spill]] }
  0x14   : > { %s10784_s22 = scalar_select %p8727_p8, 1, 0 }
  0x15   : > { %p8324_p9 = pneg %p8727_p8 }
  0x17   : > { %p8736_p11 = pnand %p8324_p9, %p10684_p1 }
  0x19   : > { %s8468_s29 = scalar_lea.hbm %s10786_s2, 512  ;;  %p8470_p13 = pneg %p8736_p11 }
  0x1a   : > { %p8469_p12 = scmp.ne.s32.totalorder %s10786_s2, %s8468_s29  ;;  %p8475_p5 = scmp.lt.u32.totalorder %s8468_s29, %s10786_s2 }
  0x1c   : > { %p8471_p0 = pnand %p8470_p13, %p8469_p12 }
  0x1e   : > { %p8472_p3 = pneg %p8471_p0 }
  0x20   : > { %p8477_p7 = pnand %p8475_p5, %p8472_p3 }
  0x22   : > { %8480 = shalt.err (!%p8477_p7)
}
  0x23   : > { %s8481_s7 = scalar_lea.vmem %s161_s24, 512  ;;  %p8489_p2 = scmp.lt.s32.totalorder %s161_s24, %s161_s24 }
  0x24   : > { %p8482_p9 = scmp.ne.s32.totalorder %s161_s24, %s8481_s7  ;;  %p8490_p6 = scmp.lt.s32.totalorder %s8481_s7, %s8481_s7 }
  0x26   : > { %p8484_p10 = pnand %p8482_p9, %p8470_p13  ;;  %p8491_p4 = por %p8490_p6, %p8489_p2 }
  0x28   : > { %p8485_p1 = pneg %p8484_p10 }
  0x2a   : > { %p8492_p8 = pnand %p8491_p4, %p8485_p1 }
  0x2c   : > { %8495 = shalt.err (!%p8492_p8)
}
  0x2d   : > { %s8650_s8 = smov 64   ;;  %s8651_s9 = smov 4  }
  0x2e   : > { %8327 = dma.hbm_to_vmem [thread:$0]  (!%p8736_p11), %s10786_s2, 512, %s161_s24, [#allocation6], %s8650_s8, %s8650_s8, %s8651_s9  }
  0x2f   : > { %p36_p1 = scmp.ge.s32.totalorder %s34_s26, 2  ;;  %s43_s19 = sadd.s32 1, %s8635_s14 }
  0x30   : > { %p50_p2 = scmp.ne.s32.totalorder %s8635_s14, %s8631_s13  ;;  %p51_p4 = scmp.eq.s32.totalorder %s8647_s17, 0 }
  0x31   : > { %s10994_s26 = smov (%p36_p1, %s34_s26), 0  ;;  %p10788_p8 = scmp.eq.s32.totalorder %s8708_s18, 1 }
  0x32   : > { %10787 = sst [smem:[#allocation13_spill]] %s10994_s26  ;;  %p52_p6 = por %p51_p4, %p50_p2 }
  0x33   : > { %p8768_p10 = por %p10788_p8, %p50_p2  ;;  %s38_s25 = ssub.s32 %s8643_s16, %s10994_s26 }
  0x34   : > { %p8340_p12 = scmp.lt.s32.totalorder %s8647_s17, 2  ;;  %p41_p13 = scmp.eq.s32.totalorder %s38_s25, 0 }
  0x35   : > { %s8776_s27 = sand.u32 1, %s8635_s14   ;;  %s10687_s29 = smul.u32 10560, %s8643_s16 }
  0x36   : > { %s8309_s24 = smul.u32 640, %s8776_s27  ;;  %p8783_p11 = pnand %p8340_p12, %p52_p6 }
  0x37   : > { %s8780_s28 = scalar_select %p41_p13, %s8635_s14, %s43_s19  }
  0x38   : > { %s178_s30 = scalar_lea.vmem [#allocation2], %s8309_s24  ;;  %s10792_s0 = sld [smem:[#allocation106_spill]] }
  0x39   : > { %10790 = sst [smem:[#allocation14_spill]] %s8780_s28  ;;  %s196_s4 = sshll.u32 %s178_s30, 4  ;;  %s8794_s4 = int_to_ptr.vmem [resolvable:$true] %s196_s4 }
  0x3a   : > { %s175_s19 = scalar_lea.sflag [#allocation3], %s8776_s27  ;;  %p8498_p3 = pneg %p8783_p11 }
  0x3e   : > { %s8792_s10 = scalar_lea.hbm %s10792_s0, %s10687_s29  ;;  %s8501_s6 = scalar_lea.hbm %s10792_s0, 21120 }
  0x3f   : > { %s8496_s25 = scalar_lea.hbm %s8792_s10, 10240  ;;  %p8502_p9 = scmp.lt.u32.totalorder %s8792_s10, %s10792_s0 }
  0x40   : > { %p8497_p0 = scmp.ne.s32.totalorder %s8792_s10, %s8496_s25  ;;  %p8503_p1 = scmp.lt.u32.totalorder %s8501_s6, %s8496_s25 }
  0x41   : > { %p8505_p4 = scmp.lt.u32.totalorder %s8496_s25, %s8792_s10 }
  0x42   : > { %p8499_p5 = pnand %p8498_p3, %p8497_p0  ;;  %p8504_p2 = por %p8503_p1, %p8502_p9 }
  0x44   : > { %p8500_p7 = pneg %p8499_p5  ;;  %p8506_p6 = por %p8505_p4, %p8504_p2 }
  0x46   : > { %p8507_p8 = pnand %p8506_p6, %p8500_p7 }
  0x48   : > { %8510 = shalt.err (!%p8507_p8)
}
  0x49   : > { %s8511_s11 = scalar_lea.vmem %s8794_s4, 10240  ;;  %s8652_s24 = smov [#allocation2]  }
  0x4a   : > { %p8512_p12 = scmp.ne.s32.totalorder %s8794_s4, %s8511_s11  ;;  %s8516_s30 = sshll.u32 %s8652_s24, 4  ;;  %s8517_s30 = int_to_ptr.vmem [resolvable:$false] %s8516_s30 }
  0x4b   : > { %s8518_s29 = scalar_lea.vmem %s8517_s30, 20480  ;;  %p8519_p5 = scmp.lt.s32.totalorder %s8794_s4, %s8517_s30 }
  0x4c   : > { %p8514_p13 = pnand %p8512_p12, %p8498_p3  ;;  %p8520_p9 = scmp.lt.s32.totalorder %s8518_s29, %s8511_s11 }
  0x4e   : > { %p8515_p0 = pneg %p8514_p13  ;;  %p8521_p1 = por %p8520_p9, %p8519_p5 }
  0x50   : > { %p8522_p2 = pnand %p8521_p1, %p8515_p0 }
  0x52   : > { %8525 = shalt.err (!%p8522_p2)
}
  0x53   : > { %8331 = dma.hbm_to_vmem [thread:$0]  (!%p8783_p11), %s8792_s10, 10240, %s8794_s4, %s175_s19, %s8650_s8, %s8650_s8, %s8651_s9  }
  0x54   : > { %s8311_s25 = smul.u32 20, %s8776_s27  ;;  %s10794_s2 = sand.u32 1, %s8647_s17  }
  0x55   : > { %s10793_s6 = smul.u32 10560, %s8643_s16  ;;  %s8840_s26 = scalar_lea.sflag [#allocation6], %s10794_s2 }
  0x56   : > { %s210_s29 = scalar_lea.vmem [#allocation5], %s8311_s25  ;;  %s8531_s10 = scalar_lea.hbm %s10681_s1, 21120 }
  0x57   : > { %s6401_s24 = scalar_lea.hbm %s10681_s1, %s10793_s6  ;;  %s221_s0 = sshll.u32 %s210_s29, 4  ;;  %s8836_s0 = int_to_ptr.vmem [resolvable:$true] %s221_s0 }
  0x58   : > { %s8834_s30 = scalar_lea.hbm %s6401_s24, 10240  ;;  %s8556_s28 = scalar_lea.hbm %s6401_s24, 10560 }
  0x59   : > { %p8527_p7 = scmp.ne.s32.totalorder %s8834_s30, %s8556_s28  ;;  %p8532_p8 = scmp.lt.u32.totalorder %s8834_s30, %s10681_s1 }
  0x5a   : > { %p8533_p12 = scmp.lt.u32.totalorder %s8531_s10, %s8556_s28  ;;  %p8535_p0 = scmp.lt.u32.totalorder %s8556_s28, %s8834_s30 }
  0x5b   : > { %p8529_p4 = pnand %p8527_p7, %p8498_p3 }
  0x5c   : > { %p8534_p13 = por %p8533_p12, %p8532_p8 }
  0x5d   : > { %p8530_p6 = pneg %p8529_p4 }
  0x5e   : > { %p8536_p5 = por %p8535_p0, %p8534_p13 }
  0x60   : > { %p8537_p9 = pnand %p8536_p5, %p8530_p6 }
  0x62   : > { %8540 = shalt.err (!%p8537_p9)
}
  0x63   : > { %s8541_s2 = scalar_lea.vmem %s8836_s0, 320  ;;  %s8653_s25 = smov [#allocation5]  }
  0x64   : > { %p8542_p1 = scmp.ne.s32.totalorder %s8836_s0, %s8541_s2  ;;  %s8546_s11 = sshll.u32 %s8653_s25, 4  ;;  %s8547_s11 = int_to_ptr.vmem [resolvable:$false] %s8546_s11 }
  0x65   : > { %s8548_s7 = scalar_lea.vmem %s8547_s11, 640  ;;  %p8549_p4 = scmp.lt.s32.totalorder %s8836_s0, %s8547_s11 }
  0x66   : > { %p8544_p2 = pnand %p8542_p1, %p8498_p3  ;;  %p8550_p8 = scmp.lt.s32.totalorder %s8548_s7, %s8541_s2 }
  0x68   : > { %p8545_p7 = pneg %p8544_p2  ;;  %p8551_p12 = por %p8550_p8, %p8549_p4 }
  0x6a   : > { %p8552_p13 = pnand %p8551_p12, %p8545_p7 }
  0x6c   : > { %8555 = shalt.err (!%p8552_p13)
}
  0x6d   : > { %8334 = dma.hbm_to_vmem [thread:$0]  (!%p8783_p11), %s8834_s30, 320, %s8836_s0, %s8840_s26, %s8650_s8, %s8650_s8, %s8651_s9  }
  0x6e   : > { %p10795_p3 = scmp.ne.s32.totalorder %s10784_s22, 0 }
  0x70   : > { %233 = sbr.rel (%p10795_p3) target bundleno = 906 (0x38a), region = 32 }
  0x77   : > { %s8871_s28 = sand.u32 1, %s8631_s13   ;;  %p10796_p6 = scmp.ne.s32.totalorder %s10782_s20, 0 }
  0x78   : > { %s8312_s24 = smul.u32 640, %s8871_s28  ;;  %s236_s29 = scalar_lea.sflag [#allocation3], %s8871_s28 }
  0x7a   : > { %s8875_s27 = scalar_lea.vmem [#allocation2], %s8312_s24 }
  0x7b   : > { %8610 = dma.done.wait (%p10796_p6), %s236_s29, 10240  }
  0x7c   : > { %8612 = vsyncadd (%p10796_p6), %s236_s29, 4294957056  ;;  %s244_s0 = sand.u32 1, %s8708_s18   ;;  %s8313_s22 = smul.u32 20, %s8871_s28 }
  0x7d   : > { %s245_s26 = scalar_lea.sflag [#allocation6], %s244_s0 }
  0x7e   : > { %s8883_s8 = scalar_lea.vmem [#allocation5], %s8313_s22 }
  0x7f   : > { %8614 = dma.done.wait (%p10796_p6), %s245_s26, 320  }
  0x80   : > { %8616 = vsyncadd (%p10796_p6), %s245_s26, 4294966976  ;;  %p10797_p11 = scmp.eq.s32.totalorder %s8708_s18, 0 }
  0x82   : > { %8618 = dma.done.wait (%p10797_p11), [#allocation6], 512   ;;  %p10798_p0 = pmov %p10797_p11 }
  0x83   : > { %vm2262_vm0 = vcmask 1045504   ;;  %vm2069_vm1 = vcmask 97280   ;;  %v8396_v0 = vld [vmem:[#allocation7 + $0x10] sm:$0x3f]   ;;  %vm458_vm2 = vsmask.f32 3328 }
  0x84   : > { %8620 = vsyncadd (%p10798_p0), [#allocation6], 4294966784  ;;  %vm459_vm3 = vsmask.f32 7440  ;;  %v296_v1 = vld [vmem:[%s8875_s27 + $0x14] sm:$0xf]  ;;  %8307 = vmatprep.subr.msk.bf16.mxu0 %vm2262_vm0, %v8396_v0 }
  0x85   : > { %v297_v2 = vld [vmem:[%s8875_s27 + $0x18] sm:$0xf]  ;;  %v298_v3 = vld [vmem:[%s8875_s27 + $0x1c] sm:$0xf]  ;;  %v3901_v4 = vsel %vm2262_vm0, %v8396_v0, 0  ;;  %v506_v5 = vshrl.u32 %v296_v1, 16  ;;  %vm8938_vm4 = vmor %vm458_vm2, %vm459_vm3 }
  0x86   : > { %v509_v6 = vshll.u32 %v296_v1, 16  ;;  %v515_v7 = vshll.u32 %v297_v2, 16  ;;  %v299_v8 = vld [vmem:[%s8875_s27 + $0x20] sm:$0xf]  ;;  %7662 = vmatpush3.bf16.msra.mxu0 %v3901_v4  ;;  %v519_v9 = vshrl.u32 %v297_v2, 16  ;;  %v8899_v10 = vcombine.low %v296_v1, %v297_v2  ;;  %s6486_s18 = sshll.u32 %s8871_s28, 9 }
  0x87   : > { %v525_v11 = vshll.u32 %v298_v3, 16  ;;  %v529_v12 = vshrl.u32 %v298_v3, 16  ;;  %v508_v13 = vrot.slane %v506_v5, 4  ;;  %v535_v16 = vshll.u32 %v299_v8, 16  ;;  %v8399_v20 = vld [vmem:[#allocation7 + $0x8] sm:$0x3f]  }
  0x88   : > { %v511_v14 = vrot.slane %v509_v6, 5  ;;  %v8901_v15 = vrot.slane %v515_v7, 5  ;;  %v521_v17 = vrot.slane %v519_v9, 4  ;;  %7663 = vmatprep.mubr.msk.bf16.mxu0 %vm2069_vm1, %v8899_v10  ;;  %v539_v19 = vshrl.u32 %v299_v8, 16  ;;  %v291_v25 = vld [vmem:[%s8875_s27] sm:$0xf]  ;;  %8305 = vmatprep.subr.msk.bf16.mxu1 %vm2262_vm0, %v8399_v20 }
  0x89   : > { %v8905_v18 = vrot.slane %v525_v11, 5  ;;  %v8907_v22 = vrot.slane %v529_v12, 4  ;;  %v8909_v23 = vrot.slane %v535_v16, 5  ;;  %v8911_v24 = vcombine.low %v298_v3, %v299_v8  ;;  %v292_v26 = vld [vmem:[%s8875_s27 + $0x4] sm:$0xf]  ;;  %s10342_s20 = scalar_lea.vmem [#allocation8], %s6486_s18 }
  0x8a   : > { %v512_v21 = vor.u32 %v511_v14, %v508_v13  ;;  %v522_v27 = vor.u32 %v521_v17, %v8901_v15  ;;  %v8916_v28 = vrot.slane %v539_v19, 4  ;;  %v2264_v29 = vsel %vm2262_vm0, %v8399_v20, 0  ;;  %v8921_v30 = vld [vmem:[%s8875_s27 + $0x8] sm:$0xf]  ;;  %v8924_v31 = vld [vmem:[%s8875_s27 + $0xc] sm:$0xf] }
  0x8b   : > { %7664 = vmatmul.mubr.msk.bf16.vlgmr.msra.gmra.mrb[0].mxu0 %vm2069_vm1, %v8911_v24  ;;  %7402 = vmatpush3.bf16.msra.mxu1 %v2264_v29  ;;  %v462_v33 = vshrl.u32 %v291_v25, 16  ;;  %v465_v34 = vshll.u32 %v291_v25, 16  ;;  %v471_v35 = vshll.u32 %v292_v26, 16  ;;  %v475_v37 = vshrl.u32 %v292_v26, 16  ;;  %v8401_v44 = vld [vmem:[#allocation7] sm:$0x3f]  }
  0x8c   : > { %v8926_v32 = vrot.slane %v512_v21, 4  ;;  %v8930_v36 = vrot.slane %v522_v27, 4  ;;  %v481_v38 = vshll.u32 %v8921_v30, 16  ;;  %v485_v39 = vshrl.u32 %v8921_v30, 16  ;;  %8306 = vmatprep.subr.msk.bf16.mxu1 %vm2262_vm0, %v8401_v44  ;;  %v8402_v51 = vld [vmem:[#allocation7 + $0x18] sm:$0x3f]  }
  0x8d   : > { %v464_v40 = vrot.slane %v462_v33, 4  ;;  %v467_v41 = vrot.slane %v465_v34, 5  ;;  %v473_v42 = vrot.slane %v471_v35, 5  ;;  %v477_v46 = vrot.slane %v475_v37, 4  ;;  %v295_v52 = vld [vmem:[%s8875_s27 + $0x10] sm:$0x1]  ;;  %8308 = vmatprep.subr.msk.bf16.mxu0 %vm2262_vm0, %v8402_v51 }
  0x8e   : > { %v483_v47 = vrot.slane %v481_v38, 5  ;;  %v487_v48 = vrot.slane %v485_v39, 4  ;;  %v491_v49 = vshll.u32 %v8924_v31, 16  ;;  %v518_v53 = vsel %vm8938_vm4, %v8926_v32, %v8901_v15  ;;  %v301_v62 = vld [vmem:[%s8875_s27 + $0x28] sm:$0xf]  ;;  %s7140_s9 = sshll.u32 %s8639_s15, 13 }
  0x8f   : > { %v468_v50 = vor.u32 %v467_v41, %v464_v40  ;;  %v532_v54 = vor.u32 %v8907_v22, %v8905_v18  ;;  %v478_v55 = vor.u32 %v477_v46, %v473_v42  ;;  %v495_v58 = vshrl.u32 %v8924_v31, 16  ;;  %v302_v3 = vld [vmem:[%s8875_s27 + $0x2c] sm:$0xf]  ;;  %v303_v14 = vld [vmem:[%s8875_s27 + $0x30] sm:$0xf]  ;;  %s6356_s5 = sshll.u32 %s10342_s20, 4  ;;  %s10623_s10 = scalar_lea.hbm %s10683_s3, %s7140_s9  ;;  %s10625_s5 = int_to_ptr.vmem [resolvable:$true] %s6356_s5 }
  0x90   : > { %v488_v56 = vor.u32 %v487_v48, %v483_v47  ;;  %v493_v57 = vrot.slane %v491_v49, 5  ;;  %v501_v60 = vshll.u32 %v295_v52, 16  ;;  %v4641_v61 = vsel %vm2262_vm0, %v8402_v51, 0  ;;  %v304_v15 = vld [vmem:[%s8875_s27 + $0x34] sm:$0xf]  ;;  %s6342_s15 = scalar_lea.sflag [#allocation4], %s8871_s28 }
  0x91   : > { %v469_v59 = vrot.slane %v468_v50, 4  ;;  %v528_v63 = vsel %vm8938_vm4, %v8930_v36, %v8905_v18  ;;  %v479_v0 = vrot.slane %v478_v55, 4  ;;  %v497_v2 = vrot.slane %v495_v58, 4  ;;  %7792 = vmatpush3.bf16.msra.mxu0 %v4641_v61  ;;  %v300_v32 = vld [vmem:[%s8875_s27 + $0x24] sm:$0x1]  ;;  %s8557_s19 = scalar_lea.vmem %s10625_s5, 8192 }
  0x92   : > { %v489_v1 = vrot.slane %v488_v56, 4  ;;  %v550_v4 = vshrl.u32 %v301_v62, 16  ;;  %v553_v6 = vshll.u32 %v301_v62, 16  ;;  %v559_v7 = vshll.u32 %v302_v3, 16  ;;  %v306_v37 = vld [vmem:[%s8875_s27 + $0x3c] sm:$0xf]  ;;  %p8558_p5 = scmp.ne.s32.totalorder %s10625_s5, %s8557_s19 }
  0x93   : > { %v474_v5 = vsel %vm8938_vm4, %v469_v59, %v473_v42  ;;  %v542_v8 = vor.u32 %v8916_v28, %v8909_v23  ;;  %v484_v9 = vsel %vm8938_vm4, %v479_v0, %v483_v47  ;;  %v498_v11 = vor.u32 %v497_v2, %v493_v57  ;;  %v307_v38 = vld [vmem:[%s8875_s27 + $0x40] sm:$0xf]  ;;  %v308_v49 = vld [vmem:[%s8875_s27 + $0x44] sm:$0xf]  ;;  %v309_v55 = vld [vmem:[%s8875_s27 + $0x48] sm:$0xf] }
  0x94   : > { %v503_v12 = vrot.slane %v501_v60, 5  ;;  %v3329_v13 = vsel %vm2262_vm0, %v8401_v44, 0  ;;  %v6487_v16 = vcombine.low %v474_v5, %v484_v9  ;;  %v494_v17 = vsel %vm8938_vm4, %v489_v1, %v493_v57  ;;  %v305_v2 = vld [vmem:[%s8875_s27 + $0x38] sm:$0x1]  ;;  %p8559_p9 = pnand %p8558_p5, %p8768_p10  ;;  %s8654_s6 = smov [#allocation8]  }
  0x95   : > { %v552_v18 = vrot.slane %v550_v4, 4  ;;  %v563_v19 = vshrl.u32 %v302_v3, 16  ;;  %v499_v20 = vrot.slane %v498_v11, 4  ;;  %v8971_v21 = vcombine.low %v301_v62, %v302_v3  ;;  %v311_v11 = vld [vmem:[%s8875_s27 + $0x50] sm:$0xf]  ;;  %s8561_s2 = sshll.u32 %s8654_s6, 4  ;;  %s8562_s2 = int_to_ptr.vmem [resolvable:$false] %s8561_s2 }
  0x96   : > { %v569_v22 = vshll.u32 %v303_v14, 16  ;;  %v573_v25 = vshrl.u32 %v303_v14, 16  ;;  %7403 = vmatprep.mubr.msk.bf16.mxu1 %vm2069_vm1, %v6487_v16  ;;  %v555_v26 = vrot.slane %v553_v6, 5  ;;  %v8974_v27 = vrot.slane %v559_v7, 5  ;;  %p8560_p1 = pneg %p8559_p9  ;;  %s8563_s25 = scalar_lea.vmem %s8562_s2, 16384 }
  0x97   : > { %v579_v28 = vshll.u32 %v304_v15, 16  ;;  %v8976_v29 = vcombine.low %v303_v14, %v304_v15  ;;  %v504_v33 = vsel %vm8938_vm4, %v499_v20, %v503_v12  ;;  %v565_v34 = vrot.slane %v563_v19, 4  ;;  %7667 = vmatprep.mubr.msk.bf16.mxu0 %vm2069_vm1, %v8971_v21  ;;  %v312_v14 = vld [vmem:[%s8875_s27 + $0x54] sm:$0xf]  ;;  %p8564_p2 = scmp.lt.s32.totalorder %s10625_s5, %s8562_s2  ;;  %p8565_p7 = scmp.lt.s32.totalorder %s8563_s25, %s8557_s19 }
  0x98   : > { %v583_v35 = vshrl.u32 %v304_v15, 16  ;;  %v8983_v36 = vcombine.low %v518_v53, %v528_v63  ;;  %v6488_v39 = vcombine.low %v494_v17, %v504_v33  ;;  %v571_v40 = vrot.slane %v569_v22, 5 }
  0x99   : > { %v575_v41 = vrot.slane %v573_v25, 4  ;;  %7668 = vmatmul.mubr.msk.bf16.gmra.mrb[4].mxu0 %vm2069_vm1, %v8976_v29  ;;  %v533_v42 = vrot.slane %v532_v54, 4  ;;  %v543_v44 = vrot.slane %v542_v8, 4  ;;  %v545_v46 = vshll.u32 %v300_v32, 16  ;;  %p8566_p4 = por %p8565_p7, %p8564_p2 }
  0x9a   : > { %v594_v47 = vshrl.u32 %v306_v37, 16  ;;  %v597_v48 = vshll.u32 %v306_v37, 16  ;;  %7404 = vmatmul.mubr.msk.bf16.vlgmr.msra.gmra.mrb[0].mxu1 %vm2069_vm1, %v6488_v39  ;;  %v581_v50 = vrot.slane %v579_v28, 5  ;;  %v603_v51 = vshll.u32 %v307_v38, 16 }
  0x9b   : > { %v607_v52 = vshrl.u32 %v307_v38, 16  ;;  %v8991_v53 = vcombine.low %v306_v37, %v307_v38  ;;  %7532 = vmatpush3.bf16.msra.mxu1 %v3329_v13  ;;  %v585_v56 = vrot.slane %v583_v35, 4  ;;  %7407 = vmatprep.mubr.msk.bf16.mxu1 %vm2069_vm1, %v8983_v36  ;;  %v538_v54 = vsel %vm8938_vm4, %v533_v42, %v8909_v23  ;;  %v313_v37 = vld [vmem:[%s8875_s27 + $0x58] sm:$0xf]  ;;  %v314_v38 = vld [vmem:[%s8875_s27 + $0x5c] sm:$0xf]  ;;  %p8567_p8 = pnand %p8566_p4, %p8560_p1 }
  0x9c   : > { %v547_v57 = vrot.slane %v545_v46, 5  ;;  %v613_v58 = vshll.u32 %v308_v49, 16  ;;  %v596_v59 = vrot.slane %v594_v47, 4  ;;  %v599_v60 = vrot.slane %v597_v48, 5 }
  0x9d   : > { %v8999_v61 = vrot.slane %v603_v51, 5  ;;  %7671 = vmatprep.mubr.msk.bf16.mxu0 %vm2069_vm1, %v8991_v53  ;;  %v609_v63 = vrot.slane %v607_v52, 4  ;;  %v617_v0 = vshrl.u32 %v308_v49, 16  ;;  %v9005_v1 = vcombine.low %v308_v49, %v309_v55 }
  0x9e   : > { %v548_v62 = vsel %vm8938_vm4, %v543_v44, %v547_v57  ;;  %v9010_v3 = vrot.slane %v613_v58, 5  ;;  %v623_v4 = vshll.u32 %v309_v55, 16  ;;  %v556_v5 = vor.u32 %v555_v26, %v552_v18 }
  0x9f   : > { %v9008_v23 = vcombine.low %v538_v54, %v548_v62  ;;  %v627_v6 = vshrl.u32 %v309_v55, 16  ;;  %v566_v7 = vor.u32 %v565_v34, %v8974_v27  ;;  %v576_v8 = vor.u32 %v575_v41, %v571_v40 }
  0xa0   : > { %v586_v9 = vor.u32 %v585_v56, %v581_v50  ;;  %v557_v12 = vrot.slane %v556_v5, 4  ;;  %v589_v13 = vshll.u32 %v305_v2, 16  ;;  %v638_v15 = vshrl.u32 %v311_v11, 16 }
  0xa1   : > { %7672 = vmatmul.mubr.msk.bf16.gmra.mrb[8].mxu0 %vm2069_vm1, %v9005_v1  ;;  %v641_v16 = vshll.u32 %v311_v11, 16  ;;  %v567_v17 = vrot.slane %v566_v7, 4  ;;  %v577_v19 = vrot.slane %v576_v8, 4  ;;  %v647_v18 = vshll.u32 %v312_v14, 16 }
  0xa2   : > { %v587_v20 = vrot.slane %v586_v9, 4  ;;  %7408 = vmatmul.mubr.msk.bf16.gmra.mrb[4].mxu1 %vm2069_vm1, %v9008_v23  ;;  %v619_v22 = vrot.slane %v617_v0, 4  ;;  %v625_v25 = vrot.slane %v623_v4, 5  ;;  %v562_v26 = vsel %vm8938_vm4, %v557_v12, %v8974_v27  ;;  %v316_v4 = vld [vmem:[%s8875_s27 + $0x64] sm:$0xf] }
  0xa3   : > { %v591_v28 = vrot.slane %v589_v13, 5  ;;  %v629_v32 = vrot.slane %v627_v6, 4  ;;  %v572_v33 = vsel %vm8938_vm4, %v567_v17, %v571_v40  ;;  %v582_v34 = vsel %vm8938_vm4, %v577_v19, %v581_v50  ;;  %v310_v40 = vld [vmem:[%s8875_s27 + $0x4c] sm:$0x1]  ;;  %v319_v17 = vld [vmem:[%s8875_s27 + $0x70] sm:$0xf] }
  0xa4   : > { %v651_v35 = vshrl.u32 %v312_v14, 16  ;;  %v9028_v39 = vcombine.low %v562_v26, %v572_v33  ;;  %v9032_v42 = vcombine.low %v311_v11, %v312_v14  ;;  %v657_v27 = vshll.u32 %v313_v37, 16 }
  0xa5   : > { %v592_v41 = vsel %vm8938_vm4, %v587_v20, %v591_v28  ;;  %v640_v46 = vrot.slane %v638_v15, 4  ;;  %v643_v47 = vrot.slane %v641_v16, 5  ;;  %v9036_v48 = vrot.slane %v647_v18, 5  ;;  %v318_v16 = vld [vmem:[%s8875_s27 + $0x6c] sm:$0xf] }
  0xa6   : > { %v9034_v44 = vcombine.low %v582_v34, %v592_v41  ;;  %7411 = vmatprep.mubr.msk.bf16.mxu1 %vm2069_vm1, %v9028_v39  ;;  %v653_v49 = vrot.slane %v651_v35, 4  ;;  %7675 = vmatprep.mubr.msk.bf16.mxu0 %vm2069_vm1, %v9032_v42  ;;  %v661_v50 = vshrl.u32 %v313_v37, 16  ;;  %v9043_v51 = vcombine.low %v313_v37, %v314_v38  ;;  %v315_v35 = vld [vmem:[%s8875_s27 + $0x60] sm:$0x1] }
  0xa7   : > { %v600_v52 = vor.u32 %v599_v60, %v596_v59  ;;  %v9045_v55 = vrot.slane %v657_v27, 5  ;;  %v667_v56 = vshll.u32 %v314_v38, 16  ;;  %v610_v54 = vor.u32 %v609_v63, %v8999_v61  ;;  %v317_v59 = vld [vmem:[%s8875_s27 + $0x68] sm:$0xf] }
  0xa8   : > { %v620_v57 = vor.u32 %v619_v22, %v9010_v3  ;;  %v671_v58 = vshrl.u32 %v314_v38, 16  ;;  %v630_v0 = vor.u32 %v629_v32, %v625_v25  ;;  %v633_v2 = vshll.u32 %v310_v40, 16 }
  0xa9   : > { %7676 = vmatmul.mubr.msk.bf16.gmra.mrb[12].mxu0 %vm2069_vm1, %v9043_v51  ;;  %v601_v62 = vrot.slane %v600_v52, 4  ;;  %v611_v5 = vrot.slane %v610_v54, 4  ;;  %v682_v60 = vshrl.u32 %v316_v4, 16  ;;  %v685_v7 = vshll.u32 %v316_v4, 16  ;;  %v321_v54 = vld [vmem:[%s8875_s27 + $0x78] sm:$0xf] }
  0xaa   : > { %v621_v6 = vrot.slane %v620_v57, 4  ;;  %7412 = vmatmul.mubr.msk.bf16.gmra.mrb[8].mxu1 %vm2069_vm1, %v9034_v44  ;;  %v631_v8 = vrot.slane %v630_v0, 4  ;;  %v635_v9 = vrot.slane %v633_v2, 5  ;;  %v691_v11 = vshll.u32 %v317_v59, 16  ;;  %v322_v0 = vld [vmem:[%s8875_s27 + $0x7c] sm:$0xf] }
  0xab   : > { %v606_v63 = vsel %vm8938_vm4, %v601_v62, %v8999_v61  ;;  %v663_v12 = vrot.slane %v661_v50, 4  ;;  %v669_v13 = vrot.slane %v667_v56, 5  ;;  %v616_v14 = vsel %vm8938_vm4, %v611_v5, %v9010_v3 }
  0xac   : > { %v626_v15 = vsel %vm8938_vm4, %v621_v6, %v625_v25  ;;  %v673_v19 = vrot.slane %v671_v58, 4  ;;  %v9065_v20 = vcombine.low %v606_v63, %v616_v14  ;;  %v636_v61 = vsel %vm8938_vm4, %v631_v8, %v635_v9 }
  0xad   : > { %v695_v18 = vshrl.u32 %v317_v59, 16  ;;  %v684_v22 = vrot.slane %v682_v60, 4  ;;  %v687_v26 = vrot.slane %v685_v7, 5  ;;  %v9069_v28 = vcombine.low %v316_v4, %v317_v59 }
  0xae   : > { %v701_v32 = vshll.u32 %v318_v16, 16  ;;  %7415 = vmatprep.mubr.msk.bf16.mxu1 %vm2069_vm1, %v9065_v20  ;;  %v9073_v3 = vcombine.low %v626_v15, %v636_v61  ;;  %v9075_v25 = vrot.slane %v691_v11, 5  ;;  %v705_v33 = vshrl.u32 %v318_v16, 16  ;;  %v323_v11 = vld [vmem:[%s8875_s27 + $0x80] sm:$0xf] }
  0xaf   : > { %v9077_v34 = vcombine.low %v318_v16, %v319_v17  ;;  %v697_v37 = vrot.slane %v695_v18, 4  ;;  %7679 = vmatprep.mubr.msk.bf16.mxu0 %vm2069_vm1, %v9069_v28  ;;  %v711_v38 = vshll.u32 %v319_v17, 16  ;;  %v644_v41 = vor.u32 %v643_v47, %v640_v46 }
  0xb0   : > { %v654_v27 = vor.u32 %v653_v49, %v9036_v48  ;;  %v9083_v40 = vrot.slane %v701_v32, 5  ;;  %v715_v50 = vshrl.u32 %v319_v17, 16  ;;  %v664_v52 = vor.u32 %v663_v12, %v9045_v55  ;;  %v324_v12 = vld [vmem:[%s8875_s27 + $0x84] sm:$0xf] }
  0xb1   : > { %7680 = vmatmul.mubr.msk.bf16.gmra.mrb[16].mxu0 %vm2069_vm1, %v9077_v34  ;;  %v674_v56 = vor.u32 %v673_v19, %v669_v13  ;;  %v645_v57 = vrot.slane %v644_v41, 4  ;;  %v677_v62 = vshll.u32 %v315_v35, 16  ;;  %v726_v2 = vshrl.u32 %v321_v54, 16 }
  0xb2   : > { %v655_v58 = vrot.slane %v654_v27, 4  ;;  %7416 = vmatmul.mubr.msk.bf16.gmra.mrb[12].mxu1 %vm2069_vm1, %v9073_v3  ;;  %v665_v46 = vrot.slane %v664_v52, 4  ;;  %v729_v49 = vshll.u32 %v321_v54, 16  ;;  %v735_v4 = vshll.u32 %v322_v0, 16 }
  0xb3   : > { %v675_v47 = vrot.slane %v674_v56, 4  ;;  %v707_v5 = vrot.slane %v705_v33, 4  ;;  %v650_v6 = vsel %vm8938_vm4, %v645_v57, %v9036_v48  ;;  %v679_v60 = vrot.slane %v677_v62, 5  ;;  %v327_v62 = vld [vmem:[%s8875_s27 + $0x90] sm:$0xf] }
  0xb4   : > { %v660_v59 = vsel %vm8938_vm4, %v655_v58, %v9045_v55  ;;  %v713_v7 = vrot.slane %v711_v38, 5  ;;  %v717_v63 = vrot.slane %v715_v50, 4  ;;  %v670_v9 = vsel %vm8938_vm4, %v665_v46, %v669_v13  ;;  %v320_v13 = vld [vmem:[%s8875_s27 + $0x74] sm:$0x1]  ;;  %v326_v58 = vld [vmem:[%s8875_s27 + $0x8c] sm:$0xf] }
  0xb5   : > { %v9098_v8 = vcombine.low %v650_v6, %v660_v59  ;;  %v680_v14 = vsel %vm8938_vm4, %v675_v47, %v679_v60  ;;  %v739_v15 = vshrl.u32 %v322_v0, 16  ;;  %v9106_v48 = vcombine.low %v321_v54, %v322_v0 }
  0xb6   : > { %v745_v16 = vshll.u32 %v323_v11, 16  ;;  %v9110_v55 = vcombine.low %v670_v9, %v680_v14  ;;  %v728_v17 = vrot.slane %v726_v2, 4  ;;  %v731_v19 = vrot.slane %v729_v49, 5 }
  0xb7   : > { %7419 = vmatprep.mubr.msk.bf16.mxu1 %vm2069_vm1, %v9098_v8  ;;  %v9112_v61 = vrot.slane %v735_v4, 5  ;;  %7683 = vmatprep.mubr.msk.bf16.mxu0 %vm2069_vm1, %v9106_v48  ;;  %v749_v18 = vshrl.u32 %v323_v11, 16  ;;  %v755_v32 = vshll.u32 %v324_v12, 16  ;;  %v9117_v33 = vcombine.low %v323_v11, %v324_v12  ;;  %v328_v4 = vld [vmem:[%s8875_s27 + $0x94] sm:$0xf] }
  0xb8   : > { %v688_v35 = vor.u32 %v687_v26, %v684_v22  ;;  %v741_v38 = vrot.slane %v739_v15, 4  ;;  %v9119_v41 = vrot.slane %v745_v16, 5  ;;  %v759_v27 = vshrl.u32 %v324_v12, 16 }
  0xb9   : > { %v698_v50 = vor.u32 %v697_v37, %v9075_v25  ;;  %7684 = vmatmul.mubr.msk.bf16.gmra.mrb[20].mxu0 %vm2069_vm1, %v9117_v33  ;;  %v708_v56 = vor.u32 %v707_v5, %v9083_v40  ;;  %v718_v54 = vor.u32 %v717_v63, %v713_v7  ;;  %v721_v57 = vshll.u32 %v320_v13, 16  ;;  %v329_v63 = vld [vmem:[%s8875_s27 + $0x98] sm:$0xf] }
  0xba   : > { %v689_v52 = vrot.slane %v688_v35, 4  ;;  %7420 = vmatmul.mubr.msk.bf16.gmra.mrb[16].mxu1 %vm2069_vm1, %v9110_v55  ;;  %v770_v26 = vshrl.u32 %v326_v58, 16  ;;  %v773_v0 = vshll.u32 %v326_v58, 16  ;;  %v779_v2 = vshll.u32 %v327_v62, 16 }
  0xbb   : > { %v699_v22 = vrot.slane %v698_v50, 4  ;;  %v709_v46 = vrot.slane %v708_v56, 4  ;;  %v719_v47 = vrot.slane %v718_v54, 4  ;;  %v723_v49 = vrot.slane %v721_v57, 5 }
  0xbc   : > { %v694_v37 = vsel %vm8938_vm4, %v689_v52, %v9075_v25  ;;  %v751_v5 = vrot.slane %v749_v18, 4  ;;  %v757_v6 = vrot.slane %v755_v32, 5  ;;  %v761_v59 = vrot.slane %v759_v27, 4 }
  0xbd   : > { %v704_v60 = vsel %vm8938_vm4, %v699_v22, %v9083_v40  ;;  %v714_v11 = vsel %vm8938_vm4, %v709_v46, %v713_v7  ;;  %v724_v25 = vsel %vm8938_vm4, %v719_v47, %v723_v49  ;;  %v783_v12 = vshrl.u32 %v327_v62, 16  ;;  %v325_v7 = vld [vmem:[%s8875_s27 + $0x88] sm:$0x1]  ;;  %v331_v22 = vld [vmem:[%s8875_s27 + $0xa0] sm:$0xf] }
  0xbe   : > { %v9137_v9 = vcombine.low %v694_v37, %v704_v60  ;;  %v9143_v14 = vcombine.low %v714_v11, %v724_v25  ;;  %v772_v15 = vrot.slane %v770_v26, 4  ;;  %v9145_v16 = vcombine.low %v326_v58, %v327_v62 }
  0xbf   : > { %v789_v13 = vshll.u32 %v328_v4, 16  ;;  %v775_v40 = vrot.slane %v773_v0, 5  ;;  %v9149_v18 = vrot.slane %v779_v2, 5  ;;  %v793_v32 = vshrl.u32 %v328_v4, 16 }
  0xc0   : > { %10801 = vst [vmem:[#allocation15_spill] sm:$0xff] %v9145_v16  ;;  %7423 = vmatprep.mubr.msk.bf16.mxu1 %vm2069_vm1, %v9137_v9  ;;  %v9151_v35 = vcombine.low %v328_v4, %v329_v63  ;;  %v785_v27 = vrot.slane %v783_v12, 4  ;;  %7687 = vmatprep.mubr.msk.bf16.mxu0 %vm2069_vm1, %v9145_v16  ;;  %v799_v50 = vshll.u32 %v329_v63, 16  ;;  %v732_v52 = vor.u32 %v731_v19, %v728_v17  ;;  %v332_v17 = vld [vmem:[%s8875_s27 + $0xa4] sm:$0xf] }
  0xc1   : > { %v742_v56 = vor.u32 %v741_v38, %v9112_v61  ;;  %v9157_v54 = vrot.slane %v789_v13, 5  ;;  %v803_v57 = vshrl.u32 %v329_v63, 16  ;;  %v752_v58 = vor.u32 %v751_v5, %v9119_v41  ;;  %v333_v12 = vld [vmem:[%s8875_s27 + $0xa8] sm:$0xf]  ;;  %v334_v13 = vld [vmem:[%s8875_s27 + $0xac] sm:$0xf] }
  0xc2   : > { %10802 = vst [vmem:[#allocation16_spill] sm:$0xff] %v9151_v35  ;;  %7688 = vmatmul.mubr.msk.bf16.gmra.mrb[24].mxu0 %vm2069_vm1, %v9151_v35  ;;  %v762_v62 = vor.u32 %v761_v59, %v757_v6  ;;  %7424 = vmatmul.mubr.msk.bf16.gmra.mrb[20].mxu1 %vm2069_vm1, %v9143_v14  ;;  %v733_v26 = vrot.slane %v732_v52, 4  ;;  %v765_v2 = vshll.u32 %v325_v7, 16  ;;  %v814_v19 = vshrl.u32 %v331_v22, 16 }
  0xc3   : > { %v743_v0 = vrot.slane %v742_v56, 4  ;;  %v753_v38 = vrot.slane %v752_v58, 4  ;;  %v817_v46 = vshll.u32 %v331_v22, 16  ;;  %v823_v47 = vshll.u32 %v332_v17, 16  ;;  %v330_v58 = vld [vmem:[%s8875_s27 + $0x9c] sm:$0x1] }
  0xc4   : > { %v763_v37 = vrot.slane %v762_v62, 4  ;;  %v795_v49 = vrot.slane %v793_v32, 4  ;;  %v738_v4 = vsel %vm8938_vm4, %v733_v26, %v9112_v61  ;;  %v767_v59 = vrot.slane %v765_v2, 5 }
  0xc5   : > { %v748_v5 = vsel %vm8938_vm4, %v743_v0, %v9119_v41  ;;  %v801_v60 = vrot.slane %v799_v50, 5  ;;  %v805_v63 = vrot.slane %v803_v57, 4  ;;  %v758_v25 = vsel %vm8938_vm4, %v753_v38, %v757_v6 }
  0xc6   : > { %v9172_v11 = vcombine.low %v738_v4, %v748_v5  ;;  %v768_v32 = vsel %vm8938_vm4, %v763_v37, %v767_v59  ;;  %v827_v7 = vshrl.u32 %v332_v17, 16  ;;  %v9180_v61 = vcombine.low %v331_v22, %v332_v17 }
  0xc7   : > { %v833_v52 = vshll.u32 %v333_v12, 16  ;;  %v9184_v41 = vcombine.low %v758_v25, %v768_v32  ;;  %v816_v50 = vrot.slane %v814_v19, 4  ;;  %v819_v56 = vrot.slane %v817_v46, 5 }
  0xc8   : > { %10803 = vst [vmem:[#allocation17_spill] sm:$0xff] %v9180_v61  ;;  %7427 = vmatprep.mubr.msk.bf16.mxu1 %vm2069_vm1, %v9172_v11  ;;  %v9186_v57 = vrot.slane %v823_v47, 5  ;;  %7691 = vmatprep.mubr.msk.bf16.mxu0 %vm2069_vm1, %v9180_v61  ;;  %v837_v6 = vshrl.u32 %v333_v12, 16  ;;  %v843_v62 = vshll.u32 %v334_v13, 16  ;;  %v9191_v22 = vcombine.low %v333_v12, %v334_v13 }
  0xc9   : > { %v776_v26 = vor.u32 %v775_v40, %v772_v15  ;;  %v829_v0 = vrot.slane %v827_v7, 4  ;;  %v9193_v2 = vrot.slane %v833_v52, 5  ;;  %v847_v17 = vshrl.u32 %v334_v13, 16  ;;  %v336_v15 = vld [vmem:[%s8875_s27 + $0xb4] sm:$0xf] }
  0xca   : > { %10804 = vst [vmem:[#allocation18_spill] sm:$0xff] %v9191_v22  ;;  %v786_v19 = vor.u32 %v785_v27, %v9149_v18  ;;  %7428 = vmatmul.mubr.msk.bf16.gmra.mrb[24].mxu1 %vm2069_vm1, %v9184_v41  ;;  %7692 = vmatmul.mubr.msk.bf16.gmra.mrb[28].mxu0 %vm2069_vm1, %v9191_v22  ;;  %v796_v37 = vor.u32 %v795_v49, %v9157_v54  ;;  %v809_v47 = vshll.u32 %v330_v58, 16  ;;  %v337_v40 = vld [vmem:[%s8875_s27 + $0xb8] sm:$0xf]  ;;  %v858_v5 = vshrl.u32 %v336_v15, 16 }
  0xcb   : > { %v777_v38 = vrot.slane %v776_v26, 4  ;;  %v806_v46 = vor.u32 %v805_v63, %v801_v60  ;;  %v861_v59 = vshll.u32 %v336_v15, 16  ;;  %v867_v25 = vshll.u32 %v337_v40, 16  ;;  %v338_v7 = vld [vmem:[%s8875_s27 + $0xbc] sm:$0xf] }
  0xcc   : > { %v787_v4 = vrot.slane %v786_v19, 4  ;;  %v797_v12 = vrot.slane %v796_v37, 4  ;;  %v811_v32 = vrot.slane %v809_v47, 5  ;;  %v839_v52 = vrot.slane %v837_v6, 4  ;;  %v339_v58 = vld [vmem:[%s8875_s27 + $0xc0] sm:$0xf] }
  0xcd   : > { %v782_v27 = vsel %vm8938_vm4, %v777_v38, %v9149_v18  ;;  %v807_v13 = vrot.slane %v806_v46, 4  ;;  %v845_v26 = vrot.slane %v843_v62, 5  ;;  %v849_v49 = vrot.slane %v847_v17, 4 }
  0xce   : > { %v792_v63 = vsel %vm8938_vm4, %v787_v4, %v9157_v54  ;;  %v802_v43 = vsel %vm8938_vm4, %v797_v12, %v801_v60  ;;  %v871_v38 = vshrl.u32 %v337_v40, 16  ;;  %v860_v6 = vrot.slane %v858_v5, 4  ;;  %v335_v60 = vld [vmem:[%s8875_s27 + $0xb0] sm:$0x1] }
  0xcf   : > { %v9211_v19 = vcombine.low %v782_v27, %v792_v63  ;;  %v812_v18 = vsel %vm8938_vm4, %v807_v13, %v811_v32  ;;  %v9219_v62 = vcombine.low %v336_v15, %v337_v40  ;;  %v877_v17 = vshll.u32 %v338_v7, 16  ;;  %v341_v13 = vld [vmem:[%s8875_s27 + $0xc8] sm:$0xf] }
  0xd0   : > { %v9217_v37 = vcombine.low %v802_v43, %v812_v18  ;;  %v863_v54 = vrot.slane %v861_v59, 5  ;;  %v9223_v46 = vrot.slane %v867_v25, 5  ;;  %v881_v47 = vshrl.u32 %v338_v7, 16 }
  0xd1   : > { %10805 = vst [vmem:[#allocation19_spill] sm:$0xff] %v9219_v62  ;;  %7431 = vmatprep.mubr.msk.bf16.mxu1 %vm2069_vm1, %v9211_v19  ;;  %v9225_v4 = vcombine.low %v338_v7, %v339_v58  ;;  %v873_v27 = vrot.slane %v871_v38, 4  ;;  %7695 = vmatprep.mubr.msk.bf16.mxu0 %vm2069_vm1, %v9219_v62  ;;  %v887_v43 = vshll.u32 %v339_v58, 16  ;;  %v820_v15 = vor.u32 %v819_v56, %v816_v50  ;;  %v342_v50 = vld [vmem:[%s8875_s27 + $0xcc] sm:$0xf] }
  0xd2   : > { %v830_v40 = vor.u32 %v829_v0, %v9186_v57  ;;  %7432 = vmatmul.mubr.msk.bf16.gmra.mrb[28].mxu1 %vm2069_vm1, %v9217_v37  ;;  %v9233_v5 = vrot.slane %v877_v17, 5  ;;  %v891_v59 = vshrl.u32 %v339_v58, 16  ;;  %v840_v25 = vor.u32 %v839_v52, %v9193_v2 }
  0xd3   : > { %10806 = vst [vmem:[#allocation20_spill] sm:$0xff] %v9225_v4  ;;  %7696 = vmatmul.mubr.msk.bf16.gmra.mrb[32].mxu0 %vm2069_vm1, %v9225_v4  ;;  %v850_v12 = vor.u32 %v849_v49, %v845_v26  ;;  %v821_v32 = vrot.slane %v820_v15, 4  ;;  %v853_v63 = vshll.u32 %v335_v60, 16  ;;  %v902_v56 = vshrl.u32 %v341_v13, 16  ;;  %v344_v4 = vld [vmem:[%s8875_s27 + $0xd4] sm:$0xf] }
  0xd4   : > { %v831_v7 = vrot.slane %v830_v40, 4  ;;  %v841_v0 = vrot.slane %v840_v25, 4  ;;  %v905_v38 = vshll.u32 %v341_v13, 16  ;;  %v911_v17 = vshll.u32 %v342_v50, 16 }
  0xd5   : > { %v851_v18 = vrot.slane %v850_v12, 4  ;;  %v883_v62 = vrot.slane %v881_v47, 4  ;;  %v826_v58 = vsel %vm8938_vm4, %v821_v32, %v9186_v57  ;;  %v855_v49 = vrot.slane %v853_v63, 5  ;;  %v343_v12 = vld [vmem:[%s8875_s27 + $0xd0] sm:$0xf] }
  0xd6   : > { %v836_v52 = vsel %vm8938_vm4, %v831_v7, %v9193_v2  ;;  %v889_v15 = vrot.slane %v887_v43, 5  ;;  %v893_v60 = vrot.slane %v891_v59, 4  ;;  %v846_v25 = vsel %vm8938_vm4, %v841_v0, %v845_v26  ;;  %v340_v63 = vld [vmem:[%s8875_s27 + $0xc4] sm:$0x1] }
  0xd7   : > { %v9246_v40 = vcombine.low %v826_v58, %v836_v52  ;;  %v856_v47 = vsel %vm8938_vm4, %v851_v18, %v855_v49  ;;  %v915_v22 = vshrl.u32 %v342_v50, 16  ;;  %v9254_v57 = vcombine.low %v341_v13, %v342_v50 }
  0xd8   : > { %v921_v32 = vshll.u32 %v343_v12, 16  ;;  %v9258_v2 = vcombine.low %v846_v25, %v856_v47  ;;  %v904_v43 = vrot.slane %v902_v56, 4  ;;  %v907_v59 = vrot.slane %v905_v38, 5 }
  0xd9   : > { %10807 = vst [vmem:[#allocation21_spill] sm:$0xff] %v9254_v57  ;;  %7435 = vmatprep.mubr.msk.bf16.mxu1 %vm2069_vm1, %v9246_v40  ;;  %v9260_v7 = vrot.slane %v911_v17, 5  ;;  %7699 = vmatprep.mubr.msk.bf16.mxu0 %vm2069_vm1, %v9254_v57  ;;  %v925_v26 = vshrl.u32 %v343_v12, 16  ;;  %v931_v0 = vshll.u32 %v344_v4, 16  ;;  %v9265_v13 = vcombine.low %v343_v12, %v344_v4 }
  0xda   : > { %v864_v50 = vor.u32 %v863_v54, %v860_v6  ;;  %7436 = vmatmul.mubr.msk.bf16.gmra.mrb[32].mxu1 %vm2069_vm1, %v9258_v2  ;;  %v917_v18 = vrot.slane %v915_v22, 4  ;;  %v9269_v58 = vrot.slane %v921_v32, 5  ;;  %v935_v56 = vshrl.u32 %v344_v4, 16  ;;  %v346_v6 = vld [vmem:[%s8875_s27 + $0xdc] sm:$0xf] }
  0xdb   : > { %10808 = vst [vmem:[#allocation22_spill] sm:$0xff] %v9265_v13  ;;  %v874_v38 = vor.u32 %v873_v27, %v9223_v46  ;;  %7700 = vmatmul.mubr.msk.bf16.gmra.mrb[36].mxu0 %vm2069_vm1, %v9265_v13  ;;  %v884_v52 = vor.u32 %v883_v62, %v9233_v5  ;;  %v894_v49 = vor.u32 %v893_v60, %v889_v15  ;;  %v897_v25 = vshll.u32 %v340_v63, 16  ;;  %v347_v54 = vld [vmem:[%s8875_s27 + $0xe0] sm:$0xf]  ;;  %v348_v13 = vld [vmem:[%s8875_s27 + $0xe4] sm:$0xf] }
  0xdc   : > { %v865_v17 = vrot.slane %v864_v50, 4  ;;  %v946_v47 = vshrl.u32 %v346_v6, 16  ;;  %v949_v22 = vshll.u32 %v346_v6, 16  ;;  %v955_v32 = vshll.u32 %v347_v54, 16  ;;  %v349_v63 = vld [vmem:[%s8875_s27 + $0xe8] sm:$0xf] }
  0xdd   : > { %v875_v12 = vrot.slane %v874_v38, 4  ;;  %v885_v27 = vrot.slane %v884_v52, 4  ;;  %v895_v57 = vrot.slane %v894_v49, 4  ;;  %v899_v61 = vrot.slane %v897_v25, 5 }
  0xde   : > { %v870_v4 = vsel %vm8938_vm4, %v865_v17, %v9223_v46  ;;  %v927_v50 = vrot.slane %v925_v26, 4  ;;  %v933_v35 = vrot.slane %v931_v0, 5  ;;  %v937_v62 = vrot.slane %v935_v56, 4 }
  0xdf   : > { %v880_v60 = vsel %vm8938_vm4, %v875_v12, %v9233_v5  ;;  %v890_v16 = vsel %vm8938_vm4, %v885_v27, %v889_v15  ;;  %v900_v46 = vsel %vm8938_vm4, %v895_v57, %v899_v61  ;;  %v959_v17 = vshrl.u32 %v347_v54, 16  ;;  %v345_v15 = vld [vmem:[%s8875_s27 + $0xd8] sm:$0x1] }
  0xe0   : > { %v9285_v38 = vcombine.low %v870_v4, %v880_v60  ;;  %v9291_v52 = vcombine.low %v890_v16, %v900_v46  ;;  %v948_v26 = vrot.slane %v946_v47, 4  ;;  %v9293_v0 = vcombine.low %v346_v6, %v347_v54  ;;  %v352_v46 = vld [vmem:[%s8875_s27 + $0xf4] sm:$0xf] }
  0xe1   : > { %v965_v56 = vshll.u32 %v348_v13, 16  ;;  %v951_v5 = vrot.slane %v949_v22, 5  ;;  %v9297_v49 = vrot.slane %v955_v32, 5  ;;  %v969_v25 = vshrl.u32 %v348_v13, 16  ;;  %v351_v32 = vld [vmem:[%s8875_s27 + $0xf0] sm:$0xf] }
  0xe2   : > { %10809 = vst [vmem:[#allocation23_spill] sm:$0xff] %v9285_v38  ;;  %10810 = vst [vmem:[#allocation24_spill] sm:$0xff] %v9291_v52  ;;  %7439 = vmatprep.mubr.msk.bf16.mxu1 %vm2069_vm1, %v9285_v38  ;;  %v9299_v12 = vcombine.low %v348_v13, %v349_v63  ;;  %v961_v16 = vrot.slane %v959_v17, 4  ;;  %7703 = vmatprep.mubr.msk.bf16.mxu0 %vm2069_vm1, %v9293_v0  ;;  %v975_v61 = vshll.u32 %v349_v63, 16  ;;  %v979_v47 = vshrl.u32 %v349_v63, 16 }
  0xe3   : > { %10811 = vst [vmem:[#allocation25_spill] sm:$0xff] %v9293_v0  ;;  %7440 = vmatmul.mubr.msk.bf16.gmra.mrb[36].mxu1 %vm2069_vm1, %v9291_v52  ;;  %v908_v57 = vor.u32 %v907_v59, %v904_v43  ;;  %v918_v6 = vor.u32 %v917_v18, %v9260_v7  ;;  %v9307_v54 = vrot.slane %v965_v56, 5  ;;  %v928_v13 = vor.u32 %v927_v50, %v9269_v58 }
  0xe4   : > { %10812 = vst [vmem:[#allocation26_spill] sm:$0xff] %v9299_v12  ;;  %7704 = vmatmul.mubr.msk.bf16.gmra.mrb[40].mxu0 %vm2069_vm1, %v9299_v12  ;;  %v938_v22 = vor.u32 %v937_v62, %v933_v35  ;;  %v941_v60 = vshll.u32 %v345_v15, 16  ;;  %v990_v17 = vshrl.u32 %v351_v32, 16  ;;  %v993_v18 = vshll.u32 %v351_v32, 16  ;;  %v354_v12 = vld [vmem:[%s8875_s27 + $0xfc] sm:$0xf] }
  0xe5   : > { %v909_v4 = vrot.slane %v908_v57, 4  ;;  %v919_v27 = vrot.slane %v918_v6, 4  ;;  %v929_v43 = vrot.slane %v928_v13, 4  ;;  %v999_v56 = vshll.u32 %v352_v46, 16 }
  0xe6   : > { %v939_v59 = vrot.slane %v938_v22, 4  ;;  %v971_v0 = vrot.slane %v969_v25, 4  ;;  %v943_v62 = vrot.slane %v941_v60, 5  ;;  %v977_v57 = vrot.slane %v975_v61, 5  ;;  %v353_v22 = vld [vmem:[%s8875_s27 + $0xf8] sm:$0xf] }
  0xe7   : > { %v914_v63 = vsel %vm8938_vm4, %v909_v4, %v9260_v7  ;;  %v924_v50 = vsel %vm8938_vm4, %v919_v27, %v9269_v58  ;;  %v981_v15 = vrot.slane %v979_v47, 4  ;;  %v934_v13 = vsel %vm8938_vm4, %v929_v43, %v933_v35  ;;  %v350_v60 = vld [vmem:[%s8875_s27 + $0xec] sm:$0x1] }
  0xe8   : > { %v9320_v6 = vcombine.low %v914_v63, %v924_v50  ;;  %v944_v25 = vsel %vm8938_vm4, %v939_v59, %v943_v62  ;;  %v1003_v52 = vshrl.u32 %v352_v46, 16  ;;  %v9328_v7 = vcombine.low %v351_v32, %v352_v46 }
  0xe9   : > { %v1009_v4 = vshll.u32 %v353_v22, 16  ;;  %v9332_v58 = vcombine.low %v934_v13, %v944_v25  ;;  %v992_v61 = vrot.slane %v990_v17, 4  ;;  %v995_v47 = vrot.slane %v993_v18, 5 }
  0xea   : > { %10813 = vst [vmem:[#allocation27_spill] sm:$0xff] %v9320_v6  ;;  %10814 = vst [vmem:[#allocation28_spill] sm:$0xff] %v9328_v7  ;;  %7443 = vmatprep.mubr.msk.bf16.mxu1 %vm2069_vm1, %v9320_v6  ;;  %v9334_v27 = vrot.slane %v999_v56, 5  ;;  %7707 = vmatprep.mubr.msk.bf16.mxu0 %vm2069_vm1, %v9328_v7  ;;  %v1013_v35 = vshrl.u32 %v353_v22, 16  ;;  %v1019_v43 = vshll.u32 %v354_v12, 16  ;;  %v9339_v32 = vcombine.low %v353_v22, %v354_v12 }
  0xeb   : > { %10815 = vst [vmem:[#allocation29_spill] sm:$0xff] %v9332_v58  ;;  %v952_v46 = vor.u32 %v951_v5, %v948_v26  ;;  %7444 = vmatmul.mubr.msk.bf16.gmra.mrb[40].mxu1 %vm2069_vm1, %v9332_v58  ;;  %v1005_v59 = vrot.slane %v1003_v52, 4  ;;  %v9343_v63 = vrot.slane %v1009_v4, 5  ;;  %v1023_v17 = vshrl.u32 %v354_v12, 16  ;;  %v356_v26 = vld [vmem:[%s8875_s27 + $0x104] sm:$0xf] }
  0xec   : > { %10816 = vst [vmem:[#allocation30_spill] sm:$0xff] %v9339_v32  ;;  %v962_v18 = vor.u32 %v961_v16, %v9297_v49  ;;  %7708 = vmatmul.mubr.msk.bf16.gmra.mrb[44].mxu0 %vm2069_vm1, %v9339_v32  ;;  %v972_v50 = vor.u32 %v971_v0, %v9307_v54  ;;  %v982_v62 = vor.u32 %v981_v15, %v977_v57  ;;  %v985_v13 = vshll.u32 %v350_v60, 16  ;;  %v357_v5 = vld [vmem:[%s8875_s27 + $0x108] sm:$0xf]  ;;  %v358_v32 = vld [vmem:[%s8875_s27 + $0x10c] sm:$0xf] }
  0xed   : > { %v953_v56 = vrot.slane %v952_v46, 4  ;;  %v1034_v25 = vshrl.u32 %v356_v26, 16  ;;  %v1037_v52 = vshll.u32 %v356_v26, 16  ;;  %v1043_v4 = vshll.u32 %v357_v5, 16  ;;  %v359_v60 = vld [vmem:[%s8875_s27 + $0x110] sm:$0xf] }
  0xee   : > { %v963_v22 = vrot.slane %v962_v18, 4  ;;  %v973_v16 = vrot.slane %v972_v50, 4  ;;  %v983_v7 = vrot.slane %v982_v62, 4  ;;  %v987_v58 = vrot.slane %v985_v13, 5 }
  0xef   : > { %v958_v12 = vsel %vm8938_vm4, %v953_v56, %v9297_v49  ;;  %v1015_v46 = vrot.slane %v1013_v35, 4  ;;  %v1021_v6 = vrot.slane %v1019_v43, 5  ;;  %v1025_v0 = vrot.slane %v1023_v17, 4 }
  0xf0   : > { %v968_v15 = vsel %vm8938_vm4, %v963_v22, %v9307_v54  ;;  %v978_v38 = vsel %vm8938_vm4, %v973_v16, %v977_v57  ;;  %v988_v49 = vsel %vm8938_vm4, %v983_v7, %v987_v58  ;;  %v1047_v56 = vshrl.u32 %v357_v5, 16  ;;  %v355_v57 = vld [vmem:[%s8875_s27 + $0x100] sm:$0x1] }
  0xf1   : > { %v9359_v18 = vcombine.low %v958_v12, %v968_v15  ;;  %v9365_v50 = vcombine.low %v978_v38, %v988_v49  ;;  %v1036_v35 = vrot.slane %v1034_v25, 4  ;;  %v9367_v43 = vcombine.low %v356_v26, %v357_v5  ;;  %v362_v49 = vld [vmem:[%s8875_s27 + $0x11c] sm:$0xf] }
  0xf2   : > { %v1053_v17 = vshll.u32 %v358_v32, 16  ;;  %v1039_v54 = vrot.slane %v1037_v52, 5  ;;  %v9371_v62 = vrot.slane %v1043_v4, 5  ;;  %v1057_v13 = vshrl.u32 %v358_v32, 16  ;;  %v361_v4 = vld [vmem:[%s8875_s27 + $0x118] sm:$0xf] }
  0xf3   : > { %10817 = vst [vmem:[#allocation31_spill] sm:$0xff] %v9359_v18  ;;  %10818 = vst [vmem:[#allocation32_spill] sm:$0xff] %v9365_v50  ;;  %7447 = vmatprep.mubr.msk.bf16.mxu1 %vm2069_vm1, %v9359_v18  ;;  %v9373_v22 = vcombine.low %v358_v32, %v359_v60  ;;  %v1049_v38 = vrot.slane %v1047_v56, 4  ;;  %7711 = vmatprep.mubr.msk.bf16.mxu0 %vm2069_vm1, %v9367_v43  ;;  %v1063_v7 = vshll.u32 %v359_v60, 16  ;;  %v1067_v25 = vshrl.u32 %v359_v60, 16 }
  0xf4   : > { %10819 = vst [vmem:[#allocation33_spill] sm:$0xff] %v9367_v43  ;;  %7448 = vmatmul.mubr.msk.bf16.gmra.mrb[44].mxu1 %vm2069_vm1, %v9365_v50  ;;  %v996_v58 = vor.u32 %v995_v47, %v992_v61  ;;  %v1006_v26 = vor.u32 %v1005_v59, %v9334_v27  ;;  %v9381_v5 = vrot.slane %v1053_v17, 5  ;;  %v1016_v32 = vor.u32 %v1015_v46, %v9343_v63 }
  0xf5   : > { %10820 = vst [vmem:[#allocation34_spill] sm:$0xff] %v9373_v22  ;;  %7712 = vmatmul.mubr.msk.bf16.gmra.mrb[48].mxu0 %vm2069_vm1, %v9373_v22  ;;  %v1026_v52 = vor.u32 %v1025_v0, %v1021_v6  ;;  %v1029_v15 = vshll.u32 %v355_v57, 16  ;;  %v1078_v56 = vshrl.u32 %v361_v4, 16  ;;  %v1081_v59 = vshll.u32 %v361_v4, 16  ;;  %v364_v22 = vld [vmem:[%s8875_s27 + $0x124] sm:$0xf] }
  0xf6   : > { %v997_v12 = vrot.slane %v996_v58, 4  ;;  %v1007_v16 = vrot.slane %v1006_v26, 4  ;;  %v1017_v61 = vrot.slane %v1016_v32, 4  ;;  %v1087_v17 = vshll.u32 %v362_v49, 16 }
  0xf7   : > { %v1027_v47 = vrot.slane %v1026_v52, 4  ;;  %v1059_v43 = vrot.slane %v1057_v13, 4  ;;  %v1031_v0 = vrot.slane %v1029_v15, 5  ;;  %v1065_v58 = vrot.slane %v1063_v7, 5  ;;  %v363_v52 = vld [vmem:[%s8875_s27 + $0x120] sm:$0xf] }
  0xf8   : > { %v1002_v60 = vsel %vm8938_vm4, %v997_v12, %v9334_v27  ;;  %v1012_v46 = vsel %vm8938_vm4, %v1007_v16, %v9343_v63  ;;  %v1069_v57 = vrot.slane %v1067_v25, 4  ;;  %v1022_v32 = vsel %vm8938_vm4, %v1017_v61, %v1021_v6  ;;  %v360_v15 = vld [vmem:[%s8875_s27 + $0x114] sm:$0x1] }
  0xf9   : > { %v9394_v26 = vcombine.low %v1002_v60, %v1012_v46  ;;  %v1032_v13 = vsel %vm8938_vm4, %v1027_v47, %v1031_v0  ;;  %v1091_v50 = vshrl.u32 %v362_v49, 16  ;;  %v9402_v27 = vcombine.low %v361_v4, %v362_v49 }
  0xfa   : > { %v1097_v12 = vshll.u32 %v363_v52, 16  ;;  %v9406_v63 = vcombine.low %v1022_v32, %v1032_v13  ;;  %v1080_v7 = vrot.slane %v1078_v56, 4  ;;  %v1083_v25 = vrot.slane %v1081_v59, 5 }
  0xfb   : > { %10821 = vst [vmem:[#allocation35_spill] sm:$0xff] %v9394_v26  ;;  %10822 = vst [vmem:[#allocation36_spill] sm:$0xff] %v9402_v27  ;;  %7451 = vmatprep.mubr.msk.bf16.mxu1 %vm2069_vm1, %v9394_v26  ;;  %v9408_v16 = vrot.slane %v1087_v17, 5  ;;  %7715 = vmatprep.mubr.msk.bf16.mxu0 %vm2069_vm1, %v9402_v27  ;;  %v1101_v6 = vshrl.u32 %v363_v52, 16  ;;  %v1107_v61 = vshll.u32 %v364_v22, 16  ;;  %v9413_v4 = vcombine.low %v363_v52, %v364_v22 }
  0xfc   : > { %10823 = vst [vmem:[#allocation37_spill] sm:$0xff] %v9406_v63  ;;  %v1040_v49 = vor.u32 %v1039_v54, %v1036_v35  ;;  %7452 = vmatmul.mubr.msk.bf16.gmra.mrb[48].mxu1 %vm2069_vm1, %v9406_v63  ;;  %v1093_v47 = vrot.slane %v1091_v50, 4  ;;  %v9417_v60 = vrot.slane %v1097_v12, 5  ;;  %v1111_v56 = vshrl.u32 %v364_v22, 16  ;;  %v366_v35 = vld [vmem:[%s8875_s27 + $0x12c] sm:$0xf] }
  0xfd   : > { %10824 = vst [vmem:[#allocation38_spill] sm:$0xff] %v9413_v4  ;;  %v1050_v59 = vor.u32 %v1049_v38, %v9371_v62  ;;  %7716 = vmatmul.mubr.msk.bf16.gmra.mrb[52].mxu0 %vm2069_vm1, %v9413_v4  ;;  %v1060_v46 = vor.u32 %v1059_v43, %v9381_v5  ;;  %v1070_v0 = vor.u32 %v1069_v57, %v1065_v58  ;;  %v1073_v32 = vshll.u32 %v360_v15, 16  ;;  %v367_v54 = vld [vmem:[%s8875_s27 + $0x130] sm:$0xf]  ;;  %v368_v4 = vld [vmem:[%s8875_s27 + $0x134] sm:$0xf] }
  0xfe   : > { %v1041_v17 = vrot.slane %v1040_v49, 4  ;;  %v1122_v13 = vshrl.u32 %v366_v35, 16  ;;  %v1125_v50 = vshll.u32 %v366_v35, 16  ;;  %v1131_v12 = vshll.u32 %v367_v54, 16  ;;  %v369_v15 = vld [vmem:[%s8875_s27 + $0x138] sm:$0xf] }
  0xff   : > { %v1051_v52 = vrot.slane %v1050_v59, 4  ;;  %v1061_v38 = vrot.slane %v1060_v46, 4  ;;  %v1071_v27 = vrot.slane %v1070_v0, 4  ;;  %v1075_v63 = vrot.slane %v1073_v32, 5 }
 0x100   : > { %v1046_v22 = vsel %vm8938_vm4, %v1041_v17, %v9371_v62  ;;  %v1103_v49 = vrot.slane %v1101_v6, 4  ;;  %v1109_v26 = vrot.slane %v1107_v61, 5  ;;  %v1113_v43 = vrot.slane %v1111_v56, 4 }
 0x101   : > { %v1056_v57 = vsel %vm8938_vm4, %v1051_v52, %v9381_v5  ;;  %v1066_v18 = vsel %vm8938_vm4, %v1061_v38, %v1065_v58  ;;  %v1076_v62 = vsel %vm8938_vm4, %v1071_v27, %v1075_v63  ;;  %v1135_v17 = vshrl.u32 %v367_v54, 16  ;;  %v365_v58 = vld [vmem:[%s8875_s27 + $0x128] sm:$0x1] }
 0x102   : > { %v9433_v59 = vcombine.low %v1046_v22, %v1056_v57  ;;  %v9439_v46 = vcombine.low %v1066_v18, %v1076_v62  ;;  %v1124_v6 = vrot.slane %v1122_v13, 4  ;;  %v9441_v61 = vcombine.low %v366_v35, %v367_v54  ;;  %v372_v62 = vld [vmem:[%s8875_s27 + $0x144] sm:$0xf] }
 0x103   : > { %v1141_v56 = vshll.u32 %v368_v4, 16  ;;  %v1127_v5 = vrot.slane %v1125_v50, 5  ;;  %v9445_v0 = vrot.slane %v1131_v12, 5  ;;  %v1145_v32 = vshrl.u32 %v368_v4, 16  ;;  %v371_v12 = vld [vmem:[%s8875_s27 + $0x140] sm:$0xf] }
 0x104   : > { %10825 = vst [vmem:[#allocation39_spill] sm:$0xff] %v9433_v59  ;;  %10826 = vst [vmem:[#allocation40_spill] sm:$0xff] %v9439_v46  ;;  %7455 = vmatprep.mubr.msk.bf16.mxu1 %vm2069_vm1, %v9433_v59  ;;  %v9447_v52 = vcombine.low %v368_v4, %v369_v15  ;;  %v1137_v18 = vrot.slane %v1135_v17, 4  ;;  %7719 = vmatprep.mubr.msk.bf16.mxu0 %vm2069_vm1, %v9441_v61  ;;  %v1151_v27 = vshll.u32 %v369_v15, 16  ;;  %v1155_v13 = vshrl.u32 %v369_v15, 16 }
 0x105   : > { %10827 = vst [vmem:[#allocation41_spill] sm:$0xff] %v9441_v61  ;;  %7456 = vmatmul.mubr.msk.bf16.gmra.mrb[52].mxu1 %vm2069_vm1, %v9439_v46  ;;  %v1084_v63 = vor.u32 %v1083_v25, %v1080_v7  ;;  %v1094_v35 = vor.u32 %v1093_v47, %v9408_v16  ;;  %v9455_v54 = vrot.slane %v1141_v56, 5  ;;  %v1104_v4 = vor.u32 %v1103_v49, %v9417_v60 }
 0x106   : > { %10828 = vst [vmem:[#allocation42_spill] sm:$0xff] %v9447_v52  ;;  %7720 = vmatmul.mubr.msk.bf16.gmra.mrb[56].mxu0 %vm2069_vm1, %v9447_v52  ;;  %v1114_v50 = vor.u32 %v1113_v43, %v1109_v26  ;;  %v1117_v57 = vshll.u32 %v365_v58, 16  ;;  %v1166_v17 = vshrl.u32 %v371_v12, 16  ;;  %v1169_v47 = vshll.u32 %v371_v12, 16  ;;  %v374_v52 = vld [vmem:[%s8875_s27 + $0x14c] sm:$0xf] }
 0x107   : > { %v1085_v22 = vrot.slane %v1084_v63, 4  ;;  %v1095_v38 = vrot.slane %v1094_v35, 4  ;;  %v1105_v7 = vrot.slane %v1104_v4, 4  ;;  %v1175_v56 = vshll.u32 %v372_v62, 16 }
 0x108   : > { %v1115_v25 = vrot.slane %v1114_v50, 4  ;;  %v1147_v61 = vrot.slane %v1145_v32, 4  ;;  %v1119_v43 = vrot.slane %v1117_v57, 5  ;;  %v1153_v63 = vrot.slane %v1151_v27, 5  ;;  %v373_v50 = vld [vmem:[%s8875_s27 + $0x148] sm:$0xf] }
 0x109   : > { %v1090_v15 = vsel %vm8938_vm4, %v1085_v22, %v9408_v16  ;;  %v1100_v49 = vsel %vm8938_vm4, %v1095_v38, %v9417_v60  ;;  %v1157_v58 = vrot.slane %v1155_v13, 4  ;;  %v1110_v4 = vsel %vm8938_vm4, %v1105_v7, %v1109_v26  ;;  %v370_v57 = vld [vmem:[%s8875_s27 + $0x13c] sm:$0x1] }
 0x10a   : > { %v9468_v35 = vcombine.low %v1090_v15, %v1100_v49  ;;  %v1120_v32 = vsel %vm8938_vm4, %v1115_v25, %v1119_v43  ;;  %v1179_v46 = vshrl.u32 %v372_v62, 16  ;;  %v9476_v16 = vcombine.low %v371_v12, %v372_v62 }
 0x10b   : > { %v1185_v22 = vshll.u32 %v373_v50, 16  ;;  %v9480_v60 = vcombine.low %v1110_v4, %v1120_v32  ;;  %v1168_v27 = vrot.slane %v1166_v17, 4  ;;  %v1171_v13 = vrot.slane %v1169_v47, 5 }
 0x10c   : > { %10829 = vst [vmem:[#allocation43_spill] sm:$0xff] %v9468_v35  ;;  %10830 = vst [vmem:[#allocation44_spill] sm:$0xff] %v9476_v16  ;;  %7459 = vmatprep.mubr.msk.bf16.mxu1 %vm2069_vm1, %v9468_v35  ;;  %v9482_v38 = vrot.slane %v1175_v56, 5  ;;  %7723 = vmatprep.mubr.msk.bf16.mxu0 %vm2069_vm1, %v9476_v16  ;;  %v1189_v26 = vshrl.u32 %v373_v50, 16  ;;  %v1195_v7 = vshll.u32 %v374_v52, 16  ;;  %v9487_v12 = vcombine.low %v373_v50, %v374_v52 }
 0x10d   : > { %10831 = vst [vmem:[#allocation45_spill] sm:$0xff] %v9480_v60  ;;  %v1128_v62 = vor.u32 %v1127_v5, %v1124_v6  ;;  %7460 = vmatmul.mubr.msk.bf16.gmra.mrb[56].mxu1 %vm2069_vm1, %v9480_v60  ;;  %v1181_v25 = vrot.slane %v1179_v46, 4  ;;  %v9491_v15 = vrot.slane %v1185_v22, 5  ;;  %v1199_v17 = vshrl.u32 %v374_v52, 16  ;;  %v376_v6 = vld [vmem:[%s8875_s27 + $0x154] sm:$0xf] }
 0x10e   : > { %10832 = vst [vmem:[#allocation46_spill] sm:$0xff] %v9487_v12  ;;  %v1138_v47 = vor.u32 %v1137_v18, %v9445_v0  ;;  %7724 = vmatmul.mubr.msk.bf16.gmra.mrb[60].mxu0 %vm2069_vm1, %v9487_v12  ;;  %v1148_v49 = vor.u32 %v1147_v61, %v9455_v54  ;;  %v1158_v43 = vor.u32 %v1157_v58, %v1153_v63  ;;  %v1161_v4 = vshll.u32 %v370_v57, 16  ;;  %v377_v5 = vld [vmem:[%s8875_s27 + $0x158] sm:$0xf]  ;;  %v378_v12 = vld [vmem:[%s8875_s27 + $0x15c] sm:$0xf] }
 0x10f   : > { %v1129_v56 = vrot.slane %v1128_v62, 4  ;;  %v1210_v32 = vshrl.u32 %v376_v6, 16  ;;  %v1213_v46 = vshll.u32 %v376_v6, 16  ;;  %v1219_v22 = vshll.u32 %v377_v5, 16  ;;  %v379_v57 = vld [vmem:[%s8875_s27 + $0x160] sm:$0xf] }
 0x110   : > { %v1139_v50 = vrot.slane %v1138_v47, 4  ;;  %v1149_v18 = vrot.slane %v1148_v49, 4  ;;  %v1159_v16 = vrot.slane %v1158_v43, 4  ;;  %v1163_v60 = vrot.slane %v1161_v4, 5 }
 0x111   : > { %v1134_v52 = vsel %vm8938_vm4, %v1129_v56, %v9445_v0  ;;  %v1191_v62 = vrot.slane %v1189_v26, 4  ;;  %v1197_v35 = vrot.slane %v1195_v7, 5  ;;  %v1201_v61 = vrot.slane %v1199_v17, 4 }
 0x112   : > { %v1144_v58 = vsel %vm8938_vm4, %v1139_v50, %v9455_v54  ;;  %v1154_v59 = vsel %vm8938_vm4, %v1149_v18, %v1153_v63  ;;  %v1164_v0 = vsel %vm8938_vm4, %v1159_v16, %v1163_v60  ;;  %v1223_v56 = vshrl.u32 %v377_v5, 16  ;;  %v375_v63 = vld [vmem:[%s8875_s27 + $0x150] sm:$0x1] }
 0x113   : > { %v9507_v47 = vcombine.low %v1134_v52, %v1144_v58  ;;  %v9513_v49 = vcombine.low %v1154_v59, %v1164_v0  ;;  %v1212_v26 = vrot.slane %v1210_v32, 4  ;;  %v9515_v7 = vcombine.low %v376_v6, %v377_v5  ;;  %v382_v0 = vld [vmem:[%s8875_s27 + $0x16c] sm:$0xf] }
 0x114   : > { %v1229_v17 = vshll.u32 %v378_v12, 16  ;;  %v1215_v54 = vrot.slane %v1213_v46, 5  ;;  %v9519_v43 = vrot.slane %v1219_v22, 5  ;;  %v1233_v4 = vshrl.u32 %v378_v12, 16  ;;  %v381_v22 = vld [vmem:[%s8875_s27 + $0x168] sm:$0xf] }
 0x115   : > { %10833 = vst [vmem:[#allocation47_spill] sm:$0xff] %v9507_v47  ;;  %10834 = vst [vmem:[#allocation48_spill] sm:$0xff] %v9513_v49  ;;  %7463 = vmatprep.mubr.msk.bf16.mxu1 %vm2069_vm1, %v9507_v47  ;;  %v9521_v50 = vcombine.low %v378_v12, %v379_v57  ;;  %v1225_v59 = vrot.slane %v1223_v56, 4  ;;  %7727 = vmatprep.mubr.msk.bf16.mxu0 %vm2069_vm1, %v9515_v7  ;;  %v1239_v16 = vshll.u32 %v379_v57, 16  ;;  %v1243_v32 = vshrl.u32 %v379_v57, 16 }
 0x116   : > { %10835 = vst [vmem:[#allocation49_spill] sm:$0xff] %v9515_v7  ;;  %7464 = vmatmul.mubr.msk.bf16.gmra.mrb[60].mxu1 %vm2069_vm1, %v9513_v49  ;;  %v1172_v60 = vor.u32 %v1171_v13, %v1168_v27  ;;  %v1182_v6 = vor.u32 %v1181_v25, %v9482_v38  ;;  %v9529_v5 = vrot.slane %v1229_v17, 5  ;;  %v1192_v12 = vor.u32 %v1191_v62, %v9491_v15 }
 0x117   : > { %10836 = vst [vmem:[#allocation50_spill] sm:$0xff] %v9521_v50  ;;  %7728 = vmatmul.mubr.msk.bf16.gmra.mrb[64].mxu0 %vm2069_vm1, %v9521_v50  ;;  %v1202_v46 = vor.u32 %v1201_v61, %v1197_v35  ;;  %v1205_v58 = vshll.u32 %v375_v63, 16  ;;  %v1254_v56 = vshrl.u32 %v381_v22, 16  ;;  %v1257_v25 = vshll.u32 %v381_v22, 16  ;;  %v384_v50 = vld [vmem:[%s8875_s27 + $0x174] sm:$0xf] }
 0x118   : > { %v1173_v52 = vrot.slane %v1172_v60, 4  ;;  %v1183_v18 = vrot.slane %v1182_v6, 4  ;;  %v1193_v27 = vrot.slane %v1192_v12, 4  ;;  %v1263_v17 = vshll.u32 %v382_v0, 16 }
 0x119   : > { %v1203_v13 = vrot.slane %v1202_v46, 4  ;;  %v1235_v7 = vrot.slane %v1233_v4, 4  ;;  %v1207_v61 = vrot.slane %v1205_v58, 5  ;;  %v1241_v60 = vrot.slane %v1239_v16, 5  ;;  %v383_v46 = vld [vmem:[%s8875_s27 + $0x170] sm:$0xf] }
 0x11a   : > { %v1178_v57 = vsel %vm8938_vm4, %v1173_v52, %v9482_v38  ;;  %v1188_v62 = vsel %vm8938_vm4, %v1183_v18, %v9491_v15  ;;  %v1245_v63 = vrot.slane %v1243_v32, 4  ;;  %v1198_v12 = vsel %vm8938_vm4, %v1193_v27, %v1197_v35  ;;  %v380_v58 = vld [vmem:[%s8875_s27 + $0x164] sm:$0x1] }
 0x11b   : > { %v9542_v6 = vcombine.low %v1178_v57, %v1188_v62  ;;  %v1208_v4 = vsel %vm8938_vm4, %v1203_v13, %v1207_v61  ;;  %v1267_v49 = vshrl.u32 %v382_v0, 16  ;;  %v9550_v38 = vcombine.low %v381_v22, %v382_v0 }
 0x11c   : > { %v1273_v52 = vshll.u32 %v383_v46, 16  ;;  %v9554_v15 = vcombine.low %v1198_v12, %v1208_v4  ;;  %v1256_v16 = vrot.slane %v1254_v56, 4  ;;  %v1259_v32 = vrot.slane %v1257_v25, 5 }
 0x11d   : > { %10837 = vst [vmem:[#allocation51_spill] sm:$0xff] %v9542_v6  ;;  %10838 = vst [vmem:[#allocation52_spill] sm:$0xff] %v9550_v38  ;;  %7467 = vmatprep.mubr.msk.bf16.mxu1 %vm2069_vm1, %v9542_v6  ;;  %v9556_v18 = vrot.slane %v1263_v17, 5  ;;  %7731 = vmatprep.mubr.msk.bf16.mxu0 %vm2069_vm1, %v9550_v38  ;;  %v1277_v35 = vshrl.u32 %v383_v46, 16  ;;  %v1283_v27 = vshll.u32 %v384_v50, 16  ;;  %v9561_v22 = vcombine.low %v383_v46, %v384_v50 }
 0x11e   : > { %10839 = vst [vmem:[#allocation53_spill] sm:$0xff] %v9554_v15  ;;  %v1216_v0 = vor.u32 %v1215_v54, %v1212_v26  ;;  %7468 = vmatmul.mubr.msk.bf16.gmra.mrb[64].mxu1 %vm2069_vm1, %v9554_v15  ;;  %v1269_v13 = vrot.slane %v1267_v49, 4  ;;  %v9565_v57 = vrot.slane %v1273_v52, 5  ;;  %v1287_v56 = vshrl.u32 %v384_v50, 16  ;;  %v386_v26 = vld [vmem:[%s8875_s27 + $0x17c] sm:$0xf] }
 0x11f   : > { %10840 = vst [vmem:[#allocation54_spill] sm:$0xff] %v9561_v22  ;;  %v1226_v25 = vor.u32 %v1225_v59, %v9519_v43  ;;  %7732 = vmatmul.mubr.msk.bf16.gmra.mrb[68].mxu0 %vm2069_vm1, %v9561_v22  ;;  %v1236_v62 = vor.u32 %v1235_v7, %v9529_v5  ;;  %v1246_v61 = vor.u32 %v1245_v63, %v1241_v60  ;;  %v1249_v12 = vshll.u32 %v380_v58, 16  ;;  %v387_v54 = vld [vmem:[%s8875_s27 + $0x180] sm:$0xf]  ;;  %v388_v22 = vld [vmem:[%s8875_s27 + $0x184] sm:$0xf] }
 0x120   : > { %v1217_v17 = vrot.slane %v1216_v0, 4  ;;  %v1298_v4 = vshrl.u32 %v386_v26, 16  ;;  %v1301_v49 = vshll.u32 %v386_v26, 16  ;;  %v1307_v52 = vshll.u32 %v387_v54, 16  ;;  %v389_v58 = vld [vmem:[%s8875_s27 + $0x188] sm:$0xf] }
 0x121   : > { %v1227_v46 = vrot.slane %v1226_v25, 4  ;;  %v1237_v59 = vrot.slane %v1236_v62, 4  ;;  %v1247_v38 = vrot.slane %v1246_v61, 4  ;;  %v1251_v15 = vrot.slane %v1249_v12, 5 }
 0x122   : > { %v1222_v50 = vsel %vm8938_vm4, %v1217_v17, %v9519_v43  ;;  %v1279_v0 = vrot.slane %v1277_v35, 4  ;;  %v1285_v6 = vrot.slane %v1283_v27, 5  ;;  %v1289_v7 = vrot.slane %v1287_v56, 4 }
 0x123   : > { %v1232_v63 = vsel %vm8938_vm4, %v1227_v46, %v9529_v5  ;;  %v1242_v47 = vsel %vm8938_vm4, %v1237_v59, %v1241_v60  ;;  %v1252_v43 = vsel %vm8938_vm4, %v1247_v38, %v1251_v15  ;;  %v1311_v17 = vshrl.u32 %v387_v54, 16  ;;  %v385_v60 = vld [vmem:[%s8875_s27 + $0x178] sm:$0x1] }
 0x124   : > { %v9581_v25 = vcombine.low %v1222_v50, %v1232_v63  ;;  %v9587_v62 = vcombine.low %v1242_v47, %v1252_v43  ;;  %v1300_v35 = vrot.slane %v1298_v4, 4  ;;  %v9589_v27 = vcombine.low %v386_v26, %v387_v54  ;;  %v392_v43 = vld [vmem:[%s8875_s27 + $0x194] sm:$0xf] }
 0x125   : > { %v1317_v56 = vshll.u32 %v388_v22, 16  ;;  %v1303_v5 = vrot.slane %v1301_v49, 5  ;;  %v9593_v61 = vrot.slane %v1307_v52, 5  ;;  %v1321_v12 = vshrl.u32 %v388_v22, 16  ;;  %v391_v52 = vld [vmem:[%s8875_s27 + $0x190] sm:$0xf] }
 0x126   : > { %10841 = vst [vmem:[#allocation55_spill] sm:$0xff] %v9581_v25  ;;  %10842 = vst [vmem:[#allocation56_spill] sm:$0xff] %v9587_v62  ;;  %7471 = vmatprep.mubr.msk.bf16.mxu1 %vm2069_vm1, %v9581_v25  ;;  %v9595_v46 = vcombine.low %v388_v22, %v389_v58  ;;  %v1313_v47 = vrot.slane %v1311_v17, 4  ;;  %7735 = vmatprep.mubr.msk.bf16.mxu0 %vm2069_vm1, %v9589_v27  ;;  %v1327_v38 = vshll.u32 %v389_v58, 16  ;;  %v1331_v4 = vshrl.u32 %v389_v58, 16 }
 0x127   : > { %10843 = vst [vmem:[#allocation57_spill] sm:$0xff] %v9589_v27  ;;  %7472 = vmatmul.mubr.msk.bf16.gmra.mrb[68].mxu1 %vm2069_vm1, %v9587_v62  ;;  %v1260_v15 = vor.u32 %v1259_v32, %v1256_v16  ;;  %v1270_v26 = vor.u32 %v1269_v13, %v9556_v18  ;;  %v9603_v54 = vrot.slane %v1317_v56, 5  ;;  %v1280_v22 = vor.u32 %v1279_v0, %v9565_v57 }
 0x128   : > { %10844 = vst [vmem:[#allocation58_spill] sm:$0xff] %v9595_v46  ;;  %7736 = vmatmul.mubr.msk.bf16.gmra.mrb[72].mxu0 %vm2069_vm1, %v9595_v46  ;;  %v1290_v49 = vor.u32 %v1289_v7, %v1285_v6  ;;  %v1293_v63 = vshll.u32 %v385_v60, 16  ;;  %v1342_v17 = vshrl.u32 %v391_v52, 16  ;;  %v1345_v13 = vshll.u32 %v391_v52, 16  ;;  %v394_v46 = vld [vmem:[%s8875_s27 + $0x19c] sm:$0xf] }
 0x129   : > { %v1261_v50 = vrot.slane %v1260_v15, 4  ;;  %v1271_v59 = vrot.slane %v1270_v26, 4  ;;  %v1281_v16 = vrot.slane %v1280_v22, 4  ;;  %v1351_v56 = vshll.u32 %v392_v43, 16 }
 0x12a   : > { %v1291_v32 = vrot.slane %v1290_v49, 4  ;;  %v1323_v27 = vrot.slane %v1321_v12, 4  ;;  %v1295_v7 = vrot.slane %v1293_v63, 5  ;;  %v1329_v15 = vrot.slane %v1327_v38, 5  ;;  %v393_v49 = vld [vmem:[%s8875_s27 + $0x198] sm:$0xf] }
 0x12b   : > { %v1266_v58 = vsel %vm8938_vm4, %v1261_v50, %v9556_v18  ;;  %v1276_v0 = vsel %vm8938_vm4, %v1271_v59, %v9565_v57  ;;  %v1333_v60 = vrot.slane %v1331_v4, 4  ;;  %v1286_v22 = vsel %vm8938_vm4, %v1281_v16, %v1285_v6  ;;  %v390_v63 = vld [vmem:[%s8875_s27 + $0x18c] sm:$0x1] }
 0x12c   : > { %v9616_v26 = vcombine.low %v1266_v58, %v1276_v0  ;;  %v1296_v12 = vsel %vm8938_vm4, %v1291_v32, %v1295_v7  ;;  %v1355_v62 = vshrl.u32 %v392_v43, 16  ;;  %v9624_v18 = vcombine.low %v391_v52, %v392_v43 }
 0x12d   : > { %v1361_v50 = vshll.u32 %v393_v49, 16  ;;  %v9628_v57 = vcombine.low %v1286_v22, %v1296_v12  ;;  %v1344_v38 = vrot.slane %v1342_v17, 4  ;;  %v1347_v4 = vrot.slane %v1345_v13, 5 }
 0x12e   : > { %10845 = vst [vmem:[#allocation59_spill] sm:$0xff] %v9616_v26  ;;  %10846 = vst [vmem:[#allocation60_spill] sm:$0xff] %v9624_v18  ;;  %7475 = vmatprep.mubr.msk.bf16.mxu1 %vm2069_vm1, %v9616_v26  ;;  %v9630_v59 = vrot.slane %v1351_v56, 5  ;;  %7739 = vmatprep.mubr.msk.bf16.mxu0 %vm2069_vm1, %v9624_v18  ;;  %v1365_v6 = vshrl.u32 %v393_v49, 16  ;;  %v1371_v16 = vshll.u32 %v394_v46, 16  ;;  %v9635_v52 = vcombine.low %v393_v49, %v394_v46 }
 0x12f   : > { %10847 = vst [vmem:[#allocation61_spill] sm:$0xff] %v9628_v57  ;;  %v1304_v43 = vor.u32 %v1303_v5, %v1300_v35  ;;  %7476 = vmatmul.mubr.msk.bf16.gmra.mrb[72].mxu1 %vm2069_vm1, %v9628_v57  ;;  %v1357_v32 = vrot.slane %v1355_v62, 4  ;;  %v9639_v58 = vrot.slane %v1361_v50, 5  ;;  %v1375_v17 = vshrl.u32 %v394_v46, 16  ;;  %v396_v35 = vld [vmem:[%s8875_s27 + $0x1a4] sm:$0xf] }
 0x130   : > { %10848 = vst [vmem:[#allocation62_spill] sm:$0xff] %v9635_v52  ;;  %v1314_v13 = vor.u32 %v1313_v47, %v9593_v61  ;;  %7740 = vmatmul.mubr.msk.bf16.gmra.mrb[76].mxu0 %vm2069_vm1, %v9635_v52  ;;  %v1324_v0 = vor.u32 %v1323_v27, %v9603_v54  ;;  %v1334_v7 = vor.u32 %v1333_v60, %v1329_v15  ;;  %v1337_v22 = vshll.u32 %v390_v63, 16  ;;  %v397_v5 = vld [vmem:[%s8875_s27 + $0x1a8] sm:$0xf]  ;;  %v398_v52 = vld [vmem:[%s8875_s27 + $0x1ac] sm:$0xf] }
 0x131   : > { %v1305_v56 = vrot.slane %v1304_v43, 4  ;;  %v1386_v12 = vshrl.u32 %v396_v35, 16  ;;  %v1389_v62 = vshll.u32 %v396_v35, 16  ;;  %v1395_v50 = vshll.u32 %v397_v5, 16  ;;  %v399_v63 = vld [vmem:[%s8875_s27 + $0x1b0] sm:$0xf] }
 0x132   : > { %v1315_v49 = vrot.slane %v1314_v13, 4  ;;  %v1325_v47 = vrot.slane %v1324_v0, 4  ;;  %v1335_v18 = vrot.slane %v1334_v7, 4  ;;  %v1339_v57 = vrot.slane %v1337_v22, 5 }
 0x133   : > { %v1310_v46 = vsel %vm8938_vm4, %v1305_v56, %v9593_v61  ;;  %v1367_v43 = vrot.slane %v1365_v6, 4  ;;  %v1373_v26 = vrot.slane %v1371_v16, 5  ;;  %v1377_v27 = vrot.slane %v1375_v17, 4 }
 0x134   : > { %v1320_v60 = vsel %vm8938_vm4, %v1315_v49, %v9603_v54  ;;  %v1330_v25 = vsel %vm8938_vm4, %v1325_v47, %v1329_v15  ;;  %v1340_v61 = vsel %vm8938_vm4, %v1335_v18, %v1339_v57  ;;  %v1399_v56 = vshrl.u32 %v397_v5, 16  ;;  %v395_v15 = vld [vmem:[%s8875_s27 + $0x1a0] sm:$0x1] }
 0x135   : > { %v9655_v13 = vcombine.low %v1310_v46, %v1320_v60  ;;  %v9661_v0 = vcombine.low %v1330_v25, %v1340_v61  ;;  %v1388_v6 = vrot.slane %v1386_v12, 4  ;;  %v9663_v16 = vcombine.low %v396_v35, %v397_v5  ;;  %v402_v61 = vld [vmem:[%s8875_s27 + $0x1bc] sm:$0xf]  ;;  %v10929_v45 = vld [vmem:[#allocation59_spill] sm:$0xff] }
 0x136   : > { %v1405_v17 = vshll.u32 %v398_v52, 16  ;;  %v1391_v54 = vrot.slane %v1389_v62, 5  ;;  %v9667_v7 = vrot.slane %v1395_v50, 5  ;;  %v1409_v22 = vshrl.u32 %v398_v52, 16  ;;  %v401_v50 = vld [vmem:[%s8875_s27 + $0x1b8] sm:$0xf] }
 0x137   : > { %10849 = vst [vmem:[#allocation63_spill] sm:$0xff] %v9655_v13  ;;  %10850 = vst [vmem:[#allocation64_spill] sm:$0xff] %v9661_v0  ;;  %7479 = vmatprep.mubr.msk.bf16.mxu1 %vm2069_vm1, %v9655_v13  ;;  %v9669_v49 = vcombine.low %v398_v52, %v399_v63  ;;  %v1401_v25 = vrot.slane %v1399_v56, 4  ;;  %7743 = vmatprep.mubr.msk.bf16.mxu0 %vm2069_vm1, %v9663_v16  ;;  %v1415_v18 = vshll.u32 %v399_v63, 16  ;;  %v1419_v12 = vshrl.u32 %v399_v63, 16 }
 0x138   : > { %10851 = vst [vmem:[#allocation65_spill] sm:$0xff] %v9663_v16  ;;  %7480 = vmatmul.mubr.msk.bf16.gmra.mrb[76].mxu1 %vm2069_vm1, %v9661_v0  ;;  %v1348_v57 = vor.u32 %v1347_v4, %v1344_v38  ;;  %v1358_v35 = vor.u32 %v1357_v32, %v9630_v59  ;;  %v9677_v5 = vrot.slane %v1405_v17, 5  ;;  %v1368_v52 = vor.u32 %v1367_v43, %v9639_v58 }
 0x139   : > { %10852 = vst [vmem:[#allocation66_spill] sm:$0xff] %v9669_v49  ;;  %7744 = vmatmul.mubr.msk.bf16.gmra.mrb[80].mxu0 %vm2069_vm1, %v9669_v49  ;;  %v1378_v62 = vor.u32 %v1377_v27, %v1373_v26  ;;  %v1381_v60 = vshll.u32 %v395_v15, 16  ;;  %v1430_v56 = vshrl.u32 %v401_v50, 16  ;;  %v1433_v32 = vshll.u32 %v401_v50, 16  ;;  %v404_v49 = vld [vmem:[%s8875_s27 + $0x1c4] sm:$0xf] }
 0x13a   : > { %v1349_v46 = vrot.slane %v1348_v57, 4  ;;  %v1359_v47 = vrot.slane %v1358_v35, 4  ;;  %v1369_v38 = vrot.slane %v1368_v52, 4  ;;  %v1439_v17 = vshll.u32 %v402_v61, 16 }
 0x13b   : > { %v1379_v4 = vrot.slane %v1378_v62, 4  ;;  %v1411_v16 = vrot.slane %v1409_v22, 4  ;;  %v1383_v27 = vrot.slane %v1381_v60, 5  ;;  %v1417_v57 = vrot.slane %v1415_v18, 5  ;;  %v403_v62 = vld [vmem:[%s8875_s27 + $0x1c0] sm:$0xf] }
 0x13c   : > { %v1354_v63 = vsel %vm8938_vm4, %v1349_v46, %v9630_v59  ;;  %v1364_v43 = vsel %vm8938_vm4, %v1359_v47, %v9639_v58  ;;  %v1421_v15 = vrot.slane %v1419_v12, 4  ;;  %v1374_v52 = vsel %vm8938_vm4, %v1369_v38, %v1373_v26  ;;  %v400_v60 = vld [vmem:[%s8875_s27 + $0x1b4] sm:$0x1] }
 0x13d   : > { %v9690_v35 = vcombine.low %v1354_v63, %v1364_v43  ;;  %v1384_v22 = vsel %vm8938_vm4, %v1379_v4, %v1383_v27  ;;  %v1443_v0 = vshrl.u32 %v402_v61, 16  ;;  %v9698_v59 = vcombine.low %v401_v50, %v402_v61 }
 0x13e   : > { %v1449_v46 = vshll.u32 %v403_v62, 16  ;;  %v9702_v58 = vcombine.low %v1374_v52, %v1384_v22  ;;  %v1432_v18 = vrot.slane %v1430_v56, 4  ;;  %v1435_v12 = vrot.slane %v1433_v32, 5 }
 0x13f   : > { %10853 = vst [vmem:[#allocation67_spill] sm:$0xff] %v9690_v35  ;;  %10854 = vst [vmem:[#allocation68_spill] sm:$0xff] %v9698_v59  ;;  %7483 = vmatprep.mubr.msk.bf16.mxu1 %vm2069_vm1, %v9690_v35  ;;  %v9704_v47 = vrot.slane %v1439_v17, 5  ;;  %7747 = vmatprep.mubr.msk.bf16.mxu0 %vm2069_vm1, %v9698_v59  ;;  %v1453_v26 = vshrl.u32 %v403_v62, 16  ;;  %v1459_v38 = vshll.u32 %v404_v49, 16  ;;  %v9709_v50 = vcombine.low %v403_v62, %v404_v49 }
 0x140   : > { %10855 = vst [vmem:[#allocation69_spill] sm:$0xff] %v9702_v58  ;;  %v1392_v61 = vor.u32 %v1391_v54, %v1388_v6  ;;  %7484 = vmatmul.mubr.msk.bf16.gmra.mrb[80].mxu1 %vm2069_vm1, %v9702_v58  ;;  %v1445_v4 = vrot.slane %v1443_v0, 4  ;;  %v9713_v63 = vrot.slane %v1449_v46, 5  ;;  %v1463_v56 = vshrl.u32 %v404_v49, 16  ;;  %v406_v6 = vld [vmem:[%s8875_s27 + $0x1cc] sm:$0xf] }
 0x141   : > { %10856 = vst [vmem:[#allocation70_spill] sm:$0xff] %v9709_v50  ;;  %v1402_v32 = vor.u32 %v1401_v25, %v9667_v7  ;;  %7748 = vmatmul.mubr.msk.bf16.gmra.mrb[84].mxu0 %vm2069_vm1, %v9709_v50  ;;  %v1412_v43 = vor.u32 %v1411_v16, %v9677_v5  ;;  %v1422_v27 = vor.u32 %v1421_v15, %v1417_v57  ;;  %v1425_v52 = vshll.u32 %v400_v60, 16  ;;  %v407_v54 = vld [vmem:[%s8875_s27 + $0x1d0] sm:$0xf]  ;;  %v408_v50 = vld [vmem:[%s8875_s27 + $0x1d4] sm:$0xf] }
 0x142   : > { %v1393_v17 = vrot.slane %v1392_v61, 4  ;;  %v1474_v22 = vshrl.u32 %v406_v6, 16  ;;  %v1477_v0 = vshll.u32 %v406_v6, 16  ;;  %v1483_v46 = vshll.u32 %v407_v54, 16  ;;  %v409_v60 = vld [vmem:[%s8875_s27 + $0x1d8] sm:$0xf] }
 0x143   : > { %v1403_v62 = vrot.slane %v1402_v32, 4  ;;  %v1413_v25 = vrot.slane %v1412_v43, 4  ;;  %v1423_v59 = vrot.slane %v1422_v27, 4  ;;  %v1427_v58 = vrot.slane %v1425_v52, 5 }
 0x144   : > { %v1398_v49 = vsel %vm8938_vm4, %v1393_v17, %v9667_v7  ;;  %v1455_v61 = vrot.slane %v1453_v26, 4  ;;  %v1461_v35 = vrot.slane %v1459_v38, 5  ;;  %v1465_v16 = vrot.slane %v1463_v56, 4 }
 0x145   : > { %v1408_v15 = vsel %vm8938_vm4, %v1403_v62, %v9677_v5  ;;  %v1418_v13 = vsel %vm8938_vm4, %v1413_v25, %v1417_v57  ;;  %v1428_v7 = vsel %vm8938_vm4, %v1423_v59, %v1427_v58  ;;  %v1487_v17 = vshrl.u32 %v407_v54, 16  ;;  %v405_v57 = vld [vmem:[%s8875_s27 + $0x1c8] sm:$0x1] }
 0x146   : > { %v9729_v32 = vcombine.low %v1398_v49, %v1408_v15  ;;  %v9735_v43 = vcombine.low %v1418_v13, %v1428_v7  ;;  %v1476_v26 = vrot.slane %v1474_v22, 4  ;;  %v9737_v38 = vcombine.low %v406_v6, %v407_v54  ;;  %v412_v7 = vld [vmem:[%s8875_s27 + $0x1e4] sm:$0xf] }
 0x147   : > { %v1493_v56 = vshll.u32 %v408_v50, 16  ;;  %v1479_v5 = vrot.slane %v1477_v0, 5  ;;  %v9741_v27 = vrot.slane %v1483_v46, 5  ;;  %v1497_v52 = vshrl.u32 %v408_v50, 16  ;;  %v411_v46 = vld [vmem:[%s8875_s27 + $0x1e0] sm:$0xf] }
 0x148   : > { %10857 = vst [vmem:[#allocation71_spill] sm:$0xff] %v9729_v32  ;;  %10858 = vst [vmem:[#allocation72_spill] sm:$0xff] %v9735_v43  ;;  %7487 = vmatprep.mubr.msk.bf16.mxu1 %vm2069_vm1, %v9729_v32  ;;  %v9743_v62 = vcombine.low %v408_v50, %v409_v60  ;;  %v1489_v13 = vrot.slane %v1487_v17, 4  ;;  %7751 = vmatprep.mubr.msk.bf16.mxu0 %vm2069_vm1, %v9737_v38  ;;  %v1503_v59 = vshll.u32 %v409_v60, 16  ;;  %v1507_v22 = vshrl.u32 %v409_v60, 16 }
 0x149   : > { %10859 = vst [vmem:[#allocation73_spill] sm:$0xff] %v9737_v38  ;;  %7488 = vmatmul.mubr.msk.bf16.gmra.mrb[84].mxu1 %vm2069_vm1, %v9735_v43  ;;  %v1436_v58 = vor.u32 %v1435_v12, %v1432_v18  ;;  %v1446_v6 = vor.u32 %v1445_v4, %v9704_v47  ;;  %v9751_v54 = vrot.slane %v1493_v56, 5  ;;  %v1456_v50 = vor.u32 %v1455_v61, %v9713_v63 }
 0x14a   : > { %10860 = vst [vmem:[#allocation74_spill] sm:$0xff] %v9743_v62  ;;  %7752 = vmatmul.mubr.msk.bf16.gmra.mrb[88].mxu0 %vm2069_vm1, %v9743_v62  ;;  %v1466_v0 = vor.u32 %v1465_v16, %v1461_v35  ;;  %v1469_v15 = vshll.u32 %v405_v57, 16  ;;  %v1518_v17 = vshrl.u32 %v411_v46, 16  ;;  %v1521_v4 = vshll.u32 %v411_v46, 16  ;;  %v414_v62 = vld [vmem:[%s8875_s27 + $0x1ec] sm:$0xf] }
 0x14b   : > { %v1437_v49 = vrot.slane %v1436_v58, 4  ;;  %v1447_v25 = vrot.slane %v1446_v6, 4  ;;  %v1457_v18 = vrot.slane %v1456_v50, 4  ;;  %v1527_v56 = vshll.u32 %v412_v7, 16 }
 0x14c   : > { %v1467_v12 = vrot.slane %v1466_v0, 4  ;;  %v1499_v38 = vrot.slane %v1497_v52, 4  ;;  %v1471_v16 = vrot.slane %v1469_v15, 5  ;;  %v1505_v58 = vrot.slane %v1503_v59, 5  ;;  %v413_v0 = vld [vmem:[%s8875_s27 + $0x1e8] sm:$0xf] }
 0x14d   : > { %v1442_v60 = vsel %vm8938_vm4, %v1437_v49, %v9704_v47  ;;  %v1452_v61 = vsel %vm8938_vm4, %v1447_v25, %v9713_v63  ;;  %v1509_v57 = vrot.slane %v1507_v22, 4  ;;  %v1462_v50 = vsel %vm8938_vm4, %v1457_v18, %v1461_v35  ;;  %v410_v15 = vld [vmem:[%s8875_s27 + $0x1dc] sm:$0x1] }
 0x14e   : > { %v9764_v6 = vcombine.low %v1442_v60, %v1452_v61  ;;  %v1472_v52 = vsel %vm8938_vm4, %v1467_v12, %v1471_v16  ;;  %v1531_v43 = vshrl.u32 %v412_v7, 16  ;;  %v9772_v47 = vcombine.low %v411_v46, %v412_v7 }
 0x14f   : > { %v1537_v49 = vshll.u32 %v413_v0, 16  ;;  %v9776_v63 = vcombine.low %v1462_v50, %v1472_v52  ;;  %v1520_v59 = vrot.slane %v1518_v17, 4  ;;  %v1523_v22 = vrot.slane %v1521_v4, 5 }
 0x150   : > { %10861 = vst [vmem:[#allocation75_spill] sm:$0xff] %v9764_v6  ;;  %10862 = vst [vmem:[#allocation76_spill] sm:$0xff] %v9772_v47  ;;  %7491 = vmatprep.mubr.msk.bf16.mxu1 %vm2069_vm1, %v9764_v6  ;;  %v9778_v25 = vrot.slane %v1527_v56, 5  ;;  %7755 = vmatprep.mubr.msk.bf16.mxu0 %vm2069_vm1, %v9772_v47  ;;  %v1541_v35 = vshrl.u32 %v413_v0, 16  ;;  %v1547_v18 = vshll.u32 %v414_v62, 16  ;;  %v9783_v46 = vcombine.low %v413_v0, %v414_v62 }
 0x151   : > { %10863 = vst [vmem:[#allocation77_spill] sm:$0xff] %v9776_v63  ;;  %v1480_v7 = vor.u32 %v1479_v5, %v1476_v26  ;;  %7492 = vmatmul.mubr.msk.bf16.gmra.mrb[88].mxu1 %vm2069_vm1, %v9776_v63  ;;  %v1533_v12 = vrot.slane %v1531_v43, 4  ;;  %v9787_v60 = vrot.slane %v1537_v49, 5  ;;  %v1551_v17 = vshrl.u32 %v414_v62, 16  ;;  %v416_v26 = vld [vmem:[%s8875_s27 + $0x1f4] sm:$0xf] }
 0x152   : > { %10864 = vst [vmem:[#allocation78_spill] sm:$0xff] %v9783_v46  ;;  %v1490_v4 = vor.u32 %v1489_v13, %v9741_v27  ;;  %7756 = vmatmul.mubr.msk.bf16.gmra.mrb[92].mxu0 %vm2069_vm1, %v9783_v46  ;;  %v1500_v61 = vor.u32 %v1499_v38, %v9751_v54  ;;  %v1510_v16 = vor.u32 %v1509_v57, %v1505_v58  ;;  %v1513_v50 = vshll.u32 %v410_v15, 16  ;;  %v417_v5 = vld [vmem:[%s8875_s27 + $0x1f8] sm:$0xf]  ;;  %v418_v46 = vld [vmem:[%s8875_s27 + $0x1fc] sm:$0xf] }
 0x153   : > { %v1481_v56 = vrot.slane %v1480_v7, 4  ;;  %v1562_v52 = vshrl.u32 %v416_v26, 16  ;;  %v1565_v43 = vshll.u32 %v416_v26, 16  ;;  %v1571_v49 = vshll.u32 %v417_v5, 16  ;;  %v419_v15 = vld [vmem:[%s8875_s27 + $0x200] sm:$0xf] }
 0x154   : > { %v1491_v0 = vrot.slane %v1490_v4, 4  ;;  %v1501_v13 = vrot.slane %v1500_v61, 4  ;;  %v1511_v47 = vrot.slane %v1510_v16, 4  ;;  %v1515_v63 = vrot.slane %v1513_v50, 5 }
 0x155   : > { %v1486_v62 = vsel %vm8938_vm4, %v1481_v56, %v9741_v27  ;;  %v1543_v7 = vrot.slane %v1541_v35, 4  ;;  %v1549_v6 = vrot.slane %v1547_v18, 5  ;;  %v1553_v38 = vrot.slane %v1551_v17, 4 }
 0x156   : > { %v1496_v57 = vsel %vm8938_vm4, %v1491_v0, %v9751_v54  ;;  %v1506_v32 = vsel %vm8938_vm4, %v1501_v13, %v1505_v58  ;;  %v1516_v27 = vsel %vm8938_vm4, %v1511_v47, %v1515_v63  ;;  %v1575_v56 = vshrl.u32 %v417_v5, 16  ;;  %v415_v58 = vld [vmem:[%s8875_s27 + $0x1f0] sm:$0x1] }
 0x157   : > { %v9803_v4 = vcombine.low %v1486_v62, %v1496_v57  ;;  %v9809_v61 = vcombine.low %v1506_v32, %v1516_v27  ;;  %v1564_v35 = vrot.slane %v1562_v52, 4  ;;  %v9811_v18 = vcombine.low %v416_v26, %v417_v5  ;;  %v422_v27 = vld [vmem:[%s8875_s27 + $0x20c] sm:$0xf] }
 0x158   : > { %v1581_v17 = vshll.u32 %v418_v46, 16  ;;  %v1567_v54 = vrot.slane %v1565_v43, 5  ;;  %v9815_v16 = vrot.slane %v1571_v49, 5  ;;  %v1585_v50 = vshrl.u32 %v418_v46, 16  ;;  %v421_v49 = vld [vmem:[%s8875_s27 + $0x208] sm:$0xf] }
 0x159   : > { %10865 = vst [vmem:[#allocation79_spill] sm:$0xff] %v9803_v4  ;;  %10866 = vst [vmem:[#allocation80_spill] sm:$0xff] %v9809_v61  ;;  %7495 = vmatprep.mubr.msk.bf16.mxu1 %vm2069_vm1, %v9803_v4  ;;  %v9817_v0 = vcombine.low %v418_v46, %v419_v15  ;;  %v1577_v32 = vrot.slane %v1575_v56, 4  ;;  %7759 = vmatprep.mubr.msk.bf16.mxu0 %vm2069_vm1, %v9811_v18  ;;  %v1591_v47 = vshll.u32 %v419_v15, 16  ;;  %v1595_v52 = vshrl.u32 %v419_v15, 16 }
 0x15a   : > { %10867 = vst [vmem:[#allocation81_spill] sm:$0xff] %v9811_v18  ;;  %7496 = vmatmul.mubr.msk.bf16.gmra.mrb[92].mxu1 %vm2069_vm1, %v9809_v61  ;;  %v1524_v63 = vor.u32 %v1523_v22, %v1520_v59  ;;  %v1534_v26 = vor.u32 %v1533_v12, %v9778_v25  ;;  %v9825_v5 = vrot.slane %v1581_v17, 5  ;;  %v1544_v46 = vor.u32 %v1543_v7, %v9787_v60 }
 0x15b   : > { %10868 = vst [vmem:[#allocation82_spill] sm:$0xff] %v9817_v0  ;;  %7760 = vmatmul.mubr.msk.bf16.gmra.mrb[96].mxu0 %vm2069_vm1, %v9817_v0  ;;  %v1554_v43 = vor.u32 %v1553_v38, %v1549_v6  ;;  %v1557_v57 = vshll.u32 %v415_v58, 16  ;;  %v1606_v56 = vshrl.u32 %v421_v49, 16  ;;  %v1609_v12 = vshll.u32 %v421_v49, 16  ;;  %v424_v0 = vld [vmem:[%s8875_s27 + $0x214] sm:$0xf] }
 0x15c   : > { %v1525_v62 = vrot.slane %v1524_v63, 4  ;;  %v1535_v13 = vrot.slane %v1534_v26, 4  ;;  %v1545_v59 = vrot.slane %v1544_v46, 4  ;;  %v1615_v17 = vshll.u32 %v422_v27, 16 }
 0x15d   : > { %v1555_v22 = vrot.slane %v1554_v43, 4  ;;  %v1587_v18 = vrot.slane %v1585_v50, 4  ;;  %v1559_v38 = vrot.slane %v1557_v57, 5  ;;  %v1593_v63 = vrot.slane %v1591_v47, 5  ;;  %v423_v43 = vld [vmem:[%s8875_s27 + $0x210] sm:$0xf] }
 0x15e   : > { %v1530_v15 = vsel %vm8938_vm4, %v1525_v62, %v9778_v25  ;;  %v1540_v7 = vsel %vm8938_vm4, %v1535_v13, %v9787_v60  ;;  %v1597_v58 = vrot.slane %v1595_v52, 4  ;;  %v1550_v46 = vsel %vm8938_vm4, %v1545_v59, %v1549_v6  ;;  %v420_v57 = vld [vmem:[%s8875_s27 + $0x204] sm:$0x1] }
 0x15f   : > { %v9838_v26 = vcombine.low %v1530_v15, %v1540_v7  ;;  %v1560_v50 = vsel %vm8938_vm4, %v1555_v22, %v1559_v38  ;;  %v1619_v61 = vshrl.u32 %v422_v27, 16  ;;  %v9846_v25 = vcombine.low %v421_v49, %v422_v27 }
 0x160   : > { %v1625_v62 = vshll.u32 %v423_v43, 16  ;;  %v9850_v60 = vcombine.low %v1550_v46, %v1560_v50  ;;  %v1608_v47 = vrot.slane %v1606_v56, 4  ;;  %v1611_v52 = vrot.slane %v1609_v12, 5 }
 0x161   : > { %10869 = vst [vmem:[#allocation83_spill] sm:$0xff] %v9838_v26  ;;  %10870 = vst [vmem:[#allocation84_spill] sm:$0xff] %v9846_v25  ;;  %7499 = vmatprep.mubr.msk.bf16.mxu1 %vm2069_vm1, %v9838_v26  ;;  %v9852_v13 = vrot.slane %v1615_v17, 5  ;;  %7763 = vmatprep.mubr.msk.bf16.mxu0 %vm2069_vm1, %v9846_v25  ;;  %v1629_v6 = vshrl.u32 %v423_v43, 16  ;;  %v1635_v59 = vshll.u32 %v424_v0, 16  ;;  %v9857_v49 = vcombine.low %v423_v43, %v424_v0 }
 0x162   : > { %10871 = vst [vmem:[#allocation85_spill] sm:$0xff] %v9850_v60  ;;  %v1568_v27 = vor.u32 %v1567_v54, %v1564_v35  ;;  %7500 = vmatmul.mubr.msk.bf16.gmra.mrb[96].mxu1 %vm2069_vm1, %v9850_v60  ;;  %v1621_v22 = vrot.slane %v1619_v61, 4  ;;  %v9861_v15 = vrot.slane %v1625_v62, 5  ;;  %v1639_v56 = vshrl.u32 %v424_v0, 16  ;;  %v426_v35 = vld [vmem:[%s8875_s27 + $0x21c] sm:$0xf] }
 0x163   : > { %10872 = vst [vmem:[#allocation86_spill] sm:$0xff] %v9857_v49  ;;  %v1578_v12 = vor.u32 %v1577_v32, %v9815_v16  ;;  %7764 = vmatmul.mubr.msk.bf16.gmra.mrb[100].mxu0 %vm2069_vm1, %v9857_v49  ;;  %v1588_v7 = vor.u32 %v1587_v18, %v9825_v5  ;;  %v1598_v38 = vor.u32 %v1597_v58, %v1593_v63  ;;  %v1601_v46 = vshll.u32 %v420_v57, 16  ;;  %v427_v54 = vld [vmem:[%s8875_s27 + $0x220] sm:$0xf]  ;;  %v428_v49 = vld [vmem:[%s8875_s27 + $0x224] sm:$0xf] }
 0x164   : > { %v1569_v17 = vrot.slane %v1568_v27, 4  ;;  %v1650_v50 = vshrl.u32 %v426_v35, 16  ;;  %v1653_v61 = vshll.u32 %v426_v35, 16  ;;  %v1659_v62 = vshll.u32 %v427_v54, 16  ;;  %v429_v57 = vld [vmem:[%s8875_s27 + $0x228] sm:$0xf] }
 0x165   : > { %v1579_v43 = vrot.slane %v1578_v12, 4  ;;  %v1589_v32 = vrot.slane %v1588_v7, 4  ;;  %v1599_v25 = vrot.slane %v1598_v38, 4  ;;  %v1603_v60 = vrot.slane %v1601_v46, 5 }
 0x166   : > { %v1574_v0 = vsel %vm8938_vm4, %v1569_v17, %v9815_v16  ;;  %v1631_v27 = vrot.slane %v1629_v6, 4  ;;  %v1637_v26 = vrot.slane %v1635_v59, 5  ;;  %v1641_v18 = vrot.slane %v1639_v56, 4 }
 0x167   : > { %v1584_v58 = vsel %vm8938_vm4, %v1579_v43, %v9825_v5  ;;  %v1594_v4 = vsel %vm8938_vm4, %v1589_v32, %v1593_v63  ;;  %v1604_v16 = vsel %vm8938_vm4, %v1599_v25, %v1603_v60  ;;  %v1663_v17 = vshrl.u32 %v427_v54, 16  ;;  %v425_v43 = vld [vmem:[%s8875_s27 + $0x218] sm:$0x1] }
 0x168   : > { %v9877_v12 = vcombine.low %v1574_v0, %v1584_v58  ;;  %v9883_v7 = vcombine.low %v1594_v4, %v1604_v16  ;;  %v9885_v6 = vcombine.low %v426_v35, %v427_v54  ;;  %v1669_v59 = vshll.u32 %v428_v49, 16  ;;  %v431_v16 = vld [vmem:[%s8875_s27 + $0x230] sm:$0xf] }
 0x169   : > { %v1652_v56 = vrot.slane %v1650_v50, 4  ;;  %v1655_v5 = vrot.slane %v1653_v61, 5  ;;  %v9889_v38 = vrot.slane %v1659_v62, 5  ;;  %v9891_v46 = vcombine.low %v428_v49, %v429_v57 }
 0x16a   : > { %10873 = vst [vmem:[#allocation87_spill] sm:$0xff] %v9877_v12  ;;  %10874 = vst [vmem:[#allocation88_spill] sm:$0xff] %v9883_v7  ;;  %7503 = vmatprep.mubr.msk.bf16.mxu1 %vm2069_vm1, %v9877_v12  ;;  %v1665_v63 = vrot.slane %v1663_v17, 4  ;;  %7767 = vmatprep.mubr.msk.bf16.mxu0 %vm2069_vm1, %v9885_v6  ;;  %v1673_v4 = vshrl.u32 %v428_v49, 16  ;;  %v1612_v25 = vor.u32 %v1611_v52, %v1608_v47  ;;  %v1679_v35 = vshll.u32 %v429_v57, 16 }
 0x16b   : > { %10875 = vst [vmem:[#allocation89_spill] sm:$0xff] %v9885_v6  ;;  %10876 = vst [vmem:[#allocation90_spill] sm:$0xff] %v9891_v46  ;;  %7504 = vmatmul.mubr.msk.bf16.gmra.mrb[100].mxu1 %vm2069_vm1, %v9883_v7  ;;  %v1622_v60 = vor.u32 %v1621_v22, %v9852_v13  ;;  %v1683_v54 = vshrl.u32 %v429_v57, 16  ;;  %7768 = vmatmul.mubr.msk.bf16.gmra.mrb[104].mxu0 %vm2069_vm1, %v9891_v46  ;;  %v1632_v50 = vor.u32 %v1631_v27, %v9861_v15  ;;  %v432_v52 = vld [vmem:[%s8875_s27 + $0x234] sm:$0xf]  ;;  %vm6212_vm7 = vcmask 60416  }
 0x16c   : > { %v1642_v61 = vor.u32 %v1641_v18, %v1637_v26  ;;  %v9902_v62 = vrot.slane %v1669_v59, 5  ;;  %v1613_v0 = vrot.slane %v1612_v25, 4  ;;  %v1645_v58 = vshll.u32 %v425_v43, 16  ;;  %v434_v46 = vld [vmem:[%s8875_s27 + $0x23c] sm:$0xf] }
 0x16d   : > { %v1623_v32 = vrot.slane %v1622_v60, 4  ;;  %v1633_v49 = vrot.slane %v1632_v50, 4  ;;  %v1694_v22 = vshrl.u32 %v431_v16, 16  ;;  %v1697_v17 = vshll.u32 %v431_v16, 16 }
 0x16e   : > { %v1643_v47 = vrot.slane %v1642_v61, 4  ;;  %v1618_v57 = vsel %vm8938_vm4, %v1613_v0, %v9852_v13  ;;  %v1647_v18 = vrot.slane %v1645_v58, 5  ;;  %v1703_v59 = vshll.u32 %v432_v52, 16  ;;  %v433_v61 = vld [vmem:[%s8875_s27 + $0x238] sm:$0xf] }
 0x16f   : > { %v1628_v27 = vsel %vm8938_vm4, %v1623_v32, %v9861_v15  ;;  %v1675_v25 = vrot.slane %v1673_v4, 4  ;;  %v1681_v43 = vrot.slane %v1679_v35, 5  ;;  %v1638_v50 = vsel %vm8938_vm4, %v1633_v49, %v1637_v26  ;;  %v430_v58 = vld [vmem:[%s8875_s27 + $0x22c] sm:$0x1] }
 0x170   : > { %v9912_v60 = vcombine.low %v1618_v57, %v1628_v27  ;;  %v1685_v6 = vrot.slane %v1683_v54, 4  ;;  %v1648_v13 = vsel %vm8938_vm4, %v1643_v47, %v1647_v18  ;;  %v1707_v0 = vshrl.u32 %v432_v52, 16 }
 0x171   : > { %v9920_v7 = vcombine.low %v431_v16, %v432_v52  ;;  %v9924_v15 = vcombine.low %v1638_v50, %v1648_v13  ;;  %v1696_v4 = vrot.slane %v1694_v22, 4  ;;  %v1699_v35 = vrot.slane %v1697_v17, 5  ;;  %v436_v50 = vld [vmem:[%s8875_s27 + $0x244] sm:$0xf] }
 0x172   : > { %10877 = vst [vmem:[#allocation91_spill] sm:$0xff] %v9912_v60  ;;  %7507 = vmatprep.mubr.msk.bf16.mxu1 %vm2069_vm1, %v9912_v60  ;;  %v1713_v32 = vshll.u32 %v433_v61, 16  ;;  %v9927_v26 = vrot.slane %v1703_v59, 5  ;;  %v1717_v54 = vshrl.u32 %v433_v61, 16  ;;  %v9931_v49 = vcombine.low %v433_v61, %v434_v46  ;;  %v437_v61 = vld [vmem:[%s8875_s27 + $0x248] sm:$0xf] }
 0x173   : > { %10878 = vst [vmem:[#allocation92_spill] sm:$0xff] %v9920_v7  ;;  %10879 = vst [vmem:[#allocation93_spill] sm:$0xff] %v9924_v15  ;;  %7771 = vmatprep.mubr.msk.bf16.mxu0 %vm2069_vm1, %v9920_v7  ;;  %v1656_v16 = vor.u32 %v1655_v5, %v1652_v56  ;;  %7508 = vmatmul.mubr.msk.bf16.gmra.mrb[104].mxu1 %vm2069_vm1, %v9924_v15  ;;  %v1709_v47 = vrot.slane %v1707_v0, 4  ;;  %v1723_v52 = vshll.u32 %v434_v46, 16  ;;  %v1727_v22 = vshrl.u32 %v434_v46, 16 }
 0x174   : > { %10880 = vst [vmem:[#allocation94_spill] sm:$0xff] %v9931_v49  ;;  %v1666_v17 = vor.u32 %v1665_v63, %v9889_v38  ;;  %7772 = vmatmul.mubr.msk.bf16.gmra.mrb[108].mxu0 %vm2069_vm1, %v9931_v49  ;;  %v1676_v27 = vor.u32 %v1675_v25, %v9902_v62  ;;  %v1686_v18 = vor.u32 %v1685_v6, %v1681_v43  ;;  %v1689_v59 = vshll.u32 %v430_v58, 16  ;;  %v438_v49 = vld [vmem:[%s8875_s27 + $0x24c] sm:$0xf]  ;;  %v439_v58 = vld [vmem:[%s8875_s27 + $0x250] sm:$0xf] }
 0x175   : > { %v1657_v57 = vrot.slane %v1656_v16, 4  ;;  %v1715_v56 = vrot.slane %v1713_v32, 5  ;;  %v1738_v13 = vshrl.u32 %v436_v50, 16  ;;  %v1741_v0 = vshll.u32 %v436_v50, 16 }
 0x176   : > { %v1667_v5 = vrot.slane %v1666_v17, 4  ;;  %v1677_v63 = vrot.slane %v1676_v27, 4  ;;  %v1687_v7 = vrot.slane %v1686_v18, 4  ;;  %v1691_v15 = vrot.slane %v1689_v59, 5 }
 0x177   : > { %v1662_v46 = vsel %vm8938_vm4, %v1657_v57, %v9889_v38  ;;  %v1719_v16 = vrot.slane %v1717_v54, 4  ;;  %v1725_v25 = vrot.slane %v1723_v52, 5  ;;  %v1747_v32 = vshll.u32 %v437_v61, 16 }
 0x178   : > { %v1672_v6 = vsel %vm8938_vm4, %v1667_v5, %v9902_v62  ;;  %v1729_v17 = vrot.slane %v1727_v22, 4  ;;  %v1682_v12 = vsel %vm8938_vm4, %v1677_v63, %v1681_v43  ;;  %v1692_v38 = vsel %vm8938_vm4, %v1687_v7, %v1691_v15  ;;  %v435_v22 = vld [vmem:[%s8875_s27 + $0x240] sm:$0x1] }
 0x179   : > { %v9949_v60 = vcombine.low %v1662_v46, %v1672_v6  ;;  %v9955_v57 = vcombine.low %v1682_v12, %v1692_v38  ;;  %v9957_v54 = vcombine.low %v436_v50, %v437_v61  ;;  %v1740_v52 = vrot.slane %v1738_v13, 4  ;;  %v441_v6 = vld [vmem:[%s8875_s27 + $0x258] sm:$0xf] }
 0x17a   : > { %v1743_v62 = vrot.slane %v1741_v0, 5  ;;  %v1751_v27 = vshrl.u32 %v437_v61, 16  ;;  %v9961_v18 = vcombine.low %v438_v49, %v439_v58  ;;  %v9966_v43 = vrot.slane %v1747_v32, 5 }
 0x17b   : > { %10881 = vst [vmem:[#allocation95_spill] sm:$0xff] %v9955_v57  ;;  %10882 = vst [vmem:[#allocation96_spill] sm:$0xff] %v9957_v54  ;;  %7511 = vmatprep.mubr.msk.bf16.mxu1 %vm2069_vm1, %v9949_v60  ;;  %7775 = vmatprep.mubr.msk.bf16.mxu0 %vm2069_vm1, %v9957_v54  ;;  %v1757_v12 = vshll.u32 %v438_v49, 16  ;;  %v1700_v7 = vor.u32 %v1699_v35, %v1696_v4  ;;  %v1710_v15 = vor.u32 %v1709_v47, %v9927_v26  ;;  %v442_v4 = vld [vmem:[%s8875_s27 + $0x25c] sm:$0xf] }
 0x17c   : > { %10883 = vst [vmem:[#allocation97_spill] sm:$0xff] %v9961_v18  ;;  %7512 = vmatmul.mubr.msk.bf16.gmra.mrb[108].mxu1 %vm2069_vm1, %v9955_v57  ;;  %v1761_v59 = vshrl.u32 %v438_v49, 16  ;;  %v1767_v50 = vshll.u32 %v439_v58, 16  ;;  %7776 = vmatmul.mubr.msk.bf16.gmra.mrb[112].mxu0 %vm2069_vm1, %v9961_v18  ;;  %v1720_v5 = vor.u32 %v1719_v16, %v1715_v56  ;;  %v1730_v61 = vor.u32 %v1729_v17, %v1725_v25  ;;  %v10043_v57 = vld [vmem:[%s8883_s8 + $0x8] sm:$0xf] }
 0x17d   : > { %v1771_v13 = vshrl.u32 %v439_v58, 16  ;;  %v1701_v0 = vrot.slane %v1700_v7, 4  ;;  %v1711_v46 = vrot.slane %v1710_v15, 4  ;;  %v1733_v63 = vshll.u32 %v435_v22, 16  ;;  %v443_v15 = vld [vmem:[%s8875_s27 + $0x260] sm:$0xf] }
 0x17e   : > { %v1753_v32 = vrot.slane %v1751_v27, 4  ;;  %v1721_v38 = vrot.slane %v1720_v5, 4  ;;  %v1731_v54 = vrot.slane %v1730_v61, 4  ;;  %v1782_v35 = vshrl.u32 %v441_v6, 16  ;;  %v444_v5 = vld [vmem:[%s8875_s27 + $0x264] sm:$0xf] }
 0x17f   : > { %v1706_v49 = vsel %vm8938_vm4, %v1701_v0, %v9927_v26  ;;  %v1716_v47 = vsel %vm8938_vm4, %v1711_v46, %v1715_v56  ;;  %v1735_v16 = vrot.slane %v1733_v63, 5  ;;  %v1785_v58 = vshll.u32 %v441_v6, 16  ;;  %v440_v63 = vld [vmem:[%s8875_s27 + $0x254] sm:$0x1] }
 0x180   : > { %v1759_v17 = vrot.slane %v1757_v12, 5  ;;  %v1763_v7 = vrot.slane %v1761_v59, 4  ;;  %v9980_v22 = vcombine.low %v1706_v49, %v1716_v47  ;;  %v1726_v27 = vsel %vm8938_vm4, %v1721_v38, %v1725_v25 }
 0x181   : > { %v1769_v61 = vrot.slane %v1767_v50, 5  ;;  %v1773_v18 = vrot.slane %v1771_v13, 4  ;;  %v1736_v26 = vsel %vm8938_vm4, %v1731_v54, %v1735_v16  ;;  %v9988_v0 = vcombine.low %v441_v6, %v442_v4 }
 0x182   : > { %10884 = vst [vmem:[#allocation98_spill] sm:$0xff] %v9980_v22  ;;  %7515 = vmatprep.mubr.msk.bf16.mxu1 %vm2069_vm1, %v9980_v22  ;;  %v9992_v56 = vcombine.low %v1726_v27, %v1736_v26  ;;  %v1784_v12 = vrot.slane %v1782_v35, 4  ;;  %v1791_v59 = vshll.u32 %v442_v4, 16  ;;  %v1795_v46 = vshrl.u32 %v442_v4, 16  ;;  %v446_v27 = vld [vmem:[%s8875_s27 + $0x26c] sm:$0xf] }
 0x183   : > { %10885 = vst [vmem:[#allocation99_spill] sm:$0xff] %v9988_v0  ;;  %v1787_v25 = vrot.slane %v1785_v58, 5  ;;  %7779 = vmatprep.mubr.msk.bf16.mxu0 %vm2069_vm1, %v9988_v0  ;;  %v1801_v50 = vshll.u32 %v443_v15, 16  ;;  %v9997_v13 = vcombine.low %v443_v15, %v444_v5  ;;  %v1744_v54 = vor.u32 %v1743_v62, %v1740_v52  ;;  %v447_v0 = vld [vmem:[%s8875_s27 + $0x270] sm:$0xf] }
 0x184   : > { %10886 = vst [vmem:[#allocation100_spill] sm:$0xff] %v9992_v56  ;;  %7516 = vmatmul.mubr.msk.bf16.gmra.mrb[112].mxu1 %vm2069_vm1, %v9992_v56  ;;  %v1805_v6 = vshrl.u32 %v443_v15, 16  ;;  %v1811_v38 = vshll.u32 %v444_v5, 16  ;;  %v1815_v49 = vshrl.u32 %v444_v5, 16  ;;  %v1754_v35 = vor.u32 %v1753_v32, %v9966_v43 }
 0x185   : > { %10887 = vst [vmem:[#allocation101_spill] sm:$0xff] %v9997_v13  ;;  %7780 = vmatmul.mubr.msk.bf16.gmra.mrb[116].mxu0 %vm2069_vm1, %v9997_v13  ;;  %v1745_v4 = vrot.slane %v1744_v54, 4  ;;  %v1764_v47 = vor.u32 %v1763_v7, %v1759_v17  ;;  %v1774_v16 = vor.u32 %v1773_v18, %v1769_v61  ;;  %v1777_v58 = vshll.u32 %v440_v63, 16  ;;  %v448_v54 = vld [vmem:[%s8875_s27 + $0x274] sm:$0xf] }
 0x186   : > { %v1793_v26 = vrot.slane %v1791_v59, 5  ;;  %v1797_v52 = vrot.slane %v1795_v46, 4  ;;  %v1755_v62 = vrot.slane %v1754_v35, 4  ;;  %v1826_v56 = vshrl.u32 %v446_v27, 16  ;;  %v449_v46 = vld [vmem:[%s8875_s27 + $0x278] sm:$0xf] }
 0x187   : > { %v1750_v15 = vsel %vm8938_vm4, %v1745_v4, %v9966_v43  ;;  %v1765_v32 = vrot.slane %v1764_v47, 4  ;;  %v1775_v5 = vrot.slane %v1774_v16, 4  ;;  %v1779_v13 = vrot.slane %v1777_v58, 5 }
 0x188   : > { %v1803_v7 = vrot.slane %v1801_v50, 5  ;;  %v1807_v18 = vrot.slane %v1805_v6, 4  ;;  %v1813_v63 = vrot.slane %v1811_v38, 5  ;;  %v1760_v59 = vsel %vm8938_vm4, %v1755_v62, %v1759_v17  ;;  %v445_v6 = vld [vmem:[%s8875_s27 + $0x268] sm:$0x1] }
 0x189   : > { %v1817_v35 = vrot.slane %v1815_v49, 4  ;;  %v10013_v22 = vcombine.low %v1750_v15, %v1760_v59  ;;  %v1770_v43 = vsel %vm8938_vm4, %v1765_v32, %v1769_v61  ;;  %v1780_v4 = vsel %vm8938_vm4, %v1775_v5, %v1779_v13  ;;  %v10025_v38 = vld [vmem:[%s8883_s8] sm:$0xf]  ;;  %v10032_v61 = vld [vmem:[%s8883_s8 + $0x4] sm:$0xf] }
 0x18a   : > { %v10019_v47 = vcombine.low %v1770_v43, %v1780_v4  ;;  %v1829_v16 = vshll.u32 %v446_v27, 16  ;;  %v10021_v50 = vcombine.low %v446_v27, %v447_v0  ;;  %v1828_v17 = vrot.slane %v1826_v56, 4 }
 0x18b   : > { %10888 = vst [vmem:[#allocation102_spill] sm:$0xff] %v10013_v22  ;;  %7519 = vmatprep.mubr.msk.bf16.mxu1 %vm2069_vm1, %v10013_v22  ;;  %v1835_v49 = vshll.u32 %v447_v0, 16  ;;  %v1839_v58 = vshrl.u32 %v447_v0, 16  ;;  %v10029_v62 = vcombine.low %v448_v54, %v449_v46  ;;  %v1845_v13 = vshll.u32 %v448_v54, 16 }
 0x18c   : > { %10889 = vst [vmem:[#allocation103_spill] sm:$0xff] %v10019_v47  ;;  %10890 = vst [vmem:[#allocation104_spill] sm:$0xff] %v10021_v50  ;;  %7520 = vmatmul.mubr.msk.bf16.gmra.mrb[116].mxu1 %vm2069_vm1, %v10019_v47  ;;  %7783 = vmatprep.mubr.msk.bf16.mxu0 %vm2069_vm1, %v10021_v50  ;;  %v1849_v27 = vshrl.u32 %v448_v54, 16  ;;  %v1788_v15 = vor.u32 %v1787_v25, %v1784_v12  ;;  %v1798_v32 = vor.u32 %v1797_v52, %v1793_v26  ;;  %v10046_v52 = vld [vmem:[%s8883_s8 + $0xc] sm:$0xf] }
 0x18d   : > { %10891 = vst [vmem:[#allocation105_spill] sm:$0xff] %v10029_v62  ;;  %v1855_v5 = vshll.u32 %v449_v46, 16  ;;  %v1859_v56 = vshrl.u32 %v449_v46, 16  ;;  %7784 = vmatmul.mubr.msk.bf16.gmra.mrb[120].mxu0 %vm2069_vm1, %v10029_v62  ;;  %v1808_v0 = vor.u32 %v1807_v18, %v1803_v7  ;;  %v1818_v59 = vor.u32 %v1817_v35, %v1813_v63 }
 0x18e   : > { %v1789_v43 = vrot.slane %v1788_v15, 4  ;;  %v1799_v4 = vrot.slane %v1798_v32, 4  ;;  %v1821_v22 = vshll.u32 %v445_v6, 16  ;;  %v6745_v47 = vcombine.low %v10025_v38, %v10032_v61 }
 0x18f   : > { %v1831_v50 = vrot.slane %v1829_v16, 5  ;;  %v1837_v54 = vrot.slane %v1835_v49, 5  ;;  %v1809_v12 = vrot.slane %v1808_v0, 4  ;;  %v1819_v25 = vrot.slane %v1818_v59, 4 }
 0x190   : > { %v1841_v46 = vrot.slane %v1839_v58, 4  ;;  %v1794_v62 = vsel %vm8938_vm4, %v1789_v43, %v1793_v26  ;;  %v1804_v18 = vsel %vm8938_vm4, %v1799_v4, %v1803_v7  ;;  %v1823_v35 = vrot.slane %v1821_v22, 5  ;;  %7787 = vmatprep.mubr.msk.bf16.mxu0 %vm2069_vm1, %v6745_v47 }
 0x191   : > { %v1847_v6 = vrot.slane %v1845_v13, 5  ;;  %v1851_v15 = vrot.slane %v1849_v27, 4  ;;  %v10053_v32 = vcombine.low %v1794_v62, %v1804_v18  ;;  %v1814_v16 = vsel %vm8938_vm4, %v1809_v12, %v1813_v63  ;;  %v450_v62 = vld [vmem:[%s8875_s27 + $0x27c] sm:$0x1]  ;;  %v8467_v18 = vld [vmem:[%s8875_s27 + $0x4] sm:$0xf] }
 0x192   : > { %v1857_v49 = vrot.slane %v1855_v5, 5  ;;  %v1861_v0 = vrot.slane %v1859_v56, 4  ;;  %v1824_v58 = vsel %vm8938_vm4, %v1819_v25, %v1823_v35  ;;  %v6746_v26 = vcombine.low %v10043_v57, %v10046_v52 }
 0x193   : > { %7523 = vmatprep.mubr.msk.bf16.mxu1 %vm2069_vm1, %v10053_v32  ;;  %v10063_v22 = vcombine.low %v1814_v16, %v1824_v58  ;;  %v1832_v7 = vor.u32 %v1831_v50, %v1828_v17  ;;  %v1842_v47 = vor.u32 %v1841_v46, %v1837_v54  ;;  %v1852_v63 = vor.u32 %v1851_v15, %v1847_v6  ;;  %v8466_v46 = vld [vmem:[%s8875_s27] sm:$0xf]  ;;  %v10918_v15 = vld [vmem:[#allocation33_spill] sm:$0xff] }
 0x194   : > { %v1862_v5 = vor.u32 %v1861_v0, %v1857_v49  ;;  %v1865_v59 = vshll.u32 %v450_v62, 16  ;;  %v6616_v35 = vcombine.low %v8466_v46, %v8467_v18  ;;  %v4596_v16 = vshll.u32 %v10043_v57, 16 }
 0x195   : > { %7524 = vmatmul.mubr.msk.bf16.gmra.mrb[120].mxu1 %vm2069_vm1, %v10063_v22  ;;  %7788 = vmatmul.mubr.msk.bf16.gmra.mrb[124].mxu0 %vm2069_vm1, %v6746_v26  ;;  %v1833_v13 = vrot.slane %v1832_v7, 4  ;;  %v1843_v27 = vrot.slane %v1842_v47, 4  ;;  %v1853_v56 = vrot.slane %v1852_v63, 4  ;;  %v4606_v0 = vshll.u32 %v10046_v52, 16 }
 0x196   : > { %7793 = vmatprep.mubr.msk.bf16.mxu0 %vm2069_vm1, %v8983_v36  ;;  %v1863_v43 = vrot.slane %v1862_v5, 4  ;;  %v1867_v25 = vrot.slane %v1865_v59, 5  ;;  %v4610_v58 = vshrl.u32 %v10046_v52, 16  ;;  %v4598_v62 = vrot.slane %v4596_v16, 5  ;;  %v10920_v5 = vld [vmem:[#allocation34_spill] sm:$0xff]  ;;  %v10949_v16 = vld [vmem:[#allocation79_spill] sm:$0xff] }
 0x197   : > { %v1838_v50 = vsel %vm8938_vm4, %v1833_v13, %v1837_v54  ;;  %v1848_v17 = vsel %vm8938_vm4, %v1843_v27, %v1847_v6  ;;  %v1858_v12 = vsel %vm8938_vm4, %v1853_v56, %v1857_v49  ;;  %v10892_v6 = vcombine.low %v8921_v30, %v8924_v31  ;;  %v10895_v30 = vld [vmem:[#allocation24_spill] sm:$0xff] }
 0x198   : > { %v10075_v4 = vcombine.low %v1838_v50, %v1848_v17  ;;  %v1868_v36 = vsel %vm8938_vm4, %v1863_v43, %v1867_v25  ;;  %v10896_v31 = vld [vmem:[#allocation16_spill] sm:$0xff]  ;;  %v4600_v49 = vshrl.u32 %v10043_v57, 16  ;;  %v4608_v13 = vrot.slane %v4606_v0, 5  ;;  %v10921_v57 = vld [vmem:[#allocation51_spill] sm:$0xff] }
 0x199   : > { %v10085_v54 = vcombine.low %v1858_v12, %v1868_v36  ;;  %v10919_v27 = vld [vmem:[#allocation48_spill] sm:$0xff] }
 0x19a   : > { %7527 = vmatprep.mubr.msk.bf16.mxu1 %vm2069_vm1, %v10075_v4  ;;  %v4602_v63 = vrot.slane %v4600_v49, 4  ;;  %v10922_v56 = vld [vmem:[#allocation36_spill] sm:$0xff]  ;;  %v10950_v49 = vld [vmem:[#allocation65_spill] sm:$0xff] }
 0x19b   : > { %v455_v50 = vld [vmem:[%s8883_s8 + $0x10] sm:$0x1] }
 0x19c   : > { %v4603_v17 = vor.u32 %v4602_v63, %v4598_v62  ;;  %v4616_v12 = vshll.u32 %v455_v50, 16  ;;  %v10951_v0 = vld [vmem:[#allocation80_spill] sm:$0xff]  ;;  %v10958_v63 = vld [vmem:[#allocation73_spill] sm:$0xff]  ;;  %v10967_v50 = vld [vmem:[#allocation82_spill] sm:$0xff] }
 0x19d   : > { %7794 = vmatmul.mubr.msk.bf16.vlgmr.msra.gmra.mrb[0].mxu0 %vm2069_vm1, %v9008_v23  ;;  %7528 = vmatmul.mubr.msk.bf16.gmra.mrb[124].mxu1 %vm2069_vm1, %v10085_v54  ;;  %v10901_v23 = vld [vmem:[#allocation31_spill] sm:$0xff] }
 0x19e   : > { %7797 = vmatprep.mubr.msk.bf16.mxu0 %vm2069_vm1, %v9028_v39  ;;  %7533 = vmatprep.mubr.msk.bf16.mxu1 %vm2069_vm1, %v6616_v35  ;;  %v10902_v39 = vld [vmem:[#allocation19_spill] sm:$0xff]  ;;  %v4604_v46 = vrot.slane %v4603_v17, 4  ;;  %v4618_v35 = vrot.slane %v4616_v12, 5  ;;  %v10968_v17 = vld [vmem:[#allocation98_spill] sm:$0xff] }
 0x1a5   : > { %7798 = vmatmul.mubr.msk.bf16.gmra.mrb[4].mxu0 %vm2069_vm1, %v9034_v44  ;;  %7534 = vmatmul.mubr.msk.bf16.vlgmr.msra.gmra.mrb[0].mxu1 %vm2069_vm1, %v10892_v6  ;;  %v10904_v44 = vld [vmem:[#allocation20_spill] sm:$0xff] }
 0x1a6   : > { %7801 = vmatprep.mubr.msk.bf16.mxu0 %vm2069_vm1, %v9065_v20  ;;  %7537 = vmatprep.mubr.msk.bf16.mxu1 %vm2069_vm1, %v8899_v10  ;;  %v10893_v10 = vld [vmem:[#allocation23_spill] sm:$0xff]  ;;  %v10906_v20 = vld [vmem:[#allocation21_spill] sm:$0xff] }
 0x1ad   : > { %7802 = vmatmul.mubr.msk.bf16.gmra.mrb[8].mxu0 %vm2069_vm1, %v9073_v3  ;;  %7538 = vmatmul.mubr.msk.bf16.gmra.mrb[4].mxu1 %vm2069_vm1, %v8911_v24  ;;  %v10894_v24 = vld [vmem:[#allocation15_spill] sm:$0xff]  ;;  %v10908_v3 = vld [vmem:[#allocation22_spill] sm:$0xff] }
 0x1ae   : > { %7805 = vmatprep.mubr.msk.bf16.mxu0 %vm2069_vm1, %v9098_v8  ;;  %7541 = vmatprep.mubr.msk.bf16.mxu1 %vm2069_vm1, %v8971_v21  ;;  %v10897_v21 = vld [vmem:[#allocation27_spill] sm:$0xff]  ;;  %v10910_v8 = vld [vmem:[#allocation25_spill] sm:$0xff] }
 0x1b5   : > { %7806 = vmatmul.mubr.msk.bf16.gmra.mrb[12].mxu0 %vm2069_vm1, %v9110_v55  ;;  %7542 = vmatmul.mubr.msk.bf16.gmra.mrb[8].mxu1 %vm2069_vm1, %v8976_v29  ;;  %v10898_v29 = vld [vmem:[#allocation17_spill] sm:$0xff]  ;;  %v10912_v55 = vld [vmem:[#allocation26_spill] sm:$0xff] }
 0x1b6   : > { %7809 = vmatprep.mubr.msk.bf16.mxu0 %vm2069_vm1, %v9137_v9  ;;  %7545 = vmatprep.mubr.msk.bf16.mxu1 %vm2069_vm1, %v8991_v53  ;;  %v10899_v53 = vld [vmem:[#allocation29_spill] sm:$0xff]  ;;  %v10914_v9 = vld [vmem:[#allocation28_spill] sm:$0xff] }
 0x1bd   : > { %7810 = vmatmul.mubr.msk.bf16.gmra.mrb[16].mxu0 %vm2069_vm1, %v9143_v14  ;;  %7546 = vmatmul.mubr.msk.bf16.gmra.mrb[12].mxu1 %vm2069_vm1, %v9005_v1  ;;  %v10900_v1 = vld [vmem:[#allocation18_spill] sm:$0xff]  ;;  %v10915_v14 = vld [vmem:[#allocation45_spill] sm:$0xff] }
 0x1be   : > { %7813 = vmatprep.mubr.msk.bf16.mxu0 %vm2069_vm1, %v9172_v11  ;;  %7549 = vmatprep.mubr.msk.bf16.mxu1 %vm2069_vm1, %v9032_v42  ;;  %v10903_v42 = vld [vmem:[#allocation32_spill] sm:$0xff]  ;;  %v10916_v11 = vld [vmem:[#allocation30_spill] sm:$0xff] }
 0x1c5   : > { %7814 = vmatmul.mubr.msk.bf16.gmra.mrb[20].mxu0 %vm2069_vm1, %v9184_v41  ;;  %7550 = vmatmul.mubr.msk.bf16.gmra.mrb[16].mxu1 %vm2069_vm1, %v9043_v51  ;;  %v10905_v51 = vld [vmem:[#allocation35_spill] sm:$0xff] }
 0x1c6   : > { %7817 = vmatprep.mubr.msk.bf16.mxu0 %vm2069_vm1, %v9211_v19  ;;  %7553 = vmatprep.mubr.msk.bf16.mxu1 %vm2069_vm1, %v9069_v28  ;;  %v10907_v28 = vld [vmem:[#allocation37_spill] sm:$0xff]  ;;  %v10917_v41 = vld [vmem:[#allocation47_spill] sm:$0xff]  ;;  %v4577_v19 = vshrl.u32 %v10025_v38, 16 }
 0x1c8   : > { %v4579_v26 = vrot.slane %v4577_v19, 4  ;;  %v10944_v19 = vld [vmem:[#allocation58_spill] sm:$0xff] }
 0x1cd   : > { %7818 = vmatmul.mubr.msk.bf16.gmra.mrb[24].mxu0 %vm2069_vm1, %v9217_v37  ;;  %7554 = vmatmul.mubr.msk.bf16.gmra.mrb[20].mxu1 %vm2069_vm1, %v9077_v34  ;;  %v10909_v34 = vld [vmem:[#allocation39_spill] sm:$0xff]  ;;  %v4580_v37 = vshll.u32 %v10025_v38, 16 }
 0x1ce   : > { %7821 = vmatprep.mubr.msk.bf16.mxu0 %vm2069_vm1, %v9246_v40  ;;  %7557 = vmatprep.mubr.msk.bf16.mxu1 %vm2069_vm1, %v9106_v48  ;;  %v10911_v48 = vld [vmem:[#allocation40_spill] sm:$0xff]  ;;  %v4586_v40 = vshll.u32 %v10032_v61, 16 }
 0x1cf   : > { %v4582_v7 = vrot.slane %v4580_v37, 5  ;;  %v10945_v37 = vld [vmem:[#allocation75_spill] sm:$0xff] }
 0x1d0   : > { %v4588_v47 = vrot.slane %v4586_v40, 5  ;;  %v10946_v40 = vld [vmem:[#allocation60_spill] sm:$0xff] }
 0x1d1   : > { %v4583_v52 = vor.u32 %v4582_v7, %v4579_v26  ;;  %v10953_v26 = vld [vmem:[#allocation83_spill] sm:$0xff]  ;;  %v10954_v7 = vld [vmem:[#allocation68_spill] sm:$0xff] }
 0x1d3   : > { %v4584_v25 = vrot.slane %v4583_v52, 4  ;;  %v10965_v52 = vld [vmem:[#allocation81_spill] sm:$0xff] }
 0x1d5   : > { %7822 = vmatmul.mubr.msk.bf16.gmra.mrb[28].mxu0 %vm2069_vm1, %v9258_v2  ;;  %7558 = vmatmul.mubr.msk.bf16.gmra.mrb[24].mxu1 %vm2069_vm1, %v9117_v33  ;;  %v10913_v33 = vld [vmem:[#allocation43_spill] sm:$0xff]  ;;  %v4590_v2 = vshrl.u32 %v10032_v61, 16  ;;  %v4612_v61 = vrot.slane %v4610_v58, 4  ;;  %v4589_v6 = vsel %vm8938_vm4, %v4584_v25, %v4588_v47  ;;  %v10952_v58 = vld [vmem:[#allocation66_spill] sm:$0xff] }
 0x1d6   : > { %7825 = vmatprep.mubr.msk.bf16.mxu0 %vm2069_vm1, %v10893_v10  ;;  %7561 = vmatprep.mubr.msk.bf16.mxu1 %vm2069_vm1, %v10894_v24 }
 0x1d7   : > { %v4592_v38 = vrot.slane %v4590_v2, 4  ;;  %v4613_v43 = vor.u32 %v4612_v61, %v4608_v13  ;;  %v10947_v2 = vld [vmem:[#allocation77_spill] sm:$0xff]  ;;  %v10960_v61 = vld [vmem:[#allocation74_spill] sm:$0xff] }
 0x1d9   : > { %v4593_v59 = vor.u32 %v4592_v38, %v4588_v47  ;;  %v4614_v18 = vrot.slane %v4613_v43, 4  ;;  %v10955_v47 = vld [vmem:[#allocation85_spill] sm:$0xff]  ;;  %v10956_v38 = vld [vmem:[#allocation70_spill] sm:$0xff]  ;;  %v10969_v43 = vld [vmem:[#allocation84_spill] sm:$0xff] }
 0x1db   : > { %v4594_v36 = vrot.slane %v4593_v59, 4  ;;  %v10966_v59 = vld [vmem:[#allocation95_spill] sm:$0xff] }
 0x1dd   : > { %7826 = vmatmul.mubr.msk.bf16.gmra.mrb[32].mxu0 %vm2069_vm1, %v10895_v30  ;;  %7562 = vmatmul.mubr.msk.bf16.gmra.mrb[28].mxu1 %vm2069_vm1, %v10896_v31  ;;  %v4599_v10 = vsel %vm8938_vm4, %v4594_v36, %v4598_v62  ;;  %v4609_v30 = vsel %vm8938_vm4, %v4604_v46, %v4608_v13  ;;  %v4619_v31 = vsel %vm8938_vm4, %v4614_v18, %v4618_v35  ;;  %v10957_v62 = vld [vmem:[#allocation87_spill] sm:$0xff]  ;;  %v10959_v13 = vld [vmem:[#allocation88_spill] sm:$0xff]  ;;  %v10971_v18 = vld [vmem:[#allocation86_spill] sm:$0xff] }
 0x1de   : > { %7829 = vmatprep.mubr.msk.bf16.mxu0 %vm2069_vm1, %v10897_v21  ;;  %7565 = vmatprep.mubr.msk.bf16.mxu1 %vm2069_vm1, %v10898_v29  ;;  %v10221_v24 = vcombine.low %v4589_v6, %v4599_v10  ;;  %v10923_v21 = vld [vmem:[#allocation53_spill] sm:$0xff]  ;;  %v10229_v29 = vcombine.low %v4609_v30, %v4619_v31  ;;  %v10970_v46 = vld [vmem:[#allocation100_spill] sm:$0xff]  ;;  %v10972_v35 = vld [vmem:[#allocation102_spill] sm:$0xff] }
 0x1df   : > { %v10973_v6 = vld [vmem:[#allocation89_spill] sm:$0xff] }
 0x1e5   : > { %7830 = vmatmul.mubr.msk.bf16.gmra.mrb[36].mxu0 %vm2069_vm1, %v10899_v53  ;;  %7566 = vmatmul.mubr.msk.bf16.gmra.mrb[32].mxu1 %vm2069_vm1, %v10900_v1  ;;  %v10924_v53 = vld [vmem:[#allocation38_spill] sm:$0xff]  ;;  %v10925_v1 = vld [vmem:[#allocation55_spill] sm:$0xff] }
 0x1e6   : > { %7833 = vmatprep.mubr.msk.bf16.mxu0 %vm2069_vm1, %v10901_v23  ;;  %7569 = vmatprep.mubr.msk.bf16.mxu1 %vm2069_vm1, %v10902_v39  ;;  %v10926_v23 = vld [vmem:[#allocation41_spill] sm:$0xff]  ;;  %v10927_v39 = vld [vmem:[#allocation56_spill] sm:$0xff] }
 0x1ed   : > { %7834 = vmatmul.mubr.msk.bf16.gmra.mrb[40].mxu0 %vm2069_vm1, %v10903_v42  ;;  %7570 = vmatmul.mubr.msk.bf16.gmra.mrb[36].mxu1 %vm2069_vm1, %v10904_v44  ;;  %v10928_v42 = vld [vmem:[#allocation42_spill] sm:$0xff]  ;;  %v10930_v44 = vld [vmem:[#allocation44_spill] sm:$0xff] }
 0x1ee   : > { %7837 = vmatprep.mubr.msk.bf16.mxu0 %vm2069_vm1, %v10905_v51  ;;  %7573 = vmatprep.mubr.msk.bf16.mxu1 %vm2069_vm1, %v10906_v20  ;;  %v10931_v51 = vld [vmem:[#allocation61_spill] sm:$0xff]  ;;  %v10932_v20 = vld [vmem:[#allocation46_spill] sm:$0xff] }
 0x1f5   : > { %7838 = vmatmul.mubr.msk.bf16.gmra.mrb[44].mxu0 %vm2069_vm1, %v10907_v28  ;;  %7574 = vmatmul.mubr.msk.bf16.gmra.mrb[40].mxu1 %vm2069_vm1, %v10908_v3  ;;  %v10933_v28 = vld [vmem:[#allocation63_spill] sm:$0xff]  ;;  %v10934_v3 = vld [vmem:[#allocation49_spill] sm:$0xff] }
 0x1f6   : > { %7841 = vmatprep.mubr.msk.bf16.mxu0 %vm2069_vm1, %v10909_v34  ;;  %7577 = vmatprep.mubr.msk.bf16.mxu1 %vm2069_vm1, %v10910_v8  ;;  %v10935_v34 = vld [vmem:[#allocation64_spill] sm:$0xff]  ;;  %v10936_v8 = vld [vmem:[#allocation50_spill] sm:$0xff] }
 0x1fd   : > { %7842 = vmatmul.mubr.msk.bf16.gmra.mrb[48].mxu0 %vm2069_vm1, %v10911_v48  ;;  %7578 = vmatmul.mubr.msk.bf16.gmra.mrb[44].mxu1 %vm2069_vm1, %v10912_v55  ;;  %v10937_v48 = vld [vmem:[#allocation67_spill] sm:$0xff]  ;;  %v10938_v55 = vld [vmem:[#allocation52_spill] sm:$0xff] }
 0x1fe   : > { %7845 = vmatprep.mubr.msk.bf16.mxu0 %vm2069_vm1, %v10913_v33  ;;  %7581 = vmatprep.mubr.msk.bf16.mxu1 %vm2069_vm1, %v10914_v9  ;;  %v10939_v33 = vld [vmem:[#allocation69_spill] sm:$0xff]  ;;  %v10940_v9 = vld [vmem:[#allocation54_spill] sm:$0xff] }
 0x205   : > { %7846 = vmatmul.mubr.msk.bf16.gmra.mrb[52].mxu0 %vm2069_vm1, %v10915_v14  ;;  %7582 = vmatmul.mubr.msk.bf16.gmra.mrb[48].mxu1 %vm2069_vm1, %v10916_v11  ;;  %v10941_v14 = vld [vmem:[#allocation71_spill] sm:$0xff]  ;;  %v10942_v11 = vld [vmem:[#allocation57_spill] sm:$0xff] }
 0x206   : > { %7849 = vmatprep.mubr.msk.bf16.mxu0 %vm2069_vm1, %v10917_v41  ;;  %7585 = vmatprep.mubr.msk.bf16.mxu1 %vm2069_vm1, %v10918_v15  ;;  %v10943_v41 = vld [vmem:[#allocation72_spill] sm:$0xff]  ;;  %v10948_v15 = vld [vmem:[#allocation62_spill] sm:$0xff] }
 0x20d   : > { %7850 = vmatmul.mubr.msk.bf16.gmra.mrb[56].mxu0 %vm2069_vm1, %v10919_v27  ;;  %7586 = vmatmul.mubr.msk.bf16.gmra.mrb[52].mxu1 %vm2069_vm1, %v10920_v5  ;;  %v10961_v27 = vld [vmem:[#allocation91_spill] sm:$0xff]  ;;  %v10962_v5 = vld [vmem:[#allocation76_spill] sm:$0xff] }
 0x20e   : > { %7853 = vmatprep.mubr.msk.bf16.mxu0 %vm2069_vm1, %v10921_v57  ;;  %7589 = vmatprep.mubr.msk.bf16.mxu1 %vm2069_vm1, %v10922_v56  ;;  %v10963_v57 = vld [vmem:[#allocation93_spill] sm:$0xff]  ;;  %v10964_v56 = vld [vmem:[#allocation78_spill] sm:$0xff] }
 0x215   : > { %7854 = vmatmul.mubr.msk.bf16.gmra.mrb[60].mxu0 %vm2069_vm1, %v10923_v21  ;;  %7590 = vmatmul.mubr.msk.bf16.gmra.mrb[56].mxu1 %vm2069_vm1, %v10924_v53 }
 0x216   : > { %7857 = vmatprep.mubr.msk.bf16.mxu0 %vm2069_vm1, %v10925_v1  ;;  %7593 = vmatprep.mubr.msk.bf16.mxu1 %vm2069_vm1, %v10926_v23 }
 0x21d   : > { %7858 = vmatmul.mubr.msk.bf16.gmra.mrb[64].mxu0 %vm2069_vm1, %v10927_v39  ;;  %7594 = vmatmul.mubr.msk.bf16.gmra.mrb[60].mxu1 %vm2069_vm1, %v10928_v42 }
 0x21e   : > { %7861 = vmatprep.mubr.msk.bf16.mxu0 %vm2069_vm1, %v10929_v45  ;;  %7597 = vmatprep.mubr.msk.bf16.mxu1 %vm2069_vm1, %v10930_v44 }
 0x225   : > { %7862 = vmatmul.mubr.msk.bf16.gmra.mrb[68].mxu0 %vm2069_vm1, %v10931_v51  ;;  %7598 = vmatmul.mubr.msk.bf16.gmra.mrb[64].mxu1 %vm2069_vm1, %v10932_v20 }
 0x226   : > { %7865 = vmatprep.mubr.msk.bf16.mxu0 %vm2069_vm1, %v10933_v28  ;;  %7601 = vmatprep.mubr.msk.bf16.mxu1 %vm2069_vm1, %v10934_v3  ;;  %v10974_v3 = vld [vmem:[#allocation103_spill] sm:$0xff] }
 0x22d   : > { %7866 = vmatmul.mubr.msk.bf16.gmra.mrb[72].mxu0 %vm2069_vm1, %v10935_v34  ;;  %7602 = vmatmul.mubr.msk.bf16.gmra.mrb[68].mxu1 %vm2069_vm1, %v10936_v8 }
 0x22e   : > { %7869 = vmatprep.mubr.msk.bf16.mxu0 %vm2069_vm1, %v10937_v48  ;;  %7605 = vmatprep.mubr.msk.bf16.mxu1 %vm2069_vm1, %v10938_v55  ;;  %v10975_v48 = vld [vmem:[#allocation90_spill] sm:$0xff] }
 0x235   : > { %7870 = vmatmul.mubr.msk.bf16.gmra.mrb[76].mxu0 %vm2069_vm1, %v10939_v33  ;;  %7606 = vmatmul.mubr.msk.bf16.gmra.mrb[72].mxu1 %vm2069_vm1, %v10940_v9 }
 0x236   : > { %7873 = vmatprep.mubr.msk.bf16.mxu0 %vm2069_vm1, %v10941_v14  ;;  %7609 = vmatprep.mubr.msk.bf16.mxu1 %vm2069_vm1, %v10942_v11  ;;  %v10976_v14 = vld [vmem:[#allocation92_spill] sm:$0xff] }
 0x23d   : > { %7874 = vmatmul.mubr.msk.bf16.gmra.mrb[80].mxu0 %vm2069_vm1, %v10943_v41  ;;  %7610 = vmatmul.mubr.msk.bf16.gmra.mrb[76].mxu1 %vm2069_vm1, %v10944_v19 }
 0x23e   : > { %7877 = vmatprep.mubr.msk.bf16.mxu0 %vm2069_vm1, %v10945_v37  ;;  %7613 = vmatprep.mubr.msk.bf16.mxu1 %vm2069_vm1, %v10946_v40 }
 0x245   : > { %7878 = vmatmul.mubr.msk.bf16.gmra.mrb[84].mxu0 %vm2069_vm1, %v10947_v2  ;;  %7614 = vmatmul.mubr.msk.bf16.gmra.mrb[80].mxu1 %vm2069_vm1, %v10948_v15 }
 0x246   : > { %7881 = vmatprep.mubr.msk.bf16.mxu0 %vm2069_vm1, %v10949_v16  ;;  %7617 = vmatprep.mubr.msk.bf16.mxu1 %vm2069_vm1, %v10950_v49 }
 0x24d   : > { %7882 = vmatmul.mubr.msk.bf16.gmra.mrb[88].mxu0 %vm2069_vm1, %v10951_v0  ;;  %7618 = vmatmul.mubr.msk.bf16.gmra.mrb[84].mxu1 %vm2069_vm1, %v10952_v58 }
 0x24e   : > { %7885 = vmatprep.mubr.msk.bf16.mxu0 %vm2069_vm1, %v10953_v26  ;;  %7621 = vmatprep.mubr.msk.bf16.mxu1 %vm2069_vm1, %v10954_v7 }
 0x255   : > { %7886 = vmatmul.mubr.msk.bf16.gmra.mrb[92].mxu0 %vm2069_vm1, %v10955_v47  ;;  %7622 = vmatmul.mubr.msk.bf16.gmra.mrb[88].mxu1 %vm2069_vm1, %v10956_v38 }
 0x256   : > { %7889 = vmatprep.mubr.msk.bf16.mxu0 %vm2069_vm1, %v10957_v62  ;;  %7625 = vmatprep.mubr.msk.bf16.mxu1 %vm2069_vm1, %v10958_v63 }
 0x25d   : > { %7890 = vmatmul.mubr.msk.bf16.gmra.mrb[96].mxu0 %vm2069_vm1, %v10959_v13  ;;  %7626 = vmatmul.mubr.msk.bf16.gmra.mrb[92].mxu1 %vm2069_vm1, %v10960_v61 }
 0x25e   : > { %7893 = vmatprep.mubr.msk.bf16.mxu0 %vm2069_vm1, %v10961_v27  ;;  %7629 = vmatprep.mubr.msk.bf16.mxu1 %vm2069_vm1, %v10962_v5  ;;  %v10977_v5 = vld [vmem:[#allocation94_spill] sm:$0xff] }
 0x265   : > { %7894 = vmatmul.mubr.msk.bf16.gmra.mrb[100].mxu0 %vm2069_vm1, %v10963_v57  ;;  %7630 = vmatmul.mubr.msk.bf16.gmra.mrb[96].mxu1 %vm2069_vm1, %v10964_v56 }
 0x266   : > { %7897 = vmatprep.mubr.msk.bf16.mxu0 %vm2069_vm1, %v9949_v60  ;;  %7633 = vmatprep.mubr.msk.bf16.mxu1 %vm2069_vm1, %v10965_v52 }
 0x26d   : > { %7898 = vmatmul.mubr.msk.bf16.gmra.mrb[104].mxu0 %vm2069_vm1, %v10966_v59  ;;  %7634 = vmatmul.mubr.msk.bf16.gmra.mrb[100].mxu1 %vm2069_vm1, %v10967_v50  ;;  %v10978_v59 = vld [vmem:[#allocation96_spill] sm:$0xff] }
 0x26e   : > { %7901 = vmatprep.mubr.msk.bf16.mxu0 %vm2069_vm1, %v10968_v17  ;;  %7637 = vmatprep.mubr.msk.bf16.mxu1 %vm2069_vm1, %v10969_v43 }
 0x270   : > { %v7795_v12 = vpop.f32.mrb[0].mxu0 }
 0x271   : > { %v4677_v25 = vpop.f32.mrb[1].mxu0 }
 0x272   : > { %v7796_v36 = vpop.f32.mrb[2].mxu0 }
 0x273   : > { %v4680_v60 = vpop.f32.mrb[3].mxu0 }
 0x275   : > { %7902 = vmatmul.mubr.msk.bf16.gmra.mrb[108].mxu0 %vm2069_vm1, %v10970_v46  ;;  %7638 = vmatmul.mubr.msk.bf16.gmra.mrb[104].mxu1 %vm2069_vm1, %v10971_v18 }
 0x276   : > { %7905 = vmatprep.mubr.msk.bf16.mxu0 %vm2069_vm1, %v10972_v35  ;;  %7641 = vmatprep.mubr.msk.bf16.mxu1 %vm2069_vm1, %v10973_v6 }
 0x278   : > { %v7799_v10 = vpop.f32.mrb[4].mxu0  ;;  %v7535_v30 = vpop.f32.mrb[0].mxu1 }
 0x279   : > { %v4693_v31 = vpop.f32.mrb[5].mxu0  ;;  %v7921_v21 = vadd.f32 %v7795_v12, %v7535_v30  ;;  %v3365_v53 = vpop.f32.mrb[1].mxu1 }
 0x27a   : > { %v7800_v1 = vpop.f32.mrb[6].mxu0  ;;  %v7922_v23 = vadd.f32 %v4677_v25, %v3365_v53  ;;  %v7536_v39 = vpop.f32.mrb[2].mxu1 }
 0x27b   : > { %v4696_v42 = vpop.f32.mrb[7].mxu0  ;;  %vm5318_vm5 = vcmp.gt.f32.partialorder %v7921_v21, 0.0  ;;  %v5446_v45 = vmul.f32 0.2, %v7921_v21  ;;  %v7923_v44 = vadd.f32 %v7796_v36, %v7536_v39  ;;  %v3368_v51 = vpop.f32.mrb[3].mxu1 }
 0x27c   : > { %vm5316_vm6 = vcmp.gt.f32.partialorder %v7922_v23, 0.0  ;;  %v5444_v20 = vmul.f32 0.2, %v7922_v23  ;;  %v7924_v28 = vadd.f32 %v4680_v60, %v3368_v51 }
 0x27d   : > { %7906 = vmatmul.mubr.msk.bf16.gmra.mrb[112].mxu0 %vm2069_vm1, %v10974_v3  ;;  %v5574_v34 = vsel %vm5318_vm5, %v7921_v21, %v5446_v45  ;;  %vm5319_vm8 = vcmp.gt.f32.partialorder %v7923_v44, 0.0  ;;  %v5447_v8 = vmul.f32 0.2, %v7923_v44  ;;  %7642 = vmatmul.mubr.msk.bf16.gmra.mrb[108].mxu1 %vm2069_vm1, %v10975_v48 }
 0x27e   : > { %7909 = vmatprep.mubr.msk.bf16.mxu0 %vm2069_vm1, %v10053_v32  ;;  %v7014_v55 = vpack.c.bf16 %v5574_v34, %v5574_v34  ;;  %v5572_v33 = vsel %vm5316_vm6, %v7922_v23, %v5444_v20  ;;  %vm5317_vm9 = vcmp.gt.f32.partialorder %v7924_v28, 0.0  ;;  %v5445_v9 = vmul.f32 0.2, %v7924_v28  ;;  %7645 = vmatprep.mubr.msk.bf16.mxu1 %vm2069_vm1, %v10976_v14  ;;  %v10980_v20 = vld [vmem:[#allocation99_spill] sm:$0xff] }
 0x27f   : > { %v7012_v11 = vpack.c.bf16 %v5572_v33, %v5572_v33  ;;  %v5575_v41 = vsel %vm5319_vm8, %v7923_v44, %v5447_v8 }
 0x280   : > { %v7803_v19 = vpop.f32.mrb[8].mxu0  ;;  %6215 = vst.msk [vmem:[%s10342_s20 + $0x8] sm:$0xf] %vm6212_vm7, %v7014_v55  ;;  %v7015_v37 = vpack.c.bf16 %v5575_v41, %v5575_v41  ;;  %v5573_v32 = vsel %vm5317_vm9, %v7924_v28, %v5445_v9  ;;  %v7539_v40 = vpop.f32.mrb[4].mxu1 }
 0x281   : > { %v4709_v2 = vpop.f32.mrb[9].mxu0  ;;  %6213 = vst.msk [vmem:[%s10342_s20] sm:$0xf] %vm6212_vm7, %v7012_v11  ;;  %v7013_v15 = vpack.c.bf16 %v5573_v32, %v5573_v32  ;;  %v7925_v16 = vadd.f32 %v7799_v10, %v7539_v40  ;;  %v3381_v49 = vpop.f32.mrb[5].mxu1 }
 0x282   : > { %v7804_v0 = vpop.f32.mrb[10].mxu0  ;;  %6216 = vst.msk [vmem:[%s10342_s20 + $0xc] sm:$0xf] %vm6212_vm7, %v7015_v37  ;;  %v7926_v58 = vadd.f32 %v4693_v31, %v3381_v49  ;;  %v7540_v26 = vpop.f32.mrb[6].mxu1 }
 0x283   : > { %v4712_v7 = vpop.f32.mrb[11].mxu0  ;;  %6214 = vst.msk [vmem:[%s10342_s20 + $0x4] sm:$0xf] %vm6212_vm7, %v7013_v15  ;;  %vm5322_vm10 = vcmp.gt.f32.partialorder %v7925_v16, 0.0  ;;  %v5450_v47 = vmul.f32 0.2, %v7925_v16  ;;  %v7927_v38 = vadd.f32 %v7800_v1, %v7540_v26 }
 0x284   : > { %v3384_v62 = vpop.f32.mrb[7].mxu1  ;;  %vm5320_vm11 = vcmp.gt.f32.partialorder %v7926_v58, 0.0  ;;  %v5448_v63 = vmul.f32 0.2, %v7926_v58 }
 0x285   : > { %v7928_v13 = vadd.f32 %v4696_v42, %v3384_v62  ;;  %7910 = vmatmul.mubr.msk.bf16.gmra.mrb[116].mxu0 %vm2069_vm1, %v10063_v22  ;;  %v5578_v61 = vsel %vm5322_vm10, %v7925_v16, %v5450_v47  ;;  %vm5323_vm12 = vcmp.gt.f32.partialorder %v7927_v38, 0.0  ;;  %v5451_v27 = vmul.f32 0.2, %v7927_v38  ;;  %7646 = vmatmul.mubr.msk.bf16.gmra.mrb[112].mxu1 %vm2069_vm1, %v10977_v5  ;;  %v10979_v42 = vld [vmem:[#allocation97_spill] sm:$0xff]  ;;  %v10982_v47 = vld [vmem:[#allocation104_spill] sm:$0xff] }
 0x286   : > { %7913 = vmatprep.mubr.msk.bf16.mxu0 %vm2069_vm1, %v10075_v4  ;;  %v7018_v57 = vpack.c.bf16 %v5578_v61, %v5578_v61  ;;  %v5576_v56 = vsel %vm5320_vm11, %v7926_v58, %v5448_v63  ;;  %7649 = vmatprep.mubr.msk.bf16.mxu1 %vm2069_vm1, %v10978_v59 }
 0x287   : > { %vm5321_vm13 = vcmp.gt.f32.partialorder %v7928_v13, 0.0  ;;  %v5449_v52 = vmul.f32 0.2, %v7928_v13  ;;  %v7016_v50 = vpack.c.bf16 %v5576_v56, %v5576_v56  ;;  %v5579_v22 = vsel %vm5323_vm12, %v7927_v38, %v5451_v27 }
 0x288   : > { %v7807_v17 = vpop.f32.mrb[12].mxu0  ;;  %6219 = vst.msk [vmem:[%s10342_s20 + $0x18] sm:$0xf] %vm6212_vm7, %v7018_v57  ;;  %v7019_v43 = vpack.c.bf16 %v5579_v22, %v5579_v22  ;;  %v7543_v25 = vpop.f32.mrb[8].mxu1 }
 0x289   : > { %v5577_v12 = vsel %vm5321_vm13, %v7928_v13, %v5449_v52  ;;  %v4725_v36 = vpop.f32.mrb[13].mxu0  ;;  %6217 = vst.msk [vmem:[%s10342_s20 + $0x10] sm:$0xf] %vm6212_vm7, %v7016_v50  ;;  %v7929_v60 = vadd.f32 %v7803_v19, %v7543_v25  ;;  %v3397_v46 = vpop.f32.mrb[9].mxu1 }
 0x28a   : > { %v7017_v4 = vpack.c.bf16 %v5577_v12, %v5577_v12  ;;  %v7808_v18 = vpop.f32.mrb[14].mxu0  ;;  %6220 = vst.msk [vmem:[%s10342_s20 + $0x1c] sm:$0xf] %vm6212_vm7, %v7019_v43  ;;  %v7930_v35 = vadd.f32 %v4709_v2, %v3397_v46  ;;  %v7544_v6 = vpop.f32.mrb[10].mxu1  ;;  %v10983_v46 = vld [vmem:[#allocation105_spill] sm:$0xff] }
 0x28b   : > { %v4728_v10 = vpop.f32.mrb[15].mxu0  ;;  %vm5326_vm14 = vcmp.gt.f32.partialorder %v7929_v60, 0.0  ;;  %v5454_v30 = vmul.f32 0.2, %v7929_v60  ;;  %v7931_v31 = vadd.f32 %v7804_v0, %v7544_v6  ;;  %v3400_v21 = vpop.f32.mrb[11].mxu1  ;;  %v10981_v0 = vld [vmem:[#allocation101_spill] sm:$0xff] }
 0x28c   : > { %6218 = vst.msk [vmem:[%s10342_s20 + $0x14] sm:$0xf] %vm6212_vm7, %v7017_v4  ;;  %vm5324_vm15 = vcmp.gt.f32.partialorder %v7930_v35, 0.0  ;;  %v5452_v53 = vmul.f32 0.2, %v7930_v35  ;;  %v7932_v1 = vadd.f32 %v4712_v7, %v3400_v21 }
 0x28d   : > { %7914 = vmatmul.mubr.msk.bf16.gmra.mrb[120].mxu0 %vm2069_vm1, %v10085_v54  ;;  %v5582_v23 = vsel %vm5326_vm14, %v7929_v60, %v5454_v30  ;;  %vm5327_vm0 = vcmp.gt.f32.partialorder %v7931_v31, 0.0  ;;  %v5455_v39 = vmul.f32 0.2, %v7931_v31  ;;  %7650 = vmatmul.mubr.msk.bf16.gmra.mrb[116].mxu1 %vm2069_vm1, %v10979_v42 }
 0x28e   : > { %7917 = vmatprep.mubr.msk.bf16.mxu0 %vm2069_vm1, %v10221_v24  ;;  %v7022_v45 = vpack.c.bf16 %v5582_v23, %v5582_v23  ;;  %v5580_v44 = vsel %vm5324_vm15, %v7930_v35, %v5452_v53  ;;  %vm5325_vm2 = vcmp.gt.f32.partialorder %v7932_v1, 0.0  ;;  %v5453_v51 = vmul.f32 0.2, %v7932_v1  ;;  %7653 = vmatprep.mubr.msk.bf16.mxu1 %vm2069_vm1, %v10980_v20 }
 0x28f   : > { %v7020_v28 = vpack.c.bf16 %v5580_v44, %v5580_v44  ;;  %v5583_v54 = vsel %vm5327_vm0, %v7931_v31, %v5455_v39 }
 0x290   : > { %v7811_v3 = vpop.f32.mrb[16].mxu0  ;;  %6223 = vst.msk [vmem:[%s10342_s20 + $0x28] sm:$0xf] %vm6212_vm7, %v7022_v45  ;;  %v7023_v34 = vpack.c.bf16 %v5583_v54, %v5583_v54  ;;  %v5581_v8 = vsel %vm5325_vm2, %v7932_v1, %v5453_v51  ;;  %v7547_v48 = vpop.f32.mrb[12].mxu1 }
 0x291   : > { %v4741_v55 = vpop.f32.mrb[17].mxu0  ;;  %6221 = vst.msk [vmem:[%s10342_s20 + $0x20] sm:$0xf] %vm6212_vm7, %v7020_v28  ;;  %v7021_v24 = vpack.c.bf16 %v5581_v8, %v5581_v8  ;;  %v7933_v33 = vadd.f32 %v7807_v17, %v7547_v48  ;;  %v3413_v9 = vpop.f32.mrb[13].mxu1 }
 0x292   : > { %v7812_v14 = vpop.f32.mrb[18].mxu0  ;;  %6224 = vst.msk [vmem:[%s10342_s20 + $0x2c] sm:$0xf] %vm6212_vm7, %v7023_v34  ;;  %v7934_v11 = vadd.f32 %v4725_v36, %v3413_v9  ;;  %v7548_v41 = vpop.f32.mrb[14].mxu1 }
 0x293   : > { %v4744_v19 = vpop.f32.mrb[19].mxu0  ;;  %6222 = vst.msk [vmem:[%s10342_s20 + $0x24] sm:$0xf] %vm6212_vm7, %v7021_v24  ;;  %vm5330_vm3 = vcmp.gt.f32.partialorder %v7933_v33, 0.0  ;;  %v5458_v37 = vmul.f32 0.2, %v7933_v33  ;;  %v7935_v32 = vadd.f32 %v7808_v18, %v7548_v41 }
 0x294   : > { %v3416_v40 = vpop.f32.mrb[15].mxu1  ;;  %vm5328_vm4 = vcmp.gt.f32.partialorder %v7934_v11, 0.0  ;;  %v5456_v2 = vmul.f32 0.2, %v7934_v11 }
 0x295   : > { %v7936_v15 = vadd.f32 %v4728_v10, %v3416_v40  ;;  %7918 = vmatmul.mubr.msk.bf16.gmra.mrb[124].mxu0 %vm2069_vm1, %v10229_v29  ;;  %v5586_v16 = vsel %vm5330_vm3, %v7933_v33, %v5458_v37  ;;  %vm5331_vm5 = vcmp.gt.f32.partialorder %v7935_v32, 0.0  ;;  %v5459_v49 = vmul.f32 0.2, %v7935_v32  ;;  %7654 = vmatmul.mubr.msk.bf16.gmra.mrb[120].mxu1 %vm2069_vm1, %v10981_v0 }
 0x296   : > { %v7026_v58 = vpack.c.bf16 %v5586_v16, %v5586_v16  ;;  %v5584_v26 = vsel %vm5328_vm4, %v7934_v11, %v5456_v2  ;;  %7657 = vmatprep.mubr.msk.bf16.mxu1 %vm2069_vm1, %v10982_v47 }
 0x297   : > { %vm5329_vm6 = vcmp.gt.f32.partialorder %v7936_v15, 0.0  ;;  %v5457_v7 = vmul.f32 0.2, %v7936_v15  ;;  %v7024_v38 = vpack.c.bf16 %v5584_v26, %v5584_v26  ;;  %v5587_v62 = vsel %vm5331_vm5, %v7935_v32, %v5459_v49 }
 0x298   : > { %v7815_v63 = vpop.f32.mrb[20].mxu0  ;;  %6227 = vst.msk [vmem:[%s10342_s20 + $0x38] sm:$0xf] %vm6212_vm7, %v7026_v58  ;;  %v7027_v29 = vpack.c.bf16 %v5587_v62, %v5587_v62  ;;  %v7551_v61 = vpop.f32.mrb[16].mxu1 }
 0x299   : > { %v5585_v13 = vsel %vm5329_vm6, %v7936_v15, %v5457_v7  ;;  %v4757_v27 = vpop.f32.mrb[21].mxu0  ;;  %6225 = vst.msk [vmem:[%s10342_s20 + $0x30] sm:$0xf] %vm6212_vm7, %v7024_v38  ;;  %v7937_v57 = vadd.f32 %v7811_v3, %v7551_v61  ;;  %v3429_v56 = vpop.f32.mrb[17].mxu1 }
 0x29a   : > { %v7025_v5 = vpack.c.bf16 %v5585_v13, %v5585_v13  ;;  %v7816_v52 = vpop.f32.mrb[22].mxu0  ;;  %6228 = vst.msk [vmem:[%s10342_s20 + $0x3c] sm:$0xf] %vm6212_vm7, %v7027_v29  ;;  %v7938_v59 = vadd.f32 %v4741_v55, %v3429_v56  ;;  %v7552_v50 = vpop.f32.mrb[18].mxu1 }
 0x29b   : > { %v4760_v22 = vpop.f32.mrb[23].mxu0  ;;  %vm5334_vm8 = vcmp.gt.f32.partialorder %v7937_v57, 0.0  ;;  %v5462_v17 = vmul.f32 0.2, %v7937_v57  ;;  %v7939_v43 = vadd.f32 %v7812_v14, %v7552_v50  ;;  %v3432_v12 = vpop.f32.mrb[19].mxu1 }
 0x29c   : > { %6226 = vst.msk [vmem:[%s10342_s20 + $0x34] sm:$0xf] %vm6212_vm7, %v7025_v5  ;;  %vm5332_vm9 = vcmp.gt.f32.partialorder %v7938_v59, 0.0  ;;  %v5460_v25 = vmul.f32 0.2, %v7938_v59  ;;  %v7940_v36 = vadd.f32 %v4744_v19, %v3432_v12 }
 0x29d   : > { %v5590_v4 = vsel %vm5334_vm8, %v7937_v57, %v5462_v17  ;;  %vm5335_vm10 = vcmp.gt.f32.partialorder %v7939_v43, 0.0  ;;  %v5463_v60 = vmul.f32 0.2, %v7939_v43  ;;  %7658 = vmatmul.mubr.msk.bf16.gmra.mrb[124].mxu1 %vm2069_vm1, %v10983_v46 }
 0x29e   : > { %v7030_v18 = vpack.c.bf16 %v5590_v4, %v5590_v4  ;;  %v5588_v35 = vsel %vm5332_vm9, %v7938_v59, %v5460_v25  ;;  %vm5333_vm11 = vcmp.gt.f32.partialorder %v7940_v36, 0.0  ;;  %v5461_v6 = vmul.f32 0.2, %v7940_v36 }
 0x29f   : > { %v7028_v10 = vpack.c.bf16 %v5588_v35, %v5588_v35  ;;  %v5591_v30 = vsel %vm5335_vm10, %v7939_v43, %v5463_v60 }
 0x2a0   : > { %v7819_v31 = vpop.f32.mrb[24].mxu0  ;;  %6231 = vst.msk [vmem:[%s10342_s20 + $0x48] sm:$0xf] %vm6212_vm7, %v7030_v18  ;;  %v7031_v21 = vpack.c.bf16 %v5591_v30, %v5591_v30  ;;  %v5589_v53 = vsel %vm5333_vm11, %v7940_v36, %v5461_v6  ;;  %v7555_v1 = vpop.f32.mrb[20].mxu1 }
 0x2a1   : > { %v4773_v23 = vpop.f32.mrb[25].mxu0  ;;  %6229 = vst.msk [vmem:[%s10342_s20 + $0x40] sm:$0xf] %vm6212_vm7, %v7028_v10  ;;  %v7029_v39 = vpack.c.bf16 %v5589_v53, %v5589_v53  ;;  %v7941_v42 = vadd.f32 %v7815_v63, %v7555_v1  ;;  %v3445_v45 = vpop.f32.mrb[21].mxu1 }
 0x2a2   : > { %v7820_v44 = vpop.f32.mrb[26].mxu0  ;;  %6232 = vst.msk [vmem:[%s10342_s20 + $0x4c] sm:$0xf] %vm6212_vm7, %v7031_v21  ;;  %v7942_v51 = vadd.f32 %v4757_v27, %v3445_v45  ;;  %v7556_v20 = vpop.f32.mrb[22].mxu1 }
 0x2a3   : > { %v4776_v28 = vpop.f32.mrb[27].mxu0  ;;  %6230 = vst.msk [vmem:[%s10342_s20 + $0x44] sm:$0xf] %vm6212_vm7, %v7029_v39  ;;  %vm5338_vm1 = vcmp.gt.f32.partialorder %v7941_v42, 0.0  ;;  %v5466_v54 = vmul.f32 0.2, %v7941_v42  ;;  %v7943_v3 = vadd.f32 %v7816_v52, %v7556_v20 }
 0x2a4   : > { %v3448_v34 = vpop.f32.mrb[23].mxu1  ;;  %vm5336_vm12 = vcmp.gt.f32.partialorder %v7942_v51, 0.0  ;;  %v5464_v8 = vmul.f32 0.2, %v7942_v51 }
 0x2a5   : > { %v7944_v48 = vadd.f32 %v4760_v22, %v3448_v34  ;;  %v5594_v55 = vsel %vm5338_vm1, %v7941_v42, %v5466_v54  ;;  %vm5339_vm13 = vcmp.gt.f32.partialorder %v7943_v3, 0.0  ;;  %v5467_v24 = vmul.f32 0.2, %v7943_v3 }
 0x2a6   : > { %v7034_v33 = vpack.c.bf16 %v5594_v55, %v5594_v55  ;;  %v5592_v9 = vsel %vm5336_vm12, %v7942_v51, %v5464_v8 }
 0x2a7   : > { %vm5337_vm14 = vcmp.gt.f32.partialorder %v7944_v48, 0.0  ;;  %v5465_v14 = vmul.f32 0.2, %v7944_v48  ;;  %v7032_v11 = vpack.c.bf16 %v5592_v9, %v5592_v9  ;;  %v5595_v41 = vsel %vm5339_vm13, %v7943_v3, %v5467_v24 }
 0x2a8   : > { %v7823_v19 = vpop.f32.mrb[28].mxu0  ;;  %6235 = vst.msk [vmem:[%s10342_s20 + $0x58] sm:$0xf] %vm6212_vm7, %v7034_v33  ;;  %v7035_v37 = vpack.c.bf16 %v5595_v41, %v5595_v41  ;;  %v7559_v40 = vpop.f32.mrb[24].mxu1 }
 0x2a9   : > { %v5593_v32 = vsel %vm5337_vm14, %v7944_v48, %v5465_v14  ;;  %v4789_v2 = vpop.f32.mrb[29].mxu0  ;;  %6233 = vst.msk [vmem:[%s10342_s20 + $0x50] sm:$0xf] %vm6212_vm7, %v7032_v11  ;;  %v7945_v16 = vadd.f32 %v7819_v31, %v7559_v40  ;;  %v3461_v49 = vpop.f32.mrb[25].mxu1 }
 0x2aa   : > { %v7033_v15 = vpack.c.bf16 %v5593_v32, %v5593_v32  ;;  %v7824_v0 = vpop.f32.mrb[30].mxu0  ;;  %6236 = vst.msk [vmem:[%s10342_s20 + $0x5c] sm:$0xf] %vm6212_vm7, %v7035_v37  ;;  %v7946_v58 = vadd.f32 %v4773_v23, %v3461_v49  ;;  %v7560_v26 = vpop.f32.mrb[26].mxu1 }
 0x2ab   : > { %v4792_v7 = vpop.f32.mrb[31].mxu0  ;;  %vm5342_vm15 = vcmp.gt.f32.partialorder %v7945_v16, 0.0  ;;  %v5470_v47 = vmul.f32 0.2, %v7945_v16  ;;  %v7947_v38 = vadd.f32 %v7820_v44, %v7560_v26  ;;  %v3464_v62 = vpop.f32.mrb[27].mxu1 }
 0x2ac   : > { %6234 = vst.msk [vmem:[%s10342_s20 + $0x54] sm:$0xf] %vm6212_vm7, %v7033_v15  ;;  %vm5340_vm0 = vcmp.gt.f32.partialorder %v7946_v58, 0.0  ;;  %v5468_v63 = vmul.f32 0.2, %v7946_v58  ;;  %v7948_v29 = vadd.f32 %v4776_v28, %v3464_v62 }
 0x2ad   : > { %v5598_v13 = vsel %vm5342_vm15, %v7945_v16, %v5470_v47  ;;  %vm5343_vm2 = vcmp.gt.f32.partialorder %v7947_v38, 0.0  ;;  %v5471_v61 = vmul.f32 0.2, %v7947_v38 }
 0x2ae   : > { %v7038_v27 = vpack.c.bf16 %v5598_v13, %v5598_v13  ;;  %v5596_v5 = vsel %vm5340_vm0, %v7946_v58, %v5468_v63  ;;  %vm5341_vm3 = vcmp.gt.f32.partialorder %v7948_v29, 0.0  ;;  %v5469_v57 = vmul.f32 0.2, %v7948_v29 }
 0x2af   : > { %v7036_v56 = vpack.c.bf16 %v5596_v5, %v5596_v5  ;;  %v5599_v52 = vsel %vm5343_vm2, %v7947_v38, %v5471_v61 }
 0x2b0   : > { %v7827_v59 = vpop.f32.mrb[32].mxu0  ;;  %6239 = vst.msk [vmem:[%s10342_s20 + $0x68] sm:$0xf] %vm6212_vm7, %v7038_v27  ;;  %v7039_v50 = vpack.c.bf16 %v5599_v52, %v5599_v52  ;;  %v5597_v22 = vsel %vm5341_vm3, %v7948_v29, %v5469_v57  ;;  %v7563_v17 = vpop.f32.mrb[28].mxu1 }
 0x2b1   : > { %v4805_v43 = vpop.f32.mrb[33].mxu0  ;;  %6237 = vst.msk [vmem:[%s10342_s20 + $0x60] sm:$0xf] %vm6212_vm7, %v7036_v56  ;;  %v7037_v12 = vpack.c.bf16 %v5597_v22, %v5597_v22  ;;  %v7949_v25 = vadd.f32 %v7823_v19, %v7563_v17  ;;  %v3477_v36 = vpop.f32.mrb[29].mxu1 }
 0x2b2   : > { %v7828_v4 = vpop.f32.mrb[34].mxu0  ;;  %6240 = vst.msk [vmem:[%s10342_s20 + $0x6c] sm:$0xf] %vm6212_vm7, %v7039_v50  ;;  %v7950_v60 = vadd.f32 %v4789_v2, %v3477_v36  ;;  %v7564_v46 = vpop.f32.mrb[30].mxu1 }
 0x2b3   : > { %v4808_v18 = vpop.f32.mrb[35].mxu0  ;;  %6238 = vst.msk [vmem:[%s10342_s20 + $0x64] sm:$0xf] %vm6212_vm7, %v7037_v12  ;;  %vm5346_vm4 = vcmp.gt.f32.partialorder %v7949_v25, 0.0  ;;  %v5474_v35 = vmul.f32 0.2, %v7949_v25  ;;  %v7951_v6 = vadd.f32 %v7824_v0, %v7564_v46 }
 0x2b4   : > { %v3480_v10 = vpop.f32.mrb[31].mxu1  ;;  %vm5344_vm5 = vcmp.gt.f32.partialorder %v7950_v60, 0.0  ;;  %v5472_v30 = vmul.f32 0.2, %v7950_v60 }
 0x2b5   : > { %v7952_v31 = vadd.f32 %v4792_v7, %v3480_v10  ;;  %v5602_v21 = vsel %vm5346_vm4, %v7949_v25, %v5474_v35  ;;  %vm5347_vm6 = vcmp.gt.f32.partialorder %v7951_v6, 0.0  ;;  %v5475_v53 = vmul.f32 0.2, %v7951_v6 }
 0x2b6   : > { %v7042_v1 = vpack.c.bf16 %v5602_v21, %v5602_v21  ;;  %v5600_v23 = vsel %vm5344_vm5, %v7950_v60, %v5472_v30 }
 0x2b7   : > { %vm5345_vm8 = vcmp.gt.f32.partialorder %v7952_v31, 0.0  ;;  %v5473_v39 = vmul.f32 0.2, %v7952_v31  ;;  %v7040_v42 = vpack.c.bf16 %v5600_v23, %v5600_v23  ;;  %v5603_v45 = vsel %vm5347_vm6, %v7951_v6, %v5475_v53 }
 0x2b8   : > { %v7831_v44 = vpop.f32.mrb[36].mxu0  ;;  %6243 = vst.msk [vmem:[%s10342_s20 + $0x78] sm:$0xf] %vm6212_vm7, %v7042_v1  ;;  %v7043_v51 = vpack.c.bf16 %v5603_v45, %v5603_v45  ;;  %v7567_v28 = vpop.f32.mrb[32].mxu1 }
 0x2b9   : > { %v5601_v20 = vsel %vm5345_vm8, %v7952_v31, %v5473_v39  ;;  %v4821_v54 = vpop.f32.mrb[37].mxu0  ;;  %6241 = vst.msk [vmem:[%s10342_s20 + $0x70] sm:$0xf] %vm6212_vm7, %v7040_v42  ;;  %v7953_v34 = vadd.f32 %v7827_v59, %v7567_v28  ;;  %v3493_v8 = vpop.f32.mrb[33].mxu1 }
 0x2ba   : > { %v7041_v3 = vpack.c.bf16 %v5601_v20, %v5601_v20  ;;  %v7832_v48 = vpop.f32.mrb[38].mxu0  ;;  %6244 = vst.msk [vmem:[%s10342_s20 + $0x7c] sm:$0xf] %vm6212_vm7, %v7043_v51  ;;  %v7954_v55 = vadd.f32 %v4805_v43, %v3493_v8  ;;  %v7568_v24 = vpop.f32.mrb[34].mxu1 }
 0x2bb   : > { %v4824_v33 = vpop.f32.mrb[39].mxu0  ;;  %vm5350_vm9 = vcmp.gt.f32.partialorder %v7953_v34, 0.0  ;;  %v5478_v9 = vmul.f32 0.2, %v7953_v34  ;;  %v7955_v14 = vadd.f32 %v7828_v4, %v7568_v24  ;;  %v3496_v11 = vpop.f32.mrb[35].mxu1 }
 0x2bc   : > { %6242 = vst.msk [vmem:[%s10342_s20 + $0x74] sm:$0xf] %vm6212_vm7, %v7041_v3  ;;  %vm5348_vm10 = vcmp.gt.f32.partialorder %v7954_v55, 0.0  ;;  %v5476_v41 = vmul.f32 0.2, %v7954_v55  ;;  %v7956_v19 = vadd.f32 %v4808_v18, %v3496_v11 }
 0x2bd   : > { %v5606_v37 = vsel %vm5350_vm9, %v7953_v34, %v5478_v9  ;;  %vm5351_vm11 = vcmp.gt.f32.partialorder %v7955_v14, 0.0  ;;  %v5479_v32 = vmul.f32 0.2, %v7955_v14 }
 0x2be   : > { %v7046_v40 = vpack.c.bf16 %v5606_v37, %v5606_v37  ;;  %v5604_v2 = vsel %vm5348_vm10, %v7954_v55, %v5476_v41  ;;  %vm5349_vm1 = vcmp.gt.f32.partialorder %v7956_v19, 0.0  ;;  %v5477_v15 = vmul.f32 0.2, %v7956_v19 }
 0x2bf   : > { %v7044_v16 = vpack.c.bf16 %v5604_v2, %v5604_v2  ;;  %v5607_v49 = vsel %vm5351_vm11, %v7955_v14, %v5479_v32 }
 0x2c0   : > { %v7835_v0 = vpop.f32.mrb[40].mxu0  ;;  %6247 = vst.msk [vmem:[%s10342_s20 + $0x88] sm:$0xf] %vm6212_vm7, %v7046_v40  ;;  %v7047_v58 = vpack.c.bf16 %v5607_v49, %v5607_v49  ;;  %v5605_v26 = vsel %vm5349_vm1, %v7956_v19, %v5477_v15  ;;  %v7571_v7 = vpop.f32.mrb[36].mxu1 }
 0x2c1   : > { %v4837_v47 = vpop.f32.mrb[41].mxu0  ;;  %6245 = vst.msk [vmem:[%s10342_s20 + $0x80] sm:$0xf] %vm6212_vm7, %v7044_v16  ;;  %v7045_v38 = vpack.c.bf16 %v5605_v26, %v5605_v26  ;;  %v7957_v62 = vadd.f32 %v7831_v44, %v7571_v7  ;;  %v3509_v63 = vpop.f32.mrb[37].mxu1 }
 0x2c2   : > { %v7836_v29 = vpop.f32.mrb[42].mxu0  ;;  %6248 = vst.msk [vmem:[%s10342_s20 + $0x8c] sm:$0xf] %vm6212_vm7, %v7047_v58  ;;  %v7958_v13 = vadd.f32 %v4821_v54, %v3509_v63  ;;  %v7572_v61 = vpop.f32.mrb[38].mxu1 }
 0x2c3   : > { %v4840_v27 = vpop.f32.mrb[43].mxu0  ;;  %6246 = vst.msk [vmem:[%s10342_s20 + $0x84] sm:$0xf] %vm6212_vm7, %v7045_v38  ;;  %vm5354_vm12 = vcmp.gt.f32.partialorder %v7957_v62, 0.0  ;;  %v5482_v5 = vmul.f32 0.2, %v7957_v62  ;;  %v7959_v57 = vadd.f32 %v7832_v48, %v7572_v61 }
 0x2c4   : > { %v3512_v56 = vpop.f32.mrb[39].mxu1  ;;  %vm5352_vm13 = vcmp.gt.f32.partialorder %v7958_v13, 0.0  ;;  %v5480_v52 = vmul.f32 0.2, %v7958_v13 }
 0x2c5   : > { %v7960_v59 = vadd.f32 %v4824_v33, %v3512_v56  ;;  %v5610_v50 = vsel %vm5354_vm12, %v7957_v62, %v5482_v5  ;;  %vm5355_vm14 = vcmp.gt.f32.partialorder %v7959_v57, 0.0  ;;  %v5483_v22 = vmul.f32 0.2, %v7959_v57 }
 0x2c6   : > { %v7050_v17 = vpack.c.bf16 %v5610_v50, %v5610_v50  ;;  %v5608_v43 = vsel %vm5352_vm13, %v7958_v13, %v5480_v52 }
 0x2c7   : > { %vm5353_vm15 = vcmp.gt.f32.partialorder %v7960_v59, 0.0  ;;  %v5481_v12 = vmul.f32 0.2, %v7960_v59  ;;  %v7048_v25 = vpack.c.bf16 %v5608_v43, %v5608_v43  ;;  %v5611_v36 = vsel %vm5355_vm14, %v7959_v57, %v5483_v22 }
 0x2c8   : > { %v7839_v4 = vpop.f32.mrb[44].mxu0  ;;  %6251 = vst.msk [vmem:[%s10342_s20 + $0x98] sm:$0xf] %vm6212_vm7, %v7050_v17  ;;  %v7051_v60 = vpack.c.bf16 %v5611_v36, %v5611_v36  ;;  %v7575_v18 = vpop.f32.mrb[40].mxu1 }
 0x2c9   : > { %v5609_v46 = vsel %vm5353_vm15, %v7960_v59, %v5481_v12  ;;  %v4853_v35 = vpop.f32.mrb[45].mxu0  ;;  %6249 = vst.msk [vmem:[%s10342_s20 + $0x90] sm:$0xf] %vm6212_vm7, %v7048_v25  ;;  %v7961_v10 = vadd.f32 %v7835_v0, %v7575_v18  ;;  %v3525_v30 = vpop.f32.mrb[41].mxu1 }
 0x2ca   : > { %v7049_v6 = vpack.c.bf16 %v5609_v46, %v5609_v46  ;;  %v7840_v31 = vpop.f32.mrb[46].mxu0  ;;  %6252 = vst.msk [vmem:[%s10342_s20 + $0x9c] sm:$0xf] %vm6212_vm7, %v7051_v60  ;;  %v7962_v21 = vadd.f32 %v4837_v47, %v3525_v30  ;;  %v7576_v53 = vpop.f32.mrb[42].mxu1 }
 0x2cb   : > { %v4856_v1 = vpop.f32.mrb[47].mxu0  ;;  %vm5358_vm0 = vcmp.gt.f32.partialorder %v7961_v10, 0.0  ;;  %v5486_v23 = vmul.f32 0.2, %v7961_v10  ;;  %v7963_v39 = vadd.f32 %v7836_v29, %v7576_v53  ;;  %v3528_v42 = vpop.f32.mrb[43].mxu1 }
 0x2cc   : > { %6250 = vst.msk [vmem:[%s10342_s20 + $0x94] sm:$0xf] %vm6212_vm7, %v7049_v6  ;;  %vm5356_vm2 = vcmp.gt.f32.partialorder %v7962_v21, 0.0  ;;  %v5484_v45 = vmul.f32 0.2, %v7962_v21  ;;  %v7964_v44 = vadd.f32 %v4840_v27, %v3528_v42 }
 0x2cd   : > { %v5614_v51 = vsel %vm5358_vm0, %v7961_v10, %v5486_v23  ;;  %vm5359_vm3 = vcmp.gt.f32.partialorder %v7963_v39, 0.0  ;;  %v5487_v20 = vmul.f32 0.2, %v7963_v39 }
 0x2ce   : > { %v7054_v28 = vpack.c.bf16 %v5614_v51, %v5614_v51  ;;  %v5612_v54 = vsel %vm5356_vm2, %v7962_v21, %v5484_v45  ;;  %vm5357_vm4 = vcmp.gt.f32.partialorder %v7964_v44, 0.0  ;;  %v5485_v3 = vmul.f32 0.2, %v7964_v44 }
 0x2cf   : > { %v7052_v34 = vpack.c.bf16 %v5612_v54, %v5612_v54  ;;  %v5615_v8 = vsel %vm5359_vm3, %v7963_v39, %v5487_v20 }
 0x2d0   : > { %v7843_v48 = vpop.f32.mrb[48].mxu0  ;;  %6255 = vst.msk [vmem:[%s10342_s20 + $0xa8] sm:$0xf] %vm6212_vm7, %v7054_v28  ;;  %v7055_v55 = vpack.c.bf16 %v5615_v8, %v5615_v8  ;;  %v5613_v24 = vsel %vm5357_vm4, %v7964_v44, %v5485_v3  ;;  %v7579_v33 = vpop.f32.mrb[44].mxu1 }
 0x2d1   : > { %v4869_v9 = vpop.f32.mrb[49].mxu0  ;;  %6253 = vst.msk [vmem:[%s10342_s20 + $0xa0] sm:$0xf] %vm6212_vm7, %v7052_v34  ;;  %v7053_v14 = vpack.c.bf16 %v5613_v24, %v5613_v24  ;;  %v7965_v11 = vadd.f32 %v7839_v4, %v7579_v33  ;;  %v3541_v41 = vpop.f32.mrb[45].mxu1 }
 0x2d2   : > { %v7844_v19 = vpop.f32.mrb[50].mxu0  ;;  %6256 = vst.msk [vmem:[%s10342_s20 + $0xac] sm:$0xf] %vm6212_vm7, %v7055_v55  ;;  %v7966_v37 = vadd.f32 %v4853_v35, %v3541_v41  ;;  %v7580_v32 = vpop.f32.mrb[46].mxu1 }
 0x2d3   : > { %v4872_v40 = vpop.f32.mrb[51].mxu0  ;;  %6254 = vst.msk [vmem:[%s10342_s20 + $0xa4] sm:$0xf] %vm6212_vm7, %v7053_v14  ;;  %vm5362_vm5 = vcmp.gt.f32.partialorder %v7965_v11, 0.0  ;;  %v5490_v2 = vmul.f32 0.2, %v7965_v11  ;;  %v7967_v15 = vadd.f32 %v7840_v31, %v7580_v32 }
 0x2d4   : > { %v3544_v16 = vpop.f32.mrb[47].mxu1  ;;  %vm5360_vm6 = vcmp.gt.f32.partialorder %v7966_v37, 0.0  ;;  %v5488_v49 = vmul.f32 0.2, %v7966_v37 }
 0x2d5   : > { %v7968_v0 = vadd.f32 %v4856_v1, %v3544_v16  ;;  %v5618_v58 = vsel %vm5362_vm5, %v7965_v11, %v5490_v2  ;;  %vm5363_vm8 = vcmp.gt.f32.partialorder %v7967_v15, 0.0  ;;  %v5491_v26 = vmul.f32 0.2, %v7967_v15 }
 0x2d6   : > { %v7058_v7 = vpack.c.bf16 %v5618_v58, %v5618_v58  ;;  %v5616_v47 = vsel %vm5360_vm6, %v7966_v37, %v5488_v49 }
 0x2d7   : > { %vm5361_vm9 = vcmp.gt.f32.partialorder %v7968_v0, 0.0  ;;  %v5489_v38 = vmul.f32 0.2, %v7968_v0  ;;  %v7056_v62 = vpack.c.bf16 %v5616_v47, %v5616_v47  ;;  %v5619_v63 = vsel %vm5363_vm8, %v7967_v15, %v5491_v26 }
 0x2d8   : > { %v7847_v29 = vpop.f32.mrb[52].mxu0  ;;  %6259 = vst.msk [vmem:[%s10342_s20 + $0xb8] sm:$0xf] %vm6212_vm7, %v7058_v7  ;;  %v7059_v13 = vpack.c.bf16 %v5619_v63, %v5619_v63  ;;  %v7583_v27 = vpop.f32.mrb[48].mxu1 }
 0x2d9   : > { %v5617_v61 = vsel %vm5361_vm9, %v7968_v0, %v5489_v38  ;;  %v4885_v5 = vpop.f32.mrb[53].mxu0  ;;  %6257 = vst.msk [vmem:[%s10342_s20 + $0xb0] sm:$0xf] %vm6212_vm7, %v7056_v62  ;;  %v7969_v56 = vadd.f32 %v7843_v48, %v7583_v27  ;;  %v3557_v52 = vpop.f32.mrb[49].mxu1 }
 0x2da   : > { %v7057_v57 = vpack.c.bf16 %v5617_v61, %v5617_v61  ;;  %v7848_v59 = vpop.f32.mrb[54].mxu0  ;;  %6260 = vst.msk [vmem:[%s10342_s20 + $0xbc] sm:$0xf] %vm6212_vm7, %v7059_v13  ;;  %v7970_v50 = vadd.f32 %v4869_v9, %v3557_v52  ;;  %v7584_v22 = vpop.f32.mrb[50].mxu1 }
 0x2db   : > { %v4888_v17 = vpop.f32.mrb[55].mxu0  ;;  %vm5366_vm10 = vcmp.gt.f32.partialorder %v7969_v56, 0.0  ;;  %v5494_v43 = vmul.f32 0.2, %v7969_v56  ;;  %v7971_v12 = vadd.f32 %v7844_v19, %v7584_v22  ;;  %v3560_v25 = vpop.f32.mrb[51].mxu1 }
 0x2dc   : > { %6258 = vst.msk [vmem:[%s10342_s20 + $0xb4] sm:$0xf] %vm6212_vm7, %v7057_v57  ;;  %vm5364_vm11 = vcmp.gt.f32.partialorder %v7970_v50, 0.0  ;;  %v5492_v36 = vmul.f32 0.2, %v7970_v50  ;;  %v7972_v4 = vadd.f32 %v4872_v40, %v3560_v25 }
 0x2dd   : > { %v5622_v60 = vsel %vm5366_vm10, %v7969_v56, %v5494_v43  ;;  %vm5367_vm1 = vcmp.gt.f32.partialorder %v7971_v12, 0.0  ;;  %v5495_v46 = vmul.f32 0.2, %v7971_v12 }
 0x2de   : > { %v7062_v18 = vpack.c.bf16 %v5622_v60, %v5622_v60  ;;  %v5620_v35 = vsel %vm5364_vm11, %v7970_v50, %v5492_v36  ;;  %vm5365_vm12 = vcmp.gt.f32.partialorder %v7972_v4, 0.0  ;;  %v5493_v6 = vmul.f32 0.2, %v7972_v4 }
 0x2df   : > { %v7060_v10 = vpack.c.bf16 %v5620_v35, %v5620_v35  ;;  %v5623_v30 = vsel %vm5367_vm1, %v7971_v12, %v5495_v46 }
 0x2e0   : > { %v7851_v31 = vpop.f32.mrb[56].mxu0  ;;  %6263 = vst.msk [vmem:[%s10342_s20 + $0xc8] sm:$0xf] %vm6212_vm7, %v7062_v18  ;;  %v7063_v21 = vpack.c.bf16 %v5623_v30, %v5623_v30  ;;  %v5621_v53 = vsel %vm5365_vm12, %v7972_v4, %v5493_v6  ;;  %v7587_v1 = vpop.f32.mrb[52].mxu1 }
 0x2e1   : > { %v4901_v23 = vpop.f32.mrb[57].mxu0  ;;  %6261 = vst.msk [vmem:[%s10342_s20 + $0xc0] sm:$0xf] %vm6212_vm7, %v7060_v10  ;;  %v7061_v39 = vpack.c.bf16 %v5621_v53, %v5621_v53  ;;  %v7973_v42 = vadd.f32 %v7847_v29, %v7587_v1  ;;  %v3573_v45 = vpop.f32.mrb[53].mxu1 }
 0x2e2   : > { %v7852_v44 = vpop.f32.mrb[58].mxu0  ;;  %6264 = vst.msk [vmem:[%s10342_s20 + $0xcc] sm:$0xf] %vm6212_vm7, %v7063_v21  ;;  %v7974_v51 = vadd.f32 %v4885_v5, %v3573_v45  ;;  %v7588_v20 = vpop.f32.mrb[54].mxu1 }
 0x2e3   : > { %v4904_v28 = vpop.f32.mrb[59].mxu0  ;;  %6262 = vst.msk [vmem:[%s10342_s20 + $0xc4] sm:$0xf] %vm6212_vm7, %v7061_v39  ;;  %vm5370_vm13 = vcmp.gt.f32.partialorder %v7973_v42, 0.0  ;;  %v5498_v54 = vmul.f32 0.2, %v7973_v42  ;;  %v7975_v3 = vadd.f32 %v7848_v59, %v7588_v20 }
 0x2e4   : > { %v3576_v34 = vpop.f32.mrb[55].mxu1  ;;  %vm5368_vm14 = vcmp.gt.f32.partialorder %v7974_v51, 0.0  ;;  %v5496_v8 = vmul.f32 0.2, %v7974_v51 }
 0x2e5   : > { %v7976_v48 = vadd.f32 %v4888_v17, %v3576_v34  ;;  %v5626_v55 = vsel %vm5370_vm13, %v7973_v42, %v5498_v54  ;;  %vm5371_vm15 = vcmp.gt.f32.partialorder %v7975_v3, 0.0  ;;  %v5499_v24 = vmul.f32 0.2, %v7975_v3 }
 0x2e6   : > { %v7066_v33 = vpack.c.bf16 %v5626_v55, %v5626_v55  ;;  %v5624_v9 = vsel %vm5368_vm14, %v7974_v51, %v5496_v8 }
 0x2e7   : > { %vm5369_vm0 = vcmp.gt.f32.partialorder %v7976_v48, 0.0  ;;  %v5497_v14 = vmul.f32 0.2, %v7976_v48  ;;  %v7064_v11 = vpack.c.bf16 %v5624_v9, %v5624_v9  ;;  %v5627_v41 = vsel %vm5371_vm15, %v7975_v3, %v5499_v24 }
 0x2e8   : > { %v7855_v19 = vpop.f32.mrb[60].mxu0  ;;  %6267 = vst.msk [vmem:[%s10342_s20 + $0xd8] sm:$0xf] %vm6212_vm7, %v7066_v33  ;;  %v7067_v37 = vpack.c.bf16 %v5627_v41, %v5627_v41  ;;  %v7591_v40 = vpop.f32.mrb[56].mxu1 }
 0x2e9   : > { %v5625_v32 = vsel %vm5369_vm0, %v7976_v48, %v5497_v14  ;;  %v4917_v2 = vpop.f32.mrb[61].mxu0  ;;  %6265 = vst.msk [vmem:[%s10342_s20 + $0xd0] sm:$0xf] %vm6212_vm7, %v7064_v11  ;;  %v7977_v16 = vadd.f32 %v7851_v31, %v7591_v40  ;;  %v3589_v49 = vpop.f32.mrb[57].mxu1 }
 0x2ea   : > { %v7065_v15 = vpack.c.bf16 %v5625_v32, %v5625_v32  ;;  %v7856_v0 = vpop.f32.mrb[62].mxu0  ;;  %6268 = vst.msk [vmem:[%s10342_s20 + $0xdc] sm:$0xf] %vm6212_vm7, %v7067_v37  ;;  %v7978_v58 = vadd.f32 %v4901_v23, %v3589_v49  ;;  %v7592_v26 = vpop.f32.mrb[58].mxu1 }
 0x2eb   : > { %v4920_v7 = vpop.f32.mrb[63].mxu0  ;;  %vm5374_vm2 = vcmp.gt.f32.partialorder %v7977_v16, 0.0  ;;  %v5502_v47 = vmul.f32 0.2, %v7977_v16  ;;  %v7979_v38 = vadd.f32 %v7852_v44, %v7592_v26  ;;  %v3592_v62 = vpop.f32.mrb[59].mxu1 }
 0x2ec   : > { %6266 = vst.msk [vmem:[%s10342_s20 + $0xd4] sm:$0xf] %vm6212_vm7, %v7065_v15  ;;  %vm5372_vm3 = vcmp.gt.f32.partialorder %v7978_v58, 0.0  ;;  %v5500_v63 = vmul.f32 0.2, %v7978_v58  ;;  %v7980_v29 = vadd.f32 %v4904_v28, %v3592_v62 }
 0x2ed   : > { %v5630_v13 = vsel %vm5374_vm2, %v7977_v16, %v5502_v47  ;;  %vm5375_vm4 = vcmp.gt.f32.partialorder %v7979_v38, 0.0  ;;  %v5503_v61 = vmul.f32 0.2, %v7979_v38 }
 0x2ee   : > { %v7070_v27 = vpack.c.bf16 %v5630_v13, %v5630_v13  ;;  %v5628_v5 = vsel %vm5372_vm3, %v7978_v58, %v5500_v63  ;;  %vm5373_vm5 = vcmp.gt.f32.partialorder %v7980_v29, 0.0  ;;  %v5501_v57 = vmul.f32 0.2, %v7980_v29 }
 0x2ef   : > { %v7068_v56 = vpack.c.bf16 %v5628_v5, %v5628_v5  ;;  %v5631_v52 = vsel %vm5375_vm4, %v7979_v38, %v5503_v61 }
 0x2f0   : > { %v7859_v59 = vpop.f32.mrb[64].mxu0  ;;  %6271 = vst.msk [vmem:[%s10342_s20 + $0xe8] sm:$0xf] %vm6212_vm7, %v7070_v27  ;;  %v7071_v50 = vpack.c.bf16 %v5631_v52, %v5631_v52  ;;  %v5629_v22 = vsel %vm5373_vm5, %v7980_v29, %v5501_v57  ;;  %v7595_v17 = vpop.f32.mrb[60].mxu1 }
 0x2f1   : > { %v4933_v43 = vpop.f32.mrb[65].mxu0  ;;  %6269 = vst.msk [vmem:[%s10342_s20 + $0xe0] sm:$0xf] %vm6212_vm7, %v7068_v56  ;;  %v7069_v12 = vpack.c.bf16 %v5629_v22, %v5629_v22  ;;  %v7981_v25 = vadd.f32 %v7855_v19, %v7595_v17  ;;  %v3605_v36 = vpop.f32.mrb[61].mxu1 }
 0x2f2   : > { %v7860_v4 = vpop.f32.mrb[66].mxu0  ;;  %6272 = vst.msk [vmem:[%s10342_s20 + $0xec] sm:$0xf] %vm6212_vm7, %v7071_v50  ;;  %v7982_v60 = vadd.f32 %v4917_v2, %v3605_v36  ;;  %v7596_v46 = vpop.f32.mrb[62].mxu1 }
 0x2f3   : > { %v4936_v18 = vpop.f32.mrb[67].mxu0  ;;  %6270 = vst.msk [vmem:[%s10342_s20 + $0xe4] sm:$0xf] %vm6212_vm7, %v7069_v12  ;;  %vm5378_vm6 = vcmp.gt.f32.partialorder %v7981_v25, 0.0  ;;  %v5506_v35 = vmul.f32 0.2, %v7981_v25  ;;  %v7983_v6 = vadd.f32 %v7856_v0, %v7596_v46 }
 0x2f4   : > { %v3608_v10 = vpop.f32.mrb[63].mxu1  ;;  %vm5376_vm8 = vcmp.gt.f32.partialorder %v7982_v60, 0.0  ;;  %v5504_v30 = vmul.f32 0.2, %v7982_v60 }
 0x2f5   : > { %v7984_v31 = vadd.f32 %v4920_v7, %v3608_v10  ;;  %v5634_v21 = vsel %vm5378_vm6, %v7981_v25, %v5506_v35  ;;  %vm5379_vm9 = vcmp.gt.f32.partialorder %v7983_v6, 0.0  ;;  %v5507_v53 = vmul.f32 0.2, %v7983_v6 }
 0x2f6   : > { %v7074_v1 = vpack.c.bf16 %v5634_v21, %v5634_v21  ;;  %v5632_v23 = vsel %vm5376_vm8, %v7982_v60, %v5504_v30 }
 0x2f7   : > { %vm5377_vm10 = vcmp.gt.f32.partialorder %v7984_v31, 0.0  ;;  %v5505_v39 = vmul.f32 0.2, %v7984_v31  ;;  %v7072_v42 = vpack.c.bf16 %v5632_v23, %v5632_v23  ;;  %v5635_v45 = vsel %vm5379_vm9, %v7983_v6, %v5507_v53 }
 0x2f8   : > { %v7863_v44 = vpop.f32.mrb[68].mxu0  ;;  %6275 = vst.msk [vmem:[%s10342_s20 + $0xf8] sm:$0xf] %vm6212_vm7, %v7074_v1  ;;  %v7075_v51 = vpack.c.bf16 %v5635_v45, %v5635_v45  ;;  %v7599_v28 = vpop.f32.mrb[64].mxu1 }
 0x2f9   : > { %v5633_v20 = vsel %vm5377_vm10, %v7984_v31, %v5505_v39  ;;  %v4949_v54 = vpop.f32.mrb[69].mxu0  ;;  %6273 = vst.msk [vmem:[%s10342_s20 + $0xf0] sm:$0xf] %vm6212_vm7, %v7072_v42  ;;  %v7985_v34 = vadd.f32 %v7859_v59, %v7599_v28  ;;  %v3621_v8 = vpop.f32.mrb[65].mxu1 }
 0x2fa   : > { %v7073_v3 = vpack.c.bf16 %v5633_v20, %v5633_v20  ;;  %v7864_v48 = vpop.f32.mrb[70].mxu0  ;;  %6276 = vst.msk [vmem:[%s10342_s20 + $0xfc] sm:$0xf] %vm6212_vm7, %v7075_v51  ;;  %v7986_v55 = vadd.f32 %v4933_v43, %v3621_v8  ;;  %v7600_v24 = vpop.f32.mrb[66].mxu1 }
 0x2fb   : > { %v4952_v33 = vpop.f32.mrb[71].mxu0  ;;  %vm5382_vm11 = vcmp.gt.f32.partialorder %v7985_v34, 0.0  ;;  %v5510_v9 = vmul.f32 0.2, %v7985_v34  ;;  %v7987_v14 = vadd.f32 %v7860_v4, %v7600_v24  ;;  %v3624_v11 = vpop.f32.mrb[67].mxu1 }
 0x2fc   : > { %6274 = vst.msk [vmem:[%s10342_s20 + $0xf4] sm:$0xf] %vm6212_vm7, %v7073_v3  ;;  %vm5380_vm1 = vcmp.gt.f32.partialorder %v7986_v55, 0.0  ;;  %v5508_v41 = vmul.f32 0.2, %v7986_v55  ;;  %v7988_v19 = vadd.f32 %v4936_v18, %v3624_v11 }
 0x2fd   : > { %v5638_v37 = vsel %vm5382_vm11, %v7985_v34, %v5510_v9  ;;  %vm5383_vm12 = vcmp.gt.f32.partialorder %v7987_v14, 0.0  ;;  %v5511_v32 = vmul.f32 0.2, %v7987_v14 }
 0x2fe   : > { %v7078_v40 = vpack.c.bf16 %v5638_v37, %v5638_v37  ;;  %v5636_v2 = vsel %vm5380_vm1, %v7986_v55, %v5508_v41  ;;  %vm5381_vm13 = vcmp.gt.f32.partialorder %v7988_v19, 0.0  ;;  %v5509_v15 = vmul.f32 0.2, %v7988_v19 }
 0x2ff   : > { %v7076_v16 = vpack.c.bf16 %v5636_v2, %v5636_v2  ;;  %v5639_v49 = vsel %vm5383_vm12, %v7987_v14, %v5511_v32 }
 0x300   : > { %v7867_v0 = vpop.f32.mrb[72].mxu0  ;;  %6279 = vst.msk [vmem:[%s10342_s20 + $0x108] sm:$0xf] %vm6212_vm7, %v7078_v40  ;;  %v7079_v58 = vpack.c.bf16 %v5639_v49, %v5639_v49  ;;  %v5637_v26 = vsel %vm5381_vm13, %v7988_v19, %v5509_v15  ;;  %v7603_v7 = vpop.f32.mrb[68].mxu1 }
 0x301   : > { %v4965_v47 = vpop.f32.mrb[73].mxu0  ;;  %6277 = vst.msk [vmem:[%s10342_s20 + $0x100] sm:$0xf] %vm6212_vm7, %v7076_v16  ;;  %v7077_v38 = vpack.c.bf16 %v5637_v26, %v5637_v26  ;;  %v7989_v62 = vadd.f32 %v7863_v44, %v7603_v7  ;;  %v3637_v63 = vpop.f32.mrb[69].mxu1 }
 0x302   : > { %v7868_v29 = vpop.f32.mrb[74].mxu0  ;;  %6280 = vst.msk [vmem:[%s10342_s20 + $0x10c] sm:$0xf] %vm6212_vm7, %v7079_v58  ;;  %v7990_v13 = vadd.f32 %v4949_v54, %v3637_v63  ;;  %v7604_v61 = vpop.f32.mrb[70].mxu1 }
 0x303   : > { %v4968_v27 = vpop.f32.mrb[75].mxu0  ;;  %6278 = vst.msk [vmem:[%s10342_s20 + $0x104] sm:$0xf] %vm6212_vm7, %v7077_v38  ;;  %vm5386_vm14 = vcmp.gt.f32.partialorder %v7989_v62, 0.0  ;;  %v5514_v5 = vmul.f32 0.2, %v7989_v62  ;;  %v7991_v57 = vadd.f32 %v7864_v48, %v7604_v61 }
 0x304   : > { %v3640_v56 = vpop.f32.mrb[71].mxu1  ;;  %vm5384_vm15 = vcmp.gt.f32.partialorder %v7990_v13, 0.0  ;;  %v5512_v52 = vmul.f32 0.2, %v7990_v13 }
 0x305   : > { %v7992_v59 = vadd.f32 %v4952_v33, %v3640_v56  ;;  %v5642_v50 = vsel %vm5386_vm14, %v7989_v62, %v5514_v5  ;;  %vm5387_vm0 = vcmp.gt.f32.partialorder %v7991_v57, 0.0  ;;  %v5515_v22 = vmul.f32 0.2, %v7991_v57 }
 0x306   : > { %v7082_v17 = vpack.c.bf16 %v5642_v50, %v5642_v50  ;;  %v5640_v43 = vsel %vm5384_vm15, %v7990_v13, %v5512_v52 }
 0x307   : > { %vm5385_vm2 = vcmp.gt.f32.partialorder %v7992_v59, 0.0  ;;  %v5513_v12 = vmul.f32 0.2, %v7992_v59  ;;  %v7080_v25 = vpack.c.bf16 %v5640_v43, %v5640_v43  ;;  %v5643_v36 = vsel %vm5387_vm0, %v7991_v57, %v5515_v22 }
 0x308   : > { %v7871_v4 = vpop.f32.mrb[76].mxu0  ;;  %6283 = vst.msk [vmem:[%s10342_s20 + $0x118] sm:$0xf] %vm6212_vm7, %v7082_v17  ;;  %v7083_v60 = vpack.c.bf16 %v5643_v36, %v5643_v36  ;;  %v7607_v18 = vpop.f32.mrb[72].mxu1 }
 0x309   : > { %v5641_v46 = vsel %vm5385_vm2, %v7992_v59, %v5513_v12  ;;  %v4981_v35 = vpop.f32.mrb[77].mxu0  ;;  %6281 = vst.msk [vmem:[%s10342_s20 + $0x110] sm:$0xf] %vm6212_vm7, %v7080_v25  ;;  %v7993_v10 = vadd.f32 %v7867_v0, %v7607_v18  ;;  %v3653_v30 = vpop.f32.mrb[73].mxu1 }
 0x30a   : > { %v7081_v6 = vpack.c.bf16 %v5641_v46, %v5641_v46  ;;  %v7872_v31 = vpop.f32.mrb[78].mxu0  ;;  %6284 = vst.msk [vmem:[%s10342_s20 + $0x11c] sm:$0xf] %vm6212_vm7, %v7083_v60  ;;  %v7994_v21 = vadd.f32 %v4965_v47, %v3653_v30  ;;  %v7608_v53 = vpop.f32.mrb[74].mxu1 }
 0x30b   : > { %v4984_v1 = vpop.f32.mrb[79].mxu0  ;;  %vm5390_vm3 = vcmp.gt.f32.partialorder %v7993_v10, 0.0  ;;  %v5518_v23 = vmul.f32 0.2, %v7993_v10  ;;  %v7995_v39 = vadd.f32 %v7868_v29, %v7608_v53  ;;  %v3656_v42 = vpop.f32.mrb[75].mxu1 }
 0x30c   : > { %6282 = vst.msk [vmem:[%s10342_s20 + $0x114] sm:$0xf] %vm6212_vm7, %v7081_v6  ;;  %vm5388_vm4 = vcmp.gt.f32.partialorder %v7994_v21, 0.0  ;;  %v5516_v45 = vmul.f32 0.2, %v7994_v21  ;;  %v7996_v44 = vadd.f32 %v4968_v27, %v3656_v42 }
 0x30d   : > { %v5646_v51 = vsel %vm5390_vm3, %v7993_v10, %v5518_v23  ;;  %vm5391_vm5 = vcmp.gt.f32.partialorder %v7995_v39, 0.0  ;;  %v5519_v20 = vmul.f32 0.2, %v7995_v39 }
 0x30e   : > { %v7086_v28 = vpack.c.bf16 %v5646_v51, %v5646_v51  ;;  %v5644_v54 = vsel %vm5388_vm4, %v7994_v21, %v5516_v45  ;;  %vm5389_vm6 = vcmp.gt.f32.partialorder %v7996_v44, 0.0  ;;  %v5517_v3 = vmul.f32 0.2, %v7996_v44 }
 0x30f   : > { %v7084_v34 = vpack.c.bf16 %v5644_v54, %v5644_v54  ;;  %v5647_v8 = vsel %vm5391_vm5, %v7995_v39, %v5519_v20 }
 0x310   : > { %v7875_v48 = vpop.f32.mrb[80].mxu0  ;;  %6287 = vst.msk [vmem:[%s10342_s20 + $0x128] sm:$0xf] %vm6212_vm7, %v7086_v28  ;;  %v7087_v55 = vpack.c.bf16 %v5647_v8, %v5647_v8  ;;  %v5645_v24 = vsel %vm5389_vm6, %v7996_v44, %v5517_v3  ;;  %v7611_v33 = vpop.f32.mrb[76].mxu1 }
 0x311   : > { %v4997_v9 = vpop.f32.mrb[81].mxu0  ;;  %6285 = vst.msk [vmem:[%s10342_s20 + $0x120] sm:$0xf] %vm6212_vm7, %v7084_v34  ;;  %v7085_v14 = vpack.c.bf16 %v5645_v24, %v5645_v24  ;;  %v7997_v11 = vadd.f32 %v7871_v4, %v7611_v33  ;;  %v3669_v41 = vpop.f32.mrb[77].mxu1 }
 0x312   : > { %v7876_v19 = vpop.f32.mrb[82].mxu0  ;;  %6288 = vst.msk [vmem:[%s10342_s20 + $0x12c] sm:$0xf] %vm6212_vm7, %v7087_v55  ;;  %v7998_v37 = vadd.f32 %v4981_v35, %v3669_v41  ;;  %v7612_v32 = vpop.f32.mrb[78].mxu1 }
 0x313   : > { %v5000_v40 = vpop.f32.mrb[83].mxu0  ;;  %6286 = vst.msk [vmem:[%s10342_s20 + $0x124] sm:$0xf] %vm6212_vm7, %v7085_v14  ;;  %vm5394_vm8 = vcmp.gt.f32.partialorder %v7997_v11, 0.0  ;;  %v5522_v2 = vmul.f32 0.2, %v7997_v11  ;;  %v7999_v15 = vadd.f32 %v7872_v31, %v7612_v32 }
 0x314   : > { %v3672_v16 = vpop.f32.mrb[79].mxu1  ;;  %vm5392_vm9 = vcmp.gt.f32.partialorder %v7998_v37, 0.0  ;;  %v5520_v49 = vmul.f32 0.2, %v7998_v37 }
 0x315   : > { %v8000_v0 = vadd.f32 %v4984_v1, %v3672_v16  ;;  %v5650_v58 = vsel %vm5394_vm8, %v7997_v11, %v5522_v2  ;;  %vm5395_vm10 = vcmp.gt.f32.partialorder %v7999_v15, 0.0  ;;  %v5523_v26 = vmul.f32 0.2, %v7999_v15 }
 0x316   : > { %v7090_v7 = vpack.c.bf16 %v5650_v58, %v5650_v58  ;;  %v5648_v47 = vsel %vm5392_vm9, %v7998_v37, %v5520_v49 }
 0x317   : > { %vm5393_vm11 = vcmp.gt.f32.partialorder %v8000_v0, 0.0  ;;  %v5521_v38 = vmul.f32 0.2, %v8000_v0  ;;  %v7088_v62 = vpack.c.bf16 %v5648_v47, %v5648_v47  ;;  %v5651_v63 = vsel %vm5395_vm10, %v7999_v15, %v5523_v26 }
 0x318   : > { %v7879_v29 = vpop.f32.mrb[84].mxu0  ;;  %6291 = vst.msk [vmem:[%s10342_s20 + $0x138] sm:$0xf] %vm6212_vm7, %v7090_v7  ;;  %v7091_v13 = vpack.c.bf16 %v5651_v63, %v5651_v63  ;;  %v7615_v27 = vpop.f32.mrb[80].mxu1 }
 0x319   : > { %v5649_v61 = vsel %vm5393_vm11, %v8000_v0, %v5521_v38  ;;  %v5013_v5 = vpop.f32.mrb[85].mxu0  ;;  %6289 = vst.msk [vmem:[%s10342_s20 + $0x130] sm:$0xf] %vm6212_vm7, %v7088_v62  ;;  %v8001_v56 = vadd.f32 %v7875_v48, %v7615_v27  ;;  %v3685_v52 = vpop.f32.mrb[81].mxu1 }
 0x31a   : > { %v7089_v57 = vpack.c.bf16 %v5649_v61, %v5649_v61  ;;  %v7880_v59 = vpop.f32.mrb[86].mxu0  ;;  %6292 = vst.msk [vmem:[%s10342_s20 + $0x13c] sm:$0xf] %vm6212_vm7, %v7091_v13  ;;  %v8002_v50 = vadd.f32 %v4997_v9, %v3685_v52  ;;  %v7616_v22 = vpop.f32.mrb[82].mxu1 }
 0x31b   : > { %v5016_v17 = vpop.f32.mrb[87].mxu0  ;;  %vm5398_vm1 = vcmp.gt.f32.partialorder %v8001_v56, 0.0  ;;  %v5526_v43 = vmul.f32 0.2, %v8001_v56  ;;  %v8003_v12 = vadd.f32 %v7876_v19, %v7616_v22  ;;  %v3688_v25 = vpop.f32.mrb[83].mxu1 }
 0x31c   : > { %6290 = vst.msk [vmem:[%s10342_s20 + $0x134] sm:$0xf] %vm6212_vm7, %v7089_v57  ;;  %vm5396_vm12 = vcmp.gt.f32.partialorder %v8002_v50, 0.0  ;;  %v5524_v36 = vmul.f32 0.2, %v8002_v50  ;;  %v8004_v4 = vadd.f32 %v5000_v40, %v3688_v25 }
 0x31d   : > { %v5654_v60 = vsel %vm5398_vm1, %v8001_v56, %v5526_v43  ;;  %vm5399_vm13 = vcmp.gt.f32.partialorder %v8003_v12, 0.0  ;;  %v5527_v46 = vmul.f32 0.2, %v8003_v12 }
 0x31e   : > { %v7094_v18 = vpack.c.bf16 %v5654_v60, %v5654_v60  ;;  %v5652_v35 = vsel %vm5396_vm12, %v8002_v50, %v5524_v36  ;;  %vm5397_vm14 = vcmp.gt.f32.partialorder %v8004_v4, 0.0  ;;  %v5525_v6 = vmul.f32 0.2, %v8004_v4 }
 0x31f   : > { %v7092_v10 = vpack.c.bf16 %v5652_v35, %v5652_v35  ;;  %v5655_v30 = vsel %vm5399_vm13, %v8003_v12, %v5527_v46 }
 0x320   : > { %v7883_v31 = vpop.f32.mrb[88].mxu0  ;;  %6295 = vst.msk [vmem:[%s10342_s20 + $0x148] sm:$0xf] %vm6212_vm7, %v7094_v18  ;;  %v7095_v21 = vpack.c.bf16 %v5655_v30, %v5655_v30  ;;  %v5653_v53 = vsel %vm5397_vm14, %v8004_v4, %v5525_v6  ;;  %v7619_v1 = vpop.f32.mrb[84].mxu1 }
 0x321   : > { %v5029_v23 = vpop.f32.mrb[89].mxu0  ;;  %6293 = vst.msk [vmem:[%s10342_s20 + $0x140] sm:$0xf] %vm6212_vm7, %v7092_v10  ;;  %v7093_v39 = vpack.c.bf16 %v5653_v53, %v5653_v53  ;;  %v8005_v42 = vadd.f32 %v7879_v29, %v7619_v1  ;;  %v3701_v45 = vpop.f32.mrb[85].mxu1 }
 0x322   : > { %v7884_v44 = vpop.f32.mrb[90].mxu0  ;;  %6296 = vst.msk [vmem:[%s10342_s20 + $0x14c] sm:$0xf] %vm6212_vm7, %v7095_v21  ;;  %v8006_v51 = vadd.f32 %v5013_v5, %v3701_v45  ;;  %v7620_v20 = vpop.f32.mrb[86].mxu1 }
 0x323   : > { %v5032_v28 = vpop.f32.mrb[91].mxu0  ;;  %6294 = vst.msk [vmem:[%s10342_s20 + $0x144] sm:$0xf] %vm6212_vm7, %v7093_v39  ;;  %vm5402_vm15 = vcmp.gt.f32.partialorder %v8005_v42, 0.0  ;;  %v5530_v54 = vmul.f32 0.2, %v8005_v42  ;;  %v8007_v3 = vadd.f32 %v7880_v59, %v7620_v20 }
 0x324   : > { %v3704_v34 = vpop.f32.mrb[87].mxu1  ;;  %vm5400_vm0 = vcmp.gt.f32.partialorder %v8006_v51, 0.0  ;;  %v5528_v8 = vmul.f32 0.2, %v8006_v51 }
 0x325   : > { %v8008_v48 = vadd.f32 %v5016_v17, %v3704_v34  ;;  %v5658_v55 = vsel %vm5402_vm15, %v8005_v42, %v5530_v54  ;;  %vm5403_vm2 = vcmp.gt.f32.partialorder %v8007_v3, 0.0  ;;  %v5531_v24 = vmul.f32 0.2, %v8007_v3 }
 0x326   : > { %v7098_v33 = vpack.c.bf16 %v5658_v55, %v5658_v55  ;;  %v5656_v9 = vsel %vm5400_vm0, %v8006_v51, %v5528_v8 }
 0x327   : > { %vm5401_vm3 = vcmp.gt.f32.partialorder %v8008_v48, 0.0  ;;  %v5529_v14 = vmul.f32 0.2, %v8008_v48  ;;  %v7096_v11 = vpack.c.bf16 %v5656_v9, %v5656_v9  ;;  %v5659_v41 = vsel %vm5403_vm2, %v8007_v3, %v5531_v24 }
 0x328   : > { %v7887_v19 = vpop.f32.mrb[92].mxu0  ;;  %6299 = vst.msk [vmem:[%s10342_s20 + $0x158] sm:$0xf] %vm6212_vm7, %v7098_v33  ;;  %v7099_v37 = vpack.c.bf16 %v5659_v41, %v5659_v41  ;;  %v7623_v40 = vpop.f32.mrb[88].mxu1 }
 0x329   : > { %v5657_v32 = vsel %vm5401_vm3, %v8008_v48, %v5529_v14  ;;  %v5045_v2 = vpop.f32.mrb[93].mxu0  ;;  %6297 = vst.msk [vmem:[%s10342_s20 + $0x150] sm:$0xf] %vm6212_vm7, %v7096_v11  ;;  %v8009_v16 = vadd.f32 %v7883_v31, %v7623_v40  ;;  %v3717_v49 = vpop.f32.mrb[89].mxu1 }
 0x32a   : > { %v7097_v15 = vpack.c.bf16 %v5657_v32, %v5657_v32  ;;  %v7888_v0 = vpop.f32.mrb[94].mxu0  ;;  %6300 = vst.msk [vmem:[%s10342_s20 + $0x15c] sm:$0xf] %vm6212_vm7, %v7099_v37  ;;  %v8010_v58 = vadd.f32 %v5029_v23, %v3717_v49  ;;  %v7624_v26 = vpop.f32.mrb[90].mxu1 }
 0x32b   : > { %v5048_v7 = vpop.f32.mrb[95].mxu0  ;;  %vm5406_vm4 = vcmp.gt.f32.partialorder %v8009_v16, 0.0  ;;  %v5534_v47 = vmul.f32 0.2, %v8009_v16  ;;  %v8011_v38 = vadd.f32 %v7884_v44, %v7624_v26  ;;  %v3720_v62 = vpop.f32.mrb[91].mxu1 }
 0x32c   : > { %6298 = vst.msk [vmem:[%s10342_s20 + $0x154] sm:$0xf] %vm6212_vm7, %v7097_v15  ;;  %vm5404_vm5 = vcmp.gt.f32.partialorder %v8010_v58, 0.0  ;;  %v5532_v63 = vmul.f32 0.2, %v8010_v58  ;;  %v8012_v29 = vadd.f32 %v5032_v28, %v3720_v62 }
 0x32d   : > { %v5662_v13 = vsel %vm5406_vm4, %v8009_v16, %v5534_v47  ;;  %vm5407_vm6 = vcmp.gt.f32.partialorder %v8011_v38, 0.0  ;;  %v5535_v61 = vmul.f32 0.2, %v8011_v38 }
 0x32e   : > { %v7102_v27 = vpack.c.bf16 %v5662_v13, %v5662_v13  ;;  %v5660_v5 = vsel %vm5404_vm5, %v8010_v58, %v5532_v63  ;;  %vm5405_vm8 = vcmp.gt.f32.partialorder %v8012_v29, 0.0  ;;  %v5533_v57 = vmul.f32 0.2, %v8012_v29 }
 0x32f   : > { %v7100_v56 = vpack.c.bf16 %v5660_v5, %v5660_v5  ;;  %v5663_v52 = vsel %vm5407_vm6, %v8011_v38, %v5535_v61 }
 0x330   : > { %v7891_v59 = vpop.f32.mrb[96].mxu0  ;;  %6303 = vst.msk [vmem:[%s10342_s20 + $0x168] sm:$0xf] %vm6212_vm7, %v7102_v27  ;;  %v7103_v50 = vpack.c.bf16 %v5663_v52, %v5663_v52  ;;  %v5661_v22 = vsel %vm5405_vm8, %v8012_v29, %v5533_v57  ;;  %v7627_v17 = vpop.f32.mrb[92].mxu1 }
 0x331   : > { %v5061_v43 = vpop.f32.mrb[97].mxu0  ;;  %6301 = vst.msk [vmem:[%s10342_s20 + $0x160] sm:$0xf] %vm6212_vm7, %v7100_v56  ;;  %v7101_v12 = vpack.c.bf16 %v5661_v22, %v5661_v22  ;;  %v8013_v25 = vadd.f32 %v7887_v19, %v7627_v17  ;;  %v3733_v36 = vpop.f32.mrb[93].mxu1 }
 0x332   : > { %v7892_v4 = vpop.f32.mrb[98].mxu0  ;;  %6304 = vst.msk [vmem:[%s10342_s20 + $0x16c] sm:$0xf] %vm6212_vm7, %v7103_v50  ;;  %v8014_v60 = vadd.f32 %v5045_v2, %v3733_v36  ;;  %v7628_v46 = vpop.f32.mrb[94].mxu1 }
 0x333   : > { %v5064_v18 = vpop.f32.mrb[99].mxu0  ;;  %6302 = vst.msk [vmem:[%s10342_s20 + $0x164] sm:$0xf] %vm6212_vm7, %v7101_v12  ;;  %vm5410_vm9 = vcmp.gt.f32.partialorder %v8013_v25, 0.0  ;;  %v5538_v35 = vmul.f32 0.2, %v8013_v25  ;;  %v8015_v6 = vadd.f32 %v7888_v0, %v7628_v46 }
 0x334   : > { %v3736_v10 = vpop.f32.mrb[95].mxu1  ;;  %vm5408_vm10 = vcmp.gt.f32.partialorder %v8014_v60, 0.0  ;;  %v5536_v30 = vmul.f32 0.2, %v8014_v60 }
 0x335   : > { %v8016_v31 = vadd.f32 %v5048_v7, %v3736_v10  ;;  %v5666_v21 = vsel %vm5410_vm9, %v8013_v25, %v5538_v35  ;;  %vm5411_vm11 = vcmp.gt.f32.partialorder %v8015_v6, 0.0  ;;  %v5539_v53 = vmul.f32 0.2, %v8015_v6 }
 0x336   : > { %v7106_v1 = vpack.c.bf16 %v5666_v21, %v5666_v21  ;;  %v5664_v23 = vsel %vm5408_vm10, %v8014_v60, %v5536_v30 }
 0x337   : > { %vm5409_vm1 = vcmp.gt.f32.partialorder %v8016_v31, 0.0  ;;  %v5537_v39 = vmul.f32 0.2, %v8016_v31  ;;  %v7104_v42 = vpack.c.bf16 %v5664_v23, %v5664_v23  ;;  %v5667_v45 = vsel %vm5411_vm11, %v8015_v6, %v5539_v53 }
 0x338   : > { %v7895_v44 = vpop.f32.mrb[100].mxu0  ;;  %6307 = vst.msk [vmem:[%s10342_s20 + $0x178] sm:$0xf] %vm6212_vm7, %v7106_v1  ;;  %v7107_v51 = vpack.c.bf16 %v5667_v45, %v5667_v45  ;;  %v7631_v28 = vpop.f32.mrb[96].mxu1 }
 0x339   : > { %v5665_v20 = vsel %vm5409_vm1, %v8016_v31, %v5537_v39  ;;  %v5077_v54 = vpop.f32.mrb[101].mxu0  ;;  %6305 = vst.msk [vmem:[%s10342_s20 + $0x170] sm:$0xf] %vm6212_vm7, %v7104_v42  ;;  %v8017_v34 = vadd.f32 %v7891_v59, %v7631_v28  ;;  %v3749_v8 = vpop.f32.mrb[97].mxu1 }
 0x33a   : > { %v7105_v3 = vpack.c.bf16 %v5665_v20, %v5665_v20  ;;  %v7896_v48 = vpop.f32.mrb[102].mxu0  ;;  %6308 = vst.msk [vmem:[%s10342_s20 + $0x17c] sm:$0xf] %vm6212_vm7, %v7107_v51  ;;  %v8018_v55 = vadd.f32 %v5061_v43, %v3749_v8  ;;  %v7632_v24 = vpop.f32.mrb[98].mxu1 }
 0x33b   : > { %v5080_v33 = vpop.f32.mrb[103].mxu0  ;;  %vm5414_vm12 = vcmp.gt.f32.partialorder %v8017_v34, 0.0  ;;  %v5542_v9 = vmul.f32 0.2, %v8017_v34  ;;  %v8019_v14 = vadd.f32 %v7892_v4, %v7632_v24  ;;  %v3752_v11 = vpop.f32.mrb[99].mxu1 }
 0x33c   : > { %6306 = vst.msk [vmem:[%s10342_s20 + $0x174] sm:$0xf] %vm6212_vm7, %v7105_v3  ;;  %vm5412_vm13 = vcmp.gt.f32.partialorder %v8018_v55, 0.0  ;;  %v5540_v41 = vmul.f32 0.2, %v8018_v55  ;;  %v8020_v19 = vadd.f32 %v5064_v18, %v3752_v11 }
 0x33d   : > { %v5670_v37 = vsel %vm5414_vm12, %v8017_v34, %v5542_v9  ;;  %vm5415_vm14 = vcmp.gt.f32.partialorder %v8019_v14, 0.0  ;;  %v5543_v32 = vmul.f32 0.2, %v8019_v14 }
 0x33e   : > { %v7110_v40 = vpack.c.bf16 %v5670_v37, %v5670_v37  ;;  %v5668_v2 = vsel %vm5412_vm13, %v8018_v55, %v5540_v41  ;;  %vm5413_vm15 = vcmp.gt.f32.partialorder %v8020_v19, 0.0  ;;  %v5541_v15 = vmul.f32 0.2, %v8020_v19 }
 0x33f   : > { %v7108_v16 = vpack.c.bf16 %v5668_v2, %v5668_v2  ;;  %v5671_v49 = vsel %vm5415_vm14, %v8019_v14, %v5543_v32 }
 0x340   : > { %v7899_v0 = vpop.f32.mrb[104].mxu0  ;;  %6311 = vst.msk [vmem:[%s10342_s20 + $0x188] sm:$0xf] %vm6212_vm7, %v7110_v40  ;;  %v7111_v58 = vpack.c.bf16 %v5671_v49, %v5671_v49  ;;  %v5669_v26 = vsel %vm5413_vm15, %v8020_v19, %v5541_v15  ;;  %v7635_v7 = vpop.f32.mrb[100].mxu1 }
 0x341   : > { %v5093_v47 = vpop.f32.mrb[105].mxu0  ;;  %6309 = vst.msk [vmem:[%s10342_s20 + $0x180] sm:$0xf] %vm6212_vm7, %v7108_v16  ;;  %v7109_v38 = vpack.c.bf16 %v5669_v26, %v5669_v26  ;;  %v8021_v62 = vadd.f32 %v7895_v44, %v7635_v7  ;;  %v3765_v63 = vpop.f32.mrb[101].mxu1 }
 0x342   : > { %v7900_v29 = vpop.f32.mrb[106].mxu0  ;;  %6312 = vst.msk [vmem:[%s10342_s20 + $0x18c] sm:$0xf] %vm6212_vm7, %v7111_v58  ;;  %v8022_v13 = vadd.f32 %v5077_v54, %v3765_v63  ;;  %v7636_v61 = vpop.f32.mrb[102].mxu1 }
 0x343   : > { %v5096_v27 = vpop.f32.mrb[107].mxu0  ;;  %6310 = vst.msk [vmem:[%s10342_s20 + $0x184] sm:$0xf] %vm6212_vm7, %v7109_v38  ;;  %vm5418_vm0 = vcmp.gt.f32.partialorder %v8021_v62, 0.0  ;;  %v5546_v5 = vmul.f32 0.2, %v8021_v62  ;;  %v8023_v57 = vadd.f32 %v7896_v48, %v7636_v61 }
 0x344   : > { %v3768_v56 = vpop.f32.mrb[103].mxu1  ;;  %vm5416_vm2 = vcmp.gt.f32.partialorder %v8022_v13, 0.0  ;;  %v5544_v52 = vmul.f32 0.2, %v8022_v13 }
 0x345   : > { %v8024_v59 = vadd.f32 %v5080_v33, %v3768_v56  ;;  %v5674_v50 = vsel %vm5418_vm0, %v8021_v62, %v5546_v5  ;;  %vm5419_vm3 = vcmp.gt.f32.partialorder %v8023_v57, 0.0  ;;  %v5547_v22 = vmul.f32 0.2, %v8023_v57 }
 0x346   : > { %v7114_v17 = vpack.c.bf16 %v5674_v50, %v5674_v50  ;;  %v5672_v43 = vsel %vm5416_vm2, %v8022_v13, %v5544_v52 }
 0x347   : > { %vm5417_vm4 = vcmp.gt.f32.partialorder %v8024_v59, 0.0  ;;  %v5545_v12 = vmul.f32 0.2, %v8024_v59  ;;  %v7112_v25 = vpack.c.bf16 %v5672_v43, %v5672_v43  ;;  %v5675_v36 = vsel %vm5419_vm3, %v8023_v57, %v5547_v22 }
 0x348   : > { %v7903_v4 = vpop.f32.mrb[108].mxu0  ;;  %6315 = vst.msk [vmem:[%s10342_s20 + $0x198] sm:$0xf] %vm6212_vm7, %v7114_v17  ;;  %v7115_v60 = vpack.c.bf16 %v5675_v36, %v5675_v36  ;;  %v7639_v18 = vpop.f32.mrb[104].mxu1 }
 0x349   : > { %v5673_v46 = vsel %vm5417_vm4, %v8024_v59, %v5545_v12  ;;  %v5109_v35 = vpop.f32.mrb[109].mxu0  ;;  %6313 = vst.msk [vmem:[%s10342_s20 + $0x190] sm:$0xf] %vm6212_vm7, %v7112_v25  ;;  %v8025_v10 = vadd.f32 %v7899_v0, %v7639_v18  ;;  %v3781_v30 = vpop.f32.mrb[105].mxu1 }
 0x34a   : > { %v7113_v6 = vpack.c.bf16 %v5673_v46, %v5673_v46  ;;  %v7904_v31 = vpop.f32.mrb[110].mxu0  ;;  %6316 = vst.msk [vmem:[%s10342_s20 + $0x19c] sm:$0xf] %vm6212_vm7, %v7115_v60  ;;  %v8026_v21 = vadd.f32 %v5093_v47, %v3781_v30  ;;  %v7640_v53 = vpop.f32.mrb[106].mxu1 }
 0x34b   : > { %v5112_v1 = vpop.f32.mrb[111].mxu0  ;;  %vm5422_vm5 = vcmp.gt.f32.partialorder %v8025_v10, 0.0  ;;  %v5550_v23 = vmul.f32 0.2, %v8025_v10  ;;  %v8027_v39 = vadd.f32 %v7900_v29, %v7640_v53  ;;  %v3784_v42 = vpop.f32.mrb[107].mxu1 }
 0x34c   : > { %6314 = vst.msk [vmem:[%s10342_s20 + $0x194] sm:$0xf] %vm6212_vm7, %v7113_v6  ;;  %vm5420_vm6 = vcmp.gt.f32.partialorder %v8026_v21, 0.0  ;;  %v5548_v45 = vmul.f32 0.2, %v8026_v21  ;;  %v8028_v44 = vadd.f32 %v5096_v27, %v3784_v42 }
 0x34d   : > { %v5678_v51 = vsel %vm5422_vm5, %v8025_v10, %v5550_v23  ;;  %vm5423_vm8 = vcmp.gt.f32.partialorder %v8027_v39, 0.0  ;;  %v5551_v20 = vmul.f32 0.2, %v8027_v39 }
 0x34e   : > { %v7118_v28 = vpack.c.bf16 %v5678_v51, %v5678_v51  ;;  %v5676_v54 = vsel %vm5420_vm6, %v8026_v21, %v5548_v45  ;;  %vm5421_vm9 = vcmp.gt.f32.partialorder %v8028_v44, 0.0  ;;  %v5549_v3 = vmul.f32 0.2, %v8028_v44 }
 0x34f   : > { %v7116_v34 = vpack.c.bf16 %v5676_v54, %v5676_v54  ;;  %v5679_v8 = vsel %vm5423_vm8, %v8027_v39, %v5551_v20 }
 0x350   : > { %v7907_v48 = vpop.f32.mrb[112].mxu0  ;;  %6319 = vst.msk [vmem:[%s10342_s20 + $0x1a8] sm:$0xf] %vm6212_vm7, %v7118_v28  ;;  %v7119_v55 = vpack.c.bf16 %v5679_v8, %v5679_v8  ;;  %v5677_v24 = vsel %vm5421_vm9, %v8028_v44, %v5549_v3  ;;  %v7643_v33 = vpop.f32.mrb[108].mxu1 }
 0x351   : > { %v5125_v9 = vpop.f32.mrb[113].mxu0  ;;  %6317 = vst.msk [vmem:[%s10342_s20 + $0x1a0] sm:$0xf] %vm6212_vm7, %v7116_v34  ;;  %v7117_v14 = vpack.c.bf16 %v5677_v24, %v5677_v24  ;;  %v8029_v11 = vadd.f32 %v7903_v4, %v7643_v33  ;;  %v3797_v41 = vpop.f32.mrb[109].mxu1 }
 0x352   : > { %v7908_v19 = vpop.f32.mrb[114].mxu0  ;;  %6320 = vst.msk [vmem:[%s10342_s20 + $0x1ac] sm:$0xf] %vm6212_vm7, %v7119_v55  ;;  %v8030_v37 = vadd.f32 %v5109_v35, %v3797_v41  ;;  %v7644_v32 = vpop.f32.mrb[110].mxu1 }
 0x353   : > { %v5128_v40 = vpop.f32.mrb[115].mxu0  ;;  %6318 = vst.msk [vmem:[%s10342_s20 + $0x1a4] sm:$0xf] %vm6212_vm7, %v7117_v14  ;;  %vm5426_vm10 = vcmp.gt.f32.partialorder %v8029_v11, 0.0  ;;  %v5554_v2 = vmul.f32 0.2, %v8029_v11  ;;  %v8031_v15 = vadd.f32 %v7904_v31, %v7644_v32 }
 0x354   : > { %v3800_v16 = vpop.f32.mrb[111].mxu1  ;;  %vm5424_vm11 = vcmp.gt.f32.partialorder %v8030_v37, 0.0  ;;  %v5552_v49 = vmul.f32 0.2, %v8030_v37 }
 0x355   : > { %v8032_v0 = vadd.f32 %v5112_v1, %v3800_v16  ;;  %v5682_v58 = vsel %vm5426_vm10, %v8029_v11, %v5554_v2  ;;  %vm5427_vm1 = vcmp.gt.f32.partialorder %v8031_v15, 0.0  ;;  %v5555_v26 = vmul.f32 0.2, %v8031_v15 }
 0x356   : > { %v7122_v7 = vpack.c.bf16 %v5682_v58, %v5682_v58  ;;  %v5680_v47 = vsel %vm5424_vm11, %v8030_v37, %v5552_v49 }
 0x357   : > { %vm5425_vm12 = vcmp.gt.f32.partialorder %v8032_v0, 0.0  ;;  %v5553_v38 = vmul.f32 0.2, %v8032_v0  ;;  %v7120_v62 = vpack.c.bf16 %v5680_v47, %v5680_v47  ;;  %v5683_v63 = vsel %vm5427_vm1, %v8031_v15, %v5555_v26 }
 0x358   : > { %v7911_v29 = vpop.f32.mrb[116].mxu0  ;;  %6323 = vst.msk [vmem:[%s10342_s20 + $0x1b8] sm:$0xf] %vm6212_vm7, %v7122_v7  ;;  %v7123_v13 = vpack.c.bf16 %v5683_v63, %v5683_v63  ;;  %v7647_v27 = vpop.f32.mrb[112].mxu1 }
 0x359   : > { %v5681_v61 = vsel %vm5425_vm12, %v8032_v0, %v5553_v38  ;;  %v5141_v5 = vpop.f32.mrb[117].mxu0  ;;  %6321 = vst.msk [vmem:[%s10342_s20 + $0x1b0] sm:$0xf] %vm6212_vm7, %v7120_v62  ;;  %v8033_v56 = vadd.f32 %v7907_v48, %v7647_v27  ;;  %v3813_v52 = vpop.f32.mrb[113].mxu1 }
 0x35a   : > { %v7121_v57 = vpack.c.bf16 %v5681_v61, %v5681_v61  ;;  %v7912_v59 = vpop.f32.mrb[118].mxu0  ;;  %6324 = vst.msk [vmem:[%s10342_s20 + $0x1bc] sm:$0xf] %vm6212_vm7, %v7123_v13  ;;  %v8034_v50 = vadd.f32 %v5125_v9, %v3813_v52  ;;  %v7648_v22 = vpop.f32.mrb[114].mxu1 }
 0x35b   : > { %v5144_v17 = vpop.f32.mrb[119].mxu0  ;;  %vm5430_vm13 = vcmp.gt.f32.partialorder %v8033_v56, 0.0  ;;  %v5558_v43 = vmul.f32 0.2, %v8033_v56  ;;  %v8035_v12 = vadd.f32 %v7908_v19, %v7648_v22  ;;  %v3816_v25 = vpop.f32.mrb[115].mxu1 }
 0x35c   : > { %6322 = vst.msk [vmem:[%s10342_s20 + $0x1b4] sm:$0xf] %vm6212_vm7, %v7121_v57  ;;  %vm5428_vm14 = vcmp.gt.f32.partialorder %v8034_v50, 0.0  ;;  %v5556_v36 = vmul.f32 0.2, %v8034_v50  ;;  %v8036_v4 = vadd.f32 %v5128_v40, %v3816_v25 }
 0x35d   : > { %v5686_v60 = vsel %vm5430_vm13, %v8033_v56, %v5558_v43  ;;  %vm5431_vm15 = vcmp.gt.f32.partialorder %v8035_v12, 0.0  ;;  %v5559_v46 = vmul.f32 0.2, %v8035_v12 }
 0x35e   : > { %v7126_v18 = vpack.c.bf16 %v5686_v60, %v5686_v60  ;;  %v5684_v35 = vsel %vm5428_vm14, %v8034_v50, %v5556_v36  ;;  %vm5429_vm0 = vcmp.gt.f32.partialorder %v8036_v4, 0.0  ;;  %v5557_v6 = vmul.f32 0.2, %v8036_v4 }
 0x35f   : > { %v7124_v10 = vpack.c.bf16 %v5684_v35, %v5684_v35  ;;  %v5687_v30 = vsel %vm5431_vm15, %v8035_v12, %v5559_v46 }
 0x360   : > { %v7915_v31 = vpop.f32.mrb[120].mxu0  ;;  %6327 = vst.msk [vmem:[%s10342_s20 + $0x1c8] sm:$0xf] %vm6212_vm7, %v7126_v18  ;;  %v7127_v21 = vpack.c.bf16 %v5687_v30, %v5687_v30  ;;  %v5685_v53 = vsel %vm5429_vm0, %v8036_v4, %v5557_v6  ;;  %v7651_v1 = vpop.f32.mrb[116].mxu1 }
 0x361   : > { %v5157_v23 = vpop.f32.mrb[121].mxu0  ;;  %6325 = vst.msk [vmem:[%s10342_s20 + $0x1c0] sm:$0xf] %vm6212_vm7, %v7124_v10  ;;  %v7125_v39 = vpack.c.bf16 %v5685_v53, %v5685_v53  ;;  %v8037_v42 = vadd.f32 %v7911_v29, %v7651_v1  ;;  %v3829_v45 = vpop.f32.mrb[117].mxu1 }
 0x362   : > { %v7916_v44 = vpop.f32.mrb[122].mxu0  ;;  %6328 = vst.msk [vmem:[%s10342_s20 + $0x1cc] sm:$0xf] %vm6212_vm7, %v7127_v21  ;;  %v8038_v51 = vadd.f32 %v5141_v5, %v3829_v45  ;;  %v7652_v20 = vpop.f32.mrb[118].mxu1 }
 0x363   : > { %v5160_v28 = vpop.f32.mrb[123].mxu0  ;;  %6326 = vst.msk [vmem:[%s10342_s20 + $0x1c4] sm:$0xf] %vm6212_vm7, %v7125_v39  ;;  %vm5434_vm2 = vcmp.gt.f32.partialorder %v8037_v42, 0.0  ;;  %v5562_v54 = vmul.f32 0.2, %v8037_v42  ;;  %v8039_v3 = vadd.f32 %v7912_v59, %v7652_v20 }
 0x364   : > { %v3832_v34 = vpop.f32.mrb[119].mxu1  ;;  %vm5432_vm3 = vcmp.gt.f32.partialorder %v8038_v51, 0.0  ;;  %v5560_v8 = vmul.f32 0.2, %v8038_v51 }
 0x365   : > { %v8040_v48 = vadd.f32 %v5144_v17, %v3832_v34  ;;  %v5690_v55 = vsel %vm5434_vm2, %v8037_v42, %v5562_v54  ;;  %vm5435_vm4 = vcmp.gt.f32.partialorder %v8039_v3, 0.0  ;;  %v5563_v24 = vmul.f32 0.2, %v8039_v3 }
 0x366   : > { %v7130_v33 = vpack.c.bf16 %v5690_v55, %v5690_v55  ;;  %v5688_v9 = vsel %vm5432_vm3, %v8038_v51, %v5560_v8 }
 0x367   : > { %vm5433_vm5 = vcmp.gt.f32.partialorder %v8040_v48, 0.0  ;;  %v5561_v14 = vmul.f32 0.2, %v8040_v48  ;;  %v7128_v11 = vpack.c.bf16 %v5688_v9, %v5688_v9  ;;  %v5691_v41 = vsel %vm5435_vm4, %v8039_v3, %v5563_v24 }
 0x368   : > { %v7919_v19 = vpop.f32.mrb[124].mxu0  ;;  %6331 = vst.msk [vmem:[%s10342_s20 + $0x1d8] sm:$0xf] %vm6212_vm7, %v7130_v33  ;;  %v7131_v37 = vpack.c.bf16 %v5691_v41, %v5691_v41  ;;  %v7655_v40 = vpop.f32.mrb[120].mxu1 }
 0x369   : > { %v5689_v32 = vsel %vm5433_vm5, %v8040_v48, %v5561_v14  ;;  %v5173_v2 = vpop.f32.mrb[125].mxu0  ;;  %6329 = vst.msk [vmem:[%s10342_s20 + $0x1d0] sm:$0xf] %vm6212_vm7, %v7128_v11  ;;  %v8041_v16 = vadd.f32 %v7915_v31, %v7655_v40  ;;  %v3845_v49 = vpop.f32.mrb[121].mxu1 }
 0x36a   : > { %v7129_v15 = vpack.c.bf16 %v5689_v32, %v5689_v32  ;;  %v7920_v0 = vpop.f32.mrb[126].mxu0  ;;  %6332 = vst.msk [vmem:[%s10342_s20 + $0x1dc] sm:$0xf] %vm6212_vm7, %v7131_v37  ;;  %v8042_v58 = vadd.f32 %v5157_v23, %v3845_v49  ;;  %v7656_v26 = vpop.f32.mrb[122].mxu1 }
 0x36b   : > { %v5176_v7 = vpop.f32.mrb[127].mxu0  ;;  %vm5438_vm6 = vcmp.gt.f32.partialorder %v8041_v16, 0.0  ;;  %v5566_v47 = vmul.f32 0.2, %v8041_v16  ;;  %v8043_v38 = vadd.f32 %v7916_v44, %v7656_v26  ;;  %v3848_v62 = vpop.f32.mrb[123].mxu1 }
 0x36c   : > { %6330 = vst.msk [vmem:[%s10342_s20 + $0x1d4] sm:$0xf] %vm6212_vm7, %v7129_v15  ;;  %vm5436_vm8 = vcmp.gt.f32.partialorder %v8042_v58, 0.0  ;;  %v5564_v63 = vmul.f32 0.2, %v8042_v58  ;;  %v8044_v29 = vadd.f32 %v5160_v28, %v3848_v62 }
 0x36d   : > { %v5694_v13 = vsel %vm5438_vm6, %v8041_v16, %v5566_v47  ;;  %vm5439_vm9 = vcmp.gt.f32.partialorder %v8043_v38, 0.0  ;;  %v5567_v61 = vmul.f32 0.2, %v8043_v38 }
 0x36e   : > { %v7134_v27 = vpack.c.bf16 %v5694_v13, %v5694_v13  ;;  %v5692_v5 = vsel %vm5436_vm8, %v8042_v58, %v5564_v63  ;;  %vm5437_vm10 = vcmp.gt.f32.partialorder %v8044_v29, 0.0  ;;  %v5565_v57 = vmul.f32 0.2, %v8044_v29 }
 0x36f   : > { %v7132_v56 = vpack.c.bf16 %v5692_v5, %v5692_v5  ;;  %v5695_v52 = vsel %vm5439_vm9, %v8043_v38, %v5567_v61 }
 0x370   : > { %6335 = vst.msk [vmem:[%s10342_s20 + $0x1e8] sm:$0xf] %vm6212_vm7, %v7134_v27  ;;  %v7135_v59 = vpack.c.bf16 %v5695_v52, %v5695_v52  ;;  %v5693_v50 = vsel %vm5437_vm10, %v8044_v29, %v5565_v57  ;;  %v7659_v22 = vpop.f32.mrb[124].mxu1 }
 0x371   : > { %6333 = vst.msk [vmem:[%s10342_s20 + $0x1e0] sm:$0xf] %vm6212_vm7, %v7132_v56  ;;  %v7133_v17 = vpack.c.bf16 %v5693_v50, %v5693_v50  ;;  %v8045_v43 = vadd.f32 %v7919_v19, %v7659_v22  ;;  %v3861_v12 = vpop.f32.mrb[125].mxu1 }
 0x372   : > { %6336 = vst.msk [vmem:[%s10342_s20 + $0x1ec] sm:$0xf] %vm6212_vm7, %v7135_v59  ;;  %v8046_v25 = vadd.f32 %v5173_v2, %v3861_v12  ;;  %v7660_v36 = vpop.f32.mrb[126].mxu1 }
 0x373   : > { %6334 = vst.msk [vmem:[%s10342_s20 + $0x1e4] sm:$0xf] %vm6212_vm7, %v7133_v17  ;;  %vm5442_vm11 = vcmp.gt.f32.partialorder %v8045_v43, 0.0  ;;  %v5570_v4 = vmul.f32 0.2, %v8045_v43  ;;  %v8047_v60 = vadd.f32 %v7920_v0, %v7660_v36  ;;  %v3864_v46 = vpop.f32.mrb[127].mxu1 }
 0x374   : > { %vm5440_vm1 = vcmp.gt.f32.partialorder %v8046_v25, 0.0  ;;  %v5568_v18 = vmul.f32 0.2, %v8046_v25  ;;  %v8048_v35 = vadd.f32 %v5176_v7, %v3864_v46 }
 0x375   : > { %v5698_v6 = vsel %vm5442_vm11, %v8045_v43, %v5570_v4  ;;  %vm5443_vm12 = vcmp.gt.f32.partialorder %v8047_v60, 0.0  ;;  %v5571_v10 = vmul.f32 0.2, %v8047_v60 }
 0x376   : > { %v7138_v30 = vpack.c.bf16 %v5698_v6, %v5698_v6  ;;  %v5696_v31 = vsel %vm5440_vm1, %v8046_v25, %v5568_v18  ;;  %vm5441_vm13 = vcmp.gt.f32.partialorder %v8048_v35, 0.0  ;;  %v5569_v21 = vmul.f32 0.2, %v8048_v35 }
 0x377   : > { %v7136_v53 = vpack.c.bf16 %v5696_v31, %v5696_v31  ;;  %v5699_v1 = vsel %vm5443_vm12, %v8047_v60, %v5571_v10 }
 0x378   : > { %6339 = vst.msk [vmem:[%s10342_s20 + $0x1f8] sm:$0xf] %vm6212_vm7, %v7138_v30  ;;  %v7139_v23 = vpack.c.bf16 %v5699_v1, %v5699_v1  ;;  %v5697_v39 = vsel %vm5441_vm13, %v8048_v35, %v5569_v21 }
 0x379   : > { %6337 = vst.msk [vmem:[%s10342_s20 + $0x1f0] sm:$0xf] %vm6212_vm7, %v7136_v53  ;;  %v7137_v42 = vpack.c.bf16 %v5697_v39, %v5697_v39 }
 0x37a   : > { %6340 = vst.msk [vmem:[%s10342_s20 + $0x1fc] sm:$0xf] %vm6212_vm7, %v7139_v23 }
 0x37b   : > { %6338 = vst.msk [vmem:[%s10342_s20 + $0x1f4] sm:$0xf] %vm6212_vm7, %v7137_v42 }
 0x37c   : > { %8570 = shalt.err (!%p8567_p8)
}
 0x37d   : > { %s8571_s11 = scalar_lea.hbm %s10623_s10, 8192  ;;  %s8575_s29 = scalar_lea.hbm %s10683_s3, 16384 }
 0x37e   : > { %p8572_p12 = scmp.ne.s32.totalorder %s10623_s10, %s8571_s11  ;;  %p8576_p6 = scmp.lt.u32.totalorder %s10623_s10, %s10683_s3 }
 0x37f   : > { %p8577_p11 = scmp.lt.u32.totalorder %s8575_s29, %s8571_s11  ;;  %p8579_p5 = scmp.lt.u32.totalorder %s8571_s11, %s10623_s10 }
 0x380   : > { %p8573_p13 = pnand %p8572_p12, %p8768_p10 }
 0x381   : > { %p8578_p0 = por %p8577_p11, %p8576_p6 }
 0x382   : > { %p8574_p3 = pneg %p8573_p13 }
 0x383   : > { %p8580_p9 = por %p8579_p5, %p8578_p0 }
 0x385   : > { %p8581_p1 = pnand %p8580_p9, %p8574_p3 }
 0x387   : > { %8584 = shalt.err (!%p8581_p1)
}
 0x388   : > { %s8655_s22 = smov 64   ;;  %s8656_s26 = smov 4  }
 0x389   : > { %8322 = dma.vmem_to_hbm [thread:$0]  (%p8768_p10), %s10625_s5, 8192, %s10623_s10, %s6342_s15, %s8655_s22, %s8655_s22, %s8656_s26  }
 0x38a PF: > { %s6371_s8 = sand.u32 1, %s8627_s12   ;;  %p10984_p2 = scmp.ne.s32.totalorder %s10783_s21, 0 }
 0x38b   : > { %p10985_p7 = scmp.ge.s32.totalorder %s8647_s17, 2  ;;  %s6372_s18 = scalar_lea.sflag [#allocation4], %s6371_s8 }
 0x38d   : > { %p8336_p4 = pnand %p10985_p7, %p10984_p2 }
 0x38f   : > { %8622 = dma.done.wait (!%p8336_p4), %s6372_s18, 8192  }
 0x390   : > { %8624 = vsyncadd (!%p8336_p4), %s6372_s18, 4294959104  ;;  %s22_s17 = sadd.s32 1, %s8647_s17   ;;  %s10986_s20 = sld [smem:[#allocation14_spill]] }
 0x391   : > { %p19_p8 = scmp.ge.s32.totalorder %s22_s17, 4   ;;  %s10987_s23 = sld [smem:[#allocation13_spill]] }
 0x392   : > { %s10988_s12 = smov %s8631_s13  ;;  %s10989_s13 = smov %s8635_s14 }
 0x393   : > { %s10991_s15 = smov %s8643_s16  ;;  %21 = sbr.rel (!%p19_p8) target bundleno = 11 (0xb), region = 97 }
 0x396   : > { %s10990_s14 = smov %s10986_s20 }
 0x397   : > { %s10992_s16 = smov %s10987_s23 }
 0x39a   :  { %6377 = vsyncpa [#allocation3], 1 }
 0x39b   :  { %6379 = vsyncpa [#allocation3 + $0x1], 1 }
 0x39c   :  { %6380 = vsyncpa [#allocation6], 1 }
 0x39d   :  { %6382 = vsyncpa [#allocation6 + $0x1], 1 }
 0x39e   :  { %6383 = vsyncpa [#allocation4], 1 }
 0x39f   :  { %6385 = vsyncpa [#allocation4 + $0x1], 1 }

// kernel: discriminator2d_forward.6
= control target key start
LH: loop header
LB: loop body
LE: loop exit
PB: predicated region body
PF: predicated region fallthrough
CT: control target
= control target key end

     0   :  { %s4146_s0 = inlined_call_operand.hbm [shape: bf16[2,17,17,32], index: 0, kind: input, shape index: {}, may-alias: {0,1}]   ;;  %s4147_s1 = inlined_call_operand.hbm [shape: bf16[2,17,17,32], index: 1, kind: input, shape index: {}, may-alias: {0,1}]   ;;  %s4148_s2 = inlined_call_operand.hbm [shape: bf16[4,32,16], index: 2, kind: input, shape index: {}]   ;;  %s4149_s3 = inlined_call_operand.hbm [shape: bf16[512,16], index: 3, kind: output, shape index: {0}]   ;;  %s4150_s4 = inlined_call_operand.hbm [shape: f32[2,1,16], index: 4, kind: output, shape index: {1}]   ;;  %s4151_s5 = inlined_call_operand.hbm [shape: f32[2,1,16], index: 5, kind: output, shape index: {2}]  }
   0x1   :  { %4164 = sst [smem:[#allocation21_spill]] %s4146_s0 }
   0x2   :  { %4165 = sst [smem:[#allocation22_spill]] %s4148_s2 }
   0x3   :  { %11 = vsyncpa [#allocation3], 0 }
   0x4   :  { %13 = vsyncpa [#allocation3 + $0x1], 0 }
   0x5   :  { %14 = vsyncpa [#allocation6], 0 }
   0x6   :  { %16 = vsyncpa [#allocation6 + $0x1], 0 }
   0x7   :  { %17 = vsyncpa [#allocation4], 0 }
   0x8   :  { %19 = vsyncpa [#allocation4 + $0x1], 0 }
   0x9   :  { %20 = vsyncpa [#allocation10], 0 }
   0xa   :  { %22 = vsyncpa [#allocation10 + $0x1], 0  ;;  %s3308_s18 = smov 0   ;;  %s3310_s19 = smov 0  }
   0xb   :  { %s3312_s20 = smov 0   ;;  %s3314_s21 = smov 0  }
   0xc   :  { %s3316_s22 = smov 0   ;;  %s3318_s23 = smov 0  }
   0xd LB: > { %4166 = sst [smem:[#allocation17_spill]] %s3254_s20  ;;  %s3339_s24 = sadd.s32 4294967295, %s3266_s23   ;;  %s3266_s23 = sphi %s3318_s23, %s28_s23   ;;  %s3262_s22 = sphi %s3316_s22, %s4199_s22   ;;  %s3258_s21 = sphi %s3314_s21, %s4198_s21   ;;  %s3254_s20 = sphi %s3312_s20, %s4194_s20   ;;  %s3250_s19 = sphi %s3310_s19, %s4197_s19   ;;  %s3246_s18 = sphi %s3308_s18, %s4196_s18  }
   0xe   : > { %s4155_s25 = sadd.s32 4294967294, %s3266_s23   ;;  %p62_p0 = scmp.ne.s32.totalorder %s3250_s19, %s3246_s18 }
   0xf   : > { %p4152_p1 = scmp.eq.s32.totalorder %s3339_s24, 0  ;;  %p147_p3 = scmp.eq.s32.totalorder %s4155_s25, 1 }
  0x10   : > { %p2407_p5 = scmp.ge.s32.totalorder %s3266_s23, 1  ;;  %p210_p7 = scmp.lt.s32.totalorder %s3266_s23, 3 }
  0x11   : > { %p3350_p4 = por %p4152_p1, %p62_p0  ;;  %p3355_p6 = por %p147_p3, %p62_p0 }
  0x12   : > { %p3360_p8 = pnand %p2407_p5, %p210_p7  ;;  %s3268_s29 = smov [#allocation7]  }
  0x13   : > { %s4167_s26 = scalar_select %p3350_p4, 1, 0 }
  0x14   : > { %s4168_s27 = scalar_select %p3355_p6, 1, 0 }
  0x15   : > { %s4170_s28 = scalar_select %p3360_p8, 1, 0 }
  0x16   : > { %4169 = sst [smem:[#allocation18_spill]] %s4168_s27  ;;  %s222_s30 = sshll.u32 %s3268_s29, 4  ;;  %s223_s30 = int_to_ptr.vmem [resolvable:$true] %s222_s30 }
  0x17   : > { %p2924_p9 = pneg %p3360_p8  ;;  %s40_s7 = sadd.s32 1, %s3262_s22 }
  0x18   : > { %s4172_s2 = sld [smem:[#allocation22_spill]] }
  0x19   : > { %p3369_p11 = pnand %p2924_p9, %p4152_p1 }
  0x1b   : > { %p3029_p13 = pneg %p3369_p11 }
  0x1e   : > { %s3027_s10 = scalar_lea.hbm %s4172_s2, 1024 }
  0x1f   : > { %p3028_p12 = scmp.ne.s32.totalorder %s4172_s2, %s3027_s10  ;;  %p3034_p5 = scmp.lt.u32.totalorder %s3027_s10, %s4172_s2 }
  0x21   : > { %p3030_p0 = pnand %p3029_p13, %p3028_p12 }
  0x23   : > { %p3031_p3 = pneg %p3030_p0 }
  0x25   : > { %p3036_p7 = pnand %p3034_p5, %p3031_p3 }
  0x27   : > { %3039 = shalt.err (!%p3036_p7)
}
  0x28   : > { %s3040_s15 = scalar_lea.vmem %s223_s30, 1024  ;;  %p3048_p2 = scmp.lt.s32.totalorder %s223_s30, %s223_s30 }
  0x29   : > { %p3041_p9 = scmp.ne.s32.totalorder %s223_s30, %s3040_s15  ;;  %p3049_p6 = scmp.lt.s32.totalorder %s3040_s15, %s3040_s15 }
  0x2b   : > { %p3043_p10 = pnand %p3041_p9, %p3029_p13  ;;  %p3050_p4 = por %p3049_p6, %p3048_p2 }
  0x2d   : > { %p3044_p1 = pneg %p3043_p10 }
  0x2f   : > { %p3051_p8 = pnand %p3050_p4, %p3044_p1 }
  0x31   : > { %3054 = shalt.err (!%p3051_p8)
}
  0x32   : > { %s4157_s16 = smov 64   ;;  %s4159_s17 = smov 4  }
  0x33   : > { %2927 = dma.hbm_to_vmem [thread:$0]  (!%p3369_p11), %s4172_s2, 1024, %s223_s30, [#allocation6], %s4157_s16, %s4157_s16, %s4159_s17  }
  0x34   : > { %p42_p1 = scmp.ge.s32.totalorder %s40_s7, 2  ;;  %s49_s9 = sadd.s32 1, %s3254_s20 }
  0x35   : > { %p56_p2 = scmp.ne.s32.totalorder %s3254_s20, %s3250_s19  ;;  %p57_p4 = scmp.eq.s32.totalorder %s3266_s23, 0 }
  0x36   : > { %s4201_s7 = smov (%p42_p1, %s40_s7), 0  ;;  %p4174_p8 = scmp.eq.s32.totalorder %s3339_s24, 1 }
  0x37   : > { %4173 = sst [smem:[#allocation19_spill]] %s4201_s7  ;;  %p58_p6 = por %p57_p4, %p56_p2 }
  0x38   : > { %p3401_p10 = por %p4174_p8, %p56_p2  ;;  %s44_s10 = ssub.s32 %s3262_s22, %s4201_s7 }
  0x39   : > { %p2946_p12 = scmp.lt.s32.totalorder %s3266_s23, 2  ;;  %p47_p13 = scmp.eq.s32.totalorder %s44_s10, 0 }
  0x3a   : > { %s3409_s11 = sand.u32 1, %s3254_s20   ;;  %s4156_s13 = smul.u32 3264, %s3262_s22 }
  0x3b   : > { %s2905_s30 = smul.u32 192, %s3409_s11  ;;  %p3416_p11 = pnand %p2946_p12, %p58_p6 }
  0x3c   : > { %s3413_s12 = scalar_select %p47_p13, %s3254_s20, %s49_s9  }
  0x3d   : > { %s240_s14 = scalar_lea.vmem [#allocation2], %s2905_s30  ;;  %s4178_s0 = sld [smem:[#allocation21_spill]] }
  0x3e   : > { %4176 = sst [smem:[#allocation20_spill]] %s3413_s12  ;;  %s258_s15 = sshll.u32 %s240_s14, 4  ;;  %s3427_s15 = int_to_ptr.vmem [resolvable:$true] %s258_s15 }
  0x3f   : > { %s237_s30 = scalar_lea.sflag [#allocation3], %s3409_s11  ;;  %p3057_p3 = pneg %p3416_p11 }
  0x43   : > { %s3425_s10 = scalar_lea.hbm %s4178_s0, %s4156_s13  ;;  %s3060_s13 = scalar_lea.hbm %s4178_s0, 6528 }
  0x44   : > { %s3055_s14 = scalar_lea.hbm %s3425_s10, 3072  ;;  %p3061_p9 = scmp.lt.u32.totalorder %s3425_s10, %s4178_s0 }
  0x45   : > { %p3056_p0 = scmp.ne.s32.totalorder %s3425_s10, %s3055_s14  ;;  %p3062_p1 = scmp.lt.u32.totalorder %s3060_s13, %s3055_s14 }
  0x46   : > { %p3064_p4 = scmp.lt.u32.totalorder %s3055_s14, %s3425_s10 }
  0x47   : > { %p3058_p5 = pnand %p3057_p3, %p3056_p0  ;;  %p3063_p2 = por %p3062_p1, %p3061_p9 }
  0x49   : > { %p3059_p7 = pneg %p3058_p5  ;;  %p3065_p6 = por %p3064_p4, %p3063_p2 }
  0x4b   : > { %p3066_p8 = pnand %p3065_p6, %p3059_p7 }
  0x4d   : > { %3069 = shalt.err (!%p3066_p8)
}
  0x4e   : > { %s3070_s9 = scalar_lea.vmem %s3427_s15, 3072  ;;  %s3271_s25 = smov [#allocation2]  }
  0x4f   : > { %p3071_p12 = scmp.ne.s32.totalorder %s3427_s15, %s3070_s9  ;;  %s3075_s8 = sshll.u32 %s3271_s25, 4  ;;  %s3076_s8 = int_to_ptr.vmem [resolvable:$false] %s3075_s8 }
  0x50   : > { %s3077_s16 = scalar_lea.vmem %s3076_s8, 6144  ;;  %p3078_p5 = scmp.lt.s32.totalorder %s3427_s15, %s3076_s8 }
  0x51   : > { %p3073_p13 = pnand %p3071_p12, %p3057_p3  ;;  %p3079_p9 = scmp.lt.s32.totalorder %s3077_s16, %s3070_s9 }
  0x53   : > { %p3074_p0 = pneg %p3073_p13  ;;  %p3080_p1 = por %p3079_p9, %p3078_p5 }
  0x55   : > { %p3081_p2 = pnand %p3080_p1, %p3074_p0 }
  0x57   : > { %3084 = shalt.err (!%p3081_p2)
}
  0x58   : > { %s4179_s17 = smov 4   ;;  %s4180_s13 = smov 64  }
  0x59   : > { %2931 = dma.hbm_to_vmem [thread:$0]  (!%p3416_p11), %s3425_s10, 3072, %s3427_s15, %s237_s30, %s4180_s13, %s4180_s13, %s4179_s17  }
  0x5a   : > { %s2907_s14 = smul.u32 12, %s3409_s11  ;;  %s4182_s12 = sand.u32 1, %s3266_s23  }
  0x5b   : > { %s4181_s25 = smul.u32 3264, %s3262_s22  ;;  %s3473_s20 = scalar_lea.sflag [#allocation6], %s4182_s12 }
  0x5c   : > { %s272_s2 = scalar_lea.vmem [#allocation5], %s2907_s14  ;;  %s3090_s10 = scalar_lea.hbm %s4147_s1, 6528 }
  0x5d   : > { %s2293_s16 = scalar_lea.hbm %s4147_s1, %s4181_s25  ;;  %s283_s7 = sshll.u32 %s272_s2, 4  ;;  %s3469_s7 = int_to_ptr.vmem [resolvable:$true] %s283_s7 }
  0x5e   : > { %s3467_s0 = scalar_lea.hbm %s2293_s16, 3072  ;;  %s3115_s27 = scalar_lea.hbm %s2293_s16, 3264 }
  0x5f   : > { %p3086_p7 = scmp.ne.s32.totalorder %s3467_s0, %s3115_s27  ;;  %p3091_p8 = scmp.lt.u32.totalorder %s3467_s0, %s4147_s1 }
  0x60   : > { %p3092_p12 = scmp.lt.u32.totalorder %s3090_s10, %s3115_s27  ;;  %p3094_p0 = scmp.lt.u32.totalorder %s3115_s27, %s3467_s0 }
  0x61   : > { %p3088_p4 = pnand %p3086_p7, %p3057_p3 }
  0x62   : > { %p3093_p13 = por %p3092_p12, %p3091_p8 }
  0x63   : > { %p3089_p6 = pneg %p3088_p4 }
  0x64   : > { %p3095_p5 = por %p3094_p0, %p3093_p13 }
  0x66   : > { %p3096_p9 = pnand %p3095_p5, %p3089_p6 }
  0x68   : > { %3099 = shalt.err (!%p3096_p9)
}
  0x69   : > { %s3100_s2 = scalar_lea.vmem %s3469_s7, 192  ;;  %s3272_s12 = smov [#allocation5]  }
  0x6a   : > { %p3101_p1 = scmp.ne.s32.totalorder %s3469_s7, %s3100_s2  ;;  %s3105_s14 = sshll.u32 %s3272_s12, 4  ;;  %s3106_s14 = int_to_ptr.vmem [resolvable:$false] %s3105_s14 }
  0x6b   : > { %s3107_s9 = scalar_lea.vmem %s3106_s14, 384  ;;  %p3108_p4 = scmp.lt.s32.totalorder %s3469_s7, %s3106_s14 }
  0x6c   : > { %p3103_p2 = pnand %p3101_p1, %p3057_p3  ;;  %p3109_p8 = scmp.lt.s32.totalorder %s3107_s9, %s3100_s2 }
  0x6e   : > { %p3104_p7 = pneg %p3103_p2  ;;  %p3110_p12 = por %p3109_p8, %p3108_p4 }
  0x70   : > { %p3111_p13 = pnand %p3110_p12, %p3104_p7 }
  0x72   : > { %3114 = shalt.err (!%p3111_p13)
}
  0x73   : > { %2934 = dma.hbm_to_vmem [thread:$0]  (!%p3416_p11), %s3467_s0, 192, %s3469_s7, %s3473_s20, %s4180_s13, %s4180_s13, %s4179_s17  }
  0x74   : > { %p4183_p3 = scmp.ne.s32.totalorder %s4170_s28, 0 }
  0x75   : > { %s3504_s27 = sand.u32 (!%p4183_p3), 1, %s3250_s19   ;;  %p4184_p6 = scmp.ne.s32.totalorder (!%p4183_p3), %s4167_s26, 0 }
  0x76   : > { %295 = sbr.rel (%p4183_p3) target bundleno = 561 (0x231), region = 32  ;;  %s298_s16 = scalar_lea.sflag (!%p4183_p3), [#allocation3], %s3504_s27 }
  0x77   : > { %s2908_s8 = smul.u32 (!%p4183_p3), 192, %s3504_s27 }
  0x79   : > { %s3508_s11 = scalar_lea.vmem (!%p4183_p3), [#allocation2], %s2908_s8 }
  0x7d   : > { %3225 = dma.done.wait (%p4184_p6), %s298_s16, 3072  }
  0x7e   : > { %3227 = vsyncadd (%p4184_p6), %s298_s16, 4294964224  ;;  %s306_s0 = sand.u32 1, %s3339_s24   ;;  %s2909_s20 = smul.u32 12, %s3504_s27 }
  0x7f   : > { %s307_s28 = scalar_lea.sflag [#allocation6], %s306_s0 }
  0x80   : > { %s3518_s7 = scalar_lea.vmem [#allocation5], %s2909_s20 }
  0x81   : > { %3229 = dma.done.wait (%p4184_p6), %s307_s28, 192  }
  0x82   : > { %3231 = vsyncadd (%p4184_p6), %s307_s28, 4294967104  ;;  %p4185_p11 = scmp.eq.s32.totalorder %s3339_s24, 0 }
  0x84   : > { %3233 = dma.done.wait (%p4185_p11), [#allocation6], 1024   ;;  %p4186_p0 = pmov %p4185_p11 }
  0x85   : > { %vm422_vm0 = vsmask.f32 3328  ;;  %vm423_vm1 = vsmask.f32 7440  ;;  %v3002_v0 = vld [vmem:[#allocation7 + $0x20] sm:$0xff]   ;;  %v3003_v1 = vld [vmem:[#allocation7 + $0x10] sm:$0xff]  }
  0x86   : > { %3235 = vsyncadd (%p4186_p0), [#allocation6], 4294966272  ;;  %2737 = vmatprep.subr.bf16.mxu0 %v3002_v0  ;;  %v3004_v2 = vld [vmem:[#allocation7 + $0x28] sm:$0xff]   ;;  %2665 = vmatprep.subr.bf16.mxu1 %v3003_v1  ;;  %v3005_v3 = vld [vmem:[#allocation7 + $0x18] sm:$0xff]   ;;  %vm874_vm2 = vcmask 261120   ;;  %s2414_s26 = sshll.u32 %s3504_s27, 7 }
  0x87   : > { %2738 = vmatpush3.bf16.msra.mxu0 %v3002_v0  ;;  %2666 = vmatpush3.bf16.msra.mxu1 %v3003_v1  ;;  %v370_v4 = vld [vmem:[%s3508_s11 + $0xc] sm:$0xf]  ;;  %v371_v5 = vld [vmem:[%s3508_s11 + $0x10] sm:$0xf]  ;;  %v373_v6 = vld [vmem:[%s3508_s11 + $0x18] sm:$0xf] }
  0x88   : > { %2739 = vmatprep.subr.bf16.mxu0 %v3004_v2  ;;  %2667 = vmatprep.subr.bf16.mxu1 %v3005_v3  ;;  %v450_v7 = vshrl.u32 %v370_v4, 16  ;;  %v453_v8 = vshll.u32 %v370_v4, 16  ;;  %v459_v9 = vshll.u32 %v371_v5, 16  ;;  %v463_v10 = vshrl.u32 %v371_v5, 16  ;;  %v374_v11 = vld [vmem:[%s3508_s11 + $0x1c] sm:$0xf]  ;;  %vm3560_vm3 = vmor %vm422_vm0, %vm423_vm1 }
  0x89   : > { %v3532_v12 = vcombine.low %v370_v4, %v371_v5  ;;  %v474_v13 = vshrl.u32 %v373_v6, 16  ;;  %v477_v14 = vshll.u32 %v373_v6, 16  ;;  %v483_v15 = vshll.u32 %v374_v11, 16  ;;  %v3535_v16 = vld [vmem:[%s3508_s11] sm:$0xf]  ;;  %v3537_v17 = vld [vmem:[#allocation7] sm:$0xff]  }
  0x8a   : > { %v452_v18 = vrot.slane %v450_v7, 4  ;;  %v455_v19 = vrot.slane %v453_v8, 5  ;;  %v3539_v20 = vrot.slane %v459_v9, 5  ;;  %v465_v21 = vrot.slane %v463_v10, 4  ;;  %v3542_v22 = vld [vmem:[%s3508_s11 + $0x4] sm:$0xf] }
  0x8b   : > { %2740 = vmatpush3.bf16.msra.mxu0 %v3004_v2  ;;  %2668 = vmatpush3.bf16.msra.mxu1 %v3005_v3  ;;  %v3546_v23 = vrot.slane %v474_v13, 4  ;;  %v3548_v24 = vrot.slane %v477_v14, 5  ;;  %v3550_v25 = vrot.slane %v483_v15, 5  ;;  %v487_v26 = vshrl.u32 %v374_v11, 16  ;;  %v369_v27 = vld [vmem:[%s3508_s11 + $0x8] sm:$0x1] }
  0x8c   : > { %2741 = vmatprep.mubr.msk.bf16.mxu0 %vm874_vm2, %v3532_v12  ;;  %v456_v28 = vor.u32 %v455_v19, %v452_v18  ;;  %v466_v29 = vor.u32 %v465_v21, %v3539_v20  ;;  %v3554_v30 = vcombine.low %v373_v6, %v374_v11  ;;  %v426_v31 = vshrl.u32 %v3535_v16, 16  ;;  %2701 = vmatprep.subr.bf16.mxu1 %v3537_v17  ;;  %v3009_v32 = vld [vmem:[#allocation7 + $0x30] sm:$0xff]   ;;  %v372_v45 = vld [vmem:[%s3508_s11 + $0x14] sm:$0x1]  ;;  %v376_v50 = vld [vmem:[%s3508_s11 + $0x24] sm:$0xf] }
  0x8d   : > { %v489_v33 = vrot.slane %v487_v26, 4  ;;  %v429_v35 = vshll.u32 %v3535_v16, 16  ;;  %v435_v36 = vshll.u32 %v3542_v22, 16  ;;  %v439_v37 = vshrl.u32 %v3542_v22, 16  ;;  %2773 = vmatprep.subr.bf16.mxu0 %v3009_v32  ;;  %v377_v51 = vld [vmem:[%s3508_s11 + $0x28] sm:$0xf] }
  0x8e   : > { %v457_v38 = vrot.slane %v456_v28, 4  ;;  %v467_v39 = vrot.slane %v466_v29, 4  ;;  %2742 = vmatmul.mubr.msk.bf16.vlgmr.msra.gmra.mrb[0].mxu0 %vm874_vm2, %v3554_v30  ;;  %v428_v40 = vrot.slane %v426_v31, 4  ;;  %v445_v41 = vshll.u32 %v369_v27, 16  ;;  %v379_v57 = vld [vmem:[%s3508_s11 + $0x30] sm:$0xf] }
  0x8f   : > { %v431_v42 = vrot.slane %v429_v35, 5  ;;  %v437_v43 = vrot.slane %v435_v36, 5  ;;  %v441_v44 = vrot.slane %v439_v37, 4  ;;  %2774 = vmatpush3.bf16.msra.mxu0 %v3009_v32  ;;  %v480_v46 = vor.u32 %v3548_v24, %v3546_v23  ;;  %v3019_v62 = vld [vmem:[#allocation7 + $0x38] sm:$0xff]   ;;  %v375_v13 = vld [vmem:[%s3508_s11 + $0x20] sm:$0x1] }
  0x90   : > { %v447_v47 = vrot.slane %v445_v41, 5  ;;  %v462_v48 = vsel %vm3560_vm3, %v457_v38, %v3539_v20  ;;  %v469_v49 = vshll.u32 %v372_v45, 16  ;;  %v490_v52 = vor.u32 %v489_v33, %v3550_v25  ;;  %v380_v3 = vld [vmem:[%s3508_s11 + $0x34] sm:$0xf]  ;;  %2775 = vmatprep.subr.bf16.mxu0 %v3019_v62  ;;  %v378_v14 = vld [vmem:[%s3508_s11 + $0x2c] sm:$0x1] }
  0x91   : > { %v432_v53 = vor.u32 %v431_v42, %v428_v40  ;;  %v442_v54 = vor.u32 %v441_v44, %v437_v43  ;;  %v498_v55 = vshrl.u32 %v376_v50, 16  ;;  %v501_v56 = vshll.u32 %v376_v50, 16  ;;  %v382_v21 = vld [vmem:[%s3508_s11 + $0x3c] sm:$0xf]  ;;  %v383_v28 = vld [vmem:[%s3508_s11 + $0x40] sm:$0xf] }
  0x92   : > { %v471_v58 = vrot.slane %v469_v49, 5  ;;  %v507_v59 = vshll.u32 %v377_v51, 16  ;;  %v511_v60 = vshrl.u32 %v377_v51, 16  ;;  %v3579_v61 = vcombine.low %v376_v50, %v377_v51  ;;  %v3018_v29 = vld [vmem:[#allocation7 + $0x8] sm:$0xff]   ;;  %v385_v44 = vld [vmem:[%s3508_s11 + $0x48] sm:$0xf] }
  0x93   : > { %v433_v63 = vrot.slane %v432_v53, 4  ;;  %v443_v0 = vrot.slane %v442_v54, 4  ;;  %v500_v1 = vrot.slane %v498_v55, 4  ;;  %v503_v2 = vrot.slane %v501_v56, 5  ;;  %2776 = vmatpush3.bf16.msra.mxu0 %v3019_v62  ;;  %v386_v49 = vld [vmem:[%s3508_s11 + $0x4c] sm:$0xf] }
  0x94   : > { %v472_v4 = vsel %vm3560_vm3, %v467_v39, %v471_v58  ;;  %v509_v5 = vrot.slane %v507_v59, 5  ;;  %v513_v6 = vrot.slane %v511_v60, 4  ;;  %2745 = vmatprep.mubr.msk.bf16.mxu0 %vm874_vm2, %v3579_v61  ;;  %v522_v7 = vshrl.u32 %v379_v57, 16  ;;  %v381_v56 = vld [vmem:[%s3508_s11 + $0x38] sm:$0x1]  ;;  %s3887_s29 = scalar_lea.vmem [#allocation8], %s2414_s26 }
  0x95   : > { %v438_v8 = vsel %vm3560_vm3, %v433_v63, %v437_v43  ;;  %v448_v9 = vsel %vm3560_vm3, %v443_v0, %v447_v47  ;;  %v3590_v10 = vcombine.low %v462_v48, %v472_v4  ;;  %v525_v11 = vshll.u32 %v379_v57, 16  ;;  %v384_v62 = vld [vmem:[%s3508_s11 + $0x44] sm:$0x1]  ;;  %v389_v4 = vld [vmem:[%s3508_s11 + $0x58] sm:$0xf]  ;;  %s2592_s17 = sshll.u32 %s3258_s21, 11 }
  0x96   : > { %v2415_v15 = vcombine.low %v438_v8, %v448_v9  ;;  %v3594_v18 = vrot.slane %v522_v7, 4  ;;  %v531_v19 = vshll.u32 %v380_v3, 16  ;;  %v535_v20 = vshrl.u32 %v380_v3, 16  ;;  %s2201_s13 = sshll.u32 %s3887_s29, 4  ;;  %s4012_s30 = scalar_lea.hbm %s4149_s3, %s2592_s17  ;;  %s4014_s13 = int_to_ptr.vmem [resolvable:$true] %s2201_s13 }
  0x97   : > { %v527_v23 = vrot.slane %v525_v11, 5  ;;  %v3597_v24 = vcombine.low %v379_v57, %v380_v3  ;;  %v481_v26 = vrot.slane %v480_v46, 4  ;;  %v491_v27 = vrot.slane %v490_v52, 4  ;;  %v388_v3 = vld [vmem:[%s3508_s11 + $0x54] sm:$0xf]  ;;  %s2179_s25 = scalar_lea.sflag [#allocation4], %s3504_s27 }
  0x98   : > { %2669 = vmatprep.mubr.msk.bf16.mxu1 %vm874_vm2, %v2415_v15  ;;  %v3601_v31 = vrot.slane %v531_v19, 5  ;;  %v537_v32 = vrot.slane %v535_v20, 4  ;;  %v493_v33 = vshll.u32 %v375_v13, 16  ;;  %v504_v35 = vor.u32 %v503_v2, %v500_v1  ;;  %v391_v15 = vld [vmem:[%s3508_s11 + $0x60] sm:$0xf]  ;;  %s3116_s2 = scalar_lea.vmem %s4014_s13, 2048 }
  0x99   : > { %2670 = vmatmul.mubr.msk.bf16.vlgmr.msra.gmra.mrb[0].mxu1 %vm874_vm2, %v3590_v10  ;;  %2746 = vmatmul.mubr.msk.bf16.gmra.mrb[4].mxu0 %vm874_vm2, %v3597_v24  ;;  %v486_v36 = vsel %vm3560_vm3, %v481_v26, %v3550_v25  ;;  %v514_v37 = vor.u32 %v513_v6, %v509_v5  ;;  %v517_v38 = vshll.u32 %v378_v14, 16  ;;  %v546_v39 = vshrl.u32 %v382_v21, 16  ;;  %p3117_p5 = scmp.ne.s32.totalorder %s4014_s13, %s3116_s2  ;;  %s3273_s12 = smov [#allocation8]  }
  0x9a   : > { %2702 = vmatpush3.bf16.msra.mxu1 %v3537_v17  ;;  %v495_v40 = vrot.slane %v493_v33, 5  ;;  %v505_v41 = vrot.slane %v504_v35, 4  ;;  %v549_v42 = vshll.u32 %v382_v21, 16  ;;  %v555_v43 = vshll.u32 %v383_v28, 16  ;;  %s3120_s14 = sshll.u32 %s3273_s12, 4  ;;  %s3121_s14 = int_to_ptr.vmem [resolvable:$false] %s3120_s14 }
  0x9b   : > { %v515_v45 = vrot.slane %v514_v37, 4  ;;  %v519_v46 = vrot.slane %v517_v38, 5  ;;  %v548_v47 = vrot.slane %v546_v39, 4  ;;  %v559_v48 = vshrl.u32 %v383_v28, 16  ;;  %2703 = vmatprep.subr.bf16.mxu1 %v3018_v29  ;;  %p3118_p9 = pnand %p3117_p5, %p3401_p10  ;;  %s3122_s9 = scalar_lea.vmem %s3121_s14, 4096 }
  0x9c   : > { %v496_v25 = vsel %vm3560_vm3, %v491_v27, %v495_v40  ;;  %v510_v50 = vsel %vm3560_vm3, %v505_v41, %v509_v5  ;;  %v551_v17 = vrot.slane %v549_v42, 5  ;;  %v557_v51 = vrot.slane %v555_v43, 5  ;;  %p3123_p2 = scmp.lt.s32.totalorder %s4014_s13, %s3121_s14  ;;  %p3124_p7 = scmp.lt.s32.totalorder %s3122_s9, %s3116_s2 }
  0x9d   : > { %v3617_v52 = vcombine.low %v486_v36, %v496_v25  ;;  %v520_v53 = vsel %vm3560_vm3, %v515_v45, %v519_v46  ;;  %v561_v54 = vrot.slane %v559_v48, 4  ;;  %v3621_v55 = vcombine.low %v382_v21, %v383_v28  ;;  %v392_v36 = vld [vmem:[%s3508_s11 + $0x64] sm:$0xf]  ;;  %v387_v48 = vld [vmem:[%s3508_s11 + $0x50] sm:$0x1]  ;;  %p3119_p1 = pneg %p3118_p9 }
  0x9e   : > { %v3624_v57 = vcombine.low %v510_v50, %v520_v53  ;;  %v570_v58 = vshrl.u32 %v385_v44, 16  ;;  %v573_v59 = vshll.u32 %v385_v44, 16  ;;  %v579_v60 = vshll.u32 %v386_v49, 16  ;;  %2704 = vmatpush3.bf16.msra.mxu1 %v3018_v29  ;;  %v394_v53 = vld [vmem:[%s3508_s11 + $0x6c] sm:$0xf]  ;;  %p3125_p4 = por %p3124_p7, %p3123_p2 }
  0x9f   : > { %2673 = vmatprep.mubr.msk.bf16.mxu1 %vm874_vm2, %v3617_v52  ;;  %2749 = vmatprep.mubr.msk.bf16.mxu0 %vm874_vm2, %v3621_v55  ;;  %v583_v63 = vshrl.u32 %v386_v49, 16  ;;  %v3631_v0 = vcombine.low %v385_v44, %v386_v49  ;;  %v528_v1 = vor.u32 %v527_v23, %v3594_v18  ;;  %v538_v2 = vor.u32 %v537_v32, %v3601_v31 }
  0xa0   : > { %v572_v5 = vrot.slane %v570_v58, 4  ;;  %v575_v6 = vrot.slane %v573_v59, 5  ;;  %v3637_v7 = vrot.slane %v579_v60, 5  ;;  %v541_v8 = vshll.u32 %v381_v56, 16  ;;  %p3126_p8 = pnand %p3125_p4, %p3119_p1 }
  0xa1   : > { %2674 = vmatmul.mubr.msk.bf16.gmra.mrb[4].mxu1 %vm874_vm2, %v3624_v57  ;;  %v585_v9 = vrot.slane %v583_v63, 4  ;;  %2750 = vmatmul.mubr.msk.bf16.gmra.mrb[8].mxu0 %vm874_vm2, %v3631_v0  ;;  %v529_v11 = vrot.slane %v528_v1, 4  ;;  %v539_v13 = vrot.slane %v538_v2, 4  ;;  %v552_v14 = vor.u32 %v551_v17, %v548_v47  ;;  %v395_v2 = vld [vmem:[%s3508_s11 + $0x70] sm:$0xf] }
  0xa2   : > { %v543_v18 = vrot.slane %v541_v8, 5  ;;  %v562_v19 = vor.u32 %v561_v54, %v557_v51  ;;  %v565_v20 = vshll.u32 %v384_v62, 16  ;;  %v594_v21 = vshrl.u32 %v388_v3, 16 }
  0xa3   : > { %v534_v23 = vsel %vm3560_vm3, %v529_v11, %v3601_v31  ;;  %v553_v26 = vrot.slane %v552_v14, 4  ;;  %v597_v27 = vshll.u32 %v388_v3, 16  ;;  %v603_v28 = vshll.u32 %v389_v4, 16  ;;  %v397_v14 = vld [vmem:[%s3508_s11 + $0x78] sm:$0xf] }
  0xa4   : > { %v544_v29 = vsel %vm3560_vm3, %v539_v13, %v543_v18  ;;  %v563_v32 = vrot.slane %v562_v19, 4  ;;  %v567_v33 = vrot.slane %v565_v20, 5  ;;  %v596_v35 = vrot.slane %v594_v21, 4  ;;  %v398_v21 = vld [vmem:[%s3508_s11 + $0x7c] sm:$0xf] }
  0xa5   : > { %v3650_v37 = vcombine.low %v534_v23, %v544_v29  ;;  %v558_v38 = vsel %vm3560_vm3, %v553_v26, %v557_v51  ;;  %v599_v39 = vrot.slane %v597_v27, 5  ;;  %v605_v40 = vrot.slane %v603_v28, 5  ;;  %v390_v51 = vld [vmem:[%s3508_s11 + $0x5c] sm:$0x1] }
  0xa6   : > { %v568_v31 = vsel %vm3560_vm3, %v563_v32, %v567_v33  ;;  %v607_v41 = vshrl.u32 %v389_v4, 16  ;;  %v3656_v42 = vcombine.low %v388_v3, %v389_v4  ;;  %v618_v43 = vshrl.u32 %v391_v15, 16 }
  0xa7   : > { %2677 = vmatprep.mubr.msk.bf16.mxu1 %vm874_vm2, %v3650_v37  ;;  %v3660_v44 = vcombine.low %v558_v38, %v568_v31  ;;  %v621_v45 = vshll.u32 %v391_v15, 16  ;;  %v627_v46 = vshll.u32 %v392_v36, 16  ;;  %v631_v47 = vshrl.u32 %v392_v36, 16 }
  0xa8   : > { %v609_v49 = vrot.slane %v607_v41, 4  ;;  %2753 = vmatprep.mubr.msk.bf16.mxu0 %vm874_vm2, %v3656_v42  ;;  %v620_v25 = vrot.slane %v618_v43, 4  ;;  %v3665_v50 = vcombine.low %v391_v15, %v392_v36  ;;  %v576_v17 = vor.u32 %v575_v6, %v572_v5 }
  0xa9   : > { %2678 = vmatmul.mubr.msk.bf16.gmra.mrb[8].mxu1 %vm874_vm2, %v3660_v44  ;;  %v623_v54 = vrot.slane %v621_v45, 5  ;;  %v3671_v56 = vrot.slane %v627_v46, 5  ;;  %v633_v58 = vrot.slane %v631_v47, 4  ;;  %v586_v59 = vor.u32 %v585_v9, %v3637_v7  ;;  %v396_v46 = vld [vmem:[%s3508_s11 + $0x74] sm:$0x1] }
  0xaa   : > { %2754 = vmatmul.mubr.msk.bf16.gmra.mrb[12].mxu0 %vm874_vm2, %v3665_v50  ;;  %v577_v60 = vrot.slane %v576_v17, 4  ;;  %v589_v62 = vshll.u32 %v387_v48, 16  ;;  %v600_v63 = vor.u32 %v599_v39, %v596_v35  ;;  %v610_v1 = vor.u32 %v609_v49, %v605_v40  ;;  %v393_v35 = vld [vmem:[%s3508_s11 + $0x68] sm:$0x1]  ;;  %v400_v47 = vld [vmem:[%s3508_s11 + $0x84] sm:$0xf] }
  0xab   : > { %v587_v3 = vrot.slane %v586_v59, 4  ;;  %v613_v4 = vshll.u32 %v390_v51, 16  ;;  %v642_v5 = vshrl.u32 %v394_v53, 16  ;;  %v645_v6 = vshll.u32 %v394_v53, 16 }
  0xac   : > { %v582_v8 = vsel %vm3560_vm3, %v577_v60, %v3637_v7  ;;  %v591_v11 = vrot.slane %v589_v62, 5  ;;  %v601_v13 = vrot.slane %v600_v63, 4  ;;  %v611_v9 = vrot.slane %v610_v1, 4 }
  0xad   : > { %v615_v15 = vrot.slane %v613_v4, 5  ;;  %v644_v18 = vrot.slane %v642_v5, 4  ;;  %v647_v19 = vrot.slane %v645_v6, 5  ;;  %v651_v20 = vshll.u32 %v395_v2, 16  ;;  %v403_v6 = vld [vmem:[%s3508_s11 + $0x90] sm:$0xf] }
  0xae   : > { %v592_v23 = vsel %vm3560_vm3, %v587_v3, %v591_v11  ;;  %v606_v26 = vsel %vm3560_vm3, %v601_v13, %v605_v40  ;;  %v655_v27 = vshrl.u32 %v395_v2, 16  ;;  %v3686_v28 = vcombine.low %v394_v53, %v395_v2 }
  0xaf   : > { %v3688_v7 = vcombine.low %v582_v8, %v592_v23  ;;  %v616_v29 = vsel %vm3560_vm3, %v611_v9, %v615_v15  ;;  %v653_v32 = vrot.slane %v651_v20, 5  ;;  %v666_v33 = vshrl.u32 %v397_v14, 16 }
  0xb0   : > { %v3693_v36 = vcombine.low %v606_v26, %v616_v29  ;;  %v657_v38 = vrot.slane %v655_v27, 4  ;;  %2757 = vmatprep.mubr.msk.bf16.mxu0 %vm874_vm2, %v3686_v28  ;;  %v669_v39 = vshll.u32 %v397_v14, 16  ;;  %v675_v40 = vshll.u32 %v398_v21, 16  ;;  %v399_v27 = vld [vmem:[%s3508_s11 + $0x80] sm:$0x1] }
  0xb1   : > { %2681 = vmatprep.mubr.msk.bf16.mxu1 %vm874_vm2, %v3688_v7  ;;  %v668_v31 = vrot.slane %v666_v33, 4  ;;  %v679_v41 = vshrl.u32 %v398_v21, 16  ;;  %v3699_v43 = vcombine.low %v397_v14, %v398_v21  ;;  %v624_v45 = vor.u32 %v623_v54, %v620_v25  ;;  %v401_v54 = vld [vmem:[%s3508_s11 + $0x88] sm:$0xf]  ;;  %v404_v14 = vld [vmem:[%s3508_s11 + $0x94] sm:$0xf] }
  0xb2   : > { %2682 = vmatmul.mubr.msk.bf16.gmra.mrb[12].mxu1 %vm874_vm2, %v3693_v36  ;;  %v671_v48 = vrot.slane %v669_v39, 5  ;;  %v3705_v49 = vrot.slane %v675_v40, 5  ;;  %v634_v17 = vor.u32 %v633_v58, %v3671_v56  ;;  %v637_v51 = vshll.u32 %v393_v35, 16 }
  0xb3   : > { %v681_v53 = vrot.slane %v679_v41, 4  ;;  %2758 = vmatmul.mubr.msk.bf16.gmra.mrb[16].mxu0 %vm874_vm2, %v3699_v43  ;;  %v625_v59 = vrot.slane %v624_v45, 4  ;;  %v648_v60 = vor.u32 %v647_v19, %v644_v18  ;;  %v658_v25 = vor.u32 %v657_v38, %v653_v32  ;;  %v402_v45 = vld [vmem:[%s3508_s11 + $0x8c] sm:$0x1] }
  0xb4   : > { %v635_v62 = vrot.slane %v634_v17, 4  ;;  %v639_v63 = vrot.slane %v637_v51, 5  ;;  %v661_v1 = vshll.u32 %v396_v46, 16  ;;  %v690_v2 = vshrl.u32 %v400_v47, 16  ;;  %v406_v46 = vld [vmem:[%s3508_s11 + $0x9c] sm:$0xf] }
  0xb5   : > { %v630_v3 = vsel %vm3560_vm3, %v625_v59, %v3671_v56  ;;  %v649_v58 = vrot.slane %v648_v60, 4  ;;  %v659_v4 = vrot.slane %v658_v25, 4  ;;  %v693_v5 = vshll.u32 %v400_v47, 16 }
  0xb6   : > { %v640_v8 = vsel %vm3560_vm3, %v635_v62, %v639_v63  ;;  %v663_v11 = vrot.slane %v661_v1, 5  ;;  %v692_v13 = vrot.slane %v690_v2, 4  ;;  %v699_v9 = vshll.u32 %v401_v54, 16 }
  0xb7   : > { %v3718_v15 = vcombine.low %v630_v3, %v640_v8  ;;  %v654_v18 = vsel %vm3560_vm3, %v649_v58, %v653_v32  ;;  %v695_v19 = vrot.slane %v693_v5, 5  ;;  %v703_v20 = vshrl.u32 %v401_v54, 16  ;;  %v409_v5 = vld [vmem:[%s3508_s11 + $0xa8] sm:$0xf] }
  0xb8   : > { %v664_v56 = vsel %vm3560_vm3, %v659_v4, %v663_v11  ;;  %v701_v21 = vrot.slane %v699_v9, 5  ;;  %v3724_v23 = vcombine.low %v400_v47, %v401_v54  ;;  %v714_v26 = vshrl.u32 %v403_v6, 16  ;;  %v410_v9 = vld [vmem:[%s3508_s11 + $0xac] sm:$0xf] }
  0xb9   : > { %2685 = vmatprep.mubr.msk.bf16.mxu1 %vm874_vm2, %v3718_v15  ;;  %v3729_v29 = vcombine.low %v654_v18, %v664_v56  ;;  %v705_v33 = vrot.slane %v703_v20, 4  ;;  %v717_v35 = vshll.u32 %v403_v6, 16  ;;  %v723_v32 = vshll.u32 %v404_v14, 16 }
  0xba   : > { %2761 = vmatprep.mubr.msk.bf16.mxu0 %vm874_vm2, %v3724_v23  ;;  %v716_v38 = vrot.slane %v714_v26, 4  ;;  %v727_v39 = vshrl.u32 %v404_v14, 16  ;;  %v3733_v40 = vcombine.low %v403_v6, %v404_v14  ;;  %v672_v41 = vor.u32 %v671_v48, %v668_v31  ;;  %v407_v48 = vld [vmem:[%s3508_s11 + $0xa0] sm:$0xf] }
  0xbb   : > { %2686 = vmatmul.mubr.msk.bf16.gmra.mrb[16].mxu1 %vm874_vm2, %v3729_v29  ;;  %v719_v47 = vrot.slane %v717_v35, 5  ;;  %v3739_v17 = vrot.slane %v723_v32, 5  ;;  %v682_v51 = vor.u32 %v681_v53, %v3705_v49  ;;  %v685_v59 = vshll.u32 %v399_v27, 16 }
  0xbc   : > { %v729_v60 = vrot.slane %v727_v39, 4  ;;  %2762 = vmatmul.mubr.msk.bf16.gmra.mrb[20].mxu0 %vm874_vm2, %v3733_v40  ;;  %v673_v25 = vrot.slane %v672_v41, 4  ;;  %v696_v54 = vor.u32 %v695_v19, %v692_v13  ;;  %v706_v31 = vor.u32 %v705_v33, %v701_v21  ;;  %v405_v33 = vld [vmem:[%s3508_s11 + $0x98] sm:$0x1] }
  0xbd   : > { %v683_v62 = vrot.slane %v682_v51, 4  ;;  %v687_v63 = vrot.slane %v685_v59, 5  ;;  %v709_v1 = vshll.u32 %v402_v45, 16  ;;  %v738_v2 = vshrl.u32 %v406_v46, 16  ;;  %v408_v59 = vld [vmem:[%s3508_s11 + $0xa4] sm:$0x1] }
  0xbe   : > { %v678_v3 = vsel %vm3560_vm3, %v673_v25, %v3705_v49  ;;  %v697_v53 = vrot.slane %v696_v54, 4  ;;  %v707_v58 = vrot.slane %v706_v31, 4  ;;  %v741_v4 = vshll.u32 %v406_v46, 16  ;;  %v412_v25 = vld [vmem:[%s3508_s11 + $0xb4] sm:$0xf] }
  0xbf   : > { %v688_v6 = vsel %vm3560_vm3, %v683_v62, %v687_v63  ;;  %v711_v8 = vrot.slane %v709_v1, 5  ;;  %v740_v11 = vrot.slane %v738_v2, 4  ;;  %v747_v13 = vshll.u32 %v407_v48, 16 }
  0xc0   : > { %v3752_v14 = vcombine.low %v678_v3, %v688_v6  ;;  %v702_v18 = vsel %vm3560_vm3, %v697_v53, %v701_v21  ;;  %v743_v19 = vrot.slane %v741_v4, 5  ;;  %v751_v20 = vshrl.u32 %v407_v48, 16 }
  0xc1   : > { %v712_v49 = vsel %vm3560_vm3, %v707_v58, %v711_v8  ;;  %v749_v56 = vrot.slane %v747_v13, 5  ;;  %v3758_v26 = vcombine.low %v406_v46, %v407_v48  ;;  %v762_v27 = vshrl.u32 %v409_v5, 16 }
  0xc2   : > { %2689 = vmatprep.mubr.msk.bf16.mxu1 %vm874_vm2, %v3752_v14  ;;  %v3763_v35 = vcombine.low %v702_v18, %v712_v49  ;;  %v753_v32 = vrot.slane %v751_v20, 4  ;;  %v765_v39 = vshll.u32 %v409_v5, 16  ;;  %v771_v21 = vshll.u32 %v410_v9, 16 }
  0xc3   : > { %2765 = vmatprep.mubr.msk.bf16.mxu0 %vm874_vm2, %v3758_v26  ;;  %v764_v41 = vrot.slane %v762_v27, 4  ;;  %v775_v45 = vshrl.u32 %v410_v9, 16  ;;  %v3767_v51 = vcombine.low %v409_v5, %v410_v9  ;;  %v720_v46 = vor.u32 %v719_v47, %v716_v38  ;;  %v413_v38 = vld [vmem:[%s3508_s11 + $0xb8] sm:$0xf]  ;;  %v3778_v5 = vld [vmem:[%s3518_s7] sm:$0xf] }
  0xc4   : > { %2690 = vmatmul.mubr.msk.bf16.gmra.mrb[20].mxu1 %vm874_vm2, %v3763_v35  ;;  %v767_v54 = vrot.slane %v765_v39, 5  ;;  %v773_v31 = vrot.slane %v771_v21, 5  ;;  %v730_v48 = vor.u32 %v729_v60, %v3739_v17  ;;  %v733_v62 = vshll.u32 %v405_v33, 16  ;;  %v3784_v9 = vld [vmem:[%s3518_s7 + $0x4] sm:$0xf] }
  0xc5   : > { %v777_v63 = vrot.slane %v775_v45, 4  ;;  %2766 = vmatmul.mubr.msk.bf16.gmra.mrb[24].mxu0 %vm874_vm2, %v3767_v51  ;;  %v721_v1 = vrot.slane %v720_v46, 4  ;;  %v744_v2 = vor.u32 %v743_v19, %v740_v11  ;;  %v754_v3 = vor.u32 %v753_v32, %v749_v56  ;;  %v411_v45 = vld [vmem:[%s3508_s11 + $0xb0] sm:$0x1] }
  0xc6   : > { %v731_v47 = vrot.slane %v730_v48, 4  ;;  %v735_v53 = vrot.slane %v733_v62, 5  ;;  %v757_v58 = vshll.u32 %v408_v59, 16  ;;  %v786_v4 = vshrl.u32 %v412_v25, 16 }
  0xc7   : > { %v726_v60 = vsel %vm3560_vm3, %v721_v1, %v3739_v17  ;;  %v745_v6 = vrot.slane %v744_v2, 4  ;;  %v755_v8 = vrot.slane %v754_v3, 4  ;;  %v789_v13 = vshll.u32 %v412_v25, 16  ;;  %v414_v1 = vld [vmem:[%s3508_s11 + $0xbc] sm:$0x1] }
  0xc8   : > { %v736_v11 = vsel %vm3560_vm3, %v731_v47, %v735_v53  ;;  %v759_v18 = vrot.slane %v757_v58, 5  ;;  %v788_v19 = vrot.slane %v786_v4, 4  ;;  %v795_v20 = vshll.u32 %v413_v38, 16 }
  0xc9   : > { %v3788_v49 = vcombine.low %v726_v60, %v736_v11  ;;  %v750_v27 = vsel %vm3560_vm3, %v745_v6, %v749_v56  ;;  %v791_v33 = vrot.slane %v789_v13, 5  ;;  %v799_v17 = vshrl.u32 %v413_v38, 16 }
  0xca   : > { %v760_v32 = vsel %vm3560_vm3, %v755_v8, %v759_v18  ;;  %v3794_v39 = vcombine.low %v412_v25, %v413_v38  ;;  %v2483_v21 = vcombine.low %v3778_v5, %v3784_v9  ;;  %v797_v59 = vrot.slane %v795_v20, 5 }
  0xcb   : > { %2693 = vmatprep.mubr.msk.bf16.mxu1 %vm874_vm2, %v3788_v49  ;;  %v2428_v46 = vcombine.low %v750_v27, %v760_v32  ;;  %v801_v48 = vrot.slane %v799_v17, 4  ;;  %v768_v56 = vor.u32 %v767_v54, %v764_v41  ;;  %v778_v62 = vor.u32 %v777_v63, %v773_v31 }
  0xcc   : > { %2769 = vmatprep.mubr.msk.bf16.mxu0 %vm874_vm2, %v3794_v39  ;;  %v781_v25 = vshll.u32 %v411_v45, 16  ;;  %v792_v2 = vor.u32 %v791_v33, %v788_v19  ;;  %v805_v4 = vshll.u32 %v414_v1, 16  ;;  %vm1971_vm4 = vcmask 125952  }
  0xcd   : > { %2694 = vmatmul.mubr.msk.bf16.gmra.mrb[24].mxu1 %vm874_vm2, %v2428_v46  ;;  %2770 = vmatmul.mubr.msk.bf16.gmra.mrb[28].mxu0 %vm874_vm2, %v2483_v21  ;;  %v769_v3 = vrot.slane %v768_v56, 4  ;;  %v779_v38 = vrot.slane %v778_v62, 4  ;;  %v802_v58 = vor.u32 %v801_v48, %v797_v59  ;;  %vm2004_vm5 = vcmask 130048  }
  0xce   : > { %2777 = vmatprep.mubr.msk.bf16.mxu0 %vm874_vm2, %v3590_v10  ;;  %v783_v47 = vrot.slane %v781_v25, 5  ;;  %v793_v53 = vrot.slane %v792_v2, 4  ;;  %v807_v6 = vrot.slane %v805_v4, 5  ;;  %v2449_v10 = vcombine.low %v3535_v16, %v3542_v22 }
  0xcf   : > { %v774_v41 = vsel %vm3560_vm3, %v769_v3, %v773_v31  ;;  %v803_v60 = vrot.slane %v802_v58, 4  ;;  %v1607_v16 = vshll.u32 %v3778_v5, 16  ;;  %v1613_v22 = vshll.u32 %v3784_v9, 16 }
  0xd0   : > { %v784_v54 = vsel %vm3560_vm3, %v779_v38, %v783_v47  ;;  %v798_v63 = vsel %vm3560_vm3, %v793_v53, %v797_v59 }
  0xd1   : > { %v2429_v8 = vcombine.low %v774_v41, %v784_v54  ;;  %v808_v13 = vsel %vm3560_vm3, %v803_v60, %v807_v6 }
  0xd2   : > { %v2430_v11 = vcombine.low %v798_v63, %v808_v13 }
  0xd3   : > { %2697 = vmatprep.mubr.msk.bf16.mxu1 %vm874_vm2, %v2429_v8 }
  0xd5   : > { %2778 = vmatmul.mubr.msk.bf16.vlgmr.msra.gmra.mrb[0].mxu0 %vm874_vm2, %v3617_v52  ;;  %2698 = vmatmul.mubr.msk.bf16.gmra.mrb[28].mxu1 %vm874_vm2, %v2430_v11  ;;  %v1615_v52 = vrot.slane %v1613_v22, 5 }
  0xd6   : > { %2781 = vmatprep.mubr.msk.bf16.mxu0 %vm874_vm2, %v3624_v57  ;;  %2705 = vmatprep.mubr.msk.bf16.mxu1 %vm874_vm2, %v2449_v10  ;;  %v417_v57 = vld [vmem:[%s3518_s7 + $0x8] sm:$0x1] }
  0xdd   : > { %2782 = vmatmul.mubr.msk.bf16.gmra.mrb[4].mxu0 %vm874_vm2, %v3650_v37  ;;  %2706 = vmatmul.mubr.msk.bf16.vlgmr.msra.gmra.mrb[0].mxu1 %vm874_vm2, %v3532_v12  ;;  %v1604_v12 = vshrl.u32 %v3778_v5, 16 }
  0xde   : > { %2785 = vmatprep.mubr.msk.bf16.mxu0 %vm874_vm2, %v3660_v44  ;;  %2709 = vmatprep.mubr.msk.bf16.mxu1 %vm874_vm2, %v3554_v30  ;;  %v1617_v30 = vshrl.u32 %v3784_v9, 16 }
  0xe5   : > { %2786 = vmatmul.mubr.msk.bf16.gmra.mrb[8].mxu0 %vm874_vm2, %v3688_v7  ;;  %2710 = vmatmul.mubr.msk.bf16.gmra.mrb[4].mxu1 %vm874_vm2, %v3579_v61  ;;  %v1606_v61 = vrot.slane %v1604_v12, 4 }
  0xe6   : > { %2789 = vmatprep.mubr.msk.bf16.mxu0 %vm874_vm2, %v3693_v36  ;;  %2713 = vmatprep.mubr.msk.bf16.mxu1 %vm874_vm2, %v3597_v24  ;;  %v1609_v24 = vrot.slane %v1607_v16, 5 }
  0xed   : > { %2790 = vmatmul.mubr.msk.bf16.gmra.mrb[12].mxu0 %vm874_vm2, %v3718_v15  ;;  %2714 = vmatmul.mubr.msk.bf16.gmra.mrb[8].mxu1 %vm874_vm2, %v3621_v55  ;;  %v1619_v55 = vrot.slane %v1617_v30, 4 }
  0xee   : > { %2793 = vmatprep.mubr.msk.bf16.mxu0 %vm874_vm2, %v3729_v29  ;;  %2717 = vmatprep.mubr.msk.bf16.mxu1 %vm874_vm2, %v3631_v0  ;;  %v1610_v0 = vor.u32 %v1609_v24, %v1606_v61 }
  0xef   : > { %v1620_v37 = vor.u32 %v1619_v55, %v1615_v52 }
  0xf0   : > { %v1611_v44 = vrot.slane %v1610_v0, 4 }
  0xf5   : > { %2794 = vmatmul.mubr.msk.bf16.gmra.mrb[16].mxu0 %vm874_vm2, %v3752_v14  ;;  %2718 = vmatmul.mubr.msk.bf16.gmra.mrb[12].mxu1 %vm874_vm2, %v3656_v42  ;;  %v1623_v42 = vshll.u32 %v417_v57, 16 }
  0xf6   : > { %2797 = vmatprep.mubr.msk.bf16.mxu0 %vm874_vm2, %v3763_v35  ;;  %2721 = vmatprep.mubr.msk.bf16.mxu1 %vm874_vm2, %v3665_v50  ;;  %v1621_v50 = vrot.slane %v1620_v37, 4 }
  0xf7   : > { %v1625_v7 = vrot.slane %v1623_v42, 5 }
  0xf9   : > { %v1626_v36 = vsel %vm3560_vm3, %v1621_v50, %v1625_v7 }
  0xfd   : > { %2798 = vmatmul.mubr.msk.bf16.gmra.mrb[20].mxu0 %vm874_vm2, %v3788_v49  ;;  %2722 = vmatmul.mubr.msk.bf16.gmra.mrb[16].mxu1 %vm874_vm2, %v3686_v28  ;;  %v1616_v28 = vsel %vm3560_vm3, %v1611_v44, %v1615_v52 }
  0xfe   : > { %2801 = vmatprep.mubr.msk.bf16.mxu0 %vm874_vm2, %v2428_v46  ;;  %2725 = vmatprep.mubr.msk.bf16.mxu1 %vm874_vm2, %v3699_v43  ;;  %v2502_v43 = vcombine.low %v1616_v28, %v1626_v36 }
 0x105   : > { %2802 = vmatmul.mubr.msk.bf16.gmra.mrb[24].mxu0 %vm874_vm2, %v2429_v8  ;;  %2726 = vmatmul.mubr.msk.bf16.gmra.mrb[20].mxu1 %vm874_vm2, %v3724_v23 }
 0x106   : > { %2805 = vmatprep.mubr.msk.bf16.mxu0 %vm874_vm2, %v2430_v11  ;;  %2729 = vmatprep.mubr.msk.bf16.mxu1 %vm874_vm2, %v3733_v40 }
 0x10d   : > { %2806 = vmatmul.mubr.msk.bf16.gmra.mrb[28].mxu0 %vm874_vm2, %v2502_v43  ;;  %2730 = vmatmul.mubr.msk.bf16.gmra.mrb[24].mxu1 %vm874_vm2, %v3758_v26 }
 0x10e   : > { %2733 = vmatprep.mubr.msk.bf16.mxu1 %vm874_vm2, %v3767_v51 }
 0x115   : > { %2734 = vmatmul.mubr.msk.bf16.gmra.mrb[28].mxu1 %vm874_vm2, %v3794_v39 }
 0x1a8   : > { %v2779_v15 = vpop.f32.mrb[0].mxu0 }
 0x1a9   : > { %v1684_v23 = vpop.f32.mrb[1].mxu0 }
 0x1aa   : > { %v2780_v29 = vpop.f32.mrb[2].mxu0 }
 0x1ab   : > { %v1687_v34 = vpop.f32.mrb[3].mxu0 }
 0x1b0   : > { %v2783_v14 = vpop.f32.mrb[4].mxu0  ;;  %v2707_v35 = vpop.f32.mrb[0].mxu1 }
 0x1b1   : > { %v1700_v40 = vpop.f32.mrb[5].mxu0  ;;  %v2809_v31 = vadd.f32 %v2779_v15, %v2707_v35  ;;  %v1258_v5 = vpop.f32.mrb[1].mxu1 }
 0x1b2   : > { %v2784_v9 = vpop.f32.mrb[6].mxu0  ;;  %v2810_v18 = vadd.f32 %v1684_v23, %v1258_v5  ;;  %v2708_v26 = vpop.f32.mrb[2].mxu1 }
 0x1b3   : > { %v1703_v19 = vpop.f32.mrb[7].mxu0  ;;  %v2562_v20 = vpack.c.bf16 %v2809_v31, %v2809_v31  ;;  %v2811_v51 = vadd.f32 %v2780_v29, %v2708_v26  ;;  %v1261_v49 = vpop.f32.mrb[3].mxu1  ;;  %v2078_v32 = vmul.f32 %v2809_v31, %v2809_v31  ;;  %v2008_v1 = vsel %vm2004_vm5, %v2809_v31, 0.0 }
 0x1b4   : > { %v2560_v27 = vpack.c.bf16 %v2810_v18, %v2810_v18  ;;  %v2076_v33 = vmul.f32 %v2810_v18, %v2810_v18  ;;  %v2812_v17 = vadd.f32 %v1687_v34, %v1261_v49  ;;  %v2005_v21 = vsel %vm2004_vm5, %v2810_v18, 0.0 }
 0x1b5   : > { %1974 = vst.msk [vmem:[%s3887_s29 + $0x8] sm:$0xf] %vm1971_vm4, %v2562_v20  ;;  %v2563_v39 = vpack.c.bf16 %v2811_v51, %v2811_v51  ;;  %v2079_v48 = vmul.f32 %v2811_v51, %v2811_v51  ;;  %v2111_v54 = vsel %vm2004_vm5, %v2078_v32, 0.0  ;;  %v2010_v8 = vsel %vm2004_vm5, %v2811_v51, 0.0 }
 0x1b6   : > { %1972 = vst.msk [vmem:[%s3887_s29] sm:$0xf] %vm1971_vm4, %v2560_v27  ;;  %v2561_v45 = vpack.c.bf16 %v2812_v17, %v2812_v17  ;;  %v2006_v46 = vsel %vm2004_vm5, %v2812_v17, 0.0  ;;  %v2077_v59 = vmul.f32 %v2812_v17, %v2812_v17  ;;  %v2108_v25 = vsel %vm2004_vm5, %v2076_v33, 0.0 }
 0x1b7   : > { %1975 = vst.msk [vmem:[%s3887_s29 + $0xc] sm:$0xf] %vm1971_vm4, %v2563_v39  ;;  %v2007_v56 = vadd.f32 %v2006_v46, %v2005_v21  ;;  %v2113_v13 = vsel %vm2004_vm5, %v2079_v48, 0.0 }
 0x1b8   : > { %v2787_v62 = vpop.f32.mrb[8].mxu0  ;;  %1973 = vst.msk [vmem:[%s3887_s29 + $0x4] sm:$0xf] %vm1971_vm4, %v2561_v45  ;;  %v2109_v2 = vsel %vm2004_vm5, %v2077_v59, 0.0  ;;  %v2711_v3 = vpop.f32.mrb[4].mxu1 }
 0x1b9   : > { %v1716_v38 = vpop.f32.mrb[9].mxu0  ;;  %v2009_v47 = vadd.f32 %v2008_v1, %v2007_v56  ;;  %v2110_v53 = vadd.f32 %v2109_v2, %v2108_v25  ;;  %v2813_v58 = vadd.f32 %v2783_v14, %v2711_v3  ;;  %v1274_v4 = vpop.f32.mrb[5].mxu1 }
 0x1ba   : > { %v2788_v41 = vpop.f32.mrb[10].mxu0  ;;  %v2814_v63 = vadd.f32 %v1700_v40, %v1274_v4  ;;  %v2712_v60 = vpop.f32.mrb[6].mxu1 }
 0x1bb   : > { %v1719_v6 = vpop.f32.mrb[11].mxu0  ;;  %v2112_v10 = vadd.f32 %v2111_v54, %v2110_v53  ;;  %v2566_v11 = vpack.c.bf16 %v2813_v58, %v2813_v58  ;;  %v1277_v12 = vpop.f32.mrb[7].mxu1  ;;  %v2011_v22 = vadd.f32 %v2010_v8, %v2009_v47  ;;  %v2815_v52 = vadd.f32 %v2784_v9, %v2712_v60 }
 0x1bc   : > { %v2564_v16 = vpack.c.bf16 %v2814_v63, %v2814_v63  ;;  %v2012_v30 = vsel %vm2004_vm5, %v2814_v63, 0.0  ;;  %v2080_v61 = vmul.f32 %v2814_v63, %v2814_v63  ;;  %v2816_v55 = vadd.f32 %v1703_v19, %v1277_v12 }
 0x1bd   : > { %1978 = vst.msk [vmem:[%s3887_s29 + $0x18] sm:$0xf] %vm1971_vm4, %v2566_v11  ;;  %v2114_v24 = vadd.f32 %v2113_v13, %v2112_v10  ;;  %v2013_v57 = vadd.f32 %v2012_v30, %v2011_v22  ;;  %v2082_v37 = vmul.f32 %v2813_v58, %v2813_v58  ;;  %v2567_v44 = vpack.c.bf16 %v2815_v52, %v2815_v52 }
 0x1be   : > { %1976 = vst.msk [vmem:[%s3887_s29 + $0x10] sm:$0xf] %vm1971_vm4, %v2564_v16  ;;  %v2115_v0 = vsel %vm2004_vm5, %v2080_v61, 0.0  ;;  %v2565_v7 = vpack.c.bf16 %v2816_v55, %v2816_v55  ;;  %v2014_v28 = vsel %vm2004_vm5, %v2816_v55, 0.0  ;;  %v2081_v36 = vmul.f32 %v2816_v55, %v2816_v55 }
 0x1bf   : > { %v2116_v42 = vadd.f32 %v2115_v0, %v2114_v24  ;;  %1979 = vst.msk [vmem:[%s3887_s29 + $0x1c] sm:$0xf] %vm1971_vm4, %v2567_v44  ;;  %v2015_v23 = vadd.f32 %v2014_v28, %v2013_v57  ;;  %v2016_v35 = vsel %vm2004_vm5, %v2813_v58, 0.0  ;;  %v2083_v40 = vmul.f32 %v2815_v52, %v2815_v52 }
 0x1c0   : > { %v2791_v50 = vpop.f32.mrb[12].mxu0  ;;  %v2715_v43 = vpop.f32.mrb[8].mxu1  ;;  %1977 = vst.msk [vmem:[%s3887_s29 + $0x14] sm:$0xf] %vm1971_vm4, %v2565_v7  ;;  %v2117_v31 = vsel %vm2004_vm5, %v2081_v36, 0.0  ;;  %v2119_v26 = vsel %vm2004_vm5, %v2082_v37, 0.0 }
 0x1c1   : > { %v1732_v15 = vpop.f32.mrb[13].mxu0  ;;  %v2817_v29 = vadd.f32 %v2787_v62, %v2715_v43  ;;  %v1290_v34 = vpop.f32.mrb[9].mxu1  ;;  %v2017_v19 = vadd.f32 %v2016_v35, %v2015_v23  ;;  %v2118_v20 = vadd.f32 %v2117_v31, %v2116_v42  ;;  %v2018_v27 = vsel %vm2004_vm5, %v2815_v52, 0.0 }
 0x1c2   : > { %v2792_v14 = vpop.f32.mrb[14].mxu0  ;;  %v2818_v5 = vadd.f32 %v1716_v38, %v1290_v34  ;;  %v2716_v9 = vpop.f32.mrb[10].mxu1  ;;  %v2121_v59 = vsel %vm2004_vm5, %v2083_v40, 0.0 }
 0x1c3   : > { %v1735_v18 = vpop.f32.mrb[15].mxu0  ;;  %v2570_v51 = vpack.c.bf16 %v2817_v29, %v2817_v29  ;;  %v1293_v49 = vpop.f32.mrb[11].mxu1  ;;  %v2120_v39 = vadd.f32 %v2119_v26, %v2118_v20  ;;  %v2019_v21 = vadd.f32 %v2018_v27, %v2017_v19  ;;  %v2819_v45 = vadd.f32 %v2788_v41, %v2716_v9 }
 0x1c4   : > { %v2568_v33 = vpack.c.bf16 %v2818_v5, %v2818_v5  ;;  %v2020_v17 = vsel %vm2004_vm5, %v2818_v5, 0.0  ;;  %v2084_v32 = vmul.f32 %v2818_v5, %v2818_v5  ;;  %v2820_v46 = vadd.f32 %v1719_v6, %v1293_v49 }
 0x1c5   : > { %1982 = vst.msk [vmem:[%s3887_s29 + $0x28] sm:$0xf] %vm1971_vm4, %v2570_v51  ;;  %v2086_v56 = vmul.f32 %v2817_v29, %v2817_v29  ;;  %v2021_v62 = vadd.f32 %v2020_v17, %v2019_v21  ;;  %v2122_v1 = vadd.f32 %v2121_v59, %v2120_v39  ;;  %v2571_v25 = vpack.c.bf16 %v2819_v45, %v2819_v45 }
 0x1c6   : > { %1980 = vst.msk [vmem:[%s3887_s29 + $0x20] sm:$0xf] %vm1971_vm4, %v2568_v33  ;;  %v2123_v48 = vsel %vm2004_vm5, %v2084_v32, 0.0  ;;  %v2569_v3 = vpack.c.bf16 %v2820_v46, %v2820_v46  ;;  %v2022_v38 = vsel %vm2004_vm5, %v2820_v46, 0.0  ;;  %v2085_v47 = vmul.f32 %v2820_v46, %v2820_v46 }
 0x1c7   : > { %v2124_v4 = vadd.f32 %v2123_v48, %v2122_v1  ;;  %1983 = vst.msk [vmem:[%s3887_s29 + $0x2c] sm:$0xf] %vm1971_vm4, %v2571_v25  ;;  %v2023_v41 = vadd.f32 %v2022_v38, %v2021_v62  ;;  %v2024_v6 = vsel %vm2004_vm5, %v2817_v29, 0.0  ;;  %v2087_v8 = vmul.f32 %v2819_v45, %v2819_v45 }
 0x1c8   : > { %v2795_v2 = vpop.f32.mrb[16].mxu0  ;;  %v2719_v53 = vpop.f32.mrb[12].mxu1  ;;  %1981 = vst.msk [vmem:[%s3887_s29 + $0x24] sm:$0xf] %vm1971_vm4, %v2569_v3  ;;  %v2125_v13 = vsel %vm2004_vm5, %v2085_v47, 0.0  ;;  %v2127_v16 = vsel %vm2004_vm5, %v2086_v56, 0.0 }
 0x1c9   : > { %v1748_v58 = vpop.f32.mrb[17].mxu0  ;;  %v2821_v54 = vadd.f32 %v2791_v50, %v2719_v53  ;;  %v1306_v63 = vpop.f32.mrb[13].mxu1  ;;  %v2025_v22 = vadd.f32 %v2024_v6, %v2023_v41  ;;  %v2126_v30 = vadd.f32 %v2125_v13, %v2124_v4  ;;  %v2026_v52 = vsel %vm2004_vm5, %v2819_v45, 0.0 }
 0x1ca   : > { %v2796_v60 = vpop.f32.mrb[18].mxu0  ;;  %v2822_v10 = vadd.f32 %v1732_v15, %v1306_v63  ;;  %v2720_v11 = vpop.f32.mrb[14].mxu1  ;;  %v2129_v7 = vsel %vm2004_vm5, %v2087_v8, 0.0 }
 0x1cb   : > { %v1751_v12 = vpop.f32.mrb[19].mxu0  ;;  %v2574_v61 = vpack.c.bf16 %v2821_v54, %v2821_v54  ;;  %v1309_v24 = vpop.f32.mrb[15].mxu1  ;;  %v2128_v37 = vadd.f32 %v2127_v16, %v2126_v30  ;;  %v2027_v42 = vadd.f32 %v2026_v52, %v2025_v22  ;;  %v2823_v44 = vadd.f32 %v2792_v14, %v2720_v11 }
 0x1cc   : > { %v2572_v55 = vpack.c.bf16 %v2822_v10, %v2822_v10  ;;  %v2028_v57 = vsel %vm2004_vm5, %v2822_v10, 0.0  ;;  %v2088_v0 = vmul.f32 %v2822_v10, %v2822_v10  ;;  %v2824_v50 = vadd.f32 %v1735_v18, %v1309_v24 }
 0x1cd   : > { %1986 = vst.msk [vmem:[%s3887_s29 + $0x38] sm:$0xf] %vm1971_vm4, %v2574_v61  ;;  %v2090_v36 = vmul.f32 %v2821_v54, %v2821_v54  ;;  %v2029_v43 = vadd.f32 %v2028_v57, %v2027_v42  ;;  %v2130_v15 = vadd.f32 %v2129_v7, %v2128_v37  ;;  %v2575_v23 = vpack.c.bf16 %v2823_v44, %v2823_v44 }
 0x1ce   : > { %1984 = vst.msk [vmem:[%s3887_s29 + $0x30] sm:$0xf] %vm1971_vm4, %v2572_v55  ;;  %v2131_v28 = vsel %vm2004_vm5, %v2088_v0, 0.0  ;;  %v2573_v34 = vpack.c.bf16 %v2824_v50, %v2824_v50  ;;  %v2030_v35 = vsel %vm2004_vm5, %v2824_v50, 0.0  ;;  %v2089_v40 = vmul.f32 %v2824_v50, %v2824_v50 }
 0x1cf   : > { %v2132_v5 = vadd.f32 %v2131_v28, %v2130_v15  ;;  %1987 = vst.msk [vmem:[%s3887_s29 + $0x3c] sm:$0xf] %vm1971_vm4, %v2575_v23  ;;  %v2031_v9 = vadd.f32 %v2030_v35, %v2029_v43  ;;  %v2032_v20 = vsel %vm2004_vm5, %v2821_v54, 0.0  ;;  %v2091_v51 = vmul.f32 %v2823_v44, %v2823_v44 }
 0x1d0   : > { %v2799_v29 = vpop.f32.mrb[20].mxu0  ;;  %v2723_v31 = vpop.f32.mrb[16].mxu1  ;;  %1985 = vst.msk [vmem:[%s3887_s29 + $0x34] sm:$0xf] %vm1971_vm4, %v2573_v34  ;;  %v2133_v49 = vsel %vm2004_vm5, %v2089_v40, 0.0  ;;  %v2135_v32 = vsel %vm2004_vm5, %v2090_v36, 0.0 }
 0x1d1   : > { %v1764_v14 = vpop.f32.mrb[21].mxu0  ;;  %v2825_v18 = vadd.f32 %v2795_v2, %v2723_v31  ;;  %v1322_v26 = vpop.f32.mrb[17].mxu1  ;;  %v2033_v39 = vadd.f32 %v2032_v20, %v2031_v9  ;;  %v2134_v21 = vadd.f32 %v2133_v49, %v2132_v5  ;;  %v2034_v59 = vsel %vm2004_vm5, %v2823_v44, 0.0 }
 0x1d2   : > { %v2800_v19 = vpop.f32.mrb[22].mxu0  ;;  %v2826_v27 = vadd.f32 %v1748_v58, %v1322_v26  ;;  %v2724_v33 = vpop.f32.mrb[18].mxu1  ;;  %v2137_v38 = vsel %vm2004_vm5, %v2091_v51, 0.0 }
 0x1d3   : > { %v1767_v17 = vpop.f32.mrb[23].mxu0  ;;  %v2578_v45 = vpack.c.bf16 %v2825_v18, %v2825_v18  ;;  %v1325_v46 = vpop.f32.mrb[19].mxu1  ;;  %v2136_v1 = vadd.f32 %v2135_v32, %v2134_v21  ;;  %v2035_v25 = vadd.f32 %v2034_v59, %v2033_v39  ;;  %v2827_v2 = vadd.f32 %v2796_v60, %v2724_v33 }
 0x1d4   : > { %v2576_v48 = vpack.c.bf16 %v2826_v27, %v2826_v27  ;;  %v2036_v56 = vsel %vm2004_vm5, %v2826_v27, 0.0  ;;  %v2092_v62 = vmul.f32 %v2826_v27, %v2826_v27  ;;  %v2828_v3 = vadd.f32 %v1751_v12, %v1325_v46 }
 0x1d5   : > { %1990 = vst.msk [vmem:[%s3887_s29 + $0x48] sm:$0xf] %vm1971_vm4, %v2578_v45  ;;  %v2094_v53 = vmul.f32 %v2825_v18, %v2825_v18  ;;  %v2037_v58 = vadd.f32 %v2036_v56, %v2035_v25  ;;  %v2138_v4 = vadd.f32 %v2137_v38, %v2136_v1  ;;  %v2579_v41 = vpack.c.bf16 %v2827_v2, %v2827_v2 }
 0x1d6   : > { %1988 = vst.msk [vmem:[%s3887_s29 + $0x40] sm:$0xf] %vm1971_vm4, %v2576_v48  ;;  %v2139_v47 = vsel %vm2004_vm5, %v2092_v62, 0.0  ;;  %v2577_v63 = vpack.c.bf16 %v2828_v3, %v2828_v3  ;;  %v2038_v6 = vsel %vm2004_vm5, %v2828_v3, 0.0  ;;  %v2093_v8 = vmul.f32 %v2828_v3, %v2828_v3 }
 0x1d7   : > { %v2140_v10 = vadd.f32 %v2139_v47, %v2138_v4  ;;  %1991 = vst.msk [vmem:[%s3887_s29 + $0x4c] sm:$0xf] %vm1971_vm4, %v2579_v41  ;;  %v2039_v11 = vadd.f32 %v2038_v6, %v2037_v58  ;;  %v2040_v30 = vsel %vm2004_vm5, %v2825_v18, 0.0  ;;  %v2095_v61 = vmul.f32 %v2827_v2, %v2827_v2 }
 0x1d8   : > { %v2803_v54 = vpop.f32.mrb[24].mxu0  ;;  %v2727_v13 = vpop.f32.mrb[20].mxu1  ;;  %1989 = vst.msk [vmem:[%s3887_s29 + $0x44] sm:$0xf] %vm1971_vm4, %v2577_v63  ;;  %v2141_v24 = vsel %vm2004_vm5, %v2093_v8, 0.0  ;;  %v2143_v0 = vsel %vm2004_vm5, %v2094_v53, 0.0 }
 0x1d9   : > { %v1780_v60 = vpop.f32.mrb[25].mxu0  ;;  %v2829_v12 = vadd.f32 %v2799_v29, %v2727_v13  ;;  %v1338_v16 = vpop.f32.mrb[21].mxu1  ;;  %v2041_v37 = vadd.f32 %v2040_v30, %v2039_v11  ;;  %v2142_v42 = vadd.f32 %v2141_v24, %v2140_v10  ;;  %v2042_v7 = vsel %vm2004_vm5, %v2827_v2, 0.0 }
 0x1da   : > { %v2804_v22 = vpop.f32.mrb[26].mxu0  ;;  %v2830_v52 = vadd.f32 %v1764_v14, %v1338_v16  ;;  %v2728_v55 = vpop.f32.mrb[22].mxu1  ;;  %v2145_v35 = vsel %vm2004_vm5, %v2095_v61, 0.0 }
 0x1db   : > { %v1783_v57 = vpop.f32.mrb[27].mxu0  ;;  %v2582_v44 = vpack.c.bf16 %v2829_v12, %v2829_v12  ;;  %v1341_v50 = vpop.f32.mrb[23].mxu1  ;;  %v2144_v15 = vadd.f32 %v2143_v0, %v2142_v42  ;;  %v2043_v23 = vadd.f32 %v2042_v7, %v2041_v37  ;;  %v2831_v29 = vadd.f32 %v2800_v19, %v2728_v55 }
 0x1dc   : > { %v2580_v28 = vpack.c.bf16 %v2830_v52, %v2830_v52  ;;  %v2044_v36 = vsel %vm2004_vm5, %v2830_v52, 0.0  ;;  %v2096_v43 = vmul.f32 %v2830_v52, %v2830_v52  ;;  %v2832_v34 = vadd.f32 %v1767_v17, %v1341_v50 }
 0x1dd   : > { %1994 = vst.msk [vmem:[%s3887_s29 + $0x58] sm:$0xf] %vm1971_vm4, %v2582_v44  ;;  %v2098_v31 = vmul.f32 %v2829_v12, %v2829_v12  ;;  %v2045_v14 = vadd.f32 %v2044_v36, %v2043_v23  ;;  %v2146_v5 = vadd.f32 %v2145_v35, %v2144_v15  ;;  %v2583_v9 = vpack.c.bf16 %v2831_v29, %v2831_v29 }
 0x1de   : > { %1992 = vst.msk [vmem:[%s3887_s29 + $0x50] sm:$0xf] %vm1971_vm4, %v2580_v28  ;;  %v2147_v40 = vsel %vm2004_vm5, %v2096_v43, 0.0  ;;  %v2581_v26 = vpack.c.bf16 %v2832_v34, %v2832_v34  ;;  %v2046_v20 = vsel %vm2004_vm5, %v2832_v34, 0.0  ;;  %v2097_v51 = vmul.f32 %v2832_v34, %v2832_v34 }
 0x1df   : > { %v2148_v27 = vadd.f32 %v2147_v40, %v2146_v5  ;;  %1995 = vst.msk [vmem:[%s3887_s29 + $0x5c] sm:$0xf] %vm1971_vm4, %v2583_v9  ;;  %v2047_v33 = vadd.f32 %v2046_v20, %v2045_v14  ;;  %v2048_v21 = vsel %vm2004_vm5, %v2829_v12, 0.0  ;;  %v2099_v45 = vmul.f32 %v2831_v29, %v2831_v29 }
 0x1e0   : > { %v2807_v18 = vpop.f32.mrb[28].mxu0  ;;  %v2731_v49 = vpop.f32.mrb[24].mxu1  ;;  %1993 = vst.msk [vmem:[%s3887_s29 + $0x54] sm:$0xf] %vm1971_vm4, %v2581_v26  ;;  %v2149_v46 = vsel %vm2004_vm5, %v2097_v51, 0.0  ;;  %v2151_v62 = vsel %vm2004_vm5, %v2098_v31, 0.0 }
 0x1e1   : > { %v1796_v19 = vpop.f32.mrb[29].mxu0  ;;  %v2833_v17 = vadd.f32 %v2803_v54, %v2731_v49  ;;  %v1354_v32 = vpop.f32.mrb[25].mxu1  ;;  %v2049_v1 = vadd.f32 %v2048_v21, %v2047_v33  ;;  %v2150_v25 = vadd.f32 %v2149_v46, %v2148_v27  ;;  %v2050_v38 = vsel %vm2004_vm5, %v2831_v29, 0.0 }
 0x1e2   : > { %v2808_v39 = vpop.f32.mrb[30].mxu0  ;;  %v2834_v59 = vadd.f32 %v1780_v60, %v1354_v32  ;;  %v2732_v48 = vpop.f32.mrb[26].mxu1  ;;  %v2153_v6 = vsel %vm2004_vm5, %v2099_v45, 0.0 }
 0x1e3   : > { %v1799_v56 = vpop.f32.mrb[31].mxu0  ;;  %v2586_v2 = vpack.c.bf16 %v2833_v17, %v2833_v17  ;;  %v1357_v3 = vpop.f32.mrb[27].mxu1  ;;  %v2152_v4 = vadd.f32 %v2151_v62, %v2150_v25  ;;  %v2051_v41 = vadd.f32 %v2050_v38, %v2049_v1  ;;  %v2835_v54 = vadd.f32 %v2804_v22, %v2732_v48 }
 0x1e4   : > { %v2584_v47 = vpack.c.bf16 %v2834_v59, %v2834_v59  ;;  %v2052_v53 = vsel %vm2004_vm5, %v2834_v59, 0.0  ;;  %v2100_v58 = vmul.f32 %v2834_v59, %v2834_v59  ;;  %v2836_v63 = vadd.f32 %v1783_v57, %v1357_v3 }
 0x1e5   : > { %1998 = vst.msk [vmem:[%s3887_s29 + $0x68] sm:$0xf] %vm1971_vm4, %v2586_v2  ;;  %v2102_v13 = vmul.f32 %v2833_v17, %v2833_v17  ;;  %v2053_v60 = vadd.f32 %v2052_v53, %v2051_v41  ;;  %v2154_v10 = vadd.f32 %v2153_v6, %v2152_v4  ;;  %v2587_v11 = vpack.c.bf16 %v2835_v54, %v2835_v54 }
 0x1e6   : > { %1996 = vst.msk [vmem:[%s3887_s29 + $0x60] sm:$0xf] %vm1971_vm4, %v2584_v47  ;;  %v2155_v8 = vsel %vm2004_vm5, %v2100_v58, 0.0  ;;  %v2585_v12 = vpack.c.bf16 %v2836_v63, %v2836_v63  ;;  %v2054_v16 = vsel %vm2004_vm5, %v2836_v63, 0.0  ;;  %v2101_v30 = vmul.f32 %v2836_v63, %v2836_v63 }
 0x1e7   : > { %v2156_v24 = vadd.f32 %v2155_v8, %v2154_v10  ;;  %1999 = vst.msk [vmem:[%s3887_s29 + $0x6c] sm:$0xf] %vm1971_vm4, %v2587_v11  ;;  %v2055_v22 = vadd.f32 %v2054_v16, %v2053_v60  ;;  %v2056_v57 = vsel %vm2004_vm5, %v2833_v17, 0.0  ;;  %v2103_v0 = vmul.f32 %v2835_v54, %v2835_v54 }
 0x1e8   : > { %v2735_v61 = vpop.f32.mrb[28].mxu1  ;;  %1997 = vst.msk [vmem:[%s3887_s29 + $0x64] sm:$0xf] %vm1971_vm4, %v2585_v12  ;;  %v2157_v37 = vsel %vm2004_vm5, %v2101_v30, 0.0  ;;  %v2159_v50 = vsel %vm2004_vm5, %v2102_v13, 0.0  ;;  %v2058_v15 = vsel %vm2004_vm5, %v2835_v54, 0.0 }
 0x1e9   : > { %v2837_v52 = vadd.f32 %v2807_v18, %v2735_v61  ;;  %v1370_v55 = vpop.f32.mrb[29].mxu1  ;;  %v2057_v7 = vadd.f32 %v2056_v57, %v2055_v22  ;;  %v2158_v28 = vadd.f32 %v2157_v37, %v2156_v24  ;;  %v2161_v5 = vsel %vm2004_vm5, %v2103_v0, 0.0 }
 0x1ea   : > { %v2838_v42 = vadd.f32 %v1796_v19, %v1370_v55  ;;  %v2736_v44 = vpop.f32.mrb[30].mxu1 }
 0x1eb   : > { %v2590_v36 = vpack.c.bf16 %v2837_v52, %v2837_v52  ;;  %v1373_v43 = vpop.f32.mrb[31].mxu1  ;;  %v2160_v35 = vadd.f32 %v2159_v50, %v2158_v28  ;;  %v2059_v40 = vadd.f32 %v2058_v15, %v2057_v7  ;;  %v2839_v31 = vadd.f32 %v2808_v39, %v2736_v44 }
 0x1ec   : > { %v2588_v23 = vpack.c.bf16 %v2838_v42, %v2838_v42  ;;  %v2060_v29 = vsel %vm2004_vm5, %v2838_v42, 0.0  ;;  %v2104_v34 = vmul.f32 %v2838_v42, %v2838_v42  ;;  %v2840_v14 = vadd.f32 %v1799_v56, %v1373_v43 }
 0x1ed   : > { %2002 = vst.msk [vmem:[%s3887_s29 + $0x78] sm:$0xf] %vm1971_vm4, %v2590_v36  ;;  %v2061_v18 = vadd.f32 %v2060_v29, %v2059_v40  ;;  %v2162_v26 = vadd.f32 %v2161_v5, %v2160_v35  ;;  %v2591_v20 = vpack.c.bf16 %v2839_v31, %v2839_v31  ;;  %v2106_v51 = vmul.f32 %v2837_v52, %v2837_v52 }
 0x1ee   : > { %2000 = vst.msk [vmem:[%s3887_s29 + $0x70] sm:$0xf] %vm1971_vm4, %v2588_v23  ;;  %v2163_v9 = vsel %vm2004_vm5, %v2104_v34, 0.0  ;;  %v2589_v49 = vpack.c.bf16 %v2840_v14, %v2840_v14  ;;  %v2062_v19 = vsel %vm2004_vm5, %v2840_v14, 0.0  ;;  %v2105_v27 = vmul.f32 %v2840_v14, %v2840_v14 }
 0x1ef   : > { %v2164_v33 = vadd.f32 %v2163_v9, %v2162_v26  ;;  %2003 = vst.msk [vmem:[%s3887_s29 + $0x7c] sm:$0xf] %vm1971_vm4, %v2591_v20  ;;  %v2063_v17 = vadd.f32 %v2062_v19, %v2061_v18  ;;  %v2064_v32 = vsel %vm2004_vm5, %v2837_v52, 0.0  ;;  %v2107_v39 = vmul.f32 %v2839_v31, %v2839_v31 }
 0x1f0   : > { %2001 = vst.msk [vmem:[%s3887_s29 + $0x74] sm:$0xf] %vm1971_vm4, %v2589_v49  ;;  %v2165_v21 = vsel %vm2004_vm5, %v2105_v27, 0.0 }
 0x1f1   : > { %v2065_v45 = vadd.f32 %v2064_v32, %v2063_v17  ;;  %v2166_v46 = vadd.f32 %v2165_v21, %v2164_v33 }
 0x1f2   : > { %3129 = shalt.err (!%p3126_p8)
}
 0x1f3   : > { %s3130_s8 = scalar_lea.hbm %s4012_s30, 2048  ;;  %s3134_s20 = scalar_lea.hbm %s4149_s3, 4096 }
 0x1f4   : > { %p3131_p12 = scmp.ne.s32.totalorder %s4012_s30, %s3130_s8  ;;  %p3135_p6 = scmp.lt.u32.totalorder %s4012_s30, %s4149_s3 }
 0x1f5   : > { %p3136_p11 = scmp.lt.u32.totalorder %s3134_s20, %s3130_s8  ;;  %p3138_p5 = scmp.lt.u32.totalorder %s3130_s8, %s4012_s30 }
 0x1f6   : > { %p3132_p13 = pnand %p3131_p12, %p3401_p10 }
 0x1f7   : > { %p3137_p0 = por %p3136_p11, %p3135_p6 }
 0x1f8   : > { %p3133_p3 = pneg %p3132_p13 }
 0x1f9   : > { %p3139_p9 = por %p3138_p5, %p3137_p0 }
 0x1fb   : > { %p3140_p1 = pnand %p3139_p9, %p3133_p3 }
 0x1fd   : > { %3143 = shalt.err (!%p3140_p1)
}
 0x1fe   : > { %s3274_s26 = smov 64   ;;  %s3275_s29 = smov 4   ;;  %v2167_v59 = vsel %vm2004_vm5, %v2106_v51, 0.0  ;;  %v2066_v48 = vsel %vm2004_vm5, %v2839_v31, 0.0  ;;  %v2169_v1 = vsel %vm2004_vm5, %v2107_v39, 0.0  ;;  %vm2074_vm6 = vcmask 122880  }
 0x1ff   : > { %2918 = dma.vmem_to_hbm [thread:$0]  (%p3401_p10), %s4014_s13, 2048, %s4012_s30, %s2179_s25, %s3274_s26, %s3274_s26, %s3275_s29   ;;  %v2067_v56 = vadd.f32 %v2066_v48, %v2065_v45  ;;  %v2168_v62 = vadd.f32 %v2167_v59, %v2166_v46 }
 0x200   : > { %s2556_s17 = sshll.u32 %s3258_s21, 4  ;;  %s347_s13 = scalar_lea.vmem [#allocation9], %s3504_s27 }
 0x201   : > { %v2068_v25 = vrot.slane %v2067_v56, 4  ;;  %v2170_v2 = vadd.f32 %v2169_v1, %v2168_v62  ;;  %s2218_s15 = sshll.u32 %s347_s13, 4  ;;  %s353_s10 = scalar_lea.vmem [#allocation11], %s3504_s27  ;;  %s4060_s15 = int_to_ptr.vmem [resolvable:$true] %s2218_s15 }
 0x202   : > { %s2232_s30 = sshll.u32 %s353_s10, 4  ;;  %s4058_s12 = scalar_lea.hbm %s4150_s4, %s2556_s17  ;;  %s4068_s30 = int_to_ptr.vmem [resolvable:$true] %s2232_s30 }
 0x203   : > { %v2069_v3 = vadd.f32 %v2068_v25, %v2067_v56  ;;  %v2171_v38 = vrot.slane %v2170_v2, 4  ;;  %s4066_s9 = scalar_lea.hbm %s4151_s5, %s2556_s17  ;;  %s4072_s8 = scalar_lea.sflag [#allocation10], %s306_s0 }
 0x204   : > { %s3144_s16 = scalar_lea.vmem %s4060_s15, 16  ;;  %s3276_s11 = smov [#allocation9]  }
 0x205   : > { %v2070_v47 = vrot.slane %v2069_v3, 2  ;;  %v2172_v53 = vadd.f32 %v2171_v38, %v2170_v2  ;;  %p3145_p2 = scmp.ne.s32.totalorder %s4060_s15, %s3144_s16  ;;  %s3148_s20 = sshll.u32 %s3276_s11, 4  ;;  %s3149_s20 = int_to_ptr.vmem [resolvable:$false] %s3148_s20 }
 0x206   : > { %s3150_s28 = scalar_lea.vmem %s3149_s20, 32  ;;  %p3151_p8 = scmp.lt.s32.totalorder %s4060_s15, %s3149_s20 }
 0x207   : > { %v2071_v58 = vadd.f32 %v2070_v47, %v2069_v3  ;;  %v2173_v4 = vrot.slane %v2172_v53, 2  ;;  %p3146_p7 = pnand %p3145_p2, %p3401_p10  ;;  %p3152_p12 = scmp.lt.s32.totalorder %s3150_s28, %s3144_s16 }
 0x209   : > { %v2174_v41 = vadd.f32 %v2173_v4, %v2172_v53  ;;  %v2072_v54 = vrot.slane %v2071_v58, 1  ;;  %p3147_p4 = pneg %p3146_p7  ;;  %p3153_p13 = por %p3152_p12, %p3151_p8 }
 0x20b   : > { %v2175_v63 = vrot.slane %v2174_v41, 1  ;;  %v2073_v6 = vadd.f32 %v2072_v54, %v2071_v58  ;;  %p3154_p3 = pnand %p3153_p13, %p3147_p4 }
 0x20d   : > { %2075 = vst.msk [vmem:[%s347_s13] sm:$0x1] %vm2074_vm6, %v2073_v6  ;;  %v2176_v8 = vadd.f32 %v2175_v63, %v2174_v41 }
 0x20e   : > { %3157 = shalt.err (!%p3154_p3)
}
 0x20f   : > { %s3158_s24 = scalar_lea.hbm %s4058_s12, 16  ;;  %s3162_s26 = scalar_lea.hbm %s4150_s4, 32 }
 0x210   : > { %p3159_p6 = scmp.ne.s32.totalorder %s4058_s12, %s3158_s24  ;;  %p3163_p5 = scmp.lt.u32.totalorder %s4058_s12, %s4150_s4 }
 0x211   : > { %p3164_p9 = scmp.lt.u32.totalorder %s3162_s26, %s3158_s24  ;;  %p3166_p2 = scmp.lt.u32.totalorder %s3158_s24, %s4058_s12 }
 0x212   : > { %p3160_p11 = pnand %p3159_p6, %p3401_p10 }
 0x213   : > { %p3165_p1 = por %p3164_p9, %p3163_p5 }
 0x214   : > { %p3161_p0 = pneg %p3160_p11 }
 0x215   : > { %p3167_p7 = por %p3166_p2, %p3165_p1 }
 0x217   : > { %p3168_p4 = pnand %p3167_p7, %p3161_p0 }
 0x219   : > { %3171 = shalt.err (!%p3168_p4)
}
 0x21a   : > { %2919 = dma.vmem_to_hbm [thread:$0]  (%p3401_p10), %s4060_s15, 16, %s4058_s12, %s4072_s8   ;;  %2177 = vst.msk [vmem:[%s353_s10] sm:$0x1] %vm2074_vm6, %v2176_v8 }
 0x21b   : > { %s3172_s13 = scalar_lea.vmem %s4068_s30, 16  ;;  %s3277_s25 = smov [#allocation11]  }
 0x21c   : > { %p3173_p8 = scmp.ne.s32.totalorder %s4068_s30, %s3172_s13  ;;  %s3176_s2 = sshll.u32 %s3277_s25, 4  ;;  %s3177_s2 = int_to_ptr.vmem [resolvable:$false] %s3176_s2 }
 0x21d   : > { %s3178_s21 = scalar_lea.vmem %s3177_s2, 32  ;;  %p3179_p3 = scmp.lt.s32.totalorder %s4068_s30, %s3177_s2 }
 0x21e   : > { %p3174_p12 = pnand %p3173_p8, %p3401_p10  ;;  %p3180_p6 = scmp.lt.s32.totalorder %s3178_s21, %s3172_s13 }
 0x220   : > { %p3175_p13 = pneg %p3174_p12  ;;  %p3181_p11 = por %p3180_p6, %p3179_p3 }
 0x222   : > { %p3182_p0 = pnand %p3181_p11, %p3175_p13 }
 0x224   : > { %3185 = shalt.err (!%p3182_p0)
}
 0x225   : > { %s3186_s27 = scalar_lea.hbm %s4066_s9, 16  ;;  %s3190_s12 = scalar_lea.hbm %s4151_s5, 32 }
 0x226   : > { %p3187_p5 = scmp.ne.s32.totalorder %s4066_s9, %s3186_s27  ;;  %p3191_p2 = scmp.lt.u32.totalorder %s4066_s9, %s4151_s5 }
 0x227   : > { %p3192_p7 = scmp.lt.u32.totalorder %s3190_s12, %s3186_s27  ;;  %p3194_p8 = scmp.lt.u32.totalorder %s3186_s27, %s4066_s9 }
 0x228   : > { %p3188_p9 = pnand %p3187_p5, %p3401_p10 }
 0x229   : > { %p3193_p4 = por %p3192_p7, %p3191_p2 }
 0x22a   : > { %p3189_p1 = pneg %p3188_p9 }
 0x22b   : > { %p3195_p12 = por %p3194_p8, %p3193_p4 }
 0x22d   : > { %p3196_p13 = pnand %p3195_p12, %p3189_p1 }
 0x22f   : > { %3199 = shalt.err (!%p3196_p13)
}
 0x230   : > { %2920 = dma.vmem_to_hbm [thread:$0]  (%p3401_p10), %s4068_s30, 16, %s4066_s9, %s4072_s8  }
 0x231 PF: > { %s4189_s11 = sld [smem:[#allocation18_spill]]  ;;  %s2244_s20 = sand.u32 1, %s3246_s18  }
 0x232   : > { %p4191_p6 = scmp.ge.s32.totalorder %s3266_s23, 2  ;;  %s2245_s28 = scalar_lea.sflag [#allocation4], %s2244_s20 }
 0x237   : > { %p4190_p3 = scmp.ne.s32.totalorder %s4189_s11, 0 }
 0x239   : > { %p2936_p11 = pnand %p4191_p6, %p4190_p3 }
 0x23b   : > { %3237 = dma.done.wait (!%p2936_p11), %s2245_s28, 2048  }
 0x23c   : > { %3239 = vsyncadd (!%p2936_p11), %s2245_s28, 4294965248  ;;  %s4192_s24 = sadd.s32 4294967294, %s3266_s23  }
 0x23d   : > { %s2253_s0 = sand.u32 1, %s4192_s24  }
 0x23e   : > { %s2254_s7 = scalar_lea.sflag [#allocation10], %s2253_s0 }
 0x23f   : > { %3241 = dma.done.wait (!%p2936_p11), %s2254_s7, 32  }
 0x240   : > { %3243 = vsyncadd (!%p2936_p11), %s2254_s7, 4294967264  ;;  %s28_s23 = sadd.s32 1, %s3266_s23   ;;  %s4193_s6 = sld [smem:[#allocation17_spill]] }
 0x241   : > { %p25_p10 = scmp.ge.s32.totalorder %s28_s23, 4   ;;  %s4194_s20 = sld [smem:[#allocation20_spill]] }
 0x242   : > { %s4195_s30 = sld [smem:[#allocation19_spill]]  ;;  %s4196_s18 = smov %s3250_s19 }
 0x243   : > { %s4198_s21 = smov %s3262_s22  ;;  %27 = sbr.rel (!%p25_p10) target bundleno = 13 (0xd), region = 129 }
 0x246   : > { %s4197_s19 = smov %s4193_s6 }
 0x248   : > { %s4199_s22 = smov %s4195_s30 }
 0x24a   :  { %2266 = vsyncpa [#allocation3], 1 }
 0x24b   :  { %2268 = vsyncpa [#allocation3 + $0x1], 1 }
 0x24c   :  { %2269 = vsyncpa [#allocation6], 1 }
 0x24d   :  { %2271 = vsyncpa [#allocation6 + $0x1], 1 }
 0x24e   :  { %2272 = vsyncpa [#allocation4], 1 }
 0x24f   :  { %2274 = vsyncpa [#allocation4 + $0x1], 1 }
 0x250   :  { %2275 = vsyncpa [#allocation10], 1 }
 0x251   :  { %2277 = vsyncpa [#allocation10 + $0x1], 1 }

// kernel: discriminator2d_forward.7
= control target key start
LH: loop header
LB: loop body
LE: loop exit
PB: predicated region body
PF: predicated region fallthrough
CT: control target
= control target key end

     0   :  { %s2443_s0 = inlined_call_operand.hbm [shape: bf16[2,9,9,64], index: 0, kind: input, shape index: {}, may-alias: {0,1}]   ;;  %s2444_s1 = inlined_call_operand.hbm [shape: bf16[2,9,9,64], index: 1, kind: input, shape index: {}, may-alias: {0,1}]   ;;  %s2445_s2 = inlined_call_operand.hbm [shape: bf16[4,64,32], index: 2, kind: input, shape index: {}]   ;;  %s2446_s3 = inlined_call_operand.hbm [shape: bf16[128,32], index: 3, kind: output, shape index: {0}]   ;;  %s2447_s4 = inlined_call_operand.hbm [shape: f32[2,1,32], index: 4, kind: output, shape index: {1}]   ;;  %s2448_s5 = inlined_call_operand.hbm [shape: f32[2,1,32], index: 5, kind: output, shape index: {2}]  }
   0x1   :  { %2461 = sst [smem:[#allocation21_spill]] %s2443_s0 }
   0x2   :  { %2462 = sst [smem:[#allocation22_spill]] %s2445_s2 }
   0x3   :  { %11 = vsyncpa [#allocation3], 0 }
   0x4   :  { %13 = vsyncpa [#allocation3 + $0x1], 0 }
   0x5   :  { %14 = vsyncpa [#allocation6], 0 }
   0x6   :  { %16 = vsyncpa [#allocation6 + $0x1], 0 }
   0x7   :  { %17 = vsyncpa [#allocation4], 0 }
   0x8   :  { %19 = vsyncpa [#allocation4 + $0x1], 0 }
   0x9   :  { %20 = vsyncpa [#allocation10], 0 }
   0xa   :  { %22 = vsyncpa [#allocation10 + $0x1], 0  ;;  %s1938_s18 = smov 0   ;;  %s1940_s19 = smov 0  }
   0xb   :  { %s1942_s20 = smov 0   ;;  %s1944_s21 = smov 0  }
   0xc   :  { %s1946_s22 = smov 0   ;;  %s1948_s23 = smov 0  }
   0xd LB: > { %2463 = sst [smem:[#allocation17_spill]] %s1884_s20  ;;  %s1969_s24 = sadd.s32 4294967295, %s1896_s23   ;;  %s1896_s23 = sphi %s1948_s23, %s28_s23   ;;  %s1892_s22 = sphi %s1946_s22, %s2496_s22   ;;  %s1888_s21 = sphi %s1944_s21, %s2495_s21   ;;  %s1884_s20 = sphi %s1942_s20, %s2491_s20   ;;  %s1880_s19 = sphi %s1940_s19, %s2494_s19   ;;  %s1876_s18 = sphi %s1938_s18, %s2493_s18  }
   0xe   : > { %s2452_s25 = sadd.s32 4294967294, %s1896_s23   ;;  %p62_p0 = scmp.ne.s32.totalorder %s1880_s19, %s1876_s18 }
   0xf   : > { %p2449_p1 = scmp.eq.s32.totalorder %s1969_s24, 0  ;;  %p147_p3 = scmp.eq.s32.totalorder %s2452_s25, 1 }
  0x10   : > { %p1337_p5 = scmp.ge.s32.totalorder %s1896_s23, 1  ;;  %p210_p7 = scmp.lt.s32.totalorder %s1896_s23, 3 }
  0x11   : > { %p1980_p4 = por %p2449_p1, %p62_p0  ;;  %p1985_p6 = por %p147_p3, %p62_p0 }
  0x12   : > { %p1990_p8 = pnand %p1337_p5, %p210_p7  ;;  %s1898_s29 = smov [#allocation7]  }
  0x13   : > { %s2464_s26 = scalar_select %p1980_p4, 1, 0 }
  0x14   : > { %s2465_s27 = scalar_select %p1985_p6, 1, 0 }
  0x15   : > { %s2467_s28 = scalar_select %p1990_p8, 1, 0 }
  0x16   : > { %2466 = sst [smem:[#allocation18_spill]] %s2465_s27  ;;  %s222_s30 = sshll.u32 %s1898_s29, 4  ;;  %s223_s30 = int_to_ptr.vmem [resolvable:$true] %s222_s30 }
  0x17   : > { %p1556_p9 = pneg %p1990_p8  ;;  %s40_s7 = sadd.s32 1, %s1892_s22 }
  0x18   : > { %s2469_s2 = sld [smem:[#allocation22_spill]] }
  0x19   : > { %p1999_p11 = pnand %p1556_p9, %p2449_p1 }
  0x1b   : > { %p1659_p13 = pneg %p1999_p11 }
  0x1e   : > { %s1657_s10 = scalar_lea.hbm %s2469_s2, 2048 }
  0x1f   : > { %p1658_p12 = scmp.ne.s32.totalorder %s2469_s2, %s1657_s10  ;;  %p1664_p5 = scmp.lt.u32.totalorder %s1657_s10, %s2469_s2 }
  0x21   : > { %p1660_p0 = pnand %p1659_p13, %p1658_p12 }
  0x23   : > { %p1661_p3 = pneg %p1660_p0 }
  0x25   : > { %p1666_p7 = pnand %p1664_p5, %p1661_p3 }
  0x27   : > { %1669 = shalt.err (!%p1666_p7)
}
  0x28   : > { %s1670_s15 = scalar_lea.vmem %s223_s30, 2048  ;;  %p1678_p2 = scmp.lt.s32.totalorder %s223_s30, %s223_s30 }
  0x29   : > { %p1671_p9 = scmp.ne.s32.totalorder %s223_s30, %s1670_s15  ;;  %p1679_p6 = scmp.lt.s32.totalorder %s1670_s15, %s1670_s15 }
  0x2b   : > { %p1673_p10 = pnand %p1671_p9, %p1659_p13  ;;  %p1680_p4 = por %p1679_p6, %p1678_p2 }
  0x2d   : > { %p1674_p1 = pneg %p1673_p10 }
  0x2f   : > { %p1681_p8 = pnand %p1680_p4, %p1674_p1 }
  0x31   : > { %1684 = shalt.err (!%p1681_p8)
}
  0x32   : > { %s2454_s16 = smov 64   ;;  %s2456_s17 = smov 4  }
  0x33   : > { %1559 = dma.hbm_to_vmem [thread:$0]  (!%p1999_p11), %s2469_s2, 2048, %s223_s30, [#allocation6], %s2454_s16, %s2454_s16, %s2456_s17  }
  0x34   : > { %p42_p1 = scmp.ge.s32.totalorder %s40_s7, 2  ;;  %s49_s9 = sadd.s32 1, %s1884_s20 }
  0x35   : > { %p56_p2 = scmp.ne.s32.totalorder %s1884_s20, %s1880_s19  ;;  %p57_p4 = scmp.eq.s32.totalorder %s1896_s23, 0 }
  0x36   : > { %s2498_s7 = smov (%p42_p1, %s40_s7), 0  ;;  %p2471_p8 = scmp.eq.s32.totalorder %s1969_s24, 1 }
  0x37   : > { %2470 = sst [smem:[#allocation19_spill]] %s2498_s7  ;;  %p58_p6 = por %p57_p4, %p56_p2 }
  0x38   : > { %p2031_p10 = por %p2471_p8, %p56_p2  ;;  %s44_s10 = ssub.s32 %s1892_s22, %s2498_s7 }
  0x39   : > { %p1578_p12 = scmp.lt.s32.totalorder %s1896_s23, 2  ;;  %p47_p13 = scmp.eq.s32.totalorder %s44_s10, 0 }
  0x3a   : > { %s2039_s11 = sand.u32 1, %s1884_s20   ;;  %s2453_s13 = smul.u32 1152, %s1892_s22 }
  0x3b   : > { %s1340_s30 = sshll.u32 %s2039_s11, 6  ;;  %p2046_p11 = pnand %p1578_p12, %p58_p6 }
  0x3c   : > { %s2043_s12 = scalar_select %p47_p13, %s1884_s20, %s49_s9  }
  0x3d   : > { %s240_s14 = scalar_lea.vmem [#allocation2], %s1340_s30  ;;  %s2475_s0 = sld [smem:[#allocation21_spill]] }
  0x3e   : > { %2473 = sst [smem:[#allocation20_spill]] %s2043_s12  ;;  %s258_s15 = sshll.u32 %s240_s14, 4  ;;  %s2057_s15 = int_to_ptr.vmem [resolvable:$true] %s258_s15 }
  0x3f   : > { %s237_s30 = scalar_lea.sflag [#allocation3], %s2039_s11  ;;  %p1687_p3 = pneg %p2046_p11 }
  0x43   : > { %s2055_s10 = scalar_lea.hbm %s2475_s0, %s2453_s13  ;;  %s1690_s13 = scalar_lea.hbm %s2475_s0, 2304 }
  0x44   : > { %s1685_s14 = scalar_lea.hbm %s2055_s10, 1024  ;;  %p1691_p9 = scmp.lt.u32.totalorder %s2055_s10, %s2475_s0 }
  0x45   : > { %p1686_p0 = scmp.ne.s32.totalorder %s2055_s10, %s1685_s14  ;;  %p1692_p1 = scmp.lt.u32.totalorder %s1690_s13, %s1685_s14 }
  0x46   : > { %p1694_p4 = scmp.lt.u32.totalorder %s1685_s14, %s2055_s10 }
  0x47   : > { %p1688_p5 = pnand %p1687_p3, %p1686_p0  ;;  %p1693_p2 = por %p1692_p1, %p1691_p9 }
  0x49   : > { %p1689_p7 = pneg %p1688_p5  ;;  %p1695_p6 = por %p1694_p4, %p1693_p2 }
  0x4b   : > { %p1696_p8 = pnand %p1695_p6, %p1689_p7 }
  0x4d   : > { %1699 = shalt.err (!%p1696_p8)
}
  0x4e   : > { %s1700_s9 = scalar_lea.vmem %s2057_s15, 1024  ;;  %s1901_s25 = smov [#allocation2]  }
  0x4f   : > { %p1701_p12 = scmp.ne.s32.totalorder %s2057_s15, %s1700_s9  ;;  %s1705_s8 = sshll.u32 %s1901_s25, 4  ;;  %s1706_s8 = int_to_ptr.vmem [resolvable:$false] %s1705_s8 }
  0x50   : > { %s1707_s16 = scalar_lea.vmem %s1706_s8, 2048  ;;  %p1708_p5 = scmp.lt.s32.totalorder %s2057_s15, %s1706_s8 }
  0x51   : > { %p1703_p13 = pnand %p1701_p12, %p1687_p3  ;;  %p1709_p9 = scmp.lt.s32.totalorder %s1707_s16, %s1700_s9 }
  0x53   : > { %p1704_p0 = pneg %p1703_p13  ;;  %p1710_p1 = por %p1709_p9, %p1708_p5 }
  0x55   : > { %p1711_p2 = pnand %p1710_p1, %p1704_p0 }
  0x57   : > { %1714 = shalt.err (!%p1711_p2)
}
  0x58   : > { %s2476_s17 = smov 4   ;;  %s2477_s13 = smov 64  }
  0x59   : > { %1563 = dma.hbm_to_vmem [thread:$0]  (!%p2046_p11), %s2055_s10, 1024, %s2057_s15, %s237_s30, %s2477_s13, %s2477_s13, %s2476_s17  }
  0x5a   : > { %s1342_s14 = sshll.u32 %s2039_s11, 3  ;;  %s2478_s25 = smul.u32 1152, %s1892_s22 }
  0x5b   : > { %s272_s2 = scalar_lea.vmem [#allocation5], %s1342_s14  ;;  %s2479_s12 = sand.u32 1, %s1896_s23  }
  0x5c   : > { %s1223_s16 = scalar_lea.hbm %s2444_s1, %s2478_s25  ;;  %s283_s7 = sshll.u32 %s272_s2, 4  ;;  %s2099_s7 = int_to_ptr.vmem [resolvable:$true] %s283_s7 }
  0x5d   : > { %s2097_s0 = scalar_lea.hbm %s1223_s16, 1024  ;;  %s2103_s20 = scalar_lea.sflag [#allocation6], %s2479_s12 }
  0x5e   : > { %s1745_s27 = scalar_lea.hbm %s1223_s16, 1152  ;;  %s1720_s10 = scalar_lea.hbm %s2444_s1, 2304 }
  0x5f   : > { %p1716_p7 = scmp.ne.s32.totalorder %s2097_s0, %s1745_s27  ;;  %p1721_p8 = scmp.lt.u32.totalorder %s2097_s0, %s2444_s1 }
  0x60   : > { %p1722_p12 = scmp.lt.u32.totalorder %s1720_s10, %s1745_s27  ;;  %p1724_p0 = scmp.lt.u32.totalorder %s1745_s27, %s2097_s0 }
  0x61   : > { %p1718_p4 = pnand %p1716_p7, %p1687_p3 }
  0x62   : > { %p1723_p13 = por %p1722_p12, %p1721_p8 }
  0x63   : > { %p1719_p6 = pneg %p1718_p4 }
  0x64   : > { %p1725_p5 = por %p1724_p0, %p1723_p13 }
  0x66   : > { %p1726_p9 = pnand %p1725_p5, %p1719_p6 }
  0x68   : > { %1729 = shalt.err (!%p1726_p9)
}
  0x69   : > { %s1730_s2 = scalar_lea.vmem %s2099_s7, 128  ;;  %s1902_s12 = smov [#allocation5]  }
  0x6a   : > { %p1731_p1 = scmp.ne.s32.totalorder %s2099_s7, %s1730_s2  ;;  %s1735_s14 = sshll.u32 %s1902_s12, 4  ;;  %s1736_s14 = int_to_ptr.vmem [resolvable:$false] %s1735_s14 }
  0x6b   : > { %s1737_s9 = scalar_lea.vmem %s1736_s14, 256  ;;  %p1738_p4 = scmp.lt.s32.totalorder %s2099_s7, %s1736_s14 }
  0x6c   : > { %p1733_p2 = pnand %p1731_p1, %p1687_p3  ;;  %p1739_p8 = scmp.lt.s32.totalorder %s1737_s9, %s1730_s2 }
  0x6e   : > { %p1734_p7 = pneg %p1733_p2  ;;  %p1740_p12 = por %p1739_p8, %p1738_p4 }
  0x70   : > { %p1741_p13 = pnand %p1740_p12, %p1734_p7 }
  0x72   : > { %1744 = shalt.err (!%p1741_p13)
}
  0x73   : > { %1566 = dma.hbm_to_vmem [thread:$0]  (!%p2046_p11), %s2097_s0, 128, %s2099_s7, %s2103_s20, %s2477_s13, %s2477_s13, %s2476_s17  }
  0x74   : > { %p2480_p3 = scmp.ne.s32.totalorder %s2467_s28, 0 }
  0x75   : > { %s2134_s27 = sand.u32 (!%p2480_p3), 1, %s1880_s19   ;;  %p2481_p6 = scmp.ne.s32.totalorder (!%p2480_p3), %s2464_s26, 0 }
  0x76   : > { %295 = sbr.rel (%p2480_p3) target bundleno = 464 (0x1d0), region = 32  ;;  %s1345_s8 = sshll.u32 (!%p2480_p3), %s2134_s27, 6 }
  0x77   : > { %s298_s16 = scalar_lea.sflag (!%p2480_p3), [#allocation3], %s2134_s27  ;;  %s2138_s11 = scalar_lea.vmem (!%p2480_p3), [#allocation2], %s1345_s8 }
  0x7d   : > { %1855 = dma.done.wait (%p2481_p6), %s298_s16, 1024  }
  0x7e   : > { %1857 = vsyncadd (%p2481_p6), %s298_s16, 4294966272  ;;  %s306_s0 = sand.u32 1, %s1969_s24   ;;  %s1346_s20 = sshll.u32 %s2134_s27, 3 }
  0x7f   : > { %s307_s28 = scalar_lea.sflag [#allocation6], %s306_s0  ;;  %s2148_s7 = scalar_lea.vmem [#allocation5], %s1346_s20 }
  0x80   : > { %1859 = dma.done.wait (%p2481_p6), %s307_s28, 128  }
  0x81   : > { %1861 = vsyncadd (%p2481_p6), %s307_s28, 4294967168  ;;  %p2482_p11 = scmp.eq.s32.totalorder %s1969_s24, 0 }
  0x83   : > { %1863 = dma.done.wait (%p2482_p11), [#allocation6], 2048   ;;  %p2483_p0 = pmov %p2482_p11 }
  0x84   : > { %v1634_v0 = vld [vmem:[#allocation7 + $0x20] sm:$0xff]   ;;  %v1636_v2 = vld [vmem:[#allocation7 + $0x28] sm:$0xff]   ;;  %v1638_v4 = vld [vmem:[#allocation7 + $0x30] sm:$0xff]   ;;  %vm393_vm0 = vsmask.f32 3328  ;;  %vm553_vm2 = vcmask 523264  }
  0x85   : > { %1865 = vsyncadd (%p2483_p0), [#allocation6], 4294965248  ;;  %v1635_v1 = vld [vmem:[#allocation7 + $0x40] sm:$0xff]   ;;  %1453 = vmatprep.subr.bf16.mxu1 %v1634_v0  ;;  %v1637_v3 = vld [vmem:[#allocation7 + $0x48] sm:$0xff]   ;;  %vm394_vm1 = vsmask.f32 7440 }
  0x86   : > { %1485 = vmatprep.subr.bf16.mxu0 %v1635_v1  ;;  %1454 = vmatpush3.bf16.msra.mxu1 %v1634_v0  ;;  %v1639_v5 = vld [vmem:[#allocation7 + $0x50] sm:$0xff]   ;;  %v1640_v6 = vld [vmem:[#allocation7 + $0x38] sm:$0xff]   ;;  %v2167_v12 = vld [vmem:[%s2138_s11 + $0x10] sm:$0xf]  ;;  %s1348_s26 = sshll.u32 %s2134_s27, 5  ;;  %vm1045_vm4 = vcmask 257024  }
  0x87   : > { %1486 = vmatpush3.bf16.msra.mxu0 %v1635_v1  ;;  %1455 = vmatprep.subr.bf16.mxu1 %v1636_v2  ;;  %v2159_v7 = vld [vmem:[%s2138_s11] sm:$0xf]  ;;  %v368_v8 = vld [vmem:[%s2138_s11 + $0x4] sm:$0x1]  ;;  %v2163_v9 = vld [vmem:[%s2138_s11 + $0x8] sm:$0xf] }
  0x88   : > { %1487 = vmatprep.subr.bf16.mxu0 %v1637_v3  ;;  %v1641_v10 = vld [vmem:[#allocation7 + $0x58] sm:$0xff]   ;;  %v372_v13 = vld [vmem:[%s2138_s11 + $0x14] sm:$0x1]  ;;  %v2171_v14 = vld [vmem:[%s2138_s11 + $0x18] sm:$0xf]  ;;  %v1373_v15 = vcombine.low %v2163_v9, %v2167_v12  ;;  %v397_v18 = vshrl.u32 %v2159_v7, 16 }
  0x89   : > { %v370_v11 = vld [vmem:[%s2138_s11 + $0xc] sm:$0x1]  ;;  %v374_v16 = vld [vmem:[%s2138_s11 + $0x1c] sm:$0x1]  ;;  %v2177_v17 = vld [vmem:[%s2138_s11 + $0x20] sm:$0xf] }
  0x8a   : > { %1456 = vmatpush3.bf16.msra.mxu1 %v1636_v2  ;;  %v400_v19 = vshll.u32 %v2159_v7, 16  ;;  %v406_v20 = vshll.u32 %v368_v8, 16  ;;  %v411_v21 = vshrl.u32 %v2163_v9, 16  ;;  %v414_v22 = vshll.u32 %v2163_v9, 16  ;;  %1493 = vmatprep.mubr.msk.bf16.mxu0 %vm553_vm2, %v1373_v15  ;;  %v376_v30 = vld [vmem:[%s2138_s11 + $0x24] sm:$0x1]  ;;  %vm2193_vm3 = vmor %vm393_vm0, %vm394_vm1 }
  0x8b   : > { %1488 = vmatpush3.bf16.msra.mxu0 %v1637_v3  ;;  %1457 = vmatprep.subr.bf16.mxu1 %v1638_v4  ;;  %v420_v23 = vshll.u32 %v370_v11, 16  ;;  %v425_v24 = vshrl.u32 %v2167_v12, 16  ;;  %v428_v25 = vshll.u32 %v2167_v12, 16  ;;  %v399_v26 = vrot.slane %v397_v18, 4  ;;  %v2187_v35 = vld [vmem:[#allocation7] sm:$0xff]   ;;  %v1647_v58 = vld [vmem:[#allocation7 + $0x68] sm:$0xff]  }
  0x8c   : > { %1489 = vmatprep.subr.bf16.mxu0 %v1639_v5  ;;  %v402_v27 = vrot.slane %v400_v19, 5  ;;  %v408_v28 = vrot.slane %v406_v20, 5  ;;  %v413_v29 = vrot.slane %v411_v21, 4  ;;  %v416_v31 = vrot.slane %v414_v22, 5  ;;  %v1645_v36 = vld [vmem:[#allocation7 + $0x60] sm:$0xff]   ;;  %v1646_v21 = vld [vmem:[#allocation7 + $0x8] sm:$0xff]  }
  0x8d   : > { %v422_v32 = vrot.slane %v420_v23, 5  ;;  %v427_v33 = vrot.slane %v425_v24, 4  ;;  %v430_v34 = vrot.slane %v428_v25, 5  ;;  %v434_v38 = vshll.u32 %v372_v13, 16  ;;  %v2209_v61 = vld [vmem:[%s2138_s11 + $0x28] sm:$0xf] }
  0x8e   : > { %1458 = vmatpush3.bf16.msra.mxu1 %v1638_v4  ;;  %v403_v37 = vor.u32 %v402_v27, %v399_v26  ;;  %v439_v39 = vshrl.u32 %v2171_v14, 16  ;;  %v442_v40 = vshll.u32 %v2171_v14, 16  ;;  %v417_v42 = vor.u32 %v416_v31, %v413_v29  ;;  %v378_v62 = vld [vmem:[%s2138_s11 + $0x2c] sm:$0x1]  ;;  %v2213_v63 = vld [vmem:[%s2138_s11 + $0x30] sm:$0xf] }
  0x8f   : > { %1490 = vmatpush3.bf16.msra.mxu0 %v1639_v5  ;;  %1459 = vmatprep.subr.bf16.mxu1 %v1640_v6  ;;  %v431_v43 = vor.u32 %v430_v34, %v427_v33  ;;  %v448_v44 = vshll.u32 %v374_v16, 16  ;;  %v453_v45 = vshrl.u32 %v2177_v17, 16  ;;  %v436_v47 = vrot.slane %v434_v38, 5  ;;  %v380_v4 = vld [vmem:[%s2138_s11 + $0x34] sm:$0x1]  ;;  %s2280_s29 = scalar_lea.vmem [#allocation8], %s1348_s26 }
  0x90   : > { %1491 = vmatprep.subr.bf16.mxu0 %v1641_v10  ;;  %v404_v46 = vrot.slane %v403_v37, 4  ;;  %v441_v48 = vrot.slane %v439_v39, 4  ;;  %v444_v49 = vrot.slane %v442_v40, 5  ;;  %v418_v50 = vrot.slane %v417_v42, 4  ;;  %v2225_v11 = vld [vmem:[%s2138_s11 + $0x38] sm:$0xf] }
  0x91   : > { %v432_v51 = vrot.slane %v431_v43, 4  ;;  %v450_v52 = vrot.slane %v448_v44, 5  ;;  %v455_v53 = vrot.slane %v453_v45, 4  ;;  %v456_v56 = vshll.u32 %v2177_v17, 16  ;;  %v382_v19 = vld [vmem:[%s2138_s11 + $0x3c] sm:$0x1] }
  0x92   : > { %1460 = vmatpush3.bf16.msra.mxu1 %v1640_v6  ;;  %v409_v54 = vsel %vm2193_vm3, %v404_v46, %v408_v28  ;;  %v445_v55 = vor.u32 %v444_v49, %v441_v48  ;;  %v462_v57 = vshll.u32 %v376_v30, 16  ;;  %v2204_v59 = vsel %vm2193_vm3, %v418_v50, %v422_v32  ;;  %v383_v29 = vld [vmem:[%s2148_s7] sm:$0xf]  ;;  %s1420_s17 = sshll.u32 %s1888_s21, 9  ;;  %s1131_s13 = sshll.u32 %s2280_s29, 4  ;;  %s2311_s13 = int_to_ptr.vmem [resolvable:$true] %s1131_s13 }
  0x93   : > { %1492 = vmatpush3.bf16.msra.mxu0 %v1641_v10  ;;  %1469 = vmatprep.subr.bf16.mxu1 %v2187_v35  ;;  %v1374_v60 = vcombine.low %v2171_v14, %v2177_v17  ;;  %v2217_v0 = vsel %vm2193_vm3, %v432_v51, %v436_v47  ;;  %v458_v2 = vrot.slane %v456_v56, 5  ;;  %v1349_v3 = vcombine.low %v409_v54, %v2204_v59  ;;  %v1650_v30 = vld [vmem:[#allocation7 + $0x70] sm:$0xff]   ;;  %v1652_v45 = vld [vmem:[#allocation7 + $0x78] sm:$0xff]   ;;  %s2309_s30 = scalar_lea.hbm %s2446_s3, %s1420_s17  ;;  %s1109_s25 = scalar_lea.sflag [#allocation4], %s2134_s27 }
  0x94   : > { %1501 = vmatprep.subr.bf16.mxu0 %v1645_v36  ;;  %v446_v1 = vrot.slane %v445_v55, 4  ;;  %v464_v5 = vrot.slane %v462_v57, 5  ;;  %v467_v6 = vshrl.u32 %v2209_v61, 16  ;;  %v470_v8 = vshll.u32 %v2209_v61, 16  ;;  %v1649_v44 = vld [vmem:[#allocation7 + $0x10] sm:$0xff]   ;;  %v1651_v57 = vld [vmem:[#allocation7 + $0x18] sm:$0xff]  }
  0x95   : > { %v476_v10 = vshll.u32 %v378_v62, 16  ;;  %v459_v15 = vor.u32 %v458_v2, %v455_v53  ;;  %1461 = vmatprep.mubr.msk.bf16.mxu1 %vm553_vm2, %v1349_v3  ;;  %v481_v16 = vshrl.u32 %v2213_v63, 16  ;;  %v484_v18 = vshll.u32 %v2213_v63, 16  ;;  %v384_v51 = vld [vmem:[%s2148_s7 + $0x4] sm:$0x1]  ;;  %s1746_s2 = scalar_lea.vmem %s2311_s13, 512 }
  0x96   : > { %1494 = vmatmul.mubr.msk.bf16.vlgmr.msra.gmra.mrb[0].mxu0 %vm553_vm2, %v1374_v60  ;;  %v2229_v13 = vsel %vm2193_vm3, %v446_v1, %v450_v52  ;;  %v469_v22 = vrot.slane %v467_v6, 4  ;;  %v472_v23 = vrot.slane %v470_v8, 5  ;;  %v1375_v26 = vcombine.low %v2209_v61, %v2213_v63  ;;  %p1747_p5 = scmp.ne.s32.totalorder %s2311_s13, %s1746_s2  ;;  %s1903_s12 = smov [#allocation8]  }
  0x97   : > { %1502 = vmatpush3.bf16.msra.mxu0 %v1645_v36  ;;  %v1350_v20 = vcombine.low %v2217_v0, %v2229_v13  ;;  %v478_v24 = vrot.slane %v476_v10, 5  ;;  %v460_v25 = vrot.slane %v459_v15, 4  ;;  %v483_v27 = vrot.slane %v481_v16, 4  ;;  %s1750_s14 = sshll.u32 %s1903_s12, 4  ;;  %s1751_s14 = int_to_ptr.vmem [resolvable:$false] %s1750_s14 }
  0x98   : > { %1503 = vmatprep.subr.bf16.mxu0 %v1647_v58  ;;  %v486_v28 = vrot.slane %v484_v18, 5  ;;  %v473_v31 = vor.u32 %v472_v23, %v469_v22  ;;  %v490_v32 = vshll.u32 %v380_v4, 16  ;;  %v495_v33 = vshrl.u32 %v2225_v11, 16  ;;  %1497 = vmatprep.mubr.msk.bf16.mxu0 %vm553_vm2, %v1375_v26  ;;  %p1748_p9 = pnand %p1747_p5, %p2031_p10  ;;  %s1752_s9 = scalar_lea.vmem %s1751_s14, 1024 }
  0x99   : > { %1462 = vmatmul.mubr.msk.bf16.vlgmr.msra.gmra.mrb[0].mxu1 %vm553_vm2, %v1350_v20  ;;  %v498_v34 = vshll.u32 %v2225_v11, 16  ;;  %v504_v37 = vshll.u32 %v382_v19, 16  ;;  %v1376_v38 = vcombine.low %v2225_v11, %v383_v29  ;;  %v465_v39 = vsel %vm2193_vm3, %v460_v25, %v464_v5  ;;  %p1753_p2 = scmp.lt.s32.totalorder %s2311_s13, %s1751_s14  ;;  %p1754_p7 = scmp.lt.s32.totalorder %s1752_s9, %s1746_s2 }
  0x9a   : > { %1470 = vmatpush3.bf16.msra.mxu1 %v2187_v35  ;;  %v487_v36 = vor.u32 %v486_v28, %v483_v27  ;;  %v1385_v40 = vcombine.low %v2204_v59, %v2217_v0  ;;  %v474_v42 = vrot.slane %v473_v31, 4  ;;  %v497_v43 = vrot.slane %v495_v33, 4  ;;  %p1749_p1 = pneg %p1748_p9 }
  0x9b   : > { %1504 = vmatpush3.bf16.msra.mxu0 %v1647_v58  ;;  %1471 = vmatprep.subr.bf16.mxu1 %v1646_v21  ;;  %v492_v46 = vrot.slane %v490_v32, 5  ;;  %v500_v47 = vrot.slane %v498_v34, 5  ;;  %v877_v48 = vshrl.u32 %v383_v29, 16  ;;  %v880_v50 = vshll.u32 %v383_v29, 16  ;;  %p1755_p4 = por %p1754_p7, %p1753_p2 }
  0x9c   : > { %v488_v35 = vrot.slane %v487_v36, 4  ;;  %1505 = vmatprep.subr.bf16.mxu0 %v1650_v30  ;;  %v479_v49 = vsel %vm2193_vm3, %v474_v42, %v478_v24  ;;  %v506_v54 = vrot.slane %v504_v37, 5  ;;  %v886_v58 = vshll.u32 %v384_v51, 16 }
  0x9d   : > { %v1351_v52 = vcombine.low %v465_v39, %v479_v49  ;;  %v501_v53 = vor.u32 %v500_v47, %v497_v43  ;;  %v879_v55 = vrot.slane %v877_v48, 4  ;;  %v882_v56 = vrot.slane %v880_v50, 5  ;;  %p1756_p8 = pnand %p1755_p4, %p1749_p1 }
  0x9e   : > { %1498 = vmatmul.mubr.msk.bf16.gmra.mrb[4].mxu0 %vm553_vm2, %v1376_v38  ;;  %1472 = vmatpush3.bf16.msra.mxu1 %v1646_v21  ;;  %v493_v59 = vsel %vm2193_vm3, %v488_v35, %v492_v46  ;;  %v1386_v62 = vcombine.low %v2229_v13, %v465_v39  ;;  %v1361_v2 = vcombine.low %v2159_v7, %v2163_v9  ;;  %v888_v3 = vrot.slane %v886_v58, 5 }
  0x9f   : > { %1506 = vmatpush3.bf16.msra.mxu0 %v1650_v30  ;;  %1473 = vmatprep.subr.bf16.mxu1 %v1649_v44  ;;  %v502_v60 = vrot.slane %v501_v53, 4  ;;  %v883_v0 = vor.u32 %v882_v56, %v879_v55  ;;  %v1387_v5 = vcombine.low %v479_v49, %v493_v59  ;;  %v1362_v7 = vcombine.low %v2167_v12, %v2171_v14 }
  0xa0   : > { %1507 = vmatprep.subr.bf16.mxu0 %v1652_v45  ;;  %1465 = vmatprep.mubr.msk.bf16.mxu1 %vm553_vm2, %v1351_v52  ;;  %v1363_v10 = vcombine.low %v2177_v17, %v2209_v61  ;;  %v1364_v13 = vcombine.low %v2213_v63, %v2225_v11  ;;  %vm1054_vm5 = vcmask 261120  }
  0xa1   : > { %1509 = vmatprep.mubr.msk.bf16.mxu0 %vm553_vm2, %v1385_v40  ;;  %v507_v1 = vsel %vm2193_vm3, %v502_v60, %v506_v54  ;;  %v884_v6 = vrot.slane %v883_v0, 4 }
  0xa2   : > { %1474 = vmatpush3.bf16.msra.mxu1 %v1649_v44  ;;  %v1352_v4 = vcombine.low %v493_v59, %v507_v1 }
  0xa3   : > { %1508 = vmatpush3.bf16.msra.mxu0 %v1652_v45  ;;  %1475 = vmatprep.subr.bf16.mxu1 %v1651_v57  ;;  %v889_v8 = vsel %vm2193_vm3, %v884_v6, %v888_v3 }
  0xa4   : > { %1466 = vmatmul.mubr.msk.bf16.gmra.mrb[4].mxu1 %vm553_vm2, %v1352_v4  ;;  %v1388_v9 = vcombine.low %v507_v1, %v889_v8 }
  0xa5   : > { %1477 = vmatprep.mubr.msk.bf16.mxu1 %vm553_vm2, %v1361_v2 }
  0xa6   : > { %1510 = vmatmul.mubr.msk.bf16.vlgmr.msra.gmra.mrb[0].mxu0 %vm553_vm2, %v1386_v62  ;;  %1476 = vmatpush3.bf16.msra.mxu1 %v1651_v57 }
  0xa7   : > { %1513 = vmatprep.mubr.msk.bf16.mxu0 %vm553_vm2, %v1387_v5 }
  0xac   : > { %1478 = vmatmul.mubr.msk.bf16.vlgmr.msra.gmra.mrb[0].mxu1 %vm553_vm2, %v1362_v7 }
  0xad   : > { %1481 = vmatprep.mubr.msk.bf16.mxu1 %vm553_vm2, %v1363_v10 }
  0xae   : > { %1514 = vmatmul.mubr.msk.bf16.gmra.mrb[4].mxu0 %vm553_vm2, %v1388_v9 }
  0xb4   : > { %1482 = vmatmul.mubr.msk.bf16.gmra.mrb[4].mxu1 %vm553_vm2, %v1364_v13 }
 0x179   : > { %v1511_v41 = vpop.f32.mrb[0].mxu0 }
 0x17a   : > { %v974_v15 = vpop.f32.mrb[1].mxu0 }
 0x17b   : > { %v1512_v16 = vpop.f32.mrb[2].mxu0 }
 0x17c   : > { %v977_v18 = vpop.f32.mrb[3].mxu0 }
 0x17f   : > { %v1479_v12 = vpop.f32.mrb[0].mxu1 }
 0x180   : > { %v1517_v19 = vadd.f32 %v1511_v41, %v1479_v12  ;;  %v721_v17 = vpop.f32.mrb[1].mxu1 }
 0x181   : > { %v1515_v14 = vpop.f32.mrb[4].mxu0  ;;  %v1518_v20 = vadd.f32 %v974_v15, %v721_v17  ;;  %v1480_v21 = vpop.f32.mrb[2].mxu1 }
 0x182   : > { %v990_v61 = vpop.f32.mrb[5].mxu0  ;;  %v1414_v23 = vpack.c.bf16 %v1517_v19, %v1517_v19  ;;  %v1519_v24 = vadd.f32 %v1512_v16, %v1480_v21  ;;  %v724_v63 = vpop.f32.mrb[3].mxu1  ;;  %v1080_v28 = vmul.f32 %v1517_v19, %v1517_v19  ;;  %v1058_v37 = vsel %vm1054_vm5, %v1517_v19, 0.0 }
 0x183   : > { %v1516_v22 = vpop.f32.mrb[6].mxu0  ;;  %v1412_v25 = vpack.c.bf16 %v1518_v20, %v1518_v20  ;;  %v1078_v26 = vmul.f32 %v1518_v20, %v1518_v20  ;;  %v1520_v27 = vadd.f32 %v977_v18, %v724_v63  ;;  %v1055_v30 = vsel %vm1054_vm5, %v1518_v20, 0.0 }
 0x184   : > { %v993_v11 = vpop.f32.mrb[7].mxu0  ;;  %1048 = vst.msk [vmem:[%s2280_s29 + $0x8] sm:$0xf] %vm1045_vm4, %v1414_v23  ;;  %v1415_v29 = vpack.c.bf16 %v1519_v24, %v1519_v24  ;;  %v1081_v34 = vmul.f32 %v1519_v24, %v1519_v24  ;;  %v1089_v35 = vsel %vm1054_vm5, %v1080_v28, 0.0  ;;  %v1060_v48 = vsel %vm1054_vm5, %v1519_v24, 0.0 }
 0x185   : > { %1046 = vst.msk [vmem:[%s2280_s29] sm:$0xf] %vm1045_vm4, %v1412_v25  ;;  %v1413_v31 = vpack.c.bf16 %v1520_v27, %v1520_v27  ;;  %v1056_v32 = vsel %vm1054_vm5, %v1520_v27, 0.0  ;;  %v1079_v33 = vmul.f32 %v1520_v27, %v1520_v27  ;;  %v1086_v38 = vsel %vm1054_vm5, %v1078_v26, 0.0 }
 0x186   : > { %1049 = vst.msk [vmem:[%s2280_s29 + $0xc] sm:$0xf] %vm1045_vm4, %v1415_v29  ;;  %v1057_v36 = vadd.f32 %v1056_v32, %v1055_v30  ;;  %v1091_v49 = vsel %vm1054_vm5, %v1081_v34, 0.0 }
 0x187   : > { %1047 = vst.msk [vmem:[%s2280_s29 + $0x4] sm:$0xf] %vm1045_vm4, %v1413_v31  ;;  %v1087_v39 = vsel %vm1054_vm5, %v1079_v33, 0.0  ;;  %v1483_v40 = vpop.f32.mrb[4].mxu1 }
 0x188   : > { %v1059_v42 = vadd.f32 %v1058_v37, %v1057_v36  ;;  %v1088_v43 = vadd.f32 %v1087_v39, %v1086_v38  ;;  %v1521_v44 = vadd.f32 %v1515_v14, %v1483_v40  ;;  %v737_v45 = vpop.f32.mrb[5].mxu1 }
 0x189   : > { %v1522_v46 = vadd.f32 %v990_v61, %v737_v45  ;;  %v1484_v47 = vpop.f32.mrb[6].mxu1 }
 0x18a   : > { %v1090_v50 = vadd.f32 %v1089_v35, %v1088_v43  ;;  %v1418_v51 = vpack.c.bf16 %v1521_v44, %v1521_v44  ;;  %v740_v52 = vpop.f32.mrb[7].mxu1  ;;  %v1061_v54 = vadd.f32 %v1060_v48, %v1059_v42  ;;  %v1523_v58 = vadd.f32 %v1516_v22, %v1484_v47 }
 0x18b   : > { %v1416_v53 = vpack.c.bf16 %v1522_v46, %v1522_v46  ;;  %v1062_v55 = vsel %vm1054_vm5, %v1522_v46, 0.0  ;;  %v1082_v56 = vmul.f32 %v1522_v46, %v1522_v46  ;;  %v1524_v59 = vadd.f32 %v993_v11, %v740_v52 }
 0x18c   : > { %1052 = vst.msk [vmem:[%s2280_s29 + $0x18] sm:$0xf] %vm1045_vm4, %v1418_v51  ;;  %v1092_v57 = vadd.f32 %v1091_v49, %v1090_v50  ;;  %v1063_v60 = vadd.f32 %v1062_v55, %v1061_v54  ;;  %v1419_v1 = vpack.c.bf16 %v1523_v58, %v1523_v58  ;;  %v1084_v2 = vmul.f32 %v1521_v44, %v1521_v44 }
 0x18d   : > { %1050 = vst.msk [vmem:[%s2280_s29 + $0x10] sm:$0xf] %vm1045_vm4, %v1416_v53  ;;  %v1093_v62 = vsel %vm1054_vm5, %v1082_v56, 0.0  ;;  %v1417_v3 = vpack.c.bf16 %v1524_v59, %v1524_v59  ;;  %v1064_v4 = vsel %vm1054_vm5, %v1524_v59, 0.0  ;;  %v1083_v5 = vmul.f32 %v1524_v59, %v1524_v59 }
 0x18e   : > { %v1094_v0 = vadd.f32 %v1093_v62, %v1092_v57  ;;  %1053 = vst.msk [vmem:[%s2280_s29 + $0x1c] sm:$0xf] %vm1045_vm4, %v1419_v1  ;;  %v1065_v6 = vadd.f32 %v1064_v4, %v1063_v60  ;;  %v1066_v8 = vsel %vm1054_vm5, %v1521_v44, 0.0  ;;  %v1085_v7 = vmul.f32 %v1523_v58, %v1523_v58 }
 0x18f   : > { %1051 = vst.msk [vmem:[%s2280_s29 + $0x14] sm:$0xf] %vm1045_vm4, %v1417_v3  ;;  %v1095_v9 = vsel %vm1054_vm5, %v1083_v5, 0.0 }
 0x190   : > { %v1067_v10 = vadd.f32 %v1066_v8, %v1065_v6  ;;  %v1096_v13 = vadd.f32 %v1095_v9, %v1094_v0 }
 0x191   : > { %1759 = shalt.err (!%p1756_p8)
}
 0x192   : > { %s1760_s8 = scalar_lea.hbm %s2309_s30, 512  ;;  %s1764_s20 = scalar_lea.hbm %s2446_s3, 1024 }
 0x193   : > { %p1761_p12 = scmp.ne.s32.totalorder %s2309_s30, %s1760_s8  ;;  %p1765_p6 = scmp.lt.u32.totalorder %s2309_s30, %s2446_s3 }
 0x194   : > { %p1766_p11 = scmp.lt.u32.totalorder %s1764_s20, %s1760_s8  ;;  %p1768_p5 = scmp.lt.u32.totalorder %s1760_s8, %s2309_s30 }
 0x195   : > { %p1762_p13 = pnand %p1761_p12, %p2031_p10 }
 0x196   : > { %p1767_p0 = por %p1766_p11, %p1765_p6 }
 0x197   : > { %p1763_p3 = pneg %p1762_p13 }
 0x198   : > { %p1769_p9 = por %p1768_p5, %p1767_p0 }
 0x19a   : > { %p1770_p1 = pnand %p1769_p9, %p1763_p3 }
 0x19c   : > { %1773 = shalt.err (!%p1770_p1)
}
 0x19d   : > { %s1904_s26 = smov 64   ;;  %s1905_s29 = smov 4   ;;  %v1097_v41 = vsel %vm1054_vm5, %v1084_v2, 0.0  ;;  %v1068_v15 = vsel %vm1054_vm5, %v1523_v58, 0.0  ;;  %v1099_v12 = vsel %vm1054_vm5, %v1085_v7, 0.0  ;;  %vm1076_vm6 = vcmask 253952  }
 0x19e   : > { %1550 = dma.vmem_to_hbm [thread:$0]  (%p2031_p10), %s2311_s13, 512, %s2309_s30, %s1109_s25, %s1904_s26, %s1904_s26, %s1905_s29   ;;  %v1069_v16 = vadd.f32 %v1068_v15, %v1067_v10  ;;  %v1098_v18 = vadd.f32 %v1097_v41, %v1096_v13 }
 0x19f   : > { %s1408_s17 = sshll.u32 %s1888_s21, 4  ;;  %s347_s13 = scalar_lea.vmem [#allocation9], %s2134_s27 }
 0x1a0   : > { %v1070_v14 = vrot.slane %v1069_v16, 4  ;;  %v1100_v19 = vadd.f32 %v1099_v12, %v1098_v18  ;;  %s1148_s15 = sshll.u32 %s347_s13, 4  ;;  %s353_s10 = scalar_lea.vmem [#allocation11], %s2134_s27  ;;  %s2357_s15 = int_to_ptr.vmem [resolvable:$true] %s1148_s15 }
 0x1a1   : > { %s1162_s30 = sshll.u32 %s353_s10, 4  ;;  %s2355_s12 = scalar_lea.hbm %s2447_s4, %s1408_s17  ;;  %s2365_s30 = int_to_ptr.vmem [resolvable:$true] %s1162_s30 }
 0x1a2   : > { %v1071_v17 = vadd.f32 %v1070_v14, %v1069_v16  ;;  %v1101_v61 = vrot.slane %v1100_v19, 4  ;;  %s2363_s9 = scalar_lea.hbm %s2448_s5, %s1408_s17  ;;  %s2369_s8 = scalar_lea.sflag [#allocation10], %s306_s0 }
 0x1a3   : > { %s1774_s16 = scalar_lea.vmem %s2357_s15, 16  ;;  %s1906_s11 = smov [#allocation9]  }
 0x1a4   : > { %v1072_v20 = vrot.slane %v1071_v17, 2  ;;  %v1102_v21 = vadd.f32 %v1101_v61, %v1100_v19  ;;  %p1775_p2 = scmp.ne.s32.totalorder %s2357_s15, %s1774_s16  ;;  %s1778_s20 = sshll.u32 %s1906_s11, 4  ;;  %s1779_s20 = int_to_ptr.vmem [resolvable:$false] %s1778_s20 }
 0x1a5   : > { %s1780_s28 = scalar_lea.vmem %s1779_s20, 32  ;;  %p1781_p8 = scmp.lt.s32.totalorder %s2357_s15, %s1779_s20 }
 0x1a6   : > { %v1073_v22 = vadd.f32 %v1072_v20, %v1071_v17  ;;  %v1103_v23 = vrot.slane %v1102_v21, 2  ;;  %p1776_p7 = pnand %p1775_p2, %p2031_p10  ;;  %p1782_p12 = scmp.lt.s32.totalorder %s1780_s28, %s1774_s16 }
 0x1a8   : > { %v1104_v24 = vadd.f32 %v1103_v23, %v1102_v21  ;;  %v1074_v63 = vrot.slane %v1073_v22, 1  ;;  %p1777_p4 = pneg %p1776_p7  ;;  %p1783_p13 = por %p1782_p12, %p1781_p8 }
 0x1aa   : > { %v1105_v11 = vrot.slane %v1104_v24, 1  ;;  %v1075_v25 = vadd.f32 %v1074_v63, %v1073_v22  ;;  %p1784_p3 = pnand %p1783_p13, %p1777_p4 }
 0x1ac   : > { %1077 = vst.msk [vmem:[%s347_s13] sm:$0x1] %vm1076_vm6, %v1075_v25  ;;  %v1106_v26 = vadd.f32 %v1105_v11, %v1104_v24 }
 0x1ad   : > { %1787 = shalt.err (!%p1784_p3)
}
 0x1ae   : > { %s1788_s24 = scalar_lea.hbm %s2355_s12, 16  ;;  %s1792_s26 = scalar_lea.hbm %s2447_s4, 32 }
 0x1af   : > { %p1789_p6 = scmp.ne.s32.totalorder %s2355_s12, %s1788_s24  ;;  %p1793_p5 = scmp.lt.u32.totalorder %s2355_s12, %s2447_s4 }
 0x1b0   : > { %p1794_p9 = scmp.lt.u32.totalorder %s1792_s26, %s1788_s24  ;;  %p1796_p2 = scmp.lt.u32.totalorder %s1788_s24, %s2355_s12 }
 0x1b1   : > { %p1790_p11 = pnand %p1789_p6, %p2031_p10 }
 0x1b2   : > { %p1795_p1 = por %p1794_p9, %p1793_p5 }
 0x1b3   : > { %p1791_p0 = pneg %p1790_p11 }
 0x1b4   : > { %p1797_p7 = por %p1796_p2, %p1795_p1 }
 0x1b6   : > { %p1798_p4 = pnand %p1797_p7, %p1791_p0 }
 0x1b8   : > { %1801 = shalt.err (!%p1798_p4)
}
 0x1b9   : > { %1551 = dma.vmem_to_hbm [thread:$0]  (%p2031_p10), %s2357_s15, 16, %s2355_s12, %s2369_s8   ;;  %1107 = vst.msk [vmem:[%s353_s10] sm:$0x1] %vm1076_vm6, %v1106_v26 }
 0x1ba   : > { %s1802_s13 = scalar_lea.vmem %s2365_s30, 16  ;;  %s1907_s25 = smov [#allocation11]  }
 0x1bb   : > { %p1803_p8 = scmp.ne.s32.totalorder %s2365_s30, %s1802_s13  ;;  %s1806_s2 = sshll.u32 %s1907_s25, 4  ;;  %s1807_s2 = int_to_ptr.vmem [resolvable:$false] %s1806_s2 }
 0x1bc   : > { %s1808_s21 = scalar_lea.vmem %s1807_s2, 32  ;;  %p1809_p3 = scmp.lt.s32.totalorder %s2365_s30, %s1807_s2 }
 0x1bd   : > { %p1804_p12 = pnand %p1803_p8, %p2031_p10  ;;  %p1810_p6 = scmp.lt.s32.totalorder %s1808_s21, %s1802_s13 }
 0x1bf   : > { %p1805_p13 = pneg %p1804_p12  ;;  %p1811_p11 = por %p1810_p6, %p1809_p3 }
 0x1c1   : > { %p1812_p0 = pnand %p1811_p11, %p1805_p13 }
 0x1c3   : > { %1815 = shalt.err (!%p1812_p0)
}
 0x1c4   : > { %s1816_s27 = scalar_lea.hbm %s2363_s9, 16  ;;  %s1820_s12 = scalar_lea.hbm %s2448_s5, 32 }
 0x1c5   : > { %p1817_p5 = scmp.ne.s32.totalorder %s2363_s9, %s1816_s27  ;;  %p1821_p2 = scmp.lt.u32.totalorder %s2363_s9, %s2448_s5 }
 0x1c6   : > { %p1822_p7 = scmp.lt.u32.totalorder %s1820_s12, %s1816_s27  ;;  %p1824_p8 = scmp.lt.u32.totalorder %s1816_s27, %s2363_s9 }
 0x1c7   : > { %p1818_p9 = pnand %p1817_p5, %p2031_p10 }
 0x1c8   : > { %p1823_p4 = por %p1822_p7, %p1821_p2 }
 0x1c9   : > { %p1819_p1 = pneg %p1818_p9 }
 0x1ca   : > { %p1825_p12 = por %p1824_p8, %p1823_p4 }
 0x1cc   : > { %p1826_p13 = pnand %p1825_p12, %p1819_p1 }
 0x1ce   : > { %1829 = shalt.err (!%p1826_p13)
}
 0x1cf   : > { %1552 = dma.vmem_to_hbm [thread:$0]  (%p2031_p10), %s2365_s30, 16, %s2363_s9, %s2369_s8  }
 0x1d0 PF: > { %s2486_s11 = sld [smem:[#allocation18_spill]]  ;;  %s1174_s20 = sand.u32 1, %s1876_s18  }
 0x1d1   : > { %p2488_p6 = scmp.ge.s32.totalorder %s1896_s23, 2  ;;  %s1175_s28 = scalar_lea.sflag [#allocation4], %s1174_s20 }
 0x1d6   : > { %p2487_p3 = scmp.ne.s32.totalorder %s2486_s11, 0 }
 0x1d8   : > { %p1568_p11 = pnand %p2488_p6, %p2487_p3 }
 0x1da   : > { %1867 = dma.done.wait (!%p1568_p11), %s1175_s28, 512  }
 0x1db   : > { %1869 = vsyncadd (!%p1568_p11), %s1175_s28, 4294966784  ;;  %s2489_s24 = sadd.s32 4294967294, %s1896_s23  }
 0x1dc   : > { %s1183_s0 = sand.u32 1, %s2489_s24  }
 0x1dd   : > { %s1184_s7 = scalar_lea.sflag [#allocation10], %s1183_s0 }
 0x1de   : > { %1871 = dma.done.wait (!%p1568_p11), %s1184_s7, 32  }
 0x1df   : > { %1873 = vsyncadd (!%p1568_p11), %s1184_s7, 4294967264  ;;  %s28_s23 = sadd.s32 1, %s1896_s23   ;;  %s2490_s6 = sld [smem:[#allocation17_spill]] }
 0x1e0   : > { %p25_p10 = scmp.ge.s32.totalorder %s28_s23, 4   ;;  %s2491_s20 = sld [smem:[#allocation20_spill]] }
 0x1e1   : > { %s2492_s30 = sld [smem:[#allocation19_spill]]  ;;  %s2493_s18 = smov %s1880_s19 }
 0x1e2   : > { %s2495_s21 = smov %s1892_s22  ;;  %27 = sbr.rel (!%p25_p10) target bundleno = 13 (0xd), region = 129 }
 0x1e5   : > { %s2494_s19 = smov %s2490_s6 }
 0x1e7   : > { %s2496_s22 = smov %s2492_s30 }
 0x1e9   :  { %1196 = vsyncpa [#allocation3], 1 }
 0x1ea   :  { %1198 = vsyncpa [#allocation3 + $0x1], 1 }
 0x1eb   :  { %1199 = vsyncpa [#allocation6], 1 }
 0x1ec   :  { %1201 = vsyncpa [#allocation6 + $0x1], 1 }
 0x1ed   :  { %1202 = vsyncpa [#allocation4], 1 }
 0x1ee   :  { %1204 = vsyncpa [#allocation4 + $0x1], 1 }
 0x1ef   :  { %1205 = vsyncpa [#allocation10], 1 }
 0x1f0   :  { %1207 = vsyncpa [#allocation10 + $0x1], 1 }

// kernel: tile.13
= control target key start
LH: loop header
LB: loop body
LE: loop exit
PB: predicated region body
PF: predicated region fallthrough
CT: control target
= control target key end

     0   :  { %s28_s0 = inlined_call_operand.vmem [shape: f32[64], index: 0, kind: input, shape index: {}]   ;;  %s29_s1 = inlined_call_operand.vmem [shape: f32[16,64], index: 1, kind: output, shape index: {}]  }
   0x1   :  { %v4_v0 = vld [vmem:[%s28_s0] ss:$0 sm:$0xff] }
   0x2   :  { %5 = vst [vmem:[%s29_s1] sm:$0xff] %v4_v0  ;;  %8 = vst [vmem:[%s29_s1 + $0x8] sm:$0xff] %v4_v0 }

// kernel: tile.14
= control target key start
LH: loop header
LB: loop body
LE: loop exit
PB: predicated region body
PF: predicated region fallthrough
CT: control target
= control target key end

     0   :  { %vm4_vm0 = vcmask 523264   ;;  %s134_s0 = inlined_call_operand.vmem [shape: f32[16,64], index: 0, kind: input, shape index: {}]   ;;  %s135_s1 = inlined_call_operand.hbm [shape: f32[1,1024], index: 1, kind: output, shape index: {}]  }
   0x1   :  { %v77_v0 = vld [vmem:[%s134_s0 + $0x1] ss:$2 sm:$0xff]   ;;  %v3_v1 = vld [vmem:[%s134_s0] ss:$2 sm:$0xff]   ;;  %s104_s0 = smov 64  }
   0x2   :  { %9 = vrot.lane.b32.xlu0 %v77_v0, %s104_s0  ;;  %5 = vst.msk [vmem:[#allocation2] ss:$8 sm:$0xf] %vm4_vm0, %v3_v1   ;;  %6 = vst.msk [vmem:[#allocation2] ss:$8 sm:$0xf0] %vm4_vm0, %v3_v1  }
   0x3   :  { %2 = vsyncpa [#allocation1], 0  ;;  %vm11_vm1 = vcmask 1048064   ;;  %s105_s10 = smov [#allocation0]  }
   0x4   :  { %s65_s11 = sshll.u32 %s105_s10, 4  ;;  %s66_s11 = int_to_ptr.vmem [resolvable:$true] %s65_s11 }
   0x5   :  { %s80_s12 = scalar_lea.vmem %s66_s11, 128  ;;  %p85_p1 = scmp.lt.s32.totalorder %s66_s11, %s66_s11 }
   0x6   :  { %p81_p0 = scmp.ne.s32.totalorder %s66_s11, %s80_s12  ;;  %p86_p2 = scmp.lt.s32.totalorder %s80_s12, %s80_s12 }
   0x8   :  { %p87_p3 = por %p86_p2, %p85_p1 }
   0xa   :  { %p88_p4 = pnand %p87_p3, %p81_p0 }
  0x74   :  { %v10_v2 = vpop.permute.xlu0 %9  }
  0x75   :  { %12 = vst.msk [vmem:[#allocation2] ss:$8 sm:$0xf] %vm11_vm1, %v10_v2   ;;  %13 = vst.msk [vmem:[#allocation2] ss:$8 sm:$0xf0] %vm11_vm1, %v10_v2  }
  0x7c   :  { %v17_v3 = vld [vmem:[#allocation2] sm:$0x1]  ;;  %v21_v4 = vld [vmem:[#allocation2 + $0x8] sm:$0x1]  ;;  %v26_v5 = vld [vmem:[#allocation2 + $0x10] sm:$0x1] }
  0x7d   :  { %19 = vst [vmem:[#allocation0] sm:$0x1] %v17_v3  ;;  %24 = vst [vmem:[#allocation0 + $0x1] sm:$0x1] %v21_v4  ;;  %v32_v6 = vld [vmem:[#allocation2 + $0x18] sm:$0x1] }
  0x7e   :  { %30 = vst [vmem:[#allocation0 + $0x2] sm:$0x1] %v26_v5  ;;  %v38_v7 = vld [vmem:[#allocation2 + $0x20] sm:$0x1]  ;;  %v44_v8 = vld [vmem:[#allocation2 + $0x28] sm:$0x1] }
  0x7f   :  { %36 = vst [vmem:[#allocation0 + $0x3] sm:$0x1] %v32_v6  ;;  %42 = vst [vmem:[#allocation0 + $0x4] sm:$0x1] %v38_v7  ;;  %v50_v9 = vld [vmem:[#allocation2 + $0x30] sm:$0x1] }
  0x80   :  { %48 = vst [vmem:[#allocation0 + $0x5] sm:$0x1] %v44_v8  ;;  %v56_v10 = vld [vmem:[#allocation2 + $0x38] sm:$0x1]  ;;  %54 = vst [vmem:[#allocation0 + $0x6] sm:$0x1] %v50_v9 }
  0x81   :  { %60 = vst [vmem:[#allocation0 + $0x7] sm:$0x1] %v56_v10 }
  0x82   :  { %91 = shalt.err (!%p88_p4)
}
  0x83   :  { %s92_s15 = scalar_lea.hbm %s135_s1, 128 }
  0x84   :  { %p93_p5 = scmp.ne.s32.totalorder %s135_s1, %s92_s15  ;;  %p96_p6 = scmp.lt.u32.totalorder %s92_s15, %s135_s1 }
  0x86   :  { %p98_p7 = pnand %p96_p6, %p93_p5 }
  0x88   :  { %101 = shalt.err (!%p98_p7)
}
  0x89   :  { %68 = dma.vmem_to_hbm [thread:$0]  %s66_s11, 128, %s135_s1, [#allocation1]  }
  0x8a   :  { %102 = dma.done.wait [#allocation1], 128  }
  0x8b   :  { %103 = vsyncadd [#allocation1], 4294967168 }
  0x8c   :  { %70 = vsyncpa [#allocation1], 1 }

// kernel: discriminator2d_forward.8
= control target key start
LH: loop header
LB: loop body
LE: loop exit
PB: predicated region body
PF: predicated region fallthrough
CT: control target
= control target key end

     0   :  { %s2303_s0 = inlined_call_operand.hbm [shape: bf16[2,5,5,128], index: 0, kind: input, shape index: {}, may-alias: {0,1}]   ;;  %s2304_s1 = inlined_call_operand.hbm [shape: bf16[2,5,5,128], index: 1, kind: input, shape index: {}, may-alias: {0,1}]   ;;  %s2305_s2 = inlined_call_operand.hbm [shape: bf16[4,128,64], index: 2, kind: input, shape index: {}]   ;;  %s2306_s3 = inlined_call_operand.hbm [shape: bf16[32,64], index: 3, kind: output, shape index: {0}]   ;;  %s2307_s4 = inlined_call_operand.hbm [shape: f32[2,1,64], index: 4, kind: output, shape index: {1}]   ;;  %s2308_s5 = inlined_call_operand.hbm [shape: f32[2,1,64], index: 5, kind: output, shape index: {2}]  }
   0x1   :  { %2320 = sst [smem:[#allocation21_spill]] %s2303_s0 }
   0x2   :  { %2321 = sst [smem:[#allocation22_spill]] %s2305_s2 }
   0x3   :  { %11 = vsyncpa [#allocation3], 0 }
   0x4   :  { %13 = vsyncpa [#allocation3 + $0x1], 0 }
   0x5   :  { %14 = vsyncpa [#allocation6], 0 }
   0x6   :  { %16 = vsyncpa [#allocation6 + $0x1], 0 }
   0x7   :  { %17 = vsyncpa [#allocation4], 0 }
   0x8   :  { %19 = vsyncpa [#allocation4 + $0x1], 0 }
   0x9   :  { %20 = vsyncpa [#allocation10], 0 }
   0xa   :  { %22 = vsyncpa [#allocation10 + $0x1], 0  ;;  %s1847_s18 = smov 0   ;;  %s1849_s19 = smov 0  }
   0xb   :  { %s1851_s20 = smov 0   ;;  %s1853_s21 = smov 0  }
   0xc   :  { %s1855_s22 = smov 0   ;;  %s1857_s23 = smov 0  }
   0xd LB: > { %2322 = sst [smem:[#allocation17_spill]] %s1790_s20  ;;  %s1878_s24 = sadd.s32 4294967295, %s1802_s23   ;;  %s1802_s23 = sphi %s1857_s23, %s28_s23   ;;  %s1798_s22 = sphi %s1855_s22, %s2360_s22   ;;  %s1794_s21 = sphi %s1853_s21, %s2359_s21   ;;  %s1790_s20 = sphi %s1851_s20, %s2355_s20   ;;  %s1786_s19 = sphi %s1849_s19, %s2358_s19   ;;  %s1782_s18 = sphi %s1847_s18, %s2357_s18  }
   0xe   : > { %s2312_s25 = sadd.s32 4294967294, %s1802_s23   ;;  %p62_p0 = scmp.ne.s32.totalorder %s1786_s19, %s1782_s18 }
   0xf   : > { %p2309_p1 = scmp.eq.s32.totalorder %s1878_s24, 0  ;;  %p147_p3 = scmp.eq.s32.totalorder %s2312_s25, 1 }
  0x10   : > { %p1250_p5 = scmp.ge.s32.totalorder %s1802_s23, 1  ;;  %p210_p7 = scmp.lt.s32.totalorder %s1802_s23, 3 }
  0x11   : > { %p1889_p4 = por %p2309_p1, %p62_p0  ;;  %p1894_p6 = por %p147_p3, %p62_p0 }
  0x12   : > { %p1899_p8 = pnand %p1250_p5, %p210_p7  ;;  %s1804_s29 = smov [#allocation7]  }
  0x13   : > { %s2323_s26 = scalar_select %p1889_p4, 1, 0 }
  0x14   : > { %s2324_s27 = scalar_select %p1894_p6, 1, 0 }
  0x15   : > { %s2326_s28 = scalar_select %p1899_p8, 1, 0 }
  0x16   : > { %2325 = sst [smem:[#allocation18_spill]] %s2324_s27  ;;  %s222_s30 = sshll.u32 %s1804_s29, 4  ;;  %s223_s30 = int_to_ptr.vmem [resolvable:$true] %s222_s30 }
  0x17   : > { %p1447_p9 = pneg %p1899_p8  ;;  %s40_s7 = sadd.s32 1, %s1798_s22 }
  0x18   : > { %s2328_s2 = sld [smem:[#allocation22_spill]] }
  0x19   : > { %p1908_p11 = pnand %p1447_p9, %p2309_p1 }
  0x1b   : > { %p1565_p13 = pneg %p1908_p11 }
  0x1e   : > { %s1563_s10 = scalar_lea.hbm %s2328_s2, 4096 }
  0x1f   : > { %p1564_p12 = scmp.ne.s32.totalorder %s2328_s2, %s1563_s10  ;;  %p1570_p5 = scmp.lt.u32.totalorder %s1563_s10, %s2328_s2 }
  0x21   : > { %p1566_p0 = pnand %p1565_p13, %p1564_p12 }
  0x23   : > { %p1567_p3 = pneg %p1566_p0 }
  0x25   : > { %p1572_p7 = pnand %p1570_p5, %p1567_p3 }
  0x27   : > { %1575 = shalt.err (!%p1572_p7)
}
  0x28   : > { %s1576_s15 = scalar_lea.vmem %s223_s30, 4096  ;;  %p1584_p2 = scmp.lt.s32.totalorder %s223_s30, %s223_s30 }
  0x29   : > { %p1577_p9 = scmp.ne.s32.totalorder %s223_s30, %s1576_s15  ;;  %p1585_p6 = scmp.lt.s32.totalorder %s1576_s15, %s1576_s15 }
  0x2b   : > { %p1579_p10 = pnand %p1577_p9, %p1565_p13  ;;  %p1586_p4 = por %p1585_p6, %p1584_p2 }
  0x2d   : > { %p1580_p1 = pneg %p1579_p10 }
  0x2f   : > { %p1587_p8 = pnand %p1586_p4, %p1580_p1 }
  0x31   : > { %1590 = shalt.err (!%p1587_p8)
}
  0x32   : > { %s2314_s16 = smov 64   ;;  %s2315_s17 = smov 4  }
  0x33   : > { %1450 = dma.hbm_to_vmem [thread:$0]  (!%p1908_p11), %s2328_s2, 4096, %s223_s30, [#allocation6], %s2314_s16, %s2314_s16, %s2315_s17  }
  0x34   : > { %p42_p1 = scmp.ge.s32.totalorder %s40_s7, 2  ;;  %s49_s9 = sadd.s32 1, %s1790_s20 }
  0x35   : > { %p56_p2 = scmp.ne.s32.totalorder %s1790_s20, %s1786_s19  ;;  %p57_p4 = scmp.eq.s32.totalorder %s1802_s23, 0 }
  0x36   : > { %s2362_s7 = smov (%p42_p1, %s40_s7), 0  ;;  %p2330_p8 = scmp.eq.s32.totalorder %s1878_s24, 1 }
  0x37   : > { %2329 = sst [smem:[#allocation19_spill]] %s2362_s7  ;;  %p58_p6 = por %p57_p4, %p56_p2 }
  0x38   : > { %p1940_p10 = por %p2330_p8, %p56_p2  ;;  %s44_s10 = ssub.s32 %s1798_s22, %s2362_s7 }
  0x39   : > { %p1469_p12 = scmp.lt.s32.totalorder %s1802_s23, 2  ;;  %p47_p13 = scmp.eq.s32.totalorder %s44_s10, 0 }
  0x3a   : > { %s2331_s6 = scalar_select %p1940_p10, 1, 0 }
  0x3b   : > { %s1948_s11 = sand.u32 1, %s1790_s20   ;;  %s2313_s13 = smul.u32 320, %s1798_s22 }
  0x3c   : > { %s1253_s30 = sshll.u32 %s1948_s11, 4  ;;  %p1955_p11 = pnand %p1469_p12, %p58_p6 }
  0x3d   : > { %s1952_s12 = scalar_select %p47_p13, %s1790_s20, %s49_s9  }
  0x3e   : > { %s240_s14 = scalar_lea.vmem [#allocation2], %s1253_s30  ;;  %s2334_s0 = sld [smem:[#allocation21_spill]] }
  0x3f   : > { %2332 = sst [smem:[#allocation20_spill]] %s1952_s12  ;;  %s255_s15 = sshll.u32 %s240_s14, 4  ;;  %s1966_s15 = int_to_ptr.vmem [resolvable:$true] %s255_s15 }
  0x40   : > { %s237_s30 = scalar_lea.sflag [#allocation3], %s1948_s11  ;;  %p1593_p3 = pneg %p1955_p11 }
  0x44   : > { %s1964_s10 = scalar_lea.hbm %s2334_s0, %s2313_s13  ;;  %s1596_s13 = scalar_lea.hbm %s2334_s0, 640 }
  0x45   : > { %s1591_s14 = scalar_lea.hbm %s1964_s10, 256  ;;  %p1597_p9 = scmp.lt.u32.totalorder %s1964_s10, %s2334_s0 }
  0x46   : > { %p1592_p0 = scmp.ne.s32.totalorder %s1964_s10, %s1591_s14  ;;  %p1598_p1 = scmp.lt.u32.totalorder %s1596_s13, %s1591_s14 }
  0x47   : > { %p1600_p4 = scmp.lt.u32.totalorder %s1591_s14, %s1964_s10 }
  0x48   : > { %p1594_p5 = pnand %p1593_p3, %p1592_p0  ;;  %p1599_p2 = por %p1598_p1, %p1597_p9 }
  0x4a   : > { %p1595_p7 = pneg %p1594_p5  ;;  %p1601_p6 = por %p1600_p4, %p1599_p2 }
  0x4c   : > { %p1602_p8 = pnand %p1601_p6, %p1595_p7 }
  0x4e   : > { %1605 = shalt.err (!%p1602_p8)
}
  0x4f   : > { %s1606_s9 = scalar_lea.vmem %s1966_s15, 256  ;;  %s1807_s25 = smov [#allocation2]  }
  0x50   : > { %p1607_p12 = scmp.ne.s32.totalorder %s1966_s15, %s1606_s9  ;;  %s1611_s8 = sshll.u32 %s1807_s25, 4  ;;  %s1612_s8 = int_to_ptr.vmem [resolvable:$false] %s1611_s8 }
  0x51   : > { %s1613_s16 = scalar_lea.vmem %s1612_s8, 512  ;;  %p1614_p5 = scmp.lt.s32.totalorder %s1966_s15, %s1612_s8 }
  0x52   : > { %p1609_p13 = pnand %p1607_p12, %p1593_p3  ;;  %p1615_p9 = scmp.lt.s32.totalorder %s1613_s16, %s1606_s9 }
  0x54   : > { %p1610_p0 = pneg %p1609_p13  ;;  %p1616_p1 = por %p1615_p9, %p1614_p5 }
  0x56   : > { %p1617_p2 = pnand %p1616_p1, %p1610_p0 }
  0x58   : > { %1620 = shalt.err (!%p1617_p2)
}
  0x59   : > { %s2335_s17 = smov 4   ;;  %s2336_s13 = smov 64  }
  0x5a   : > { %1454 = dma.hbm_to_vmem [thread:$0]  (!%p1955_p11), %s1964_s10, 256, %s1966_s15, %s237_s30, %s2336_s13, %s2336_s13, %s2335_s17  }
  0x5b   : > { %s1255_s14 = sshll.u32 %s1948_s11, 2  ;;  %s2337_s25 = smul.u32 320, %s1798_s22 }
  0x5c   : > { %s269_s2 = scalar_lea.vmem [#allocation5], %s1255_s14  ;;  %s2338_s12 = sand.u32 1, %s1802_s23  }
  0x5d   : > { %s1136_s16 = scalar_lea.hbm %s2304_s1, %s2337_s25  ;;  %s280_s7 = sshll.u32 %s269_s2, 4  ;;  %s281_s7 = int_to_ptr.vmem [resolvable:$true] %s280_s7 }
  0x5e   : > { %s2006_s0 = scalar_lea.hbm %s1136_s16, 256  ;;  %s266_s20 = scalar_lea.sflag [#allocation6], %s2338_s12 }
  0x5f   : > { %s1651_s27 = scalar_lea.hbm %s1136_s16, 320  ;;  %s1626_s10 = scalar_lea.hbm %s2304_s1, 640 }
  0x60   : > { %p1622_p7 = scmp.ne.s32.totalorder %s2006_s0, %s1651_s27  ;;  %p1627_p8 = scmp.lt.u32.totalorder %s2006_s0, %s2304_s1 }
  0x61   : > { %p1628_p12 = scmp.lt.u32.totalorder %s1626_s10, %s1651_s27  ;;  %p1630_p0 = scmp.lt.u32.totalorder %s1651_s27, %s2006_s0 }
  0x62   : > { %p1624_p4 = pnand %p1622_p7, %p1593_p3 }
  0x63   : > { %p1629_p13 = por %p1628_p12, %p1627_p8 }
  0x64   : > { %p1625_p6 = pneg %p1624_p4 }
  0x65   : > { %p1631_p5 = por %p1630_p0, %p1629_p13 }
  0x67   : > { %p1632_p9 = pnand %p1631_p5, %p1625_p6 }
  0x69   : > { %1635 = shalt.err (!%p1632_p9)
}
  0x6a   : > { %s1636_s2 = scalar_lea.vmem %s281_s7, 64  ;;  %s1808_s12 = smov [#allocation5]  }
  0x6b   : > { %p1637_p1 = scmp.ne.s32.totalorder %s281_s7, %s1636_s2  ;;  %s1641_s13 = sshll.u32 %s1808_s12, 4  ;;  %s1642_s13 = int_to_ptr.vmem [resolvable:$false] %s1641_s13 }
  0x6c   : > { %s1643_s14 = scalar_lea.vmem %s1642_s13, 128  ;;  %p1644_p4 = scmp.lt.s32.totalorder %s281_s7, %s1642_s13 }
  0x6d   : > { %p1639_p2 = pnand %p1637_p1, %p1593_p3  ;;  %p1645_p10 = scmp.lt.s32.totalorder %s1643_s14, %s1636_s2 }
  0x6f   : > { %p1640_p7 = pneg %p1639_p2  ;;  %p1646_p8 = por %p1645_p10, %p1644_p4 }
  0x71   : > { %p1647_p12 = pnand %p1646_p8, %p1640_p7 }
  0x73   : > { %1650 = shalt.err (!%p1647_p12)
}
  0x74   : > { %1457 = dma.hbm_to_vmem [thread:$0]  (!%p1955_p11), %s2006_s0, 64, %s281_s7, %s266_s20  }
  0x75   : > { %p2339_p6 = scmp.ne.s32.totalorder %s2326_s28, 0 }
  0x76   : > { %s2031_s27 = sand.u32 (!%p2339_p6), 1, %s1786_s19   ;;  %p2340_p10 = scmp.ne.s32.totalorder (!%p2339_p6), %s2323_s26, 0 }
  0x77   : > { %289 = sbr.rel (%p2339_p6) target bundleno = 482 (0x1e2), region = 32  ;;  %s1258_s25 = sshll.u32 (!%p2339_p6), %s2031_s27, 4 }
  0x78   : > { %s292_s9 = scalar_lea.sflag (!%p2339_p6), [#allocation3], %s2031_s27  ;;  %s2035_s8 = scalar_lea.vmem (!%p2339_p6), [#allocation2], %s1258_s25 }
  0x7e   : > { %1761 = dma.done.wait (%p2340_p10), %s292_s9, 256  }
  0x7f   : > { %1763 = vsyncadd (%p2340_p10), %s292_s9, 4294967040  ;;  %s300_s0 = sand.u32 1, %s1878_s24   ;;  %s1259_s20 = sshll.u32 %s2031_s27, 2 }
  0x80   : > { %s301_s28 = scalar_lea.sflag [#allocation6], %s300_s0  ;;  %s2045_s7 = scalar_lea.vmem [#allocation5], %s1259_s20 }
  0x81   : > { %1765 = dma.done.wait (%p2340_p10), %s301_s28, 64  }
  0x82   : > { %1767 = vsyncadd (%p2340_p10), %s301_s28, 4294967232  ;;  %p2341_p11 = scmp.eq.s32.totalorder %s1878_s24, 0 }
  0x84   : > { %1769 = dma.done.wait (%p2341_p11), [#allocation6], 4096   ;;  %p2342_p3 = pmov %p2341_p11 }
  0x85   : > { %v1809_v0 = vmov 0.0   ;;  %vm1810_vm0 = vmmov 0   ;;  %v1528_v1 = vld [vmem:[#allocation7 + $0x40] sm:$0xff]   ;;  %v1530_v3 = vld [vmem:[#allocation7 + $0x48] sm:$0xff]   ;;  %v1811_v5 = vmov 1983009808   ;;  %v388_v7 = vlaneseq }
  0x86   : > { %1771 = vsyncadd (%p2342_p3), [#allocation6], 4294963200  ;;  %1342 = vmatprep.subr.bf16.mxu1 %v1809_v0  ;;  %1382 = vmatprep.subr.bf16.mxu0 %v1809_v0  ;;  %v1529_v2 = vld [vmem:[#allocation7 + $0x80] sm:$0xff]   ;;  %v1531_v4 = vld [vmem:[#allocation7 + $0x88] sm:$0xff]   ;;  %v386_v6 = vunpack.c.l.s4 %v1811_v5  ;;  %vm417_vm1 = vsmask.f32 1280 }
  0x87   : > { %1358 = vmatprep.mubr.msk.bf16.mxu1 %vm1810_vm0, %v1809_v0  ;;  %1398 = vmatprep.mubr.msk.bf16.mxu0 %vm1810_vm0, %v1809_v0  ;;  %v1532_v8 = vld [vmem:[#allocation7 + $0x50] sm:$0xff]   ;;  %v389_v11 = vshrl.u32 %v388_v7, 7  ;;  %v1534_v12 = vld [vmem:[#allocation7 + $0x58] sm:$0xff]   ;;  %vm418_vm2 = vsmask.f32 3336  ;;  %v1536_v15 = vld [vmem:[#allocation7 + $0x60] sm:$0xff]  }
  0x88   : > { %1343 = vmatpush3.bf16.msra.mxu1 %v1528_v1  ;;  %1383 = vmatpush3.bf16.msra.mxu0 %v1529_v2  ;;  %v1533_v9 = vld [vmem:[#allocation7 + $0x90] sm:$0xff]   ;;  %v387_v10 = vunpack.c.0.s8 %v386_v6  ;;  %v1535_v13 = vld [vmem:[#allocation7 + $0x98] sm:$0xff]   ;;  %vm420_vm3 = vsmask.f32 5392  ;;  %v1537_v16 = vld [vmem:[#allocation7 + $0xa0] sm:$0xff]   ;;  %s1261_s26 = sshll.u32 %s2031_s27, 3 }
  0x89   : > { %1344 = vmatprep.subr.bf16.mxu1 %v1809_v0  ;;  %1384 = vmatprep.subr.bf16.mxu0 %v1809_v0  ;;  %v2072_v17 = vld [vmem:[%s2035_s8] sm:$0x7]  ;;  %v2075_v18 = vld [vmem:[%s2035_s8 + $0x4] sm:$0x7]  ;;  %v2078_v19 = vld [vmem:[%s2035_s8 + $0x8] sm:$0x7] }
  0x8a   : > { %v2067_v14 = vsub.s32 %v387_v10, %v389_v11  ;;  %v2081_v20 = vld [vmem:[%s2035_s8 + $0xc] sm:$0x7]  ;;  %v1538_v24 = vld [vmem:[#allocation7 + $0x68] sm:$0xff]   ;;  %vm2093_vm4 = vmor %vm417_vm1, %vm418_vm2  ;;  %vm422_vm5 = vsmask.f32 7448  ;;  %v729_v27 = vcombine.low %v2075_v18, %v2078_v19  ;;  %s1305_s29 = sshll.u32 %s1794_s21, 7 }
  0x8b   : > { %v1539_v28 = vld [vmem:[#allocation7 + $0xa8] sm:$0xff]   ;;  %v1540_v33 = vld [vmem:[#allocation7 + $0x70] sm:$0xff]   ;;  %v364_v38 = vld [vmem:[%s2045_s7] sm:$0x7]  ;;  %s335_s16 = scalar_lea.vmem [#allocation8], %s1261_s26  ;;  %vm994_vm8 = vcmask 519168   ;;  %s2173_s30 = scalar_lea.hbm %s2306_s3, %s1305_s29 }
  0x8c   : > { %1345 = vmatpush3.bf16.msra.mxu1 %v1530_v3  ;;  %1385 = vmatpush3.bf16.msra.mxu0 %v1531_v4  ;;  %v391_v21 = vrot.slane %v2072_v17, %v2067_v14  ;;  %v399_v22 = vrot.slane %v2075_v18, %v2067_v14  ;;  %v407_v23 = vrot.slane %v2078_v19, %v2067_v14  ;;  %vm2105_vm6 = vmor %vm2093_vm4, %vm420_vm3  ;;  %v1541_v48 = vld [vmem:[#allocation7 + $0xb0] sm:$0xff]   ;;  %v1542_v57 = vld [vmem:[#allocation7 + $0x78] sm:$0xff]   ;;  %s1044_s11 = sshll.u32 %s335_s16, 4  ;;  %vm997_vm9 = vcmask 523264   ;;  %s1022_s17 = scalar_lea.sflag [#allocation4], %s2031_s27  ;;  %s2175_s11 = int_to_ptr.vmem [resolvable:$true] %s1044_s11 }
  0x8d   : > { %1346 = vmatprep.subr.bf16.mxu1 %v1809_v0  ;;  %1386 = vmatprep.subr.bf16.mxu0 %v1809_v0  ;;  %v415_v25 = vrot.slane %v2081_v20, %v2067_v14  ;;  %vm2114_vm7 = vmor %vm2105_vm6, %vm422_vm5  ;;  %v730_v61 = vcombine.low %v2081_v20, %v364_v38  ;;  %v1543_v62 = vld [vmem:[#allocation7 + $0xb8] sm:$0xff]   ;;  %v737_v6 = vrot.slane %v729_v27, %v2067_v14  ;;  %v1548_v27 = vld [vmem:[#allocation7 + $0xc8] sm:$0xff]   ;;  %s1652_s2 = scalar_lea.vmem %s2175_s11, 128  ;;  %p2349_p0 = scmp.ne.s32.totalorder %s2331_s6, 0 }
  0x8e   : > { %v392_v29 = vcombine.high %v391_v21, %v391_v21  ;;  %v400_v30 = vcombine.high %v399_v22, %v399_v22  ;;  %v408_v31 = vcombine.high %v407_v23, %v407_v23  ;;  %v425_v32 = vshrl.u32 %v391_v21, 16  ;;  %v1554_v43 = vld [vmem:[#allocation7 + $0xe0] sm:$0xff]   ;;  %v1557_v58 = vld [vmem:[#allocation7 + $0x30] sm:$0xff]   ;;  %p1653_p13 = scmp.ne.s32.totalorder %s2175_s11, %s1652_s2  ;;  %s1812_s12 = smov [#allocation8]  }
  0x8f   : > { %v416_v34 = vcombine.high %v415_v25, %v415_v25  ;;  %v428_v35 = vshll.u32 %v391_v21, 16  ;;  %v439_v36 = vshrl.u32 %v399_v22, 16  ;;  %v442_v37 = vshll.u32 %v399_v22, 16  ;;  %s1656_s13 = sshll.u32 %s1812_s12, 4  ;;  %s1657_s13 = int_to_ptr.vmem [resolvable:$false] %s1656_s13 }
  0x90   : > { %1347 = vmatpush3.bf16.msra.mxu1 %v1532_v8  ;;  %1387 = vmatpush3.bf16.msra.mxu0 %v1533_v9  ;;  %v427_v39 = vrot.slane %v425_v32, 6  ;;  %v434_v40 = vshll.u32 %v392_v29, 16  ;;  %v448_v41 = vshll.u32 %v400_v30, 16  ;;  %v453_v42 = vshrl.u32 %v407_v23, 16  ;;  %p1654_p5 = pnand %p1653_p13, %p2349_p0  ;;  %s1658_s14 = scalar_lea.vmem %s1657_s13, 256 }
  0x91   : > { %1348 = vmatprep.subr.bf16.mxu1 %v1809_v0  ;;  %1388 = vmatprep.subr.bf16.mxu0 %v1809_v0  ;;  %v430_v44 = vrot.slane %v428_v35, 7  ;;  %v441_v45 = vrot.slane %v439_v36, 6  ;;  %v444_v46 = vrot.slane %v442_v37, 7  ;;  %v456_v47 = vshll.u32 %v407_v23, 16  ;;  %v1546_v23 = vld [vmem:[#allocation7 + $0xc0] sm:$0xff]   ;;  %v1550_v36 = vld [vmem:[#allocation7 + $0xd0] sm:$0xff]   ;;  %p1659_p1 = scmp.lt.s32.totalorder %s2175_s11, %s1657_s13  ;;  %p1660_p2 = scmp.lt.s32.totalorder %s1658_s14, %s1652_s2 }
  0x92   : > { %v436_v49 = vrot.slane %v434_v40, 7  ;;  %v450_v50 = vrot.slane %v448_v41, 7  ;;  %v455_v51 = vrot.slane %v453_v42, 6  ;;  %v462_v52 = vshll.u32 %v408_v31, 16  ;;  %v1544_v31 = vld [vmem:[#allocation7] sm:$0xff]   ;;  %v1547_v37 = vld [vmem:[#allocation7 + $0x8] sm:$0xff]   ;;  %p1655_p9 = pneg %p1654_p5 }
  0x93   : > { %v431_v53 = vor.u32 %v430_v44, %v427_v39  ;;  %v445_v54 = vor.u32 %v444_v46, %v441_v45  ;;  %v458_v55 = vrot.slane %v456_v47, 7  ;;  %v467_v56 = vshrl.u32 %v415_v25, 16  ;;  %v1552_v40 = vld [vmem:[#allocation7 + $0xd8] sm:$0xff]   ;;  %v1549_v41 = vld [vmem:[#allocation7 + $0x10] sm:$0xff]   ;;  %v1556_v46 = vld [vmem:[#allocation7 + $0xe8] sm:$0xff]   ;;  %p1661_p7 = por %p1660_p2, %p1659_p1 }
  0x94   : > { %1349 = vmatpush3.bf16.msra.mxu1 %v1534_v12  ;;  %1389 = vmatpush3.bf16.msra.mxu0 %v1535_v13  ;;  %v470_v59 = vshll.u32 %v415_v25, 16  ;;  %v476_v60 = vshll.u32 %v416_v34, 16  ;;  %v464_v4 = vrot.slane %v462_v52, 7  ;;  %v744_v7 = vrot.slane %v730_v61, %v2067_v14  ;;  %v1551_v45 = vld [vmem:[#allocation7 + $0x18] sm:$0xff]   ;;  %v1555_v52 = vld [vmem:[#allocation7 + $0x28] sm:$0xff]  }
  0x95   : > { %1350 = vmatprep.subr.bf16.mxu1 %v1809_v0  ;;  %1390 = vmatprep.subr.bf16.mxu0 %v1809_v0  ;;  %v432_v63 = vrot.slane %v431_v53, 2  ;;  %v446_v1 = vrot.slane %v445_v54, 2  ;;  %v459_v2 = vor.u32 %v458_v55, %v455_v51  ;;  %v469_v3 = vrot.slane %v467_v56, 6  ;;  %v1558_v51 = vld [vmem:[#allocation7 + $0xf0] sm:$0xff]   ;;  %v1560_v55 = vld [vmem:[#allocation7 + $0xf8] sm:$0xff]   ;;  %p1662_p4 = pnand %p1661_p7, %p1655_p9 }
  0x96   : > { %v472_v5 = vrot.slane %v470_v59, 7  ;;  %v478_v12 = vrot.slane %v476_v60, 7  ;;  %v844_v22 = vrot.slane %v364_v38, %v2067_v14  ;;  %v604_v56 = vcombine.low %v2072_v17, %v2075_v18 }
  0x97   : > { %v437_v8 = vsel %vm2114_vm7, %v432_v63, %v436_v49  ;;  %v2127_v9 = vsel %vm2114_vm7, %v446_v1, %v450_v50  ;;  %v460_v10 = vrot.slane %v459_v2, 2 }
  0x98   : > { %1351 = vmatpush3.bf16.msra.mxu1 %v1536_v15  ;;  %1391 = vmatpush3.bf16.msra.mxu0 %v1537_v16  ;;  %v473_v11 = vor.u32 %v472_v5, %v469_v3  ;;  %v497_v13 = vcombine.low %v437_v8, %v2127_v9  ;;  %v745_v15 = vcombine.low %v737_v6, %v744_v7  ;;  %v850_v29 = vshll.u32 %v844_v22, 16 }
  0x99   : > { %1352 = vmatprep.subr.bf16.mxu1 %v1809_v0  ;;  %1392 = vmatprep.subr.bf16.mxu0 %v1809_v0  ;;  %v465_v16 = vsel %vm2114_vm7, %v460_v10, %v464_v4  ;;  %v612_v60 = vrot.slane %v604_v56, %v2067_v14 }
  0x9a   : > { %v474_v21 = vrot.slane %v473_v11, 2  ;;  %v505_v26 = vrot.slane %v497_v13, %v2067_v14  ;;  %v852_v35 = vrot.slane %v850_v29, 7  ;;  %v877_v49 = vcombine.low %v2127_v9, %v465_v16 }
  0x9c   : > { %1353 = vmatpush3.bf16.msra.mxu1 %v1538_v24  ;;  %1393 = vmatpush3.bf16.msra.mxu0 %v1539_v28  ;;  %v479_v24 = vsel %vm2114_vm7, %v474_v21, %v478_v12  ;;  %v847_v28 = vshrl.u32 %v844_v22, 16  ;;  %v885_v53 = vrot.slane %v877_v49, %v2067_v14 }
  0x9d   : > { %1354 = vmatprep.subr.bf16.mxu1 %v1809_v0  ;;  %1394 = vmatprep.subr.bf16.mxu0 %v1809_v0  ;;  %v498_v25 = vcombine.low %v465_v16, %v479_v24 }
  0x9e   : > { %v849_v34 = vrot.slane %v847_v28, 6 }
  0x9f   : > { %v512_v30 = vrot.slane %v498_v25, %v2067_v14 }
  0xa0   : > { %1355 = vmatpush3.bf16.msra.mxu1 %v1540_v33  ;;  %1395 = vmatpush3.bf16.msra.mxu0 %v1541_v48  ;;  %v845_v33 = vcombine.high %v844_v22, %v844_v22  ;;  %v853_v38 = vor.u32 %v852_v35, %v849_v34  ;;  %v1553_v48 = vld [vmem:[#allocation7 + $0x20] sm:$0xff]  }
  0xa1   : > { %1356 = vmatprep.subr.bf16.mxu1 %v1809_v0  ;;  %1396 = vmatprep.subr.bf16.mxu0 %v1809_v0  ;;  %v513_v32 = vcombine.low %v505_v26, %v512_v30 }
  0xa2   : > { %v856_v39 = vshll.u32 %v845_v33, 16  ;;  %v854_v44 = vrot.slane %v853_v38, 2 }
  0xa4   : > { %1357 = vmatpush3.bf16.msra.mxu1 %v1542_v57  ;;  %1397 = vmatpush3.bf16.msra.mxu0 %v1543_v62  ;;  %v858_v42 = vrot.slane %v856_v39, 7  ;;  %v605_v57 = vcombine.low %v2078_v19, %v2081_v20  ;;  %v1559_v62 = vld [vmem:[#allocation7 + $0x38] sm:$0xff]  }
  0xa5   : > { %1362 = vmatprep.subr.bf16.mxu1 %v1809_v0  ;;  %1402 = vmatprep.subr.bf16.mxu0 %v1809_v0 }
  0xa6   : > { %v859_v47 = vsel %vm2114_vm7, %v854_v44, %v858_v42  ;;  %v619_v61 = vrot.slane %v605_v57, %v2067_v14 }
  0xa7   : > { %1399 = vmatmul.mubr.bf16.vlgmr.msra.gmra.mrb[0].mxu0 %v745_v15  ;;  %1359 = vmatmul.mubr.bf16.vlgmr.msra.gmra.mrb[0].mxu1 %v513_v32  ;;  %v878_v50 = vcombine.low %v479_v24, %v859_v47 }
  0xa8   : > { %1403 = vmatpush3.bf16.msra.mxu0 %v1546_v23  ;;  %1418 = vmatprep.mubr.msk.bf16.mxu0 %vm1810_vm0, %v1809_v0  ;;  %v620_v17 = vcombine.low %v612_v60, %v619_v61 }
  0xa9   : > { %1404 = vmatprep.subr.bf16.mxu0 %v1809_v0  ;;  %1363 = vmatpush3.bf16.msra.mxu1 %v1544_v31  ;;  %v892_v54 = vrot.slane %v878_v50, %v2067_v14 }
  0xaa   : > { %1378 = vmatprep.mubr.msk.bf16.mxu1 %vm1810_vm0, %v1809_v0  ;;  %1364 = vmatprep.subr.bf16.mxu1 %v1809_v0 }
  0xab   : > { %v893_v59 = vcombine.low %v885_v53, %v892_v54 }
  0xac   : > { %1405 = vmatpush3.bf16.msra.mxu0 %v1548_v27 }
  0xad   : > { %1406 = vmatprep.subr.bf16.mxu0 %v1809_v0  ;;  %1365 = vmatpush3.bf16.msra.mxu1 %v1547_v37 }
  0xae   : > { %1366 = vmatprep.subr.bf16.mxu1 %v1809_v0 }
  0xb0   : > { %1407 = vmatpush3.bf16.msra.mxu0 %v1550_v36 }
  0xb1   : > { %1408 = vmatprep.subr.bf16.mxu0 %v1809_v0  ;;  %1367 = vmatpush3.bf16.msra.mxu1 %v1549_v41 }
  0xb2   : > { %1368 = vmatprep.subr.bf16.mxu1 %v1809_v0 }
  0xb4   : > { %1409 = vmatpush3.bf16.msra.mxu0 %v1552_v40 }
  0xb5   : > { %1410 = vmatprep.subr.bf16.mxu0 %v1809_v0  ;;  %1369 = vmatpush3.bf16.msra.mxu1 %v1551_v45 }
  0xb6   : > { %1370 = vmatprep.subr.bf16.mxu1 %v1809_v0 }
  0xb8   : > { %1411 = vmatpush3.bf16.msra.mxu0 %v1554_v43 }
  0xb9   : > { %1412 = vmatprep.subr.bf16.mxu0 %v1809_v0  ;;  %1371 = vmatpush3.bf16.msra.mxu1 %v1553_v48 }
  0xba   : > { %1372 = vmatprep.subr.bf16.mxu1 %v1809_v0 }
  0xbc   : > { %1413 = vmatpush3.bf16.msra.mxu0 %v1556_v46 }
  0xbd   : > { %1414 = vmatprep.subr.bf16.mxu0 %v1809_v0  ;;  %1373 = vmatpush3.bf16.msra.mxu1 %v1555_v52 }
  0xbe   : > { %1374 = vmatprep.subr.bf16.mxu1 %v1809_v0 }
  0xc0   : > { %1415 = vmatpush3.bf16.msra.mxu0 %v1558_v51 }
  0xc1   : > { %1416 = vmatprep.subr.bf16.mxu0 %v1809_v0  ;;  %1375 = vmatpush3.bf16.msra.mxu1 %v1557_v58 }
  0xc2   : > { %1376 = vmatprep.subr.bf16.mxu1 %v1809_v0 }
  0xc4   : > { %1417 = vmatpush3.bf16.msra.mxu0 %v1560_v55 }
  0xc5   : > { %1377 = vmatpush3.bf16.msra.mxu1 %v1559_v62 }
  0xc7   : > { %1419 = vmatmul.mubr.bf16.vlgmr.msra.gmra.mrb[0].mxu0 %v893_v59 }
  0xc8   : > { %1379 = vmatmul.mubr.bf16.vlgmr.msra.gmra.mrb[0].mxu1 %v620_v17 }
 0x19a   : > { %v977_v18 = vpop.f32.mrb[0].mxu0 }
 0x19b   : > { %v1420_v19 = vpop.f32.mrb[1].mxu0  ;;  %v704_v1 = vpop.f32.mrb[0].mxu1 }
 0x19c   : > { %v980_v20 = vpop.f32.mrb[2].mxu0  ;;  %v1422_v2 = vadd.f32 %v977_v18, %v704_v1  ;;  %v1380_v3 = vpop.f32.mrb[1].mxu1 }
 0x19d   : > { %v1421_v63 = vpop.f32.mrb[3].mxu0  ;;  %v707_v14 = vpop.f32.mrb[2].mxu1 }
 0x19e   : > { %v1303_v4 = vpack.c.bf16 %v1422_v2, %v1422_v2  ;;  %v1009_v0 = vmul.f32 %v1422_v2, %v1422_v2  ;;  %v1423_v5 = vadd.f32 %v980_v20, %v707_v14  ;;  %v1381_v6 = vpop.f32.mrb[3].mxu1  ;;  %v998_v7 = vsel %vm997_vm9, %v1422_v2, 0.0 }
 0x1a0   : > { %995 = vst.msk [vmem:[%s335_s16] sm:$0xf] %vm994_vm8, %v1303_v4  ;;  %v1304_v8 = vpack.c.bf16 %v1423_v5, %v1423_v5  ;;  %v999_v9 = vsel %vm997_vm9, %v1423_v5, 0.0  ;;  %v1010_v10 = vmul.f32 %v1423_v5, %v1423_v5  ;;  %v1011_v12 = vsel %vm997_vm9, %v1009_v0, 0.0 }
 0x1a1   : > { %v1000_v11 = vadd.f32 %v999_v9, %v998_v7 }
 0x1a2   : > { %996 = vst.msk [vmem:[%s335_s16 + $0x4] sm:$0xf] %vm994_vm8, %v1304_v8  ;;  %v1012_v13 = vsel %vm997_vm9, %v1010_v10, 0.0 }
 0x1a3   : > { %v1001_v15 = vrot.slane %v1000_v11, 4  ;;  %v1013_v16 = vadd.f32 %v1012_v13, %v1011_v12 }
 0x1a4   : > { %1665 = shalt.err (!%p1662_p4)
}
 0x1a5   : > { %s1666_s25 = scalar_lea.hbm %s2173_s30, 128  ;;  %s1670_s20 = scalar_lea.hbm %s2306_s3, 256 }
 0x1a6   : > { %p1667_p8 = scmp.ne.s32.totalorder %s2173_s30, %s1666_s25  ;;  %p1671_p10 = scmp.lt.u32.totalorder %s2173_s30, %s2306_s3 }
 0x1a7   : > { %p1672_p11 = scmp.lt.u32.totalorder %s1670_s20, %s1666_s25  ;;  %p1674_p13 = scmp.lt.u32.totalorder %s1666_s25, %s2173_s30 }
 0x1a8   : > { %p1668_p12 = pnand %p1667_p8, %p2349_p0 }
 0x1a9   : > { %p1673_p3 = por %p1672_p11, %p1671_p10 }
 0x1aa   : > { %p1669_p6 = pneg %p1668_p12 }
 0x1ab   : > { %p1675_p5 = por %p1674_p13, %p1673_p3 }
 0x1ad   : > { %p1676_p9 = pnand %p1675_p5, %p1669_p6 }
 0x1af   : > { %1679 = shalt.err (!%p1676_p9)
}
 0x1b0   : > { %s1813_s26 = smov 64   ;;  %s1814_s29 = smov 4   ;;  %v1002_v21 = vadd.f32 %v1001_v15, %v1000_v11  ;;  %v1014_v22 = vrot.slane %v1013_v16, 4  ;;  %vm1007_vm10 = vcmask 516096  }
 0x1b1   : > { %1441 = dma.vmem_to_hbm [thread:$0]  (%p2349_p0), %s2175_s11, 128, %s2173_s30, %s1022_s17, %s1813_s26, %s1813_s26, %s1814_s29  }
 0x1b2   : > { %v1003_v23 = vrot.slane %v1002_v21, 2  ;;  %v1015_v24 = vadd.f32 %v1014_v22, %v1013_v16  ;;  %s1299_s16 = sshll.u32 %s1794_s21, 4  ;;  %s341_s15 = scalar_lea.vmem [#allocation9], %s2031_s27 }
 0x1b3   : > { %s1061_s10 = sshll.u32 %s341_s15, 4  ;;  %s347_s2 = scalar_lea.vmem [#allocation11], %s2031_s27  ;;  %s2217_s10 = int_to_ptr.vmem [resolvable:$true] %s1061_s10 }
 0x1b4   : > { %v1004_v25 = vadd.f32 %v1003_v23, %v1002_v21  ;;  %v1016_v26 = vrot.slane %v1015_v24, 2  ;;  %s1075_s12 = sshll.u32 %s347_s2, 4  ;;  %s2215_s17 = scalar_lea.hbm %s2307_s4, %s1299_s16  ;;  %s2225_s12 = int_to_ptr.vmem [resolvable:$true] %s1075_s12 }
 0x1b5   : > { %s2223_s14 = scalar_lea.hbm %s2308_s5, %s1299_s16  ;;  %s2229_s25 = scalar_lea.sflag [#allocation10], %s300_s0 }
 0x1b6   : > { %v1005_v27 = vrot.slane %v1004_v25, 1  ;;  %v1017_v28 = vadd.f32 %v1016_v26, %v1015_v24  ;;  %s1680_s9 = scalar_lea.vmem %s2217_s10, 16  ;;  %s1815_s8 = smov [#allocation9]  }
 0x1b7   : > { %p1681_p1 = scmp.ne.s32.totalorder %s2217_s10, %s1680_s9  ;;  %s1684_s20 = sshll.u32 %s1815_s8, 4  ;;  %s1685_s20 = int_to_ptr.vmem [resolvable:$false] %s1684_s20 }
 0x1b8   : > { %v1006_v29 = vadd.f32 %v1005_v27, %v1004_v25  ;;  %v1018_v30 = vrot.slane %v1017_v28, 1  ;;  %s1686_s28 = scalar_lea.vmem %s1685_s20, 32  ;;  %p1687_p4 = scmp.lt.s32.totalorder %s2217_s10, %s1685_s20 }
 0x1b9   : > { %p1682_p2 = pnand %p1681_p1, %p2349_p0  ;;  %p1688_p8 = scmp.lt.s32.totalorder %s1686_s28, %s1680_s9 }
 0x1ba   : > { %v1019_v31 = vadd.f32 %v1018_v30, %v1017_v28  ;;  %1008 = vst.msk [vmem:[%s341_s15] sm:$0x1] %vm1007_vm10, %v1006_v29 }
 0x1bb   : > { %p1683_p7 = pneg %p1682_p2  ;;  %p1689_p12 = por %p1688_p8, %p1687_p4 }
 0x1bd   : > { %p1690_p6 = pnand %p1689_p12, %p1683_p7 }
 0x1bf   : > { %1693 = shalt.err (!%p1690_p6)
}
 0x1c0   : > { %s1694_s24 = scalar_lea.hbm %s2215_s17, 16  ;;  %s1698_s26 = scalar_lea.hbm %s2307_s4, 32 }
 0x1c1   : > { %p1695_p10 = scmp.ne.s32.totalorder %s2215_s17, %s1694_s24  ;;  %p1699_p13 = scmp.lt.u32.totalorder %s2215_s17, %s2307_s4 }
 0x1c2   : > { %p1700_p5 = scmp.lt.u32.totalorder %s1698_s26, %s1694_s24  ;;  %p1702_p1 = scmp.lt.u32.totalorder %s1694_s24, %s2215_s17 }
 0x1c3   : > { %p1696_p11 = pnand %p1695_p10, %p2349_p0 }
 0x1c4   : > { %p1701_p9 = por %p1700_p5, %p1699_p13 }
 0x1c5   : > { %p1697_p3 = pneg %p1696_p11 }
 0x1c6   : > { %p1703_p2 = por %p1702_p1, %p1701_p9 }
 0x1c8   : > { %p1704_p7 = pnand %p1703_p2, %p1697_p3 }
 0x1ca   : > { %1707 = shalt.err (!%p1704_p7)
}
 0x1cb   : > { %1442 = dma.vmem_to_hbm [thread:$0]  (%p2349_p0), %s2217_s10, 16, %s2215_s17, %s2229_s25   ;;  %1020 = vst.msk [vmem:[%s347_s2] sm:$0x1] %vm1007_vm10, %v1019_v31 }
 0x1cc   : > { %s1708_s15 = scalar_lea.vmem %s2225_s12, 16  ;;  %s1816_s11 = smov [#allocation11]  }
 0x1cd   : > { %p1709_p4 = scmp.ne.s32.totalorder %s2225_s12, %s1708_s15  ;;  %s1712_s30 = sshll.u32 %s1816_s11, 4  ;;  %s1713_s30 = int_to_ptr.vmem [resolvable:$false] %s1712_s30 }
 0x1ce   : > { %s1714_s21 = scalar_lea.vmem %s1713_s30, 32  ;;  %p1715_p6 = scmp.lt.s32.totalorder %s2225_s12, %s1713_s30 }
 0x1cf   : > { %p1710_p8 = pnand %p1709_p4, %p2349_p0  ;;  %p1716_p10 = scmp.lt.s32.totalorder %s1714_s21, %s1708_s15 }
 0x1d1   : > { %p1711_p12 = pneg %p1710_p8  ;;  %p1717_p11 = por %p1716_p10, %p1715_p6 }
 0x1d3   : > { %p1718_p3 = pnand %p1717_p11, %p1711_p12 }
 0x1d5   : > { %1721 = shalt.err (!%p1718_p3)
}
 0x1d6   : > { %s1722_s27 = scalar_lea.hbm %s2223_s14, 16  ;;  %s1726_s17 = scalar_lea.hbm %s2308_s5, 32 }
 0x1d7   : > { %p1723_p13 = scmp.ne.s32.totalorder %s2223_s14, %s1722_s27  ;;  %p1727_p1 = scmp.lt.u32.totalorder %s2223_s14, %s2308_s5 }
 0x1d8   : > { %p1728_p2 = scmp.lt.u32.totalorder %s1726_s17, %s1722_s27  ;;  %p1730_p4 = scmp.lt.u32.totalorder %s1722_s27, %s2223_s14 }
 0x1d9   : > { %p1724_p5 = pnand %p1723_p13, %p2349_p0 }
 0x1da   : > { %p1729_p7 = por %p1728_p2, %p1727_p1 }
 0x1db   : > { %p1725_p9 = pneg %p1724_p5 }
 0x1dc   : > { %p1731_p8 = por %p1730_p4, %p1729_p7 }
 0x1de   : > { %p1732_p12 = pnand %p1731_p8, %p1725_p9 }
 0x1e0   : > { %1735 = shalt.err (!%p1732_p12)
}
 0x1e1   : > { %1443 = dma.vmem_to_hbm [thread:$0]  (%p2349_p0), %s2225_s12, 16, %s2223_s14, %s2229_s25  }
 0x1e2 PF: > { %s2350_s8 = sld [smem:[#allocation18_spill]]  ;;  %s1087_s20 = sand.u32 1, %s1782_s18  }
 0x1e3   : > { %p2352_p10 = scmp.ge.s32.totalorder %s1802_s23, 2  ;;  %s1088_s28 = scalar_lea.sflag [#allocation4], %s1087_s20 }
 0x1e8   : > { %p2351_p6 = scmp.ne.s32.totalorder %s2350_s8, 0 }
 0x1ea   : > { %p1459_p11 = pnand %p2352_p10, %p2351_p6 }
 0x1ec   : > { %1773 = dma.done.wait (!%p1459_p11), %s1088_s28, 128  }
 0x1ed   : > { %1775 = vsyncadd (!%p1459_p11), %s1088_s28, 4294967168  ;;  %s2353_s24 = sadd.s32 4294967294, %s1802_s23  }
 0x1ee   : > { %s1096_s0 = sand.u32 1, %s2353_s24  }
 0x1ef   : > { %s1097_s7 = scalar_lea.sflag [#allocation10], %s1096_s0 }
 0x1f0   : > { %1777 = dma.done.wait (!%p1459_p11), %s1097_s7, 32  }
 0x1f1   : > { %1779 = vsyncadd (!%p1459_p11), %s1097_s7, 4294967264  ;;  %s28_s23 = sadd.s32 1, %s1802_s23   ;;  %s2354_s6 = sld [smem:[#allocation17_spill]] }
 0x1f2   : > { %p25_p0 = scmp.ge.s32.totalorder %s28_s23, 4   ;;  %s2355_s20 = sld [smem:[#allocation20_spill]] }
 0x1f3   : > { %s2356_s12 = sld [smem:[#allocation19_spill]]  ;;  %s2357_s18 = smov %s1786_s19 }
 0x1f4   : > { %s2359_s21 = smov %s1798_s22  ;;  %27 = sbr.rel (!%p25_p0) target bundleno = 13 (0xd), region = 129 }
 0x1f7   : > { %s2358_s19 = smov %s2354_s6 }
 0x1f9   : > { %s2360_s22 = smov %s2356_s12 }
 0x1fb   :  { %1109 = vsyncpa [#allocation3], 1 }
 0x1fc   :  { %1111 = vsyncpa [#allocation3 + $0x1], 1 }
 0x1fd   :  { %1112 = vsyncpa [#allocation6], 1 }
 0x1fe   :  { %1114 = vsyncpa [#allocation6 + $0x1], 1 }
 0x1ff   :  { %1115 = vsyncpa [#allocation4], 1 }
 0x200   :  { %1117 = vsyncpa [#allocation4 + $0x1], 1 }
 0x201   :  { %1118 = vsyncpa [#allocation10], 1 }
 0x202   :  { %1120 = vsyncpa [#allocation10 + $0x1], 1 }

// kernel: discriminator2d_forward.9
= control target key start
LH: loop header
LB: loop body
LE: loop exit
PB: predicated region body
PF: predicated region fallthrough
CT: control target
= control target key end

     0   :  { %9 = vsyncpa [#allocation3], 0  ;;  %s1442_s0 = inlined_call_operand.hbm [shape: bf16[2,1024], index: 0, kind: input, shape index: {}]   ;;  %s1443_s1 = inlined_call_operand.hbm [shape: f32[1,1024], index: 1, kind: input, shape index: {}]   ;;  %s1444_s2 = inlined_call_operand.hbm [shape: f32[1,1024], index: 2, kind: input, shape index: {}]   ;;  %s1445_s3 = inlined_call_operand.hbm [shape: bf16[1024,1], index: 3, kind: input, shape index: {}]   ;;  %s1446_s4 = inlined_call_operand.hbm [shape: f32[2,1], index: 4, kind: output, shape index: {}]  }
   0x1   :  { %10 = vsyncpa [#allocation6], 0 }
   0x2   :  { %11 = vsyncpa [#allocation9], 0 }
   0x3   :  { %12 = vsyncpa [#allocation4], 0  ;;  %s1317_s15 = smov [#allocation5]   ;;  %s1318_s17 = smov [#allocation2]  }
   0x4   :  { %s29_s16 = sshll.u32 %s1317_s15, 4  ;;  %s19_s18 = sshll.u32 %s1318_s17, 4  ;;  %s30_s16 = int_to_ptr.vmem [resolvable:$true] %s29_s16  ;;  %s20_s18 = int_to_ptr.vmem [resolvable:$true] %s19_s18 }
   0x5   :  { %s1199_s21 = scalar_lea.hbm %s1443_s1, 128 }
   0x6   :  { %p1200_p0 = scmp.ne.s32.totalorder %s1443_s1, %s1199_s21  ;;  %p1203_p1 = scmp.lt.u32.totalorder %s1199_s21, %s1443_s1 }
   0x8   :  { %p1205_p2 = pnand %p1203_p1, %p1200_p0 }
   0xa   :  { %1208 = shalt.err (!%p1205_p2)
}
   0xb   :  { %s1209_s26 = scalar_lea.vmem %s30_s16, 128  ;;  %p1214_p4 = scmp.lt.s32.totalorder %s30_s16, %s30_s16 }
   0xc   :  { %p1210_p3 = scmp.ne.s32.totalorder %s30_s16, %s1209_s26  ;;  %p1215_p5 = scmp.lt.s32.totalorder %s1209_s26, %s1209_s26 }
   0xe   :  { %p1216_p6 = por %p1215_p5, %p1214_p4 }
  0x10   :  { %p1217_p7 = pnand %p1216_p6, %p1210_p3 }
  0x12   :  { %1220 = shalt.err (!%p1217_p7)
}
  0x13   :  { %32 = dma.hbm_to_vmem [thread:$0]  %s1443_s1, 128, %s30_s16, [#allocation6]  }
  0x14   :  { %s1221_s5 = scalar_lea.hbm %s1442_s0, 128 }
  0x15   :  { %p1222_p8 = scmp.ne.s32.totalorder %s1442_s0, %s1221_s5  ;;  %p1225_p9 = scmp.lt.u32.totalorder %s1221_s5, %s1442_s0 }
  0x17   :  { %p1227_p10 = pnand %p1225_p9, %p1222_p8 }
  0x19   :  { %1230 = shalt.err (!%p1227_p10)
}
  0x1a   :  { %s1231_s10 = scalar_lea.vmem %s20_s18, 128  ;;  %p1236_p12 = scmp.lt.s32.totalorder %s20_s18, %s20_s18 }
  0x1b   :  { %p1232_p11 = scmp.ne.s32.totalorder %s20_s18, %s1231_s10  ;;  %p1237_p13 = scmp.lt.s32.totalorder %s1231_s10, %s1231_s10 }
  0x1d   :  { %p1238_p0 = por %p1237_p13, %p1236_p12 }
  0x1f   :  { %p1239_p1 = pnand %p1238_p0, %p1232_p11 }
  0x21   :  { %1242 = shalt.err (!%p1239_p1)
}
  0x22   :  { %22 = dma.hbm_to_vmem [thread:$0]  %s1442_s0, 128, %s20_s18, [#allocation3]  }
  0x23   :  { %s1319_s12 = smov [#allocation7]   ;;  %s1320_s14 = smov [#allocation8]  }
  0x24   :  { %s39_s13 = sshll.u32 %s1319_s12, 4  ;;  %s48_s15 = sshll.u32 %s1320_s14, 4  ;;  %s40_s13 = int_to_ptr.vmem [resolvable:$true] %s39_s13  ;;  %s1374_s15 = int_to_ptr.vmem [resolvable:$true] %s48_s15 }
  0x25   :  { %s1243_s19 = scalar_lea.hbm %s1444_s2, 128 }
  0x26   :  { %p1244_p2 = scmp.ne.s32.totalorder %s1444_s2, %s1243_s19  ;;  %p1247_p3 = scmp.lt.u32.totalorder %s1243_s19, %s1444_s2 }
  0x28   :  { %p1249_p4 = pnand %p1247_p3, %p1244_p2 }
  0x2a   :  { %1252 = shalt.err (!%p1249_p4)
}
  0x2b   :  { %s1253_s0 = scalar_lea.vmem %s40_s13, 128  ;;  %p1258_p6 = scmp.lt.s32.totalorder %s40_s13, %s40_s13 }
  0x2c   :  { %p1254_p5 = scmp.ne.s32.totalorder %s40_s13, %s1253_s0  ;;  %p1259_p7 = scmp.lt.s32.totalorder %s1253_s0, %s1253_s0 }
  0x2e   :  { %p1260_p8 = por %p1259_p7, %p1258_p6 }
  0x30   :  { %p1261_p9 = pnand %p1260_p8, %p1254_p5 }
  0x32   :  { %1264 = shalt.err (!%p1261_p9)
}
  0x33   :  { %42 = dma.hbm_to_vmem [thread:$0]  %s1444_s2, 128, %s40_s13, [#allocation6]  }
  0x34   :  { %s1265_s27 = scalar_lea.hbm %s1445_s3, 8192 }
  0x35   :  { %p1266_p10 = scmp.ne.s32.totalorder %s1445_s3, %s1265_s27  ;;  %p1269_p11 = scmp.lt.u32.totalorder %s1265_s27, %s1445_s3 }
  0x37   :  { %p1271_p12 = pnand %p1269_p11, %p1266_p10 }
  0x39   :  { %1274 = shalt.err (!%p1271_p12)
}
  0x3a   :  { %s1275_s6 = scalar_lea.vmem %s1374_s15, 8192  ;;  %p1280_p0 = scmp.lt.s32.totalorder %s1374_s15, %s1374_s15 }
  0x3b   :  { %p1276_p13 = scmp.ne.s32.totalorder %s1374_s15, %s1275_s6  ;;  %p1281_p1 = scmp.lt.s32.totalorder %s1275_s6, %s1275_s6 }
  0x3d   :  { %p1282_p2 = por %p1281_p1, %p1280_p0 }
  0x3f   :  { %p1283_p3 = pnand %p1282_p2, %p1276_p13 }
  0x41   :  { %1286 = shalt.err (!%p1283_p3)
}
  0x42   :  { %s1321_s2 = smov 64   ;;  %s1322_s7 = smov 4  }
  0x43   :  { %54 = dma.hbm_to_vmem [thread:$0]  %s1445_s3, 8192, %s1374_s15, [#allocation9], %s1321_s2, %s1321_s2, %s1322_s7  }
  0x44   :  { %1309 = dma.done.wait [#allocation3], 128  }
  0x45   :  { %1310 = vsyncadd [#allocation3], 4294967168 }
  0x46   :  { %1311 = dma.done.wait [#allocation6], 256  }
  0x47   :  { %1312 = vsyncadd [#allocation6], 4294967040 }
  0x48   :  { %1313 = dma.done.wait [#allocation9], 8192  }
  0x49   :  { %1314 = vsyncadd [#allocation9], 4294959104  ;;  %v1131_v0 = vld [vmem:[#allocation8 + $0x40] sm:$0xff]   ;;  %v1135_v4 = vld [vmem:[#allocation8 + $0x48] sm:$0xff]   ;;  %v73_v20 = vlaneseq  ;;  %v1323_v28 = vmov 1983009808  }
  0x4a   :  { %v1132_v1 = vld [vmem:[#allocation8 + $0xc0] sm:$0xff]   ;;  %1035 = vmatprep.subr.bf16.mxu0 %v1131_v0  ;;  %v1136_v5 = vld [vmem:[#allocation8 + $0xc8] sm:$0xff]   ;;  %v1139_v8 = vld [vmem:[#allocation8 + $0x50] sm:$0xff]   ;;  %v108_v29 = vunpack.c.l.s4 %v1323_v28  ;;  %s1324_s3 = smov [#allocation10]   ;;  %vm951_vm2 = vcmask 1024  }
  0x4b   :  { %v1133_v2 = vld [vmem:[#allocation8] sm:$0xff]   ;;  %1057 = vmatprep.subr.bf16.mxu1 %v1132_v1  ;;  %v1137_v6 = vld [vmem:[#allocation8 + $0x8] sm:$0xff]   ;;  %v1140_v9 = vld [vmem:[#allocation8 + $0xd0] sm:$0xff]   ;;  %v1405_v25 = vshrl.u32 %v73_v20, 7  ;;  %s959_s10 = sshll.u32 %s1324_s3, 4  ;;  %s960_s10 = int_to_ptr.vmem [resolvable:$true] %s959_s10 }
  0x4c   :  { %v1134_v3 = vld [vmem:[#allocation8 + $0x80] sm:$0xff]   ;;  %1036 = vmatpush3.bf16.msra.mxu0 %v1133_v2  ;;  %v1138_v7 = vld [vmem:[#allocation8 + $0x88] sm:$0xff]   ;;  %v1141_v10 = vld [vmem:[#allocation8 + $0x10] sm:$0xff]   ;;  %v109_v37 = vunpack.c.0.s8 %v108_v29  ;;  %s1287_s1 = scalar_lea.vmem %s960_s10, 32  ;;  %p1292_p5 = scmp.lt.s32.totalorder %s960_s10, %s960_s10 }
  0x4d   :  { %1058 = vmatpush3.bf16.msra.mxu1 %v1134_v3  ;;  %1037 = vmatprep.subr.bf16.mxu0 %v1135_v4  ;;  %v1142_v11 = vld [vmem:[#allocation8 + $0x90] sm:$0xff]   ;;  %v1143_v12 = vld [vmem:[#allocation8 + $0x58] sm:$0xff]   ;;  %v1147_v16 = vld [vmem:[#allocation8 + $0x60] sm:$0xff]   ;;  %v75_v32 = vsub.s32 0, %v1405_v25  ;;  %v79_v34 = vsub.s32 1, %v1405_v25  ;;  %v83_v36 = vsub.s32 2, %v1405_v25  ;;  %p1288_p4 = scmp.ne.s32.totalorder %s960_s10, %s1287_s1  ;;  %p1293_p6 = scmp.lt.s32.totalorder %s1287_s1, %s1287_s1 }
  0x4e   :  { %1059 = vmatprep.subr.bf16.mxu1 %v1136_v5  ;;  %v1144_v13 = vld [vmem:[#allocation8 + $0xd8] sm:$0xff]   ;;  %v1148_v17 = vld [vmem:[#allocation8 + $0xe0] sm:$0xff]   ;;  %v1151_v21 = vld [vmem:[#allocation8 + $0x68] sm:$0xff]   ;;  %v87_v39 = vsub.s32 3, %v1405_v25  ;;  %v1412_v45 = vsub.s32 %v109_v37, %v1405_v25  ;;  %v91_v47 = vsub.s32 4, %v1405_v25  ;;  %v95_v57 = vsub.s32 5, %v1405_v25 }
  0x4f   :  { %v1145_v14 = vld [vmem:[#allocation8 + $0x18] sm:$0xff]   ;;  %v1149_v18 = vld [vmem:[#allocation8 + $0x20] sm:$0xff]   ;;  %v1152_v22 = vld [vmem:[#allocation8 + $0xe8] sm:$0xff]   ;;  %v99_v60 = vsub.s32 6, %v1405_v25  ;;  %v103_v61 = vsub.s32 7, %v1405_v25  ;;  %p1294_p7 = por %p1293_p6, %p1292_p5 }
  0x50   :  { %1038 = vmatpush3.bf16.msra.mxu0 %v1137_v6  ;;  %v1146_v15 = vld [vmem:[#allocation8 + $0x98] sm:$0xff]   ;;  %v1150_v19 = vld [vmem:[#allocation8 + $0xa0] sm:$0xff]   ;;  %v1153_v23 = vld [vmem:[#allocation8 + $0x28] sm:$0xff]  }
  0x51   :  { %1060 = vmatpush3.bf16.msra.mxu1 %v1138_v7  ;;  %1039 = vmatprep.subr.bf16.mxu0 %v1139_v8  ;;  %v1154_v24 = vld [vmem:[#allocation8 + $0xa8] sm:$0xff]   ;;  %v1155_v26 = vld [vmem:[#allocation8 + $0x70] sm:$0xff]   ;;  %v1159_v33 = vld [vmem:[#allocation8 + $0x78] sm:$0xff]   ;;  %p1295_p8 = pnand %p1294_p7, %p1288_p4 }
  0x52   :  { %1061 = vmatprep.subr.bf16.mxu1 %v1140_v9  ;;  %v1156_v27 = vld [vmem:[#allocation8 + $0xf0] sm:$0xff]   ;;  %v1160_v35 = vld [vmem:[#allocation8 + $0xf8] sm:$0xff]   ;;  %v1163_v46 = vld [vmem:[#allocation8 + $0x140] sm:$0xff]  }
  0x53   :  { %v1157_v30 = vld [vmem:[#allocation8 + $0x30] sm:$0xff]   ;;  %v1161_v38 = vld [vmem:[#allocation8 + $0x38] sm:$0xff]   ;;  %v1164_v52 = vld [vmem:[#allocation8 + $0x1c0] sm:$0xff]  }
  0x54   :  { %1040 = vmatpush3.bf16.msra.mxu0 %v1141_v10  ;;  %v1158_v31 = vld [vmem:[#allocation8 + $0xb0] sm:$0xff]   ;;  %v1162_v40 = vld [vmem:[#allocation8 + $0xb8] sm:$0xff]   ;;  %v68_v53 = vld [vmem:[#allocation2] sm:$0xff] }
  0x55   :  { %1062 = vmatpush3.bf16.msra.mxu1 %v1142_v11  ;;  %1041 = vmatprep.subr.bf16.mxu0 %v1143_v12  ;;  %v71_v41 = vld [vmem:[#allocation5] sm:$0xff]  ;;  %v143_v42 = vld [vmem:[#allocation7] sm:$0xff]  ;;  %v69_v0 = vunpack.c.l.bf16 %v68_v53  ;;  %v1167_v37 = vld [vmem:[#allocation8 + $0x148] sm:$0xff]  }
  0x56   :  { %1063 = vmatprep.subr.bf16.mxu1 %v1144_v13  ;;  %v76_v43 = vrot.slane %v71_v41, %v75_v32  ;;  %v80_v44 = vrot.slane %v71_v41, %v79_v34  ;;  %v84_v48 = vrot.slane %v71_v41, %v83_v36  ;;  %v88_v49 = vrot.slane %v71_v41, %v87_v39 }
  0x57   :  { %v148_v50 = vrot.slane %v143_v42, %v75_v32  ;;  %v152_v51 = vrot.slane %v143_v42, %v79_v34  ;;  %v156_v55 = vrot.slane %v143_v42, %v83_v36  ;;  %v160_v56 = vrot.slane %v143_v42, %v87_v39  ;;  %v1166_v39 = vld [vmem:[#allocation8 + $0x180] sm:$0xff]  }
  0x58   :  { %1042 = vmatpush3.bf16.msra.mxu0 %v1145_v14  ;;  %v105_v54 = vcombine.low %v76_v43, %v80_v44  ;;  %v106_v58 = vcombine.low %v84_v48, %v88_v49  ;;  %v92_v4 = vrot.slane %v71_v41, %v91_v47  ;;  %v96_v5 = vrot.slane %v71_v41, %v95_v57  ;;  %v1169_v43 = vld [vmem:[#allocation8 + $0x108] sm:$0xff]   ;;  %v1171_v44 = vld [vmem:[#allocation8 + $0x150] sm:$0xff]  }
  0x59   :  { %1064 = vmatpush3.bf16.msra.mxu1 %v1146_v15  ;;  %1043 = vmatprep.subr.bf16.mxu0 %v1147_v16  ;;  %v177_v59 = vcombine.low %v148_v50, %v152_v51  ;;  %v178_v63 = vcombine.low %v156_v55, %v160_v56  ;;  %v100_v7 = vrot.slane %v71_v41, %v99_v60  ;;  %v1173_v49 = vld [vmem:[#allocation8 + $0x110] sm:$0xff]   ;;  %v1175_v50 = vld [vmem:[#allocation8 + $0x158] sm:$0xff]   ;;  %v1179_v55 = vld [vmem:[#allocation8 + $0x160] sm:$0xff]  }
  0x5a   :  { %1065 = vmatprep.subr.bf16.mxu1 %v1148_v17  ;;  %v113_v62 = vrot.slane %v105_v54, %v1412_v45  ;;  %v120_v1 = vrot.slane %v106_v58, %v1412_v45  ;;  %v104_v8 = vrot.slane %v71_v41, %v103_v61  ;;  %v122_v11 = vcombine.low %v92_v4, %v96_v5  ;;  %v1174_v51 = vld [vmem:[#allocation8 + $0x190] sm:$0xff]   ;;  %v1178_v56 = vld [vmem:[#allocation8 + $0x198] sm:$0xff]   ;;  %v1180_v58 = vld [vmem:[#allocation8 + $0x1e0] sm:$0xff]  }
  0x5b   :  { %v185_v2 = vrot.slane %v177_v59, %v1412_v45  ;;  %v192_v3 = vrot.slane %v178_v63, %v1412_v45  ;;  %v164_v12 = vrot.slane %v143_v42, %v91_v47  ;;  %v168_v13 = vrot.slane %v143_v42, %v95_v57  ;;  %v1172_v47 = vld [vmem:[#allocation8 + $0x1d0] sm:$0xff]   ;;  %v1185_v5 = vld [vmem:[#allocation8 + $0x128] sm:$0xff]  }
  0x5c   :  { %1044 = vmatpush3.bf16.msra.mxu0 %v1149_v18  ;;  %v121_v6 = vcombine.low %v113_v62, %v120_v1  ;;  %v123_v15 = vcombine.low %v100_v7, %v104_v8  ;;  %v172_v16 = vrot.slane %v143_v42, %v99_v60  ;;  %v176_v17 = vrot.slane %v143_v42, %v103_v61  ;;  %v1181_v61 = vld [vmem:[#allocation8 + $0x120] sm:$0xff]   ;;  %v1183_v62 = vld [vmem:[#allocation8 + $0x168] sm:$0xff]  }
  0x5d   :  { %1066 = vmatpush3.bf16.msra.mxu1 %v1150_v19  ;;  %1045 = vmatprep.subr.bf16.mxu0 %v1151_v21  ;;  %v193_v9 = vcombine.low %v185_v2, %v192_v3  ;;  %v130_v19 = vrot.slane %v122_v11, %v1412_v45  ;;  %v1182_v1 = vld [vmem:[#allocation8 + $0x1a0] sm:$0xff]   ;;  %v1184_v2 = vld [vmem:[#allocation8 + $0x1e8] sm:$0xff]   ;;  %v1190_v11 = vld [vmem:[#allocation8 + $0x1b0] sm:$0xff]  }
  0x5e   :  { %1067 = vmatprep.subr.bf16.mxu1 %v1152_v22  ;;  %v141_v10 = vmul.f32 %v121_v6, %v69_v0  ;;  %v137_v21 = vrot.slane %v123_v15, %v1412_v45  ;;  %v194_v22 = vcombine.low %v164_v12, %v168_v13  ;;  %v1187_v6 = vld [vmem:[#allocation8 + $0x170] sm:$0xff]   ;;  %v1186_v8 = vld [vmem:[#allocation8 + $0x1a8] sm:$0xff]   ;;  %v1192_v12 = vld [vmem:[#allocation8 + $0x1f8] sm:$0xff]  }
  0x5f   :  { %v1193_v13 = vld [vmem:[#allocation8 + $0x138] sm:$0xff]  }
  0x60   :  { %1046 = vmatpush3.bf16.msra.mxu0 %v1153_v23  ;;  %v213_v14 = vadd.f32 %v193_v9, %v141_v10  ;;  %v195_v23 = vcombine.low %v172_v16, %v176_v17  ;;  %v1188_v9 = vld [vmem:[#allocation8 + $0x1f0] sm:$0xff]  }
  0x61   :  { %1068 = vmatpush3.bf16.msra.mxu1 %v1154_v24  ;;  %1047 = vmatprep.subr.bf16.mxu0 %v1155_v26  ;;  %v70_v26 = vunpack.c.h.bf16 %v68_v53  ;;  %v1177_v53 = vld [vmem:[#allocation8 + $0x118] sm:$0xff]   ;;  %v1189_v10 = vld [vmem:[#allocation8 + $0x130] sm:$0xff]  }
  0x62   :  { %1069 = vmatprep.subr.bf16.mxu1 %v1156_v27  ;;  %vm215_vm0 = vcmp.gt.f32.partialorder %v213_v14, 0.0  ;;  %v217_v18 = vmul.f32 0.2, %v213_v14  ;;  %v209_v32 = vrot.slane %v195_v23, %v1412_v45 }
  0x64   :  { %1048 = vmatpush3.bf16.msra.mxu0 %v1157_v30  ;;  %v219_v20 = vsel %vm215_vm0, %v213_v14, %v217_v18  ;;  %v138_v30 = vcombine.low %v130_v19, %v137_v21  ;;  %v1194_v14 = vld [vmem:[#allocation8 + $0x1b8] sm:$0xff]  }
  0x65   :  { %1070 = vmatpush3.bf16.msra.mxu1 %v1158_v31  ;;  %1049 = vmatprep.subr.bf16.mxu0 %v1159_v33  ;;  %v230_v24 = vrot.slane %v219_v20, %v1412_v45  ;;  %v223_v25 = vcombine.high %v219_v20, %v219_v20  ;;  %v202_v31 = vrot.slane %v194_v22, %v1412_v45 }
  0x66   :  { %1071 = vmatprep.subr.bf16.mxu1 %v1160_v35  ;;  %v1165_v35 = vld [vmem:[#allocation8 + $0x100] sm:$0xff]   ;;  %v142_v41 = vmul.f32 %v138_v30, %v70_v26 }
  0x67   :  { %v238_v27 = vcombine.high %v230_v24, %v230_v24  ;;  %v237_v28 = vrot.slane %v223_v25, %v1412_v45  ;;  %v265_v29 = vpack.c.bf16 %v230_v24, %v230_v24  ;;  %v210_v42 = vcombine.low %v202_v31, %v209_v32 }
  0x68   :  { %1050 = vmatpush3.bf16.msra.mxu0 %v1161_v38 }
  0x69   :  { %1072 = vmatpush3.bf16.msra.mxu1 %v1162_v40  ;;  %1079 = vmatprep.subr.bf16.mxu0 %v1163_v46  ;;  %v266_v33 = vpack.c.bf16 %v238_v27, %v238_v27  ;;  %v239_v34 = vcombine.high %v237_v28, %v237_v28  ;;  %v267_v36 = vpack.c.bf16 %v237_v28, %v237_v28  ;;  %v1168_v40 = vld [vmem:[#allocation8 + $0x1c8] sm:$0xff]  }
  0x6a   :  { %1101 = vmatprep.subr.bf16.mxu1 %v1164_v52  ;;  %v1170_v46 = vld [vmem:[#allocation8 + $0x188] sm:$0xff]   ;;  %v214_v48 = vadd.f32 %v210_v42, %v142_v41  ;;  %v1176_v52 = vld [vmem:[#allocation8 + $0x1d8] sm:$0xff]  }
  0x6b   :  { %817 = vmatprep.mubr.bf16.mxu0 %v266_v33  ;;  %v268_v38 = vpack.c.bf16 %v239_v34, %v239_v34 }
  0x6c   :  { %818 = vmatmul.mubr.bf16.vlgmr.msra.gmra.mrb[0].mxu0 %v265_v29  ;;  %vm216_vm1 = vcmp.gt.f32.partialorder %v214_v48, 0.0  ;;  %v218_v54 = vmul.f32 0.2, %v214_v48 }
  0x6d   :  { %857 = vmatprep.mubr.bf16.mxu1 %v268_v38  ;;  %1080 = vmatpush3.bf16.msra.mxu0 %v1165_v35 }
  0x6e   :  { %858 = vmatmul.mubr.bf16.vlgmr.msra.gmra.mrb[0].mxu1 %v267_v36  ;;  %1081 = vmatprep.subr.bf16.mxu0 %v1167_v37  ;;  %v220_v57 = vsel %vm216_vm1, %v214_v48, %v218_v54 }
  0x6f   :  { %1102 = vmatpush3.bf16.msra.mxu1 %v1166_v39  ;;  %v247_v59 = vrot.slane %v220_v57, %v1412_v45  ;;  %v240_v60 = vcombine.high %v220_v57, %v220_v57 }
  0x70   :  { %1103 = vmatprep.subr.bf16.mxu1 %v1168_v40 }
  0x71   :  { %1082 = vmatpush3.bf16.msra.mxu0 %v1169_v43  ;;  %v255_v63 = vcombine.high %v247_v59, %v247_v59  ;;  %v254_v0 = vrot.slane %v240_v60, %v1412_v45  ;;  %v1191_v45 = vld [vmem:[#allocation8 + $0x178] sm:$0xff]   ;;  %v269_v15 = vpack.c.bf16 %v247_v59, %v247_v59 }
  0x72   :  { %1083 = vmatprep.subr.bf16.mxu0 %v1171_v44 }
  0x73   :  { %1104 = vmatpush3.bf16.msra.mxu1 %v1170_v46  ;;  %v270_v3 = vpack.c.bf16 %v255_v63, %v255_v63  ;;  %v256_v4 = vcombine.high %v254_v0, %v254_v0  ;;  %v271_v16 = vpack.c.bf16 %v254_v0, %v254_v0 }
  0x74   :  { %1105 = vmatprep.subr.bf16.mxu1 %v1172_v47 }
  0x75   :  { %1084 = vmatpush3.bf16.msra.mxu0 %v1173_v49  ;;  %897 = vmatprep.mubr.bf16.mxu0 %v270_v3  ;;  %v272_v7 = vpack.c.bf16 %v256_v4, %v256_v4 }
  0x76   :  { %1085 = vmatprep.subr.bf16.mxu0 %v1175_v50 }
  0x77   :  { %1106 = vmatpush3.bf16.msra.mxu1 %v1174_v51  ;;  %937 = vmatprep.mubr.bf16.mxu1 %v272_v7 }
  0x78   :  { %1107 = vmatprep.subr.bf16.mxu1 %v1176_v52 }
  0x79   :  { %1086 = vmatpush3.bf16.msra.mxu0 %v1177_v53 }
  0x7a   :  { %1087 = vmatprep.subr.bf16.mxu0 %v1179_v55 }
  0x7b   :  { %1108 = vmatpush3.bf16.msra.mxu1 %v1178_v56 }
  0x7c   :  { %1109 = vmatprep.subr.bf16.mxu1 %v1180_v58 }
  0x7d   :  { %1088 = vmatpush3.bf16.msra.mxu0 %v1181_v61 }
  0x7e   :  { %1089 = vmatprep.subr.bf16.mxu0 %v1183_v62 }
  0x7f   :  { %1110 = vmatpush3.bf16.msra.mxu1 %v1182_v1 }
  0x80   :  { %1111 = vmatprep.subr.bf16.mxu1 %v1184_v2 }
  0x81   :  { %1090 = vmatpush3.bf16.msra.mxu0 %v1185_v5 }
  0x82   :  { %1091 = vmatprep.subr.bf16.mxu0 %v1187_v6 }
  0x83   :  { %1112 = vmatpush3.bf16.msra.mxu1 %v1186_v8 }
  0x84   :  { %1113 = vmatprep.subr.bf16.mxu1 %v1188_v9 }
  0x85   :  { %1092 = vmatpush3.bf16.msra.mxu0 %v1189_v10 }
  0x86   :  { %1093 = vmatprep.subr.bf16.mxu0 %v1191_v45 }
  0x87   :  { %1114 = vmatpush3.bf16.msra.mxu1 %v1190_v11 }
  0x88   :  { %1115 = vmatprep.subr.bf16.mxu1 %v1192_v12 }
  0x89   :  { %1094 = vmatpush3.bf16.msra.mxu0 %v1193_v13 }
  0x8b   :  { %1116 = vmatpush3.bf16.msra.mxu1 %v1194_v14 }
  0x8c   :  { %898 = vmatmul.mubr.bf16.vlgmr.msra.gmra.mrb[4].mxu0 %v269_v15 }
  0x8e   :  { %938 = vmatmul.mubr.bf16.vlgmr.msra.gmra.mrb[4].mxu1 %v271_v16 }
 0x13f   :  { %v1051_v17 = vpop.f32.mrb[0].mxu0 }
 0x140   :  { %v1052_v18 = vpop.f32.mrb[1].mxu0 }
 0x141   :  { %v1073_v19 = vpop.f32.mrb[0].mxu1  ;;  %v1053_v20 = vadd.f32 %v1052_v18, %v1051_v17  ;;  %v1054_v21 = vpop.f32.mrb[2].mxu0 }
 0x142   :  { %v1074_v22 = vpop.f32.mrb[1].mxu1  ;;  %v1055_v23 = vpop.f32.mrb[3].mxu0 }
 0x143   :  { %v1075_v24 = vadd.f32 %v1074_v22, %v1073_v19  ;;  %v1076_v25 = vpop.f32.mrb[2].mxu1 }
 0x144   :  { %v1077_v26 = vpop.f32.mrb[3].mxu1 }
 0x145   :  { %v860_v27 = vadd.f32 %v1075_v24, %v1053_v20 }
 0x15f   :  { %v1095_v28 = vpop.f32.mrb[4].mxu0 }
 0x160   :  { %v1096_v29 = vpop.f32.mrb[5].mxu0 }
 0x161   :  { %v1117_v30 = vpop.f32.mrb[4].mxu1  ;;  %v1097_v31 = vadd.f32 %v1096_v29, %v1095_v28  ;;  %v1098_v32 = vpop.f32.mrb[6].mxu0 }
 0x162   :  { %v1118_v33 = vpop.f32.mrb[5].mxu1  ;;  %v1099_v34 = vpop.f32.mrb[7].mxu0 }
 0x163   :  { %v900_v35 = vadd.f32 %v1097_v31, %v860_v27  ;;  %v1119_v36 = vadd.f32 %v1118_v33, %v1117_v30  ;;  %v1120_v37 = vpop.f32.mrb[6].mxu1 }
 0x164   :  { %v1121_v38 = vpop.f32.mrb[7].mxu1 }
 0x165   :  { %v940_v39 = vadd.f32 %v1119_v36, %v900_v35 }
 0x167   :  { %v1034_v40 = vmul.f32 -1.442695, %v940_v39 }
 0x169   :  { %1195 = vpow2.f32 %v1034_v40 }
 0x173   :  { %v1196_v41 = vpop.eup %1195 }
 0x174   :  { %v948_v42 = vadd.f32 1.0, %v1196_v41 }
 0x176   :  { %1197 = vrcp.f32 %v948_v42 }
 0x180   :  { %v1198_v43 = vpop.eup %1197 }
 0x181   :  { %952 = vst.msk [vmem:[#allocation10] sm:$0x3] %vm951_vm2, %v1198_v43 }
 0x182   :  { %1298 = shalt.err (!%p1295_p8)
}
 0x183   :  { %s1299_s13 = scalar_lea.hbm %s1446_s4, 32 }
 0x184   :  { %p1300_p9 = scmp.ne.s32.totalorder %s1446_s4, %s1299_s13  ;;  %p1303_p10 = scmp.lt.u32.totalorder %s1299_s13, %s1446_s4 }
 0x186   :  { %p1305_p11 = pnand %p1303_p10, %p1300_p9 }
 0x188   :  { %1308 = shalt.err (!%p1305_p11)
}
 0x189   :  { %962 = dma.vmem_to_hbm [thread:$0]  %s960_s10, 32, %s1446_s4, [#allocation4]  }
 0x18a   :  { %1315 = dma.done.wait [#allocation4], 32  }
 0x18b   :  { %1316 = vsyncadd [#allocation4], 4294967264 }
 0x18c   :  { %966 = vsyncpa [#allocation3], 1 }
 0x18d   :  { %967 = vsyncpa [#allocation6], 1 }
 0x18e   :  { %968 = vsyncpa [#allocation9], 1 }
 0x18f   :  { %969 = vsyncpa [#allocation4], 1 }

</bundles_post_ra>
